<compile_context>
chip_gen: v5e
topology: v5e:2x2
jax: 0.10.0
libtpu: 0.0.40
codegen_flags: <defaults>
</compile_context>

<pallas_src>
import math
import numpy as np
import jax
import jax.numpy as jnp
from jax.experimental import pallas as pl
from jax.experimental.pallas import tpu as pltpu

# ---- OSGDecoder constants (n_features=32, hidden=64, decoder_output_dim=32) ----
N_PLANES = 6
FEAT_C = 32
HIDDEN = 64
RGB_OUT = 32
SDF_IN = HIDDEN + HIDDEN // 2          # 96

# ---- OffsetNetwork constants (depth=6, width=128, freqs_xyz=10, skips=[4]) ----
FREQS = 10
OFF_WIDTH = 128
OFF_IN = 3 + 3 * FREQS * 2             # 63
OFF_SKIP_IN = OFF_WIDTH + OFF_IN       # 191


def _round_up(x, m):
    return ((x + m - 1) // m) * m


def _softplus(x):
    # numerically-stable softplus (matches torch.nn.Softplus within fp tolerance)
    return jnp.maximum(x, 0.0) + jnp.log1p(jnp.exp(-jnp.abs(x)))


def _lrelu(x):
    # StyleGAN2 bias_act 'lrelu': leaky_relu(slope=0.2) * sqrt(2) gain
    return jnp.where(x >= 0.0, x, 0.2 * x) * math.sqrt(2.0)


# =============================== OSGDecoder kernel ===============================
def _osg_decoder_kernel(clamp_ref, feat_ref, sdf_in_ref,
                        w1_ref, b1_ref, wrgb_ref, brgb_ref,
                        wm_ref, bm_ref, wsdf_x_ref, wsdf_c_ref, bsdf_ref,
                        rgb_ref, sdf_ref):
    # Plane mean + FullyConnectedLayer(32->64) weight_gain folded into w1_ref
    # ([192, 64] bf16, pre-scaled by 1/(6*sqrt(32)) in the wrapper).
    h = jnp.dot(feat_ref[...], w1_ref[...],
                preferred_element_type=jnp.float32) + b1_ref[...]
    x = _softplus(h)                                      # net: FC + Softplus

    # net_rgb: FullyConnectedLayer(64 -> 32) (gain pre-folded); sigmoid*(1.002)-0.001
    rgb = jnp.dot(x, wrgb_ref[...], preferred_element_type=jnp.float32) + brgb_ref[...]
    rgb_ref[...] = jax.nn.sigmoid(rgb) * (1.0 + 2.0 * 0.001) - 0.001

    # sdf_mapper: FullyConnectedLayer(1 -> 32, activation='lrelu'); K=1 -> broadcast mul
    body = sdf_in_ref[...]                                # [rows, 1]
    sdf_code = _lrelu(body * wm_ref[...] + bm_ref[...])   # [rows, 32]

    # net_sdf on cat(x, sdf_code): concat replaced by two split reductions
    # (w_sdf pre-scaled by 1/sqrt(96) and split into [1,64] / [1,32] in wrapper).
    sdf = (jnp.sum(x * wsdf_x_ref[...], axis=-1, keepdims=True)
           + jnp.sum(sdf_code * wsdf_c_ref[...], axis=-1, keepdims=True)
           + bsdf_ref[...] + body)
    sdf_ref[...] = jnp.clip(sdf, clamp_ref[0], clamp_ref[1])


def osg_decoder_forward(sampled_features, body_sdf, params, tile_rows=1024):
    """sampled_features: [N, n_planes, M, C] f32; body_sdf: [N*M, 1] f32."""
    N, P, M, C = sampled_features.shape
    rows = N * M

    # channels-last flatten: [rows, P*C] (plane-major per row), read as bf16
    feat = jnp.transpose(sampled_features, (0, 2, 1, 3)).reshape(rows, P * C)
    feat = feat.astype(jnp.bfloat16)

    # global min/max of body_sdf (tiny scalar reduction kept in JAX glue)
    clamp = jnp.stack([jnp.min(body_sdf) - 0.5,
                       jnp.max(body_sdf) + 0.5]).astype(jnp.float32)

    # pad rows to a tile multiple (cdiv semantics; partial tiles never dropped)
    tile_rows = min(tile_rows, _round_up(rows, 8))
    rows_p = _round_up(rows, tile_rows)
    pad = rows_p - rows
    if pad:
        feat = jnp.pad(feat, ((0, pad), (0, 0)))
        body = jnp.pad(body_sdf, ((0, pad), (0, 0)))
    else:
        body = body_sdf

    # fold plane mean + weight gains into the weights at trace time
    g1 = 1.0 / math.sqrt(FEAT_C)
    w1_tiled = (jnp.tile(params["w1"].T, (N_PLANES, 1)) * (g1 / N_PLANES)).astype(jnp.bfloat16)
    wrgb = params["w_rgb"].T * (1.0 / math.sqrt(HIDDEN))
    wsdf = params["w_sdf"] * (1.0 / math.sqrt(SDF_IN))     # [1, 96]
    wsdf_x = wsdf[:, :HIDDEN]                              # [1, 64]  (x half)
    wsdf_c = wsdf[:, HIDDEN:]                              # [1, 32]  (sdf_code half)

    full = lambda shape: pl.BlockSpec(shape, lambda *_: (0,) * len(shape))
    grid = (pl.cdiv(rows_p, tile_rows),)

    rgb, sdf = pl.pallas_call(
        _osg_decoder_kernel,
        out_shape=(jax.ShapeDtypeStruct((rows_p, RGB_OUT), jnp.float32),
                   jax.ShapeDtypeStruct((rows_p, 1), jnp.float32)),
        grid=grid,
        in_specs=[
            pl.BlockSpec(memory_space=pltpu.MemorySpace.SMEM),        # clamp (2,)
            pl.BlockSpec((tile_rows, P * C), lambda i: (i, 0)),       # features (bf16)
            pl.BlockSpec((tile_rows, 1), lambda i: (i, 0)),           # body_sdf
            full((P * C, HIDDEN)), full((1, HIDDEN)),                 # net.0 (mean folded)
            full((HIDDEN, RGB_OUT)), full((1, RGB_OUT)),              # net_rgb
            full((1, HIDDEN // 2)), full((1, HIDDEN // 2)),           # sdf_mapper
            full((1, HIDDEN)), full((1, HIDDEN // 2)), full((1, 1)),  # net_sdf (split)
        ],
        out_specs=(pl.BlockSpec((tile_rows, RGB_OUT), lambda i: (i, 0)),
                   pl.BlockSpec((tile_rows, 1), lambda i: (i, 0))),
        compiler_params=pltpu.CompilerParams(dimension_semantics=("parallel",)),
    )(clamp, feat, body,
      w1_tiled, params["b1"][None, :],
      wrgb, params["b_rgb"][None, :],
      params["w_map"].T, params["b_map"][None, :],
      wsdf_x, wsdf_c, params["b_sdf"][None, :])
    return rgb[:rows].reshape(N, M, RGB_OUT), sdf[:rows].reshape(N, M, 1)


# ============================= OffsetNetwork kernel ==============================
# New enc column order: [x (3) | sin(2^k x_j) k-major (30) | cos(2^k x_j) (30)].
# perm[new_col] = original Embedder column (x, sin(2^0 x), cos(2^0 x), sin(2^1 x), ...)
_ENC_PERM = np.array(
    [0, 1, 2]
    + [3 + 6 * k + j for k in range(FREQS) for j in range(3)]
    + [6 + 6 * k + j for k in range(FREQS) for j in range(3)],
    dtype=np.int32)


def _offset_kernel(xyz_ref,
                   w0, b0, w1, b1, w2, b2, w3, b3, w4, b4,
                   w5e, w5h, b5, wout, bout, out_ref):
    xyz = xyz_ref[...]                                     # [rows, 3] f32
    # densified Embedder: one sin + one cos over a [rows, 30] slab
    scaled = jnp.concatenate([xyz * float(2.0 ** k) for k in range(FREQS)], axis=-1)
    enc = jnp.concatenate([xyz, jnp.sin(scaled), jnp.cos(scaled)], axis=-1)   # [rows, 63]
    enc_b = enc.astype(jnp.bfloat16)

    def layer(x, w, b):
        y = jnp.dot(x.astype(jnp.bfloat16), w[...],
                    preferred_element_type=jnp.float32) + b[...]
        return jnp.maximum(y, 0.0)                         # ReLU

    h = layer(enc_b, w0, b0)
    h = layer(h, w1, b1)
    h = layer(h, w2, b2)
    h = layer(h, w3, b3)
    h = layer(h, w4, b4)
    # skips=[4]: split matmul instead of materializing concat([enc, h]) [rows, 191]
    h = jnp.maximum(
        jnp.dot(h.astype(jnp.bfloat16), w5h[...], preferred_element_type=jnp.float32)
        + jnp.dot(enc_b, w5e[...], preferred_element_type=jnp.float32)
        + b5[...], 0.0)
    out = jnp.dot(h.astype(jnp.bfloat16), wout[...],
                  preferred_element_type=jnp.float32) + bout[...]
    out_ref[...] = out * 1.0                               # scale_type='linear', scale=1.0


def offset_network_forward(xyz, params, tile_rows=1024):
    """xyz: [rows, 3] f32 -> offsets: [rows, 3] f32."""
    rows = xyz.shape[0]
    tile_rows = min(tile_rows, _round_up(rows, 8))
    rows_p = _round_up(rows, tile_rows)
    pad = rows_p - rows
    xyz_p = jnp.pad(xyz, ((0, pad), (0, 0))) if pad else xyz

    perm = jnp.asarray(_ENC_PERM)
    w0 = params["w0"].T[perm, :].astype(jnp.bfloat16)          # [63, 128] (new enc order)
    w5_t = params["w5"].T                                      # [191, 128]
    w5e = w5_t[:OFF_IN][perm, :].astype(jnp.bfloat16)          # [63, 128] (enc half)
    w5h = w5_t[OFF_IN:].astype(jnp.bfloat16)                   # [128, 128] (h half)
    wout = params["w_out"].T.astype(jnp.bfloat16)              # [128, 3]

    full = lambda shape: pl.BlockSpec(shape, lambda *_: (0,) * len(shape))

    args = [xyz_p, w0, params["b0"][None, :]]
    in_specs = [pl.BlockSpec((tile_rows, 3), lambda i: (i, 0)),
                full((OFF_IN, OFF_WIDTH)), full((1, OFF_WIDTH))]
    for i in range(1, 5):
        args += [params[f"w{i}"].T.astype(jnp.bfloat16), params[f"b{i}"][None, :]]
        in_specs += [full((OFF_WIDTH, OFF_WIDTH)), full((1, OFF_WIDTH))]
    args += [w5e, w5h, params["b5"][None, :], wout, params["b_out"][None, :]]
    in_specs += [full((OFF_IN, OFF_WIDTH)), full((OFF_WIDTH, OFF_WIDTH)),
                 full((1, OFF_WIDTH)), full((OFF_WIDTH, 3)), full((1, 3))]

    out = pl.pallas_call(
        _offset_kernel,
        out_shape=jax.ShapeDtypeStruct((rows_p, 3), jnp.float32),
        grid=(pl.cdiv(rows_p, tile_rows),),
        in_specs=in_specs,
        out_specs=pl.BlockSpec((tile_rows, 3), lambda i: (i, 0)),
        compiler_params=pltpu.CompilerParams(dimension_semantics=("parallel",)),
    )(*args)
    return out[:rows]


# ============================ face_vertices (JAX glue) ===========================
# TODO(synk): data-dependent gather kept in plain JAX (indexing, not a Pallas hot path).
def face_vertices_jax(vertices, faces):
    """vertices [bs, nv, 3], faces [bs, nf, 3] int -> [bs, nf, 3, 3]."""
    bs, nv = vertices.shape[:2]
    offs = faces + (jnp.arange(bs, dtype=faces.dtype) * nv)[:, None, None]
    flat = vertices.reshape(bs * nv, vertices.shape[-1])
    return flat[offs]


# ============================= deterministic params ==============================
def init_decoder_params(key):
    ks = jax.random.split(key, 8)
    return {
        "w1":    jax.random.normal(ks[0], (HIDDEN, FEAT_C), jnp.float32),
        "b1":    0.1 * jax.random.normal(ks[1], (HIDDEN,), jnp.float32),
        "w_rgb": jax.random.normal(ks[2], (RGB_OUT, HIDDEN), jnp.float32),
        "b_rgb": 0.1 * jax.random.normal(ks[3], (RGB_OUT,), jnp.float32),
        "w_map": jax.random.normal(ks[4], (HIDDEN // 2, 1), jnp.float32),
        "b_map": 0.1 * jax.random.normal(ks[5], (HIDDEN // 2,), jnp.float32),
        "w_sdf": jax.random.normal(ks[6], (1, SDF_IN), jnp.float32),   # xavier_uniform in torch; synthetic here
        "b_sdf": 0.1 * jax.random.normal(ks[7], (1,), jnp.float32),
    }


def init_offset_params(key):
    dims_in = [OFF_IN, OFF_WIDTH, OFF_WIDTH, OFF_WIDTH, OFF_WIDTH, OFF_SKIP_IN]
    ks = jax.random.split(key, 14)
    p = {}
    for i, din in enumerate(dims_in):
        p[f"w{i}"] = jax.random.normal(ks[2 * i], (OFF_WIDTH, din), jnp.float32) / math.sqrt(din)
        p[f"b{i}"] = 0.1 * jax.random.normal(ks[2 * i + 1], (OFF_WIDTH,), jnp.float32)
    p["w_out"] = jax.random.normal(ks[12], (3, OFF_WIDTH), jnp.float32) / math.sqrt(OFF_WIDTH)
    p["b_out"] = 0.1 * jax.random.normal(ks[13], (3,), jnp.float32)
    return p


# =============================== pure-JAX references =============================
def osg_decoder_ref(sampled_features, body_sdf, p):
    x = sampled_features.mean(axis=1)            # [N, M, C]
    N, M, C = x.shape
    x = x.reshape(N * M, C)
    h = x @ (p["w1"].T * (1.0 / math.sqrt(FEAT_C))) + p["b1"]
    x = _softplus(h)
    rgb = x @ (p["w_rgb"].T * (1.0 / math.sqrt(HIDDEN))) + p["b_rgb"]
    rgb = jax.nn.sigmoid(rgb) * 1.002 - 0.001
    sdf_code = _lrelu(body_sdf @ p["w_map"].T + p["b_map"])
    h2 = jnp.concatenate([x, sdf_code], axis=-1)
    sdf = h2 @ (p["w_sdf"].T * (1.0 / math.sqrt(SDF_IN))) + p["b_sdf"]
    sdf = sdf + body_sdf
    sdf = jnp.clip(sdf, jnp.min(body_sdf) - 0.5, jnp.max(body_sdf) + 0.5)
    return rgb.reshape(N, M, RGB_OUT), sdf.reshape(N, M, 1)


def offset_network_ref(xyz, p):
    parts = [xyz]
    for k in range(FREQS):
        fx = (2.0 ** k) * xyz
        parts += [jnp.sin(fx), jnp.cos(fx)]
    enc = jnp.concatenate(parts, axis=-1)
    h = enc
    for i in range(6):
        h = jnp.maximum(h @ p[f"w{i}"].T + p[f"b{i}"], 0.0)
        if i == 4:
            h = jnp.concatenate([enc, h], axis=-1)
    return (h @ p["w_out"].T + p["b_out"]) * 1.0


# ===================================== main ======================================
if __name__ == "__main__":
    key = jax.random.PRNGKey(0)
    k_feat, k_sdf, k_xyz, k_v, k_f, k_dec, k_off = jax.random.split(key, 7)

    N, M = 2, 256                                          # batch, rays*samples per batch
    sampled_features = jax.random.normal(k_feat, (N, N_PLANES, M, FEAT_C), jnp.float32)
    body_sdf = 0.1 * jax.random.normal(k_sdf, (N * M, 1), jnp.float32)
    xyz = 0.5 * jax.random.normal(k_xyz, (N * M, 3), jnp.float32)
    verts = jax.random.normal(k_v, (N, 128, 3), jnp.float32)
    faces = jax.random.randint(k_f, (N, 64, 3), 0, 128, dtype=jnp.int32)

    dec_p = init_decoder_params(k_dec)
    off_p = init_offset_params(k_off)

    rgb, sdf = osg_decoder_forward(sampled_features, body_sdf, dec_p)
    offsets = offset_network_forward(xyz, off_p)
    triangles = face_vertices_jax(verts, faces)
    jax.block_until_ready((rgb, sdf, offsets, triangles))

    # correctness check against pure-JAX f32 reference
    rgb_ref, sdf_ref = osg_decoder_ref(sampled_features, body_sdf, dec_p)
    off_ref = offset_network_ref(xyz, off_p)
    np.testing.assert_allclose(np.asarray(rgb), np.asarray(rgb_ref), rtol=2e-2, atol=2e-2)
    np.testing.assert_allclose(np.asarray(sdf), np.asarray(sdf_ref), rtol=2e-2, atol=2e-2)
    # offset MLP runs its 7 matmuls in bf16 (per perf review) -> slightly looser tol
    np.testing.assert_allclose(np.asarray(offsets), np.asarray(off_ref), rtol=5e-2, atol=5e-2)
    assert rgb.shape == (N, M, RGB_OUT) and sdf.shape == (N, M, 1)
    assert offsets.shape == (N * M, 3)
    assert triangles.shape == (N, 64, 3, 3)

    print("KERNEL_OK")
</pallas_src>

<mosaic_0001>
module attributes {stable_mosaic.version = 11 : i64} {
  func.func @_osg_decoder_kernel(%arg0: i32, %arg1: memref<2xf32, #tpu.memory_space<smem>>, %arg2: memref<512x192xbf16, #tpu.memory_space<vmem>>, %arg3: memref<512x1xf32, #tpu.memory_space<vmem>>, %arg4: memref<192x64xbf16, #tpu.memory_space<vmem>>, %arg5: memref<1x64xf32, #tpu.memory_space<vmem>>, %arg6: memref<64x32xf32, #tpu.memory_space<vmem>>, %arg7: memref<1x32xf32, #tpu.memory_space<vmem>>, %arg8: memref<1x32xf32, #tpu.memory_space<vmem>>, %arg9: memref<1x32xf32, #tpu.memory_space<vmem>>, %arg10: memref<1x64xf32, #tpu.memory_space<vmem>>, %arg11: memref<1x32xf32, #tpu.memory_space<vmem>>, %arg12: memref<1x1xf32, #tpu.memory_space<vmem>>, %arg13: memref<512x32xf32, #tpu.memory_space<vmem>>, %arg14: memref<512x1xf32, #tpu.memory_space<vmem>>) attributes {dimension_semantics = [#tpu.dimension_semantics<parallel>], iteration_bounds = array<i64: 1>, scalar_prefetch = 0 : i64, scratch_operands = 0 : i64, tpu.core_type = #tpu.core_type<tc>, window_params = [{transform_indices = @transform_0, window_bounds = array<i64: 2>}, {transform_indices = @transform_1, window_bounds = array<i64: 512, 192>}, {transform_indices = @transform_2, window_bounds = array<i64: 512, 1>}, {pipeline_mode = #tpu.pipeline_mode<synchronous>, transform_indices = @transform_3, window_bounds = array<i64: 192, 64>}, {pipeline_mode = #tpu.pipeline_mode<synchronous>, transform_indices = @transform_4, window_bounds = array<i64: 1, 64>}, {pipeline_mode = #tpu.pipeline_mode<synchronous>, transform_indices = @transform_5, window_bounds = array<i64: 64, 32>}, {pipeline_mode = #tpu.pipeline_mode<synchronous>, transform_indices = @transform_6, window_bounds = array<i64: 1, 32>}, {pipeline_mode = #tpu.pipeline_mode<synchronous>, transform_indices = @transform_7, window_bounds = array<i64: 1, 32>}, {pipeline_mode = #tpu.pipeline_mode<synchronous>, transform_indices = @transform_8, window_bounds = array<i64: 1, 32>}, {pipeline_mode = #tpu.pipeline_mode<synchronous>, transform_indices = @transform_9, window_bounds = array<i64: 1, 64>}, {pipeline_mode = #tpu.pipeline_mode<synchronous>, transform_indices = @transform_10, window_bounds = array<i64: 1, 32>}, {pipeline_mode = #tpu.pipeline_mode<synchronous>, transform_indices = @transform_11, window_bounds = array<i64: 1, 1>}, {transform_indices = @transform_12, window_bounds = array<i64: 512, 32>}, {transform_indices = @transform_13, window_bounds = array<i64: 512, 1>}]} {
    %c0 = arith.constant 0 : index
    %c0_0 = arith.constant 0 : index
    %0 = vector.load %arg2[%c0, %c0_0] : memref<512x192xbf16, #tpu.memory_space<vmem>>, vector<512x192xbf16>
    %c0_1 = arith.constant 0 : index
    %c0_2 = arith.constant 0 : index
    %1 = vector.load %arg4[%c0_1, %c0_2] : memref<192x64xbf16, #tpu.memory_space<vmem>>, vector<192x64xbf16>
    %cst = arith.constant dense<0.000000e+00> : vector<512x64xf32>
    %2 = tpu.matmul %0, %1, %cst {dimension_numbers = #tpu.dot_dimension_numbers<[1], [0], [0], [1], [0, 0, 1, 1], [], []>} : vector<512x192xbf16>, vector<192x64xbf16>, vector<512x64xf32> -> vector<512x64xf32>
    %c0_3 = arith.constant 0 : index
    %c0_4 = arith.constant 0 : index
    %3 = vector.load %arg5[%c0_3, %c0_4] : memref<1x64xf32, #tpu.memory_space<vmem>>, vector<1x64xf32>
    %4 = vector.broadcast %3 : vector<1x64xf32> to vector<512x64xf32>
    %5 = arith.addf %2, %4 : vector<512x64xf32>
    %cst_5 = arith.constant 0.000000e+00 : f32
    %6 = vector.broadcast %cst_5 : f32 to vector<512x64xf32>
    %7 = arith.maximumf %5, %6 : vector<512x64xf32>
    %8 = math.absf %5 : vector<512x64xf32>
    %cst_6 = arith.constant 0.000000e+00 : f32
    %9 = vector.broadcast %cst_6 : f32 to vector<512x64xf32>
    %10 = arith.subf %9, %8 : vector<512x64xf32>
    %11 = math.exp %10 : vector<512x64xf32>
    %12 = math.log1p %11 : vector<512x64xf32>
    %13 = arith.addf %7, %12 : vector<512x64xf32>
    %c0_7 = arith.constant 0 : index
    %c0_8 = arith.constant 0 : index
    %14 = vector.load %arg6[%c0_7, %c0_8] : memref<64x32xf32, #tpu.memory_space<vmem>>, vector<64x32xf32>
    %cst_9 = arith.constant dense<0.000000e+00> : vector<512x32xf32>
    %15 = tpu.matmul %13, %14, %cst_9 {dimension_numbers = #tpu.dot_dimension_numbers<[1], [0], [0], [1], [0, 0, 1, 1], [], []>} : vector<512x64xf32>, vector<64x32xf32>, vector<512x32xf32> -> vector<512x32xf32>
    %c0_10 = arith.constant 0 : index
    %c0_11 = arith.constant 0 : index
    %16 = vector.load %arg7[%c0_10, %c0_11] : memref<1x32xf32, #tpu.memory_space<vmem>>, vector<1x32xf32>
    %17 = vector.broadcast %16 : vector<1x32xf32> to vector<512x32xf32>
    %18 = arith.addf %15, %17 : vector<512x32xf32>
    %19 = arith.negf %18 : vector<512x32xf32>
    %20 = math.exp %19 : vector<512x32xf32>
    %cst_12 = arith.constant 1.000000e+00 : f32
    %21 = vector.broadcast %cst_12 : f32 to vector<512x32xf32>
    %22 = arith.addf %21, %20 : vector<512x32xf32>
    %23 = arith.divf %21, %22 : vector<512x32xf32>
    %cst_13 = arith.constant 1.002000e+00 : f32
    %24 = vector.broadcast %cst_13 : f32 to vector<512x32xf32>
    %25 = arith.mulf %23, %24 : vector<512x32xf32>
    %cst_14 = arith.constant 1.000000e-03 : f32
    %26 = vector.broadcast %cst_14 : f32 to vector<512x32xf32>
    %27 = arith.subf %25, %26 : vector<512x32xf32>
    %c0_15 = arith.constant 0 : index
    %c0_16 = arith.constant 0 : index
    %28 = vector.load %arg13[%c0_15, %c0_16] : memref<512x32xf32, #tpu.memory_space<vmem>>, vector<512x32xf32>
    tpu.vector_store %arg13[%c0_15, %c0_16], %27 {strides = array<i32>} : memref<512x32xf32, #tpu.memory_space<vmem>>, vector<512x32xf32>,
    %c0_17 = arith.constant 0 : index
    %c0_18 = arith.constant 0 : index
    %29 = vector.load %arg3[%c0_17, %c0_18] : memref<512x1xf32, #tpu.memory_space<vmem>>, vector<512x1xf32>
    %c0_19 = arith.constant 0 : index
    %c0_20 = arith.constant 0 : index
    %30 = vector.load %arg8[%c0_19, %c0_20] : memref<1x32xf32, #tpu.memory_space<vmem>>, vector<1x32xf32>
    %31 = vector.broadcast %29 : vector<512x1xf32> to vector<512x32xf32>
    %32 = vector.broadcast %30 : vector<1x32xf32> to vector<512x32xf32>
    %33 = arith.mulf %31, %32 : vector<512x32xf32>
    %c0_21 = arith.constant 0 : index
    %c0_22 = arith.constant 0 : index
    %34 = vector.load %arg9[%c0_21, %c0_22] : memref<1x32xf32, #tpu.memory_space<vmem>>, vector<1x32xf32>
    %35 = vector.broadcast %34 : vector<1x32xf32> to vector<512x32xf32>
    %36 = arith.addf %33, %35 : vector<512x32xf32>
    %cst_23 = arith.constant 0.000000e+00 : f32
    %37 = vector.broadcast %cst_23 : f32 to vector<512x32xf32>
    %38 = arith.cmpf oge, %36, %37 : vector<512x32xf32>
    %cst_24 = arith.constant 2.000000e-01 : f32
    %39 = vector.broadcast %cst_24 : f32 to vector<512x32xf32>
    %40 = arith.mulf %39, %36 : vector<512x32xf32>
    %41 = arith.select %38, %36, %40 : vector<512x32xi1>, vector<512x32xf32>
    %cst_25 = arith.constant 1.41421354 : f32
    %42 = vector.broadcast %cst_25 : f32 to vector<512x32xf32>
    %43 = arith.mulf %41, %42 : vector<512x32xf32>
    %c0_26 = arith.constant 0 : index
    %c0_27 = arith.constant 0 : index
    %44 = vector.load %arg10[%c0_26, %c0_27] : memref<1x64xf32, #tpu.memory_space<vmem>>, vector<1x64xf32>
    %45 = vector.broadcast %44 : vector<1x64xf32> to vector<512x64xf32>
    %46 = arith.mulf %13, %45 : vector<512x64xf32>
    %cst_28 = arith.constant dense<0.000000e+00> : vector<512xf32>
    %47 = vector.multi_reduction <add>, %46, %cst_28 [1] : vector<512x64xf32> to vector<512xf32>
    %48 = vector.shape_cast %47 : vector<512xf32> to vector<512x1xf32>
    %c0_29 = arith.constant 0 : index
    %c0_30 = arith.constant 0 : index
    %49 = vector.load %arg11[%c0_29, %c0_30] : memref<1x32xf32, #tpu.memory_space<vmem>>, vector<1x32xf32>
    %50 = vector.broadcast %49 : vector<1x32xf32> to vector<512x32xf32>
    %51 = arith.mulf %43, %50 : vector<512x32xf32>
    %cst_31 = arith.constant dense<0.000000e+00> : vector<512xf32>
    %52 = vector.multi_reduction <add>, %51, %cst_31 [1] : vector<512x32xf32> to vector<512xf32>
    %53 = vector.shape_cast %52 : vector<512xf32> to vector<512x1xf32>
    %54 = arith.addf %48, %53 : vector<512x1xf32>
    %c0_32 = arith.constant 0 : index
    %c0_33 = arith.constant 0 : index
    %55 = vector.load %arg12[%c0_32, %c0_33] : memref<1x1xf32, #tpu.memory_space<vmem>>, vector<1x1xf32>
    %56 = vector.broadcast %55 : vector<1x1xf32> to vector<512x1xf32>
    %57 = arith.addf %54, %56 : vector<512x1xf32>
    %58 = arith.addf %57, %29 : vector<512x1xf32>
    %c0_34 = arith.constant 0 : index
    %59 = memref.load %arg1[%c0_34] : memref<2xf32, #tpu.memory_space<smem>>
    %c1 = arith.constant 1 : index
    %60 = memref.load %arg1[%c1] : memref<2xf32, #tpu.memory_space<smem>>
    %61 = vector.broadcast %59 : f32 to vector<512x1xf32>
    %62 = arith.maximumf %61, %58 : vector<512x1xf32>
    %63 = vector.broadcast %60 : f32 to vector<512x1xf32>
    %64 = arith.minimumf %63, %62 : vector<512x1xf32>
    %c0_35 = arith.constant 0 : index
    %c0_36 = arith.constant 0 : index
    %65 = vector.load %arg14[%c0_35, %c0_36] : memref<512x1xf32, #tpu.memory_space<vmem>>, vector<512x1xf32>
    tpu.vector_store %arg14[%c0_35, %c0_36], %64 {strides = array<i32>} : memref<512x1xf32, #tpu.memory_space<vmem>>, vector<512x1xf32>,
    return
  }
  func.func @transform_0(%arg0: i32) -> i32 {
    %c0_i32 = arith.constant 0 : i32
    %c0_i32_0 = arith.constant 0 : i32
    return %c0_i32 : i32
  }
  func.func @transform_1(%arg0: i32) -> (i32, i32) {
    %c0_i32 = arith.constant 0 : i32
    %c0_i32_0 = arith.constant 0 : i32
    return %arg0, %c0_i32 : i32, i32
  }
  func.func @transform_2(%arg0: i32) -> (i32, i32) {
    %c0_i32 = arith.constant 0 : i32
    %c0_i32_0 = arith.constant 0 : i32
    return %arg0, %c0_i32 : i32, i32
  }
  func.func @transform_3(%arg0: i32) -> (i32, i32) {
    %c0_i32 = arith.constant 0 : i32
    %c0_i32_0 = arith.constant 0 : i32
    %c0_i32_1 = arith.constant 0 : i32
    return %c0_i32, %c0_i32_0 : i32, i32
  }
  func.func @transform_4(%arg0: i32) -> (i32, i32) {
    %c0_i32 = arith.constant 0 : i32
    %c0_i32_0 = arith.constant 0 : i32
    %c0_i32_1 = arith.constant 0 : i32
    return %c0_i32, %c0_i32_0 : i32, i32
  }
  func.func @transform_5(%arg0: i32) -> (i32, i32) {
    %c0_i32 = arith.constant 0 : i32
    %c0_i32_0 = arith.constant 0 : i32
    %c0_i32_1 = arith.constant 0 : i32
    return %c0_i32, %c0_i32_0 : i32, i32
  }
  func.func @transform_6(%arg0: i32) -> (i32, i32) {
    %c0_i32 = arith.constant 0 : i32
    %c0_i32_0 = arith.constant 0 : i32
    %c0_i32_1 = arith.constant 0 : i32
    return %c0_i32, %c0_i32_0 : i32, i32
  }
  func.func @transform_7(%arg0: i32) -> (i32, i32) {
    %c0_i32 = arith.constant 0 : i32
    %c0_i32_0 = arith.constant 0 : i32
    %c0_i32_1 = arith.constant 0 : i32
    return %c0_i32, %c0_i32_0 : i32, i32
  }
  func.func @transform_8(%arg0: i32) -> (i32, i32) {
    %c0_i32 = arith.constant 0 : i32
    %c0_i32_0 = arith.constant 0 : i32
    %c0_i32_1 = arith.constant 0 : i32
    return %c0_i32, %c0_i32_0 : i32, i32
  }
  func.func @transform_9(%arg0: i32) -> (i32, i32) {
    %c0_i32 = arith.constant 0 : i32
    %c0_i32_0 = arith.constant 0 : i32
    %c0_i32_1 = arith.constant 0 : i32
    return %c0_i32, %c0_i32_0 : i32, i32
  }
  func.func @transform_10(%arg0: i32) -> (i32, i32) {
    %c0_i32 = arith.constant 0 : i32
    %c0_i32_0 = arith.constant 0 : i32
    %c0_i32_1 = arith.constant 0 : i32
    return %c0_i32, %c0_i32_0 : i32, i32
  }
  func.func @transform_11(%arg0: i32) -> (i32, i32) {
    %c0_i32 = arith.constant 0 : i32
    %c0_i32_0 = arith.constant 0 : i32
    %c0_i32_1 = arith.constant 0 : i32
    return %c0_i32, %c0_i32_0 : i32, i32
  }
  func.func @transform_12(%arg0: i32) -> (i32, i32) {
    %c0_i32 = arith.constant 0 : i32
    %c0_i32_0 = arith.constant 0 : i32
    return %arg0, %c0_i32 : i32, i32
  }
  func.func @transform_13(%arg0: i32) -> (i32, i32) {
    %c0_i32 = arith.constant 0 : i32
    %c0_i32_0 = arith.constant 0 : i32
    return %arg0, %c0_i32 : i32, i32
  }
}

</mosaic_0001>

<bundles_post_ra>
// kernel: tpu_custom_call.1
= control target key start
LH: loop header
LB: loop body
LE: loop exit
PB: predicated region body
PF: predicated region fallthrough
CT: control target
= control target key end

     0   :  { %s11690_s0 = inlined_call_operand.vmem [shape: f32[2], index: 0, kind: input, shape index: {}]   ;;  %s11691_s1 = inlined_call_operand.vmem [shape: bf16[512,192], index: 1, kind: input, shape index: {}]   ;;  %s11692_s2 = inlined_call_operand.vmem [shape: f32[512,1], index: 2, kind: input, shape index: {}]   ;;  %s11693_s3 = inlined_call_operand.vmem [shape: bf16[192,64], index: 3, kind: input, shape index: {}]   ;;  %s11694_s4 = inlined_call_operand.vmem [shape: f32[1,64], index: 4, kind: input, shape index: {}]   ;;  %s11695_s5 = inlined_call_operand.vmem [shape: f32[64,32], index: 5, kind: input, shape index: {}]   ;;  %s11696_s6 = inlined_call_operand.vmem [shape: f32[1,32], index: 6, kind: input, shape index: {}]   ;;  %s11697_s7 = inlined_call_operand.vmem [shape: f32[1,32], index: 7, kind: input, shape index: {}]   ;;  %s11698_s8 = inlined_call_operand.vmem [shape: f32[1,32], index: 8, kind: input, shape index: {}]   ;;  %s11699_s9 = inlined_call_operand.vmem [shape: f32[1,64], index: 9, kind: input, shape index: {}]   ;;  %s11700_s10 = inlined_call_operand.vmem [shape: f32[1,32], index: 10, kind: input, shape index: {}]   ;;  %s11701_s11 = inlined_call_operand.<no memory space> [shape: f32[1,1], index: 11, kind: input, shape index: {}]   ;;  %s11702_s12 = inlined_call_operand.vmem [shape: f32[512,32], index: 12, kind: output, shape index: {0}]   ;;  %s11703_s13 = inlined_call_operand.vmem [shape: f32[512,1], index: 13, kind: output, shape index: {1}]  }
   0x1   :  { %v19_v0 = vstv %s11701_s11 }
   0x2   :  { %20 = vst [vmem:[#allocation2] sm:$0x1] %v19_v0 }
   0x3   :  { %21 = vsyncpa [#allocation4], 0  ;;  %s27_s29 = sshll.u32 %s11690_s0, 4  ;;  %s6685_s30 = smov [#allocation3]   ;;  %s28_s29 = int_to_ptr.vmem [resolvable:$true] %s27_s29 }
   0x4   :  { %30 = dma.vmem_to_smem %s28_s29, 16, %s6685_s30, [#allocation4]  }
   0x5   :  { %6683 = dma.done.wait [#allocation4], 16  }
   0x6   :  { %6684 = vsyncadd [#allocation4], 4294967280 }
   0x7   :  { %57 = sfence }
   0x8   :  { %v3732_v1 = vld [vmem:[%s11692_s2 + $0x20] sm:$0xff]  ;;  %v3730_v2 = vld [vmem:[%s11692_s2 + $0x10] sm:$0xff]  ;;  %v6686_v4 = vmov 0   ;;  %v6026_v5 = vld [vmem:[%s11693_s3 + $0x38] sm:$0xff]  ;;  %vm511_vm0 = vcmask 523264   ;;  %vm3663_vm7 = vcmask 261120  }
   0x9   :  { %v3728_v3 = vld [vmem:[%s11692_s2] sm:$0xff]  ;;  %6055 = vset.pattern.permute.xlu2 %v6686_v4  ;;  %6054 = vset.pattern.permute.xlu1 %v6686_v4  ;;  %v6778_v6 = vld [vmem:[%s11693_s3 + $0x58] sm:$0xff]  ;;  %v6025_v7 = vld [vmem:[%s11693_s3 + $0x30] sm:$0xff]  ;;  %s8545_s17 = sld [smem:[#allocation3]] }
   0xa   :  { %6053 = vset.pattern.permute.xlu0 %v6686_v4  ;;  %3815 = vperm.xlu2 %6055, %v3732_v1   ;;  %v6787_v8 = vld [vmem:[%s11693_s3 + $0x50] sm:$0xff]  ;;  %v3733_v9 = vld [vmem:[%s11692_s2 + $0x28] sm:$0xff]  ;;  %v3731_v10 = vld [vmem:[%s11692_s2 + $0x18] sm:$0xff]  ;;  %s8558_s11 = sld [smem:[#allocation3 + $0x1]] }
   0xb   :  { %3805 = vperm.xlu1 %6054, %v3730_v2   ;;  %3795 = vperm.xlu0 %6053, %v3728_v3   ;;  %v3729_v11 = vld [vmem:[%s11692_s2 + $0x8] sm:$0xff]  ;;  %v6023_v14 = vld [vmem:[%s11693_s3 + $0x20] sm:$0xff]  ;;  %v3735_v19 = vld [vmem:[%s11692_s2 + $0x38] sm:$0xff] }
   0xc   :  { %608 = vmatpush.bf16.msra.mxu0 %v6026_v5  ;;  %6031 = vmatpush.bf16.msra.mxu3 %v6026_v5  ;;  %v6024_v12 = vld [vmem:[%s11693_s3 + $0x28] sm:$0xff]  ;;  %v6813_v15 = vld [vmem:[%s11693_s3 + $0x40] sm:$0xff]  ;;  %v3734_v20 = vld [vmem:[%s11692_s2 + $0x30] sm:$0xff] }
   0xd   :  { %781 = vmatpush.bf16.msra.mxu1 %v6778_v6  ;;  %v6805_v13 = vld [vmem:[%s11693_s3 + $0x48] sm:$0xff]  ;;  %v5955_v16 = vld [vmem:[%s11691_s1 + $0x4] sm:$0xf]  ;;  %v6022_v22 = vld [vmem:[%s11693_s3 + $0x18] sm:$0xff] }
   0xe   :  { %v5430_v17 = vld [vmem:[%s11691_s1 + $0x8] sm:$0xf0]  ;;  %v3736_v18 = vld [vmem:[%s11692_s2 + $0x40] sm:$0xff]  ;;  %v6021_v23 = vld [vmem:[%s11693_s3 + $0x10] sm:$0xff] }
   0xf   :  { %v5433_v21 = vor.u32 %v5955_v16, %v5430_v17  ;;  %v3739_v24 = vld [vmem:[%s11692_s2 + $0x58] sm:$0xff]  ;;  %v3738_v25 = vld [vmem:[%s11692_s2 + $0x50] sm:$0xff]  ;;  %v3737_v26 = vld [vmem:[%s11692_s2 + $0x48] sm:$0xff] }
  0x10   :  { %609 = vmatpush.bf16.msra.mxu0 %v6025_v7  ;;  %6032 = vmatpush.bf16.msra.mxu3 %v6025_v7  ;;  %v6020_v27 = vld [vmem:[%s11693_s3 + $0x8] sm:$0xff]  ;;  %v6019_v28 = vld [vmem:[%s11693_s3] sm:$0xff]  ;;  %v5957_v33 = vld [vmem:[%s11691_s1 + $0x14] sm:$0xf] }
  0x11   :  { %782 = vmatpush.bf16.msra.mxu1 %v6787_v8  ;;  %v5428_v29 = vld [vmem:[%s11691_s1] sm:$0xf]  ;;  %v5956_v30 = vld [vmem:[%s11691_s1 + $0x4] sm:$0xf0]  ;;  %v5438_v34 = vld [vmem:[%s11691_s1 + $0x18] sm:$0xf0] }
  0x12   :  { %3820 = vperm.xlu2 %6055, %v3733_v9   ;;  %v5620_v31 = vld [vmem:[%s11691_s1 + $0x180] sm:$0xf]  ;;  %v6004_v32 = vld [vmem:[%s11691_s1 + $0x184] sm:$0xf0]  ;;  %v3742_v35 = vld [vmem:[%s11692_s2 + $0x70] sm:$0xff]  ;;  %v5429_v38 = vor.u32 %v5956_v30, %v5428_v29  ;;  %v5441_v40 = vor.u32 %v5957_v33, %v5438_v34 }
  0x13   :  { %3810 = vperm.xlu1 %6054, %v3731_v10   ;;  %3800 = vperm.xlu0 %6053, %v3729_v11   ;;  %v3741_v36 = vld [vmem:[%s11692_s2 + $0x68] sm:$0xff]  ;;  %v3740_v37 = vld [vmem:[%s11692_s2 + $0x60] sm:$0xff]  ;;  %v5621_v39 = vor.u32 %v6004_v32, %v5620_v31  ;;  %v3743_v43 = vld [vmem:[%s11692_s2 + $0x78] sm:$0xff] }
  0x14   :  { %610 = vmatpush.bf16.msra.mxu0 %v6024_v12  ;;  %6033 = vmatpush.bf16.msra.mxu3 %v6024_v12  ;;  %v3745_v41 = vld [vmem:[%s11692_s2 + $0x88] sm:$0xff]  ;;  %v3744_v42 = vld [vmem:[%s11692_s2 + $0x80] sm:$0xff]  ;;  %v5436_v44 = vld [vmem:[%s11691_s1 + $0x10] sm:$0xf] }
  0x15   :  { %783 = vmatpush.bf16.msra.mxu1 %v6805_v13  ;;  %v5958_v45 = vld [vmem:[%s11691_s1 + $0x14] sm:$0xf0]  ;;  %v5628_v46 = vld [vmem:[%s11691_s1 + $0x190] sm:$0xf]  ;;  %v5959_v48 = vld [vmem:[%s11691_s1 + $0x24] sm:$0xf] }
  0x16   :  { %v6006_v47 = vld [vmem:[%s11691_s1 + $0x194] sm:$0xf0]  ;;  %v5446_v49 = vld [vmem:[%s11691_s1 + $0x28] sm:$0xf0]  ;;  %v3748_v50 = vld [vmem:[%s11692_s2 + $0xa0] sm:$0xff]  ;;  %v5437_v53 = vor.u32 %v5958_v45, %v5436_v44 }
  0x17   :  { %v3747_v51 = vld [vmem:[%s11692_s2 + $0x98] sm:$0xff]  ;;  %v3746_v52 = vld [vmem:[%s11692_s2 + $0x90] sm:$0xff]  ;;  %v5629_v54 = vor.u32 %v6006_v47, %v5628_v46  ;;  %v5449_v55 = vor.u32 %v5959_v48, %v5446_v49  ;;  %v3749_v58 = vld [vmem:[%s11692_s2 + $0xa8] sm:$0xff] }
  0x18   :  { %611 = vmatpush.bf16.msra.mxu0 %v6023_v14  ;;  %6034 = vmatpush.bf16.msra.mxu3 %v6023_v14  ;;  %v3751_v56 = vld [vmem:[%s11692_s2 + $0xb8] sm:$0xff]  ;;  %v3750_v57 = vld [vmem:[%s11692_s2 + $0xb0] sm:$0xff]  ;;  %v5444_v59 = vld [vmem:[%s11691_s1 + $0x20] sm:$0xf] }
  0x19   :  { %784 = vmatpush.bf16.msra.mxu1 %v6813_v15  ;;  %v5960_v60 = vld [vmem:[%s11691_s1 + $0x24] sm:$0xf0]  ;;  %v5636_v61 = vld [vmem:[%s11691_s1 + $0x1a0] sm:$0xf]  ;;  %v5961_v63 = vld [vmem:[%s11691_s1 + $0x34] sm:$0xf] }
  0x1a   :  { %3835 = vperm.xlu2 %6055, %v3736_v18   ;;  %v6008_v62 = vld [vmem:[%s11691_s1 + $0x1a4] sm:$0xf0]  ;;  %v5454_v0 = vld [vmem:[%s11691_s1 + $0x38] sm:$0xf0]  ;;  %v3754_v1 = vld [vmem:[%s11692_s2 + $0xd0] sm:$0xff]  ;;  %v5445_v4 = vor.u32 %v5960_v60, %v5444_v59 }
  0x1b   :  { %3830 = vperm.xlu1 %6054, %v3735_v19   ;;  %3825 = vperm.xlu0 %6053, %v3734_v20   ;;  %v3753_v2 = vld [vmem:[%s11692_s2 + $0xc8] sm:$0xff]  ;;  %v3752_v3 = vld [vmem:[%s11692_s2 + $0xc0] sm:$0xff]  ;;  %v5637_v5 = vor.u32 %v6008_v62, %v5636_v61  ;;  %v3755_v9 = vld [vmem:[%s11692_s2 + $0xd8] sm:$0xff] }
  0x1c   :  { %5730 = vmatmul.msk.bf16.vlgmr.msra.gmra.mxu1 %vm511_vm0, %v5433_v21  ;;  %612 = vmatpush.bf16.msra.mxu0 %v6022_v22  ;;  %v3757_v7 = vld [vmem:[%s11692_s2 + $0xe8] sm:$0xff]  ;;  %v5452_v10 = vld [vmem:[%s11691_s1 + $0x30] sm:$0xf]  ;;  %v5962_v11 = vld [vmem:[%s11691_s1 + $0x34] sm:$0xf0] }
  0x1d   :  { %6035 = vmatpush.bf16.msra.mxu3 %v6022_v22  ;;  %v5644_v12 = vld [vmem:[%s11691_s1 + $0x1b0] sm:$0xf]  ;;  %v5963_v14 = vld [vmem:[%s11691_s1 + $0x44] sm:$0xf]  ;;  %v3759_v17 = vld [vmem:[%s11692_s2 + $0xf8] sm:$0xff]  ;;  %v5453_v19 = vor.u32 %v5962_v11, %v5452_v10 }
  0x1e   :  { %v3760_v16 = vld [vmem:[%s11692_s2 + $0x100] sm:$0xff]  ;;  %v3758_v18 = vld [vmem:[%s11692_s2 + $0xf0] sm:$0xff]  ;;  %v3763_v22 = vld [vmem:[%s11692_s2 + $0x118] sm:$0xff] }
  0x1f   :  { %v6012_v29 = vld [vmem:[%s11691_s1 + $0x1c4] sm:$0xf0]  ;;  %v5965_v30 = vld [vmem:[%s11691_s1 + $0x54] sm:$0xf]  ;;  %v5470_v31 = vld [vmem:[%s11691_s1 + $0x58] sm:$0xf0] }
  0x20   :  { %613 = vmatpush.bf16.msra.mxu0 %v6021_v23  ;;  %v3766_v32 = vld [vmem:[%s11692_s2 + $0x130] sm:$0xff]  ;;  %v3765_v33 = vld [vmem:[%s11692_s2 + $0x128] sm:$0xff]  ;;  %v3764_v34 = vld [vmem:[%s11692_s2 + $0x120] sm:$0xff] }
  0x21   :  { %6036 = vmatpush.bf16.msra.mxu3 %v6021_v23  ;;  %v3762_v23 = vld [vmem:[%s11692_s2 + $0x110] sm:$0xff]  ;;  %v6014_v45 = vld [vmem:[%s11691_s1 + $0x1d4] sm:$0xf0]  ;;  %v5967_v46 = vld [vmem:[%s11691_s1 + $0x64] sm:$0xf] }
  0x22   :  { %3850 = vperm.xlu2 %6055, %v3739_v24   ;;  %v3761_v24 = vld [vmem:[%s11692_s2 + $0x108] sm:$0xff]  ;;  %v5660_v44 = vld [vmem:[%s11691_s1 + $0x1d0] sm:$0xf]  ;;  %v3772_v49 = vld [vmem:[%s11692_s2 + $0x160] sm:$0xff] }
  0x23   :  { %3845 = vperm.xlu1 %6054, %v3738_v25   ;;  %3840 = vperm.xlu0 %6053, %v3737_v26   ;;  %v5460_v25 = vld [vmem:[%s11691_s1 + $0x40] sm:$0xf]  ;;  %v5478_v47 = vld [vmem:[%s11691_s1 + $0x68] sm:$0xf0]  ;;  %v5968_v62 = vld [vmem:[%s11691_s1 + $0x64] sm:$0xf0] }
  0x24   :  { %614 = vmatpush.bf16.msra.mxu0 %v6020_v27  ;;  %v3773_v59 = vld [vmem:[%s11692_s2 + $0x168] sm:$0xff]  ;;  %v5476_v61 = vld [vmem:[%s11691_s1 + $0x60] sm:$0xf] }
  0x25   :  { %6037 = vmatpush.bf16.msra.mxu3 %v6020_v27  ;;  %v5964_v27 = vld [vmem:[%s11691_s1 + $0x44] sm:$0xf0] }
  0x28   :  { %615 = vmatpush.bf16.msra.mxu0 %v6019_v28 }
  0x29   :  { %6038 = vmatpush.bf16.msra.mxu3 %v6019_v28  ;;  %v5652_v28 = vld [vmem:[%s11691_s1 + $0x1c0] sm:$0xf] }
  0x2a   :  { %3865 = vperm.xlu2 %6055, %v3742_v35   ;;  %v5461_v35 = vor.u32 %v5964_v27, %v5460_v25  ;;  %v3784_v25 = vld [vmem:[%s11692_s2 + $0x1c0] sm:$0xff]  ;;  %v3783_v27 = vld [vmem:[%s11692_s2 + $0x1b8] sm:$0xff] }
  0x2b   :  { %3860 = vperm.xlu1 %6054, %v3741_v36   ;;  %3855 = vperm.xlu0 %6053, %v3740_v37   ;;  %v5653_v36 = vor.u32 %v6012_v29, %v5652_v28  ;;  %v5473_v37 = vor.u32 %v5965_v30, %v5470_v31  ;;  %v3782_v28 = vld [vmem:[%s11692_s2 + $0x1b0] sm:$0xff] }
  0x2c   :  { %616 = vmatmul.bf16.vlgmr.msra.gmra.mxu0 %v5429_v38  ;;  %736 = vmatmul.bf16.vlgmr.msra.gmra.mxu3 %v5621_v39  ;;  %v3769_v39 = vld [vmem:[%s11692_s2 + $0x148] sm:$0xff] }
  0x2d   :  { %6039 = vmatpush.bf16.msrb.mxu3 %v6778_v6  ;;  %5731 = vmatmul.msk.bf16.gmra.mxu1 %vm511_vm0, %v5441_v40  ;;  %v5457_v6 = vor.u32 %v5961_v63, %v5454_v0  ;;  %v3768_v40 = vld [vmem:[%s11692_s2 + $0x140] sm:$0xff]  ;;  %v6016_v0 = vld [vmem:[%s11691_s1 + $0x1e4] sm:$0xf0] }
  0x2e   :  { %v5668_v63 = vld [vmem:[%s11691_s1 + $0x1e0] sm:$0xf] }
  0x31   :  { %6040 = vmatpush.bf16.msrb.mxu3 %v6787_v8  ;;  %v3756_v8 = vld [vmem:[%s11692_s2 + $0xe0] sm:$0xff] }
  0x32   :  { %3880 = vperm.xlu2 %6055, %v3745_v41   ;;  %v3767_v41 = vld [vmem:[%s11692_s2 + $0x138] sm:$0xff] }
  0x33   :  { %3875 = vperm.xlu1 %6054, %v3744_v42   ;;  %3870 = vperm.xlu0 %6053, %v3743_v43   ;;  %v5468_v42 = vld [vmem:[%s11691_s1 + $0x50] sm:$0xf]  ;;  %v5966_v43 = vld [vmem:[%s11691_s1 + $0x54] sm:$0xf0] }
  0x35   :  { %6041 = vmatpush.bf16.msrb.mxu3 %v6805_v13  ;;  %v6010_v13 = vld [vmem:[%s11691_s1 + $0x1b4] sm:$0xf0] }
  0x36   :  { %v5645_v20 = vor.u32 %v6010_v13, %v5644_v12  ;;  %v3781_v13 = vld [vmem:[%s11692_s2 + $0x1a8] sm:$0xff] }
  0x39   :  { %6042 = vmatpush.bf16.msrb.mxu3 %v6813_v15  ;;  %v5462_v15 = vld [vmem:[%s11691_s1 + $0x48] sm:$0xf0] }
  0x3a   :  { %3895 = vperm.xlu2 %6055, %v3748_v50   ;;  %v5465_v21 = vor.u32 %v5963_v14, %v5462_v15  ;;  %v3771_v50 = vld [vmem:[%s11692_s2 + $0x158] sm:$0xff]  ;;  %v3780_v14 = vld [vmem:[%s11692_s2 + $0x1a0] sm:$0xff] }
  0x3b   :  { %3890 = vperm.xlu1 %6054, %v3747_v51   ;;  %3885 = vperm.xlu0 %6053, %v3746_v52   ;;  %v3770_v51 = vld [vmem:[%s11692_s2 + $0x150] sm:$0xff]  ;;  %v5469_v52 = vor.u32 %v5966_v43, %v5468_v42  ;;  %v3779_v15 = vld [vmem:[%s11692_s2 + $0x198] sm:$0xff] }
  0x3c   :  { %621 = vmatmul.bf16.gmra.mxu0 %v5437_v53  ;;  %741 = vmatmul.bf16.gmra.mxu3 %v5629_v54  ;;  %v5661_v53 = vor.u32 %v6014_v45, %v5660_v44  ;;  %v5481_v54 = vor.u32 %v5967_v46, %v5478_v47  ;;  %v1910_v44 = vld [vmem:[%s11695_s5 + $0x20] sm:$0xff]  ;;  %v1909_v45 = vld [vmem:[%s11695_s5 + $0x18] sm:$0xff]  ;;  %v5972_v47 = vld [vmem:[%s11691_s1 + $0x84] sm:$0xf0] }
  0x3d   :  { %5732 = vmatmul.msk.bf16.gmra.mxu1 %vm511_vm0, %v5449_v55  ;;  %v5492_v46 = vld [vmem:[%s11691_s1 + $0x80] sm:$0xf] }
  0x42   :  { %3910 = vperm.xlu2 %6055, %v3751_v56  }
  0x43   :  { %3905 = vperm.xlu1 %6054, %v3750_v57   ;;  %3900 = vperm.xlu0 %6053, %v3749_v58   ;;  %v3775_v57 = vld [vmem:[%s11692_s2 + $0x178] sm:$0xff]  ;;  %v3774_v58 = vld [vmem:[%s11692_s2 + $0x170] sm:$0xff] }
  0x4a   :  { %3925 = vperm.xlu2 %6055, %v3754_v1  }
  0x4b   :  { %3920 = vperm.xlu1 %6054, %v3753_v2   ;;  %3915 = vperm.xlu0 %6053, %v3752_v3   ;;  %v5969_v2 = vld [vmem:[%s11691_s1 + $0x74] sm:$0xf]  ;;  %v5486_v3 = vld [vmem:[%s11691_s1 + $0x78] sm:$0xf0] }
  0x4c   :  { %626 = vmatmul.bf16.gmra.mxu0 %v5445_v4  ;;  %746 = vmatmul.bf16.gmra.mxu3 %v5637_v5  ;;  %v3778_v5 = vld [vmem:[%s11692_s2 + $0x190] sm:$0xff]  ;;  %v5489_v10 = vor.u32 %v5969_v2, %v5486_v3 }
  0x4d   :  { %5733 = vmatmul.msk.bf16.gmra.mxu1 %vm511_vm0, %v5457_v6  ;;  %v3777_v6 = vld [vmem:[%s11692_s2 + $0x188] sm:$0xff] }
  0x52   :  { %3940 = vperm.xlu2 %6055, %v3757_v7   ;;  %v3776_v7 = vld [vmem:[%s11692_s2 + $0x180] sm:$0xff] }
  0x53   :  { %3935 = vperm.xlu1 %6054, %v3756_v8   ;;  %3930 = vperm.xlu0 %6053, %v3755_v9   ;;  %v5477_v8 = vor.u32 %v5968_v62, %v5476_v61  ;;  %v5669_v9 = vor.u32 %v6016_v0, %v5668_v63  ;;  %v1907_v61 = vld [vmem:[%s11695_s5 + $0x8] sm:$0xff]  ;;  %v3788_v63 = vld [vmem:[%s11692_s2 + $0x1e0] sm:$0xff]  ;;  %v5493_v0 = vor.u32 %v5972_v47, %v5492_v46 }
  0x54   :  { %v3789_v62 = vld [vmem:[%s11692_s2 + $0x1e8] sm:$0xff] }
  0x5a   :  { %3955 = vperm.xlu2 %6055, %v3760_v16  }
  0x5b   :  { %3950 = vperm.xlu1 %6054, %v3759_v17   ;;  %3945 = vperm.xlu0 %6053, %v3758_v18   ;;  %v5484_v17 = vld [vmem:[%s11691_s1 + $0x70] sm:$0xf] }
  0x5c   :  { %631 = vmatmul.bf16.gmra.mxu0 %v5453_v19  ;;  %751 = vmatmul.bf16.gmra.mxu3 %v5645_v20  ;;  %v5970_v19 = vld [vmem:[%s11691_s1 + $0x74] sm:$0xf0]  ;;  %v5676_v20 = vld [vmem:[%s11691_s1 + $0x1f0] sm:$0xf] }
  0x5d   :  { %5734 = vmatmul.msk.bf16.gmra.mxu1 %vm511_vm0, %v5465_v21  ;;  %v6018_v21 = vld [vmem:[%s11691_s1 + $0x1f4] sm:$0xf0]  ;;  %v5485_v29 = vor.u32 %v5970_v19, %v5484_v17 }
  0x5e   :  { %v5677_v30 = vor.u32 %v6018_v21, %v5676_v20 }
  0x62   :  { %3970 = vperm.xlu2 %6055, %v3763_v22   ;;  %v5971_v22 = vld [vmem:[%s11691_s1 + $0x84] sm:$0xf] }
  0x63   :  { %3965 = vperm.xlu1 %6054, %v3762_v23   ;;  %3960 = vperm.xlu0 %6053, %v3761_v24   ;;  %v5494_v23 = vld [vmem:[%s11691_s1 + $0x88] sm:$0xf0] }
  0x64   :  { %v7009_v26 = vpop.permute.xlu2 %3815 }
  0x6a   :  { %3985 = vperm.xlu2 %6055, %v3766_v32   ;;  %v5497_v32 = vor.u32 %v5971_v22, %v5494_v23 }
  0x6b   :  { %3980 = vperm.xlu1 %6054, %v3765_v33   ;;  %3975 = vperm.xlu0 %6053, %v3764_v34   ;;  %v1913_v34 = vld [vmem:[%s11695_s5 + $0x38] sm:$0xff] }
  0x6c   :  { %636 = vmatmul.bf16.gmra.mxu0 %v5461_v35  ;;  %756 = vmatmul.bf16.gmra.mxu3 %v5653_v36  ;;  %v7035_v38 = vpop.permute.xlu2 %3820  ;;  %v1912_v35 = vld [vmem:[%s11695_s5 + $0x30] sm:$0xff] }
  0x6d   :  { %5735 = vmatmul.msk.bf16.gmra.mxu1 %vm511_vm0, %v5473_v37  ;;  %2118 = vmatpush.msra.mxu2 %v1913_v34  ;;  %v1911_v37 = vld [vmem:[%s11695_s5 + $0x28] sm:$0xff] }
  0x6e   :  { %6043 = vmatpush.msra.mxu3 %v1913_v34 }
  0x6f   :  { %2119 = vmatpush.msra.mxu2 %v1912_v35 }
  0x70   :  { %6044 = vmatpush.msra.mxu3 %v1912_v35 }
  0x71   :  { %2120 = vmatpush.msra.mxu2 %v1911_v37 }
  0x72   :  { %4000 = vperm.xlu2 %6055, %v3769_v39   ;;  %v3787_v39 = vld [vmem:[%s11692_s2 + $0x1d8] sm:$0xff]  ;;  %6045 = vmatpush.msra.mxu3 %v1911_v37 }
  0x73   :  { %3995 = vperm.xlu1 %6054, %v3768_v40   ;;  %3990 = vperm.xlu0 %6053, %v3767_v41   ;;  %v3786_v40 = vld [vmem:[%s11692_s2 + $0x1d0] sm:$0xff]  ;;  %v3785_v41 = vld [vmem:[%s11692_s2 + $0x1c8] sm:$0xff] }
  0x74   :  { %v7065_v48 = vpop.permute.xlu2 %3835  ;;  %2121 = vmatpush.msra.mxu2 %v1910_v44  ;;  %6046 = vmatpush.msra.mxu3 %v1910_v44 }
  0x76   :  { %2122 = vmatpush.msra.mxu2 %v1909_v45  ;;  %6047 = vmatpush.msra.mxu3 %v1909_v45 }
  0x7a   :  { %4015 = vperm.xlu2 %6055, %v3772_v49  }
  0x7b   :  { %4010 = vperm.xlu1 %6054, %v3771_v50   ;;  %4005 = vperm.xlu0 %6053, %v3770_v51   ;;  %v6005_v50 = vld [vmem:[%s11691_s1 + $0x194] sm:$0xf]  ;;  %v5630_v51 = vld [vmem:[%s11691_s1 + $0x198] sm:$0xf0] }
  0x7c   :  { %641 = vmatmul.bf16.gmra.mxu0 %v5469_v52  ;;  %761 = vmatmul.bf16.gmra.mxu3 %v5661_v53  ;;  %v7090_v60 = vpop.permute.xlu2 %3850  ;;  %v1908_v52 = vld [vmem:[%s11695_s5 + $0x10] sm:$0xff]  ;;  %v7225_v53 = vld [vmem:[%s11694_s4] ss:$0 sm:$0xff]  ;;  %v5633_v2 = vor.u32 %v6005_v50, %v5630_v51 }
  0x7d   :  { %5736 = vmatmul.msk.bf16.gmra.mxu1 %vm511_vm0, %v5481_v54  ;;  %v7077_v55 = vpop.permute.xlu0 %3795  ;;  %v7079_v56 = vpop.permute.xlu1 %3805  ;;  %v5973_v54 = vld [vmem:[%s11691_s1 + $0x94] sm:$0xf]  ;;  %2123 = vmatpush.msra.mxu2 %v1908_v52 }
  0x7e   :  { %6048 = vmatpush.msra.mxu3 %v1908_v52 }
  0x7f   :  { %2124 = vmatpush.msra.mxu2 %v1907_v61 }
  0x80   :  { %6049 = vmatpush.msra.mxu3 %v1907_v61 }
  0x82   :  { %4030 = vperm.xlu2 %6055, %v3775_v57   ;;  %v5502_v57 = vld [vmem:[%s11691_s1 + $0x98] sm:$0xf0] }
  0x83   :  { %4025 = vperm.xlu1 %6054, %v3774_v58   ;;  %4020 = vperm.xlu0 %6053, %v3773_v59   ;;  %v7236_v58 = vld [vmem:[%s11697_s7] ss:$0 sm:$0xff]  ;;  %v3790_v59 = vld [vmem:[%s11692_s2 + $0x1f0] sm:$0xff] }
  0x84   :  { %v7123_v11 = vpop.permute.xlu2 %3865  ;;  %v4118_v17 = vmul.f32 %v7236_v58, %v7079_v56 }
  0x85   :  { %v7104_v1 = vpop.permute.xlu0 %3800  ;;  %v7112_v4 = vpop.permute.xlu1 %3810  ;;  %v4130_v19 = vmul.f32 %v7236_v58, %v7123_v11 }
  0x86   :  { %v4117_v23 = vmul.f32 %v7236_v58, %v7104_v1 }
  0x8a   :  { %4045 = vperm.xlu2 %6055, %v3778_v5   ;;  %v4120_v5 = vmul.f32 %v7236_v58, %v7009_v26  ;;  %v1906_v26 = vld [vmem:[%s11695_s5] sm:$0xff] }
  0x8b   :  { %4040 = vperm.xlu1 %6054, %v3777_v6   ;;  %4035 = vperm.xlu0 %6053, %v3776_v7   ;;  %v4121_v6 = vmul.f32 %v7236_v58, %v7035_v38  ;;  %v7269_v38 = vld [vmem:[%s11698_s8] ss:$0 sm:$0xff] }
  0x8c   :  { %646 = vmatmul.bf16.gmra.mxu0 %v5477_v8  ;;  %766 = vmatmul.bf16.gmra.mxu3 %v5669_v9  ;;  %v7142_v18 = vpop.permute.xlu2 %3880  ;;  %v5505_v8 = vor.u32 %v5973_v54, %v5502_v57  ;;  %v4124_v9 = vmul.f32 %v7236_v58, %v7065_v48  ;;  %v4116_v48 = vmul.f32 %v7236_v58, %v7077_v55  ;;  %v5500_v57 = vld [vmem:[%s11691_s1 + $0x90] sm:$0xf] }
  0x8d   :  { %5737 = vmatmul.msk.bf16.gmra.mxu1 %vm511_vm0, %v5489_v10  ;;  %v7126_v12 = vpop.permute.xlu0 %3825  ;;  %v7137_v16 = vpop.permute.xlu1 %3830  ;;  %v7284_v21 = vadd.f32 %v7269_v38, %v4120_v5  ;;  %v7287_v55 = vadd.f32 %v7269_v38, %v4121_v6  ;;  %2125 = vmatpush.msra.mxu2 %v1906_v26  ;;  %v4133_v37 = vmul.f32 %v7236_v58, %v7142_v18  ;;  %v5510_v5 = vld [vmem:[%s11691_s1 + $0xa8] sm:$0xf0] }
  0x8e   :  { %v7291_v56 = vadd.f32 %v7269_v38, %v4124_v9  ;;  %v7297_v22 = vadd.f32 %v7269_v38, %v4116_v48  ;;  %6050 = vmatpush.msra.mxu3 %v1906_v26  ;;  %v7335_v46 = vadd.f32 %v7269_v38, %v4117_v23  ;;  %v4123_v61 = vmul.f32 %v7236_v58, %v7137_v16 }
  0x8f   :  { %v7318_v1 = vmul.f32 0.2, %v7284_v21  ;;  %v7321_v34 = vmul.f32 0.2, %v7287_v55  ;;  %vm4252_vm10 = vcmp.ge.f32.partialorder %v7284_v21, 0.0  ;;  %vm4253_vm11 = vcmp.ge.f32.partialorder %v7287_v55, 0.0 }
  0x90   :  { %v7324_v35 = vmul.f32 0.2, %v7291_v56  ;;  %v7332_v45 = vmul.f32 0.2, %v7297_v22  ;;  %v7383_v6 = vmul.f32 0.2, %v7335_v46 }
  0x91   :  { %vm4249_vm2 = vcmp.ge.f32.partialorder %v7335_v46, 0.0  ;;  %vm4248_vm3 = vcmp.ge.f32.partialorder %v7297_v22, 0.0  ;;  %vm4256_vm13 = vcmp.ge.f32.partialorder %v7291_v56, 0.0 }
  0x92   :  { %4060 = vperm.xlu2 %6055, %v3781_v13  }
  0x93   :  { %4055 = vperm.xlu1 %6054, %v3780_v14   ;;  %4050 = vperm.xlu0 %6053, %v3779_v15   ;;  %v4127_v15 = vmul.f32 %v7236_v58, %v7090_v60 }
  0x94   :  { %v7181_v36 = vpop.permute.xlu2 %3895 }
  0x95   :  { %v7159_v24 = vpop.permute.xlu0 %3840  ;;  %v7172_v33 = vpop.permute.xlu1 %3845 }
  0x99   :  { %v7170_v31 = vpop.f32.mrf.mxu1 }
  0x9a   :  { %4075 = vperm.xlu2 %6055, %v3784_v25   ;;  %v7302_v25 = vadd.f32 %v7269_v38, %v4127_v15 }
  0x9b   :  { %4070 = vperm.xlu1 %6054, %v3783_v27   ;;  %4065 = vperm.xlu0 %6053, %v3782_v28   ;;  %v4119_v27 = vmul.f32 %v7236_v58, %v7112_v4 }
  0x9c   :  { %651 = vmatmul.bf16.gmra.mxu0 %v5485_v29  ;;  %771 = vmatmul.bf16.gmra.mxu3 %v5677_v30  ;;  %v7250_v3 = vpop.permute.xlu2 %3910  ;;  %v7309_v29 = vadd.f32 %v7269_v38, %v4118_v17  ;;  %v7312_v30 = vadd.f32 %v7269_v38, %v4130_v19  ;;  %v7338_v47 = vmul.f32 0.2, %v7302_v25 }
  0x9d   :  { %5738 = vmatmul.msk.bf16.gmra.mxu1 %vm511_vm0, %v5497_v32  ;;  %v7195_v42 = vpop.permute.xlu0 %3855  ;;  %v7211_v49 = vpop.permute.xlu1 %3860  ;;  %v3791_v32 = vld [vmem:[%s11692_s2 + $0x1f8] sm:$0xff]  ;;  %v7341_v50 = vadd.f32 %v7269_v38, %v4119_v27 }
  0x9e   :  { %11793 = vst [vmem:[#allocation7_spill] sm:$0xff] %v7312_v30  ;;  %v7344_v18 = vmul.f32 0.2, %v7309_v29  ;;  %v7347_v51 = vmul.f32 0.2, %v7312_v30  ;;  %vm4250_vm6 = vcmp.ge.f32.partialorder %v7309_v29, 0.0 }
  0x9f   :  { %11794 = vst [vmem:[#allocation8_spill] sm:$0xff] %v7338_v47  ;;  %vm4251_vm8 = vcmp.ge.f32.partialorder %v7341_v50, 0.0 }
  0xa0   :  { %11795 = vst [vmem:[#allocation9_spill] sm:$0xff] %v7347_v51 }
  0xa1   :  { %v7197_v43 = vpop.f32.mrf.mxu1 }
  0xa2   :  { %4090 = vperm.xlu2 %6055, %v3787_v39  }
  0xa3   :  { %4085 = vperm.xlu1 %6054, %v3786_v40   ;;  %4080 = vperm.xlu0 %6053, %v3785_v41  }
  0xa4   :  { %v3926_v44 = vpop.permute.xlu2 %3925 }
  0xa5   :  { %v7261_v14 = vpop.permute.xlu0 %3870  ;;  %v7294_v11 = vpop.permute.xlu1 %3875 }
  0xa9   :  { %v617_v7 = vpop.f32.mrf.mxu0 }
  0xaa   :  { %v618_v10 = vadd.f32 %v7225_v53, %v617_v7  ;;  %v7259_v13 = vpop.f32.mrf.mxu1  ;;  %4105 = vperm.xlu2 %6055, %v3790_v59   ;;  %v4122_v59 = vmul.f32 %v7236_v58, %v7126_v12  ;;  %v4136_v12 = vmul.f32 %v7236_v58, %v7181_v36  ;;  %v7386_v7 = vmul.f32 0.2, %v7341_v50 }
  0xab   :  { %4100 = vperm.xlu1 %6054, %v3789_v62   ;;  %4095 = vperm.xlu0 %6053, %v3788_v63   ;;  %v5974_v62 = vld [vmem:[%s11691_s1 + $0x94] sm:$0xf0]  ;;  %v5638_v63 = vld [vmem:[%s11691_s1 + $0x1a8] sm:$0xf0]  ;;  %v4126_v36 = vmul.f32 %v7236_v58, %v7172_v33 }
  0xac   :  { %v7280_v20 = vadd.f32 %v7170_v31, %v618_v10  ;;  %656 = vmatmul.bf16.gmra.mxu0 %v5493_v0  ;;  %5755 = vmatmul.msk.bf16.vlgmr.msrb.gmra.mxu3 %vm511_vm0, %v5633_v2  ;;  %v7371_v0 = vadd.f32 %v7269_v38, %v4133_v37  ;;  %v5975_v2 = vld [vmem:[%s11691_s1 + $0xa4] sm:$0xf]  ;;  %v4139_v10 = vmul.f32 %v7236_v58, %v7250_v3 }
  0xad   :  { %5739 = vmatmul.msk.bf16.gmra.mxu1 %vm511_vm0, %v5505_v8  ;;  %v7352_v54 = vpop.permute.xlu0 %3885  ;;  %v4125_v8 = vmul.f32 %v7236_v58, %v7159_v24  ;;  %v5501_v48 = vor.u32 %v5974_v62, %v5500_v57  ;;  %v7396_v17 = vpop.permute.xlu1 %3890  ;;  %v7399_v19 = vadd.f32 %v7269_v38, %v4122_v59  ;;  %v4128_v24 = vmul.f32 %v7236_v58, %v7195_v42 }
  0xae   :  { %v1010_v60 = vand.u32 2147483647, %v7280_v20  ;;  %11796 = vst [vmem:[#allocation10_spill] sm:$0xff] %v7371_v0  ;;  %v5513_v23 = vor.u32 %v5975_v2, %v5510_v5  ;;  %v7410_v3 = vadd.f32 %v7269_v38, %v4136_v12  ;;  %v4129_v59 = vmul.f32 %v7236_v58, %v7211_v49 }
  0xaf   :  { %v7306_v28 = vpop.f32.mrf.mxu3  ;;  %v7434_v12 = vadd.f32 %v7269_v38, %v4128_v24  ;;  %v4132_v2 = vmul.f32 %v7236_v58, %v7294_v11  ;;  %vm4254_vm14 = vcmp.ge.f32.partialorder %v7399_v19, 0.0 }
  0xb0   :  { %11792 = vst [vmem:[#allocation6_spill] sm:$0xff] %v7306_v28  ;;  %v1074_v31 = vsub.f32 0.0, %v1010_v60  ;;  %v7402_v60 = vadd.f32 %v7269_v38, %v4123_v61  ;;  %v7424_v61 = vadd.f32 %v7269_v38, %v4139_v10 }
  0xb1   :  { %v619_v4 = vpop.f32.mrf.mxu0  ;;  %11799 = vst [vmem:[#allocation13_spill] sm:$0xff] %v7410_v3  ;;  %v7464_v24 = vmul.f32 0.2, %v7434_v12 }
  0xb2   :  { %v1138_v39 = vmul.f32 1.442695, %v1074_v31  ;;  %v620_v40 = vadd.f32 %v7225_v53, %v619_v4  ;;  %v7329_v41 = vpop.f32.mrf.mxu1  ;;  %v7407_v31 = vmul.f32 0.2, %v7371_v0  ;;  %11800 = vst [vmem:[#allocation14_spill] sm:$0xff] %v7424_v61 }
  0xb3   :  { %4110 = vperm.xlu0 %6053, %v3791_v32   ;;  %11801 = vst [vmem:[#allocation15_spill] sm:$0xff] %v7434_v12  ;;  %v7439_v49 = vmul.f32 0.2, %v7402_v60  ;;  %v7461_v11 = vmul.f32 0.2, %v7424_v61  ;;  %v4134_v61 = vmul.f32 %v7236_v58, %v7352_v54 }
  0xb4   :  { %6063 = vpow2.f32 %v1138_v39  ;;  %v7350_v52 = vadd.f32 %v7197_v43, %v620_v40  ;;  %v6007_v43 = vld [vmem:[%s11691_s1 + $0x1a4] sm:$0xf]  ;;  %11798 = vst [vmem:[#allocation12_spill] sm:$0xff] %v7407_v31  ;;  %v7416_v39 = vadd.f32 %v7269_v38, %v4125_v8  ;;  %v7419_v40 = vadd.f32 %v7269_v38, %v4126_v36  ;;  %v5518_v54 = vld [vmem:[%s11691_s1 + $0xb8] sm:$0xf0] }
  0xb5   :  { %v5641_v15 = vor.u32 %v6007_v43, %v5638_v63  ;;  %v3941_v43 = vpop.permute.xlu2 %3940  ;;  %v7431_v63 = vmul.f32 0.2, %v7399_v19  ;;  %v3901_v8 = vpop.permute.xlu0 %3900  ;;  %11804 = vst [vmem:[#allocation18_spill] sm:$0xff] %v7461_v11  ;;  %v7530_v47 = vadd.f32 %v7269_v38, %v4134_v61 }
  0xb6   :  { %v1011_v16 = vand.u32 2147483647, %v7350_v52  ;;  %v7447_v36 = vmul.f32 0.2, %v7416_v39  ;;  %11805 = vst [vmem:[#allocation19_spill] sm:$0xff] %v7464_v24  ;;  %v3906_v28 = vpop.permute.xlu1 %3905 }
  0xb7   :  { %v7392_v9 = vpop.f32.mrf.mxu3  ;;  %11814 = vst [vmem:[#allocation28_spill] sm:$0xff] %v7530_v47 }
  0xb8   :  { %11797 = vst [vmem:[#allocation11_spill] sm:$0xff] %v7392_v9  ;;  %v1075_v26 = vsub.f32 0.0, %v1011_v16  ;;  %v4142_v16 = vmul.f32 %v7236_v58, %v3926_v44  ;;  %v7450_v44 = vmul.f32 0.2, %v7410_v3 }
  0xb9   :  { %v622_v33 = vpop.f32.mrf.mxu0 }
  0xba   :  { %v6064_v27 = vpop.eup %6063  ;;  %v1140_v32 = vmul.f32 1.442695, %v1075_v26  ;;  %v623_v4 = vadd.f32 %v7225_v53, %v622_v33  ;;  %v7413_v37 = vpop.f32.mrf.mxu1  ;;  %11802 = vst [vmem:[#allocation16_spill] sm:$0xff] %v7450_v44  ;;  %v7467_v33 = vadd.f32 %v7269_v38, %v4142_v16  ;;  %v5508_v16 = vld [vmem:[%s11691_s1 + $0xa0] sm:$0xf] }
  0xbb   :  { %v1266_v42 = vadd.f32 1.0, %v6064_v27  ;;  %v1269_v57 = vmul.f32 -0.5, %v6064_v27 }
  0xbc   :  { %6065 = vpow2.f32 %v1140_v32  ;;  %v7427_v62 = vadd.f32 %v7259_v13, %v623_v4  ;;  %661 = vmatmul.bf16.gmra.mxu0 %v5501_v48  ;;  %5756 = vmatmul.msk.bf16.gmra.mxu3 %vm511_vm0, %v5641_v15  ;;  %v4131_v13 = vmul.f32 %v7236_v58, %v7261_v14  ;;  %v7455_v48 = vmul.f32 0.2, %v7419_v40  ;;  %11806 = vst [vmem:[#allocation20_spill] sm:$0xff] %v7467_v33 }
  0xbd   :  { %5740 = vmatmul.msk.bf16.gmra.mxu1 %vm511_vm0, %v5513_v23  ;;  %6067 = vlog2.f32 %v1266_v42  ;;  %v1270_v26 = vadd.f32 1.0, %v1269_v57  ;;  %v7458_v14 = vadd.f32 %v7269_v38, %v4129_v59  ;;  %v4145_v23 = vmul.f32 %v7236_v58, %v3941_v43 }
  0xbe   :  { %v1012_v5 = vand.u32 2147483647, %v7427_v62  ;;  %v1272_v4 = vand.u32 2147483647, %v6064_v27  ;;  %v7473_v57 = vadd.f32 %v7269_v38, %v4131_v13  ;;  %v7476_v59 = vadd.f32 %v7269_v38, %v4132_v2  ;;  %v5976_v2 = vld [vmem:[%s11691_s1 + $0xa4] sm:$0xf0] }
  0xbf   :  { %v7452_v10 = vpop.f32.mrf.mxu3  ;;  %11803 = vst [vmem:[#allocation17_spill] sm:$0xff] %v7458_v14  ;;  %v946_v43 = vmax.f32 %v7280_v20, 0.0  ;;  %v1271_v13 = vmul.f32 %v6064_v27, %v1270_v26  ;;  %v4135_v26 = vmul.f32 %v7236_v58, %v7396_v17  ;;  %v7504_v31 = vadd.f32 %v7269_v38, %v4145_v23  ;;  %v3956_v23 = vpop.permute.xlu2 %3955 }
  0xc0   :  { %v1076_v15 = vsub.f32 0.0, %v1012_v5  ;;  %11807 = vst [vmem:[#allocation21_spill] sm:$0xff] %v7473_v57  ;;  %vm1273_vm1 = vcmp.lt.f32.partialorder %v1272_v4, 0.0004427343  ;;  %v7520_v4 = vmul.f32 0.2, %v7473_v57 }
  0xc1   :  { %v624_v32 = vpop.f32.mrf.mxu0  ;;  %11808 = vst [vmem:[#allocation22_spill] sm:$0xff] %v7476_v59  ;;  %v7523_v24 = vmul.f32 0.2, %v7476_v59  ;;  %v4378_v59 = vsel %vm4250_vm6, %v7309_v29, %v7344_v18 }
  0xc2   :  { %v7470_v42 = vpop.eup %6065  ;;  %v1142_v9 = vmul.f32 1.442695, %v1076_v15  ;;  %v625_v5 = vadd.f32 %v7225_v53, %v624_v32  ;;  %v7485_v44 = vpop.f32.mrf.mxu1  ;;  %v5977_v15 = vld [vmem:[%s11691_s1 + $0xb4] sm:$0xf]  ;;  %11809 = vst [vmem:[#allocation23_spill] sm:$0xff] %v7504_v31 }
  0xc3   :  { %v6068_v11 = vpop.eup %6067  ;;  %v1275_v32 = vadd.f32 1.0, %v7470_v42  ;;  %v1278_v27 = vmul.f32 -0.5, %v7470_v42  ;;  %11812 = vst [vmem:[#allocation26_spill] sm:$0xff] %v7520_v4 }
  0xc4   :  { %6069 = vpow2.f32 %v1142_v9  ;;  %v7495_v3 = vadd.f32 %v7329_v41, %v625_v5  ;;  %v1268_v20 = vmul.f32 0.6931472, %v6068_v11  ;;  %v6009_v9 = vld [vmem:[%s11691_s1 + $0x1b4] sm:$0xf]  ;;  %v5646_v41 = vld [vmem:[%s11691_s1 + $0x1b8] sm:$0xf0] }
  0xc5   :  { %6071 = vlog2.f32 %v1275_v32  ;;  %v7513_v11 = vmul.f32 0.2, %v7458_v14  ;;  %v7516_v5 = vmul.f32 0.2, %v7467_v33  ;;  %11813 = vst [vmem:[#allocation27_spill] sm:$0xff] %v7523_v24  ;;  %v5509_v32 = vor.u32 %v5976_v2, %v5508_v16  ;;  %v7527_v14 = vpop.permute.xlu0 %3915 }
  0xc6   :  { %v1013_v17 = vand.u32 2147483647, %v7495_v3  ;;  %v1274_v0 = vsel %vm1273_vm1, %v1271_v13, %v1268_v20  ;;  %v5649_v33 = vor.u32 %v6009_v9, %v5646_v41  ;;  %v7533_v13 = vadd.f32 %v7269_v38, %v4135_v26 }
  0xc7   :  { %11810 = vst [vmem:[#allocation24_spill] sm:$0xff] %v7513_v11  ;;  %v7525_v12 = vpop.f32.mrf.mxu3  ;;  %v1842_v51 = vadd.f32 %v1274_v0, %v946_v43  ;;  %v5521_v11 = vor.u32 %v5977_v15, %v5518_v54  ;;  %v7536_v20 = vmul.f32 0.2, %v7504_v31  ;;  %v1281_v0 = vand.u32 2147483647, %v7470_v42 }
  0xc8   :  { %11811 = vst [vmem:[#allocation25_spill] sm:$0xff] %v7516_v5  ;;  %v1077_v30 = vsub.f32 0.0, %v1013_v17  ;;  %v1279_v5 = vadd.f32 1.0, %v1278_v27  ;;  %v4137_v43 = vmul.f32 %v7236_v58, %v3901_v8  ;;  %v4148_v15 = vmul.f32 %v7236_v58, %v3956_v23  ;;  %v7548_v27 = vld [vmem:[%s11699_s9] ss:$0 sm:$0xff]  ;;  %v7558_v8 = vpop.permute.xlu1 %3920 }
  0xc9   :  { %11815 = vst [vmem:[#allocation29_spill] sm:$0xff] %v7533_v13  ;;  %v627_v24 = vpop.f32.mrf.mxu0  ;;  %5762 = vmatmul.msk.f32.vlgmr.msra.gmra.mxu2 %vm511_vm0, %v1842_v51  ;;  %v947_v17 = vmax.f32 %v7350_v52, 0.0  ;;  %v4138_v23 = vmul.f32 %v7236_v58, %v3906_v28  ;;  %vm1282_vm4 = vcmp.lt.f32.partialorder %v1281_v0, 0.0004427343  ;;  %v7582_v0 = vmul.f32 0.2, %v7533_v13 }
  0xca   :  { %11816 = vst [vmem:[#allocation30_spill] sm:$0xff] %v7536_v20  ;;  %v7540_v16 = vpop.eup %6069  ;;  %v1144_v2 = vmul.f32 1.442695, %v1077_v30  ;;  %v628_v61 = vadd.f32 %v7225_v53, %v627_v24  ;;  %v1280_v41 = vmul.f32 %v7470_v42, %v1279_v5  ;;  %v7563_v20 = vpop.f32.mrf.mxu1  ;;  %v4377_v42 = vsel %vm4249_vm2, %v7335_v46, %v7383_v6 }
  0xcb   :  { %v6072_v54 = vpop.eup %6071  ;;  %v1284_v26 = vadd.f32 1.0, %v7540_v16  ;;  %v1287_v9 = vmul.f32 -0.5, %v7540_v16  ;;  %v4508_v5 = vmul.f32 %v7548_v27, %v1842_v51  ;;  %11818 = vst [vmem:[#allocation32_spill] sm:$0xff] %v7582_v0  ;;  %v3971_v6 = vpop.permute.xlu2 %3970  ;;  %vm4255_vm1 = vcmp.ge.f32.partialorder %v7402_v60, 0.0 }
  0xcc   :  { %6073 = vpow2.f32 %v1144_v2  ;;  %v7555_v30 = vadd.f32 %v7413_v37, %v628_v61  ;;  %666 = vmatmul.bf16.gmra.mxu0 %v5509_v32  ;;  %5757 = vmatmul.msk.bf16.gmra.mxu3 %vm511_vm0, %v5649_v33  ;;  %v1277_v24 = vmul.f32 0.6931472, %v6072_v54  ;;  %v7567_v37 = vmul.f32 0.2, %v7530_v47 }
  0xcd   :  { %5741 = vmatmul.msk.bf16.gmra.mxu1 %vm511_vm0, %v5521_v11  ;;  %6075 = vlog2.f32 %v1284_v26  ;;  %v1288_v2 = vadd.f32 1.0, %v1287_v9  ;;  %v4376_v11 = vsel %vm4248_vm3, %v7297_v22, %v7332_v45  ;;  %v7585_v61 = vadd.f32 %v7269_v38, %v4137_v43  ;;  %v7600_v43 = vld [vmem:[%s11700_s10] ss:$0 sm:$0xff] }
  0xce   :  { %11817 = vst [vmem:[#allocation31_spill] sm:$0xff] %v7567_v37  ;;  %v1014_v33 = vand.u32 2147483647, %v7555_v30  ;;  %v1283_v32 = vsel %vm1282_vm4, %v1280_v41, %v1277_v24  ;;  %v7588_v54 = vadd.f32 %v7269_v38, %v4148_v15  ;;  %v7591_v26 = vadd.f32 %v7269_v38, %v4138_v23  ;;  %v7604_v41 = vpop.permute.xlu0 %3930  ;;  %v5516_v23 = vld [vmem:[%s11691_s1 + $0xb0] sm:$0xf] }
  0xcf   :  { %v7574_v52 = vpop.f32.mrf.mxu3  ;;  %v1843_v28 = vadd.f32 %v1283_v32, %v947_v17  ;;  %v4151_v51 = vmul.f32 %v7236_v58, %v3971_v6  ;;  %v1290_v45 = vand.u32 2147483647, %v7540_v16  ;;  %v4440_v32 = vmul.f32 1.4142135, %v4376_v11  ;;  %v6011_v11 = vld [vmem:[%s11691_s1 + $0x1c4] sm:$0xf] }
  0xd0   :  { %11819 = vst [vmem:[#allocation33_spill] sm:$0xff] %v7588_v54  ;;  %v1078_v46 = vsub.f32 0.0, %v1014_v33  ;;  %v4441_v33 = vmul.f32 1.4142135, %v4377_v42  ;;  %v4572_v31 = vsel %vm511_vm0, %v4508_v5, 0.0  ;;  %v1289_v0 = vmul.f32 %v7540_v16, %v1288_v2 }
  0xd1   :  { %11820 = vst [vmem:[#allocation34_spill] sm:$0xff] %v7591_v26  ;;  %v629_v9 = vpop.f32.mrf.mxu0  ;;  %5763 = vmatmul.msk.f32.gmra.mxu2 %vm511_vm0, %v1843_v28  ;;  %v4509_v22 = vmul.f32 %v7548_v27, %v1843_v28  ;;  %v948_v16 = vmax.f32 %v7427_v62, 0.0  ;;  %vm1291_vm5 = vcmp.lt.f32.partialorder %v1290_v45, 0.0004427343  ;;  %v5654_v2 = vld [vmem:[%s11691_s1 + $0x1c8] sm:$0xf0]  ;;  %v4768_v37 = vmul.f32 %v7600_v43, %v4440_v32 }
  0xd2   :  { %v7602_v15 = vpop.eup %6073  ;;  %v1146_v24 = vmul.f32 1.442695, %v1078_v46  ;;  %v630_v17 = vadd.f32 %v7225_v53, %v629_v9  ;;  %v5978_v46 = vld [vmem:[%s11691_s1 + $0xb4] sm:$0xf0]  ;;  %v5526_v62 = vld [vmem:[%s11691_s1 + $0xc8] sm:$0xf0]  ;;  %v7643_v45 = vpop.f32.mrf.mxu1  ;;  %v4141_v32 = vmul.f32 %v7236_v58, %v7558_v8 }
  0xd3   :  { %v6076_v28 = vpop.eup %6075  ;;  %v4575_v6 = vsel %vm511_vm0, %v4509_v22, 0.0  ;;  %v1293_v13 = vadd.f32 1.0, %v7602_v15  ;;  %v1296_v5 = vmul.f32 -0.5, %v7602_v15  ;;  %vm4257_vm2 = vcmp.ge.f32.partialorder %v7416_v39, 0.0 }
  0xd4   :  { %6077 = vpow2.f32 %v1146_v24  ;;  %v7618_v9 = vadd.f32 %v7485_v44, %v630_v17  ;;  %4576 = vadd.xlane.f32.xlu2 %v4575_v6  ;;  %v1286_v42 = vmul.f32 0.6931472, %v6076_v28  ;;  %v7631_v44 = vmul.f32 %v7236_v58, %v7527_v14  ;;  %v7634_v24 = vpop.permute.xlu1 %3935 }
  0xd5   :  { %4573 = vadd.xlane.f32.xlu1 %v4572_v31  ;;  %6079 = vlog2.f32 %v1293_v13  ;;  %v5979_v31 = vld [vmem:[%s11691_s1 + $0xc4] sm:$0xf]  ;;  %v4769_v13 = vmul.f32 %v7600_v43, %v4441_v33  ;;  %v5517_v6 = vor.u32 %v5978_v46, %v5516_v23  ;;  %v1297_v47 = vadd.f32 1.0, %v1296_v5 }
  0xd6   :  { %v1015_v22 = vand.u32 2147483647, %v7618_v9  ;;  %v1292_v17 = vsel %vm1291_vm5, %v1289_v0, %v1286_v42  ;;  %v5657_v42 = vor.u32 %v6011_v11, %v5654_v2  ;;  %v5529_v33 = vor.u32 %v5979_v31, %v5526_v62  ;;  %v7668_v31 = vpop.permute.xlu0 %3945  ;;  %v3986_v62 = vpop.permute.xlu2 %3985 }
  0xd7   :  { %v7645_v28 = vpop.f32.mrf.mxu3  ;;  %v1844_v14 = vadd.f32 %v1292_v17, %v948_v16  ;;  %v1299_v16 = vand.u32 2147483647, %v7602_v15  ;;  %v4835_v29 = vsel %vm3663_vm7, %v4769_v13, 0.0  ;;  %v7663_v5 = vadd.f32 %v7269_v38, %v4151_v51 }
  0xd8   :  { %v1079_v0 = vsub.f32 0.0, %v1015_v22  ;;  %v4832_v2 = vsel %vm3663_vm7, %v4768_v37, 0.0  ;;  %v4442_v22 = vmul.f32 1.4142135, %v4378_v59  ;;  %v4379_v17 = vsel %vm4251_vm8, %v7341_v50, %v7386_v7 }
  0xd9   :  { %v632_v4 = vpop.f32.mrf.mxu0  ;;  %5764 = vmatmul.msk.f32.gmra.mxu2 %vm511_vm0, %v1844_v14  ;;  %v4510_v57 = vmul.f32 %v7548_v27, %v1844_v14  ;;  %11821 = vst [vmem:[#allocation35_spill] sm:$0xff] %v7663_v5  ;;  %v1298_v13 = vmul.f32 %v7602_v15, %v1297_v47  ;;  %v4443_v51 = vmul.f32 1.4142135, %v4379_v17  ;;  %v949_v14 = vmax.f32 %v7495_v3, 0.0 }
  0xda   :  { %v7656_v23 = vpop.eup %6077  ;;  %v1148_v46 = vmul.f32 1.442695, %v1079_v0  ;;  %v633_v11 = vadd.f32 %v7225_v53, %v632_v4  ;;  %vm1300_vm9 = vcmp.lt.f32.partialorder %v1299_v16, 0.0004427343  ;;  %v4770_v3 = vmul.f32 %v7600_v43, %v4442_v22 }
  0xdb   :  { %v6080_v18 = vpop.eup %6079  ;;  %v4578_v50 = vsel %vm511_vm0, %v4510_v57, 0.0  ;;  %v1302_v7 = vadd.f32 1.0, %v7656_v23  ;;  %v1305_v37 = vmul.f32 -0.5, %v7656_v23  ;;  %v7686_v57 = vmul.f32 0.2, %v7585_v61 }
  0xdc   :  { %v7671_v8 = vadd.f32 %v7563_v20, %v633_v11  ;;  %671 = vmatmul.bf16.gmra.mxu0 %v5517_v6  ;;  %5758 = vmatmul.msk.bf16.gmra.mxu3 %vm511_vm0, %v5657_v42  ;;  %v1295_v4 = vmul.f32 0.6931472, %v6080_v18  ;;  %6081 = vpow2.f32 %v1148_v46  ;;  %v4771_v6 = vmul.f32 %v7600_v43, %v4443_v51  ;;  %v3951_v16 = vpop.permute.xlu1 %3950  ;;  %v7704_v18 = vpop.f32.mrf.mxu1  ;;  %v5524_v51 = vld [vmem:[%s11691_s1 + $0xc0] sm:$0xf] }
  0xdd   :  { %5742 = vmatmul.msk.bf16.gmra.mxu1 %vm511_vm0, %v5529_v33  ;;  %4836 = vadd.xlane.f32.xlu2 %v4835_v29  ;;  %6083 = vlog2.f32 %v1302_v7  ;;  %v7689_v0 = vmul.f32 0.2, %v7591_v26  ;;  %v7692_v42 = vmul.f32 0.2, %v7588_v54  ;;  %v4154_v33 = vmul.f32 %v7236_v58, %v3986_v62 }
  0xde   :  { %v1016_v59 = vand.u32 2147483647, %v7671_v8  ;;  %4579 = vadd.xlane.f32.xlu0 %v4578_v50  ;;  %4833 = vadd.xlane.f32.xlu1 %v4832_v2  ;;  %v1301_v20 = vsel %vm1300_vm9, %v1298_v13, %v1295_v4  ;;  %v7697_v46 = vadd.f32 %v7269_v38, %v7631_v44  ;;  %v7700_v11 = vadd.f32 %v7269_v38, %v4141_v32 }
  0xdf   :  { %v7681_v47 = vpop.f32.mrf.mxu3  ;;  %v1845_v15 = vadd.f32 %v1301_v20, %v949_v14  ;;  %11822 = vst [vmem:[#allocation36_spill] sm:$0xff] %v7689_v0  ;;  %v4143_v29 = vmul.f32 %v7236_v58, %v7604_v41  ;;  %v7709_v17 = vmul.f32 0.2, %v7663_v5  ;;  %v1306_v4 = vadd.f32 1.0, %v1305_v37  ;;  %v5980_v14 = vld [vmem:[%s11691_s1 + $0xc4] sm:$0xf0]  ;;  %v7746_v5 = vpop.permute.xlu0 %3960 }
  0xe0   :  { %11823 = vst [vmem:[#allocation37_spill] sm:$0xff] %v7692_v42  ;;  %v1080_v62 = vsub.f32 0.0, %v1016_v59  ;;  %v4838_v32 = vsel %vm3663_vm7, %v4770_v3, 0.0  ;;  %v4841_v13 = vsel %vm3663_vm7, %v4771_v6, 0.0  ;;  %v1308_v41 = vand.u32 2147483647, %v7656_v23  ;;  %v4001_v42 = vpop.permute.xlu2 %4000 }
  0xe1   :  { %v634_v2 = vpop.f32.mrf.mxu0  ;;  %5765 = vmatmul.msk.f32.gmra.mxu2 %vm511_vm0, %v1845_v15  ;;  %v4511_v22 = vmul.f32 %v7548_v27, %v1845_v15  ;;  %11824 = vst [vmem:[#allocation38_spill] sm:$0xff] %v7709_v17  ;;  %v4144_v7 = vmul.f32 %v7236_v58, %v7634_v24  ;;  %v7727_v59 = vadd.f32 %v7269_v38, %v4154_v33  ;;  %v5981_v37 = vld [vmem:[%s11691_s1 + $0xd4] sm:$0xf]  ;;  %v5662_v33 = vld [vmem:[%s11691_s1 + $0x1d8] sm:$0xf0]  ;;  %vm4258_vm4 = vcmp.ge.f32.partialorder %v7419_v40, 0.0 }
  0xe2   :  { %v635_v44 = vadd.f32 %v7225_v53, %v634_v2  ;;  %v7722_v50 = vpop.eup %6081  ;;  %v6013_v15 = vld [vmem:[%s11691_s1 + $0x1d4] sm:$0xf]  ;;  %v4380_v3 = vsel %vm4252_vm10, %v7284_v21, %v7318_v1  ;;  %v950_v2 = vmax.f32 %v7555_v30, 0.0  ;;  %v7740_v24 = vadd.f32 %v7269_v38, %v4143_v29  ;;  %v5534_v29 = vld [vmem:[%s11691_s1 + $0xd8] sm:$0xf0] }
  0xe3   :  { %11825 = vst [vmem:[#allocation39_spill] sm:$0xff] %v7727_v59  ;;  %v4581_v20 = vsel %vm511_vm0, %v4511_v22, 0.0  ;;  %v6084_v6 = vpop.eup %6083  ;;  %v4444_v22 = vmul.f32 1.4142135, %v4380_v3  ;;  %v1150_v17 = vmul.f32 1.442695, %v1080_v62  ;;  %v1307_v30 = vmul.f32 %v7656_v23, %v1306_v4 }
  0xe4   :  { %v7749_v21 = vadd.f32 %v7643_v45, %v635_v44  ;;  %v1304_v1 = vmul.f32 0.6931472, %v6084_v6  ;;  %vm1309_vm12 = vcmp.lt.f32.partialorder %v1308_v41, 0.0004427343  ;;  %v4381_v3 = vsel %vm4253_vm11, %v7287_v55, %v7321_v34  ;;  %v7768_v55 = vpop.permute.xlu1 %3965 }
  0xe5   :  { %4582 = vadd.xlane.f32.xlu2 %v4581_v20  ;;  %v4772_v62 = vmul.f32 %v7600_v43, %v4444_v22  ;;  %v1311_v45 = vadd.f32 1.0, %v7722_v50  ;;  %v4146_v44 = vmul.f32 %v7236_v58, %v7668_v31  ;;  %v5665_v23 = vor.u32 %v6013_v15, %v5662_v33 }
  0xe6   :  { %4839 = vadd.xlane.f32.xlu0 %v4838_v32  ;;  %4842 = vadd.xlane.f32.xlu1 %v4841_v13  ;;  %v1310_v32 = vsel %vm1309_vm12, %v1307_v30, %v1304_v1  ;;  %v5525_v13 = vor.u32 %v5980_v14, %v5524_v51  ;;  %v7764_v4 = vadd.f32 %v7269_v38, %v4144_v7  ;;  %6085 = vpow2.f32 %v1150_v17  ;;  %v7772_v51 = vpop.f32.mrf.mxu1 }
  0xe7   :  { %v7755_v20 = vpop.f32.mrf.mxu3  ;;  %v4157_v6 = vmul.f32 %v7236_v58, %v4001_v42  ;;  %v1846_v41 = vadd.f32 %v1310_v32, %v950_v2  ;;  %v5537_v0 = vor.u32 %v5981_v37, %v5534_v29  ;;  %v1017_v22 = vand.u32 2147483647, %v7749_v21 }
  0xe8   :  { %11826 = vst [vmem:[#allocation40_spill] sm:$0xff] %v7764_v4  ;;  %v4844_v34 = vsel %vm3663_vm7, %v4772_v62, 0.0  ;;  %v4445_v26 = vmul.f32 1.4142135, %v4381_v3  ;;  %v4147_v31 = vmul.f32 %v7236_v58, %v3951_v16  ;;  %6087 = vlog2.f32 %v1311_v45 }
  0xe9   :  { %v637_v54 = vpop.f32.mrf.mxu0  ;;  %5766 = vmatmul.msk.f32.gmra.mxu2 %vm511_vm0, %v1846_v41  ;;  %v4512_v14 = vmul.f32 %v7548_v27, %v1846_v41  ;;  %v1314_v42 = vmul.f32 -0.5, %v7722_v50  ;;  %v7778_v17 = vmul.f32 0.2, %v7697_v46  ;;  %v7781_v7 = vadd.f32 %v7269_v38, %v4146_v44 }
  0xea   :  { %v638_v37 = vadd.f32 %v7225_v53, %v637_v54  ;;  %v4773_v16 = vmul.f32 %v7600_v43, %v4445_v26  ;;  %v7787_v15 = vmul.f32 0.2, %v7700_v11  ;;  %v7790_v2 = vmul.f32 0.2, %v7727_v59 }
  0xeb   :  { %v7793_v33 = vadd.f32 %v7269_v38, %v4157_v6  ;;  %v4584_v1 = vsel %vm511_vm0, %v4512_v14, 0.0  ;;  %v7798_v54 = vmul.f32 0.2, %v7740_v24  ;;  %v1081_v30 = vsub.f32 0.0, %v1017_v22 }
  0xec   :  { %676 = vmatmul.bf16.gmra.mxu0 %v5525_v13  ;;  %5759 = vmatmul.msk.bf16.gmra.mxu3 %vm511_vm0, %v5665_v23  ;;  %11827 = vst [vmem:[#allocation41_spill] sm:$0xff] %v7790_v2  ;;  %v4847_v26 = vsel %vm3663_vm7, %v4773_v16, 0.0  ;;  %v1315_v29 = vadd.f32 1.0, %v1314_v42  ;;  %v7803_v62 = vadd.f32 %v7225_v53, %v7452_v10  ;;  %v7806_v3 = vmul.f32 0.2, %v7764_v4  ;;  %v7812_v44 = vpop.eup %6085  ;;  %v7820_v10 = vpop.permute.xlu0 %3975 }
  0xed   :  { %11828 = vst [vmem:[#allocation42_spill] sm:$0xff] %v7793_v33  ;;  %5743 = vmatmul.msk.bf16.gmra.mxu1 %vm511_vm0, %v5537_v0  ;;  %4845 = vadd.xlane.f32.xlu2 %v4844_v34  ;;  %v1317_v45 = vand.u32 2147483647, %v7722_v50  ;;  %v7815_v32 = vmul.f32 0.2, %v7781_v7  ;;  %v7818_v13 = vadd.f32 %v7269_v38, %v4147_v31  ;;  %v4016_v23 = vpop.permute.xlu2 %4015  ;;  %v7823_v6 = vadd.f32 %v7704_v18, %v638_v37  ;;  %v7844_v37 = vpop.permute.xlu1 %3980 }
  0xee   :  { %4585 = vadd.xlane.f32.xlu1 %v4584_v1  ;;  %11829 = vst [vmem:[#allocation43_spill] sm:$0xff] %v7806_v3  ;;  %4848 = vadd.xlane.f32.xlu0 %v4847_v26  ;;  %v4384_v41 = vsel %vm4256_vm13, %v7291_v56, %v7324_v35  ;;  %v6088_v22 = vpop.eup %6087  ;;  %v951_v34 = vmax.f32 %v7618_v9, 0.0  ;;  %v4149_v14 = vmul.f32 %v7236_v58, %v7746_v5  ;;  %v7831_v42 = vmul.f32 0.2, %v7793_v33 }
  0xef   :  { %v7808_v0 = vpop.f32.mrf.mxu3  ;;  %11830 = vst [vmem:[#allocation44_spill] sm:$0xff] %v7818_v13  ;;  %v4448_v16 = vmul.f32 1.4142135, %v4384_v41  ;;  %v1152_v1 = vmul.f32 1.442695, %v1081_v30  ;;  %v1316_v2 = vmul.f32 %v7722_v50, %v1315_v29  ;;  %v4382_v35 = vsel %vm4254_vm14, %v7399_v19, %v7431_v63 }
  0xf0   :  { %11831 = vst [vmem:[#allocation45_spill] sm:$0xff] %v7831_v42  ;;  %v1313_v26 = vmul.f32 0.6931472, %v6088_v22  ;;  %vm1318_vm15 = vcmp.lt.f32.partialorder %v1317_v45, 0.0004427343  ;;  %v1320_v9 = vadd.f32 1.0, %v7812_v44  ;;  %v7841_v5 = vadd.f32 %v7225_v53, %v7525_v12  ;;  %v7849_v45 = vpop.f32.mrf.mxu1 }
  0xf1   :  { %v639_v31 = vpop.f32.mrf.mxu0  ;;  %v4776_v56 = vmul.f32 %v7600_v43, %v4448_v16  ;;  %v1018_v18 = vand.u32 2147483647, %v7823_v6  ;;  %v4446_v50 = vmul.f32 1.4142135, %v4382_v35  ;;  %v5532_v29 = vld [vmem:[%s11691_s1 + $0xd0] sm:$0xf]  ;;  %v7861_v22 = vadd.f32 %v7225_v53, %v7574_v52 }
  0xf2   :  { %v1319_v30 = vsel %vm1318_vm15, %v1316_v2, %v1313_v26  ;;  %6089 = vlog2.f32 %v1320_v9  ;;  %v1323_v63 = vmul.f32 -0.5, %v7812_v44  ;;  %v5982_v12 = vld [vmem:[%s11691_s1 + $0xd4] sm:$0xf0]  ;;  %v5983_v2 = vld [vmem:[%s11691_s1 + $0xe4] sm:$0xf]  ;;  %v4160_v16 = vmul.f32 %v7236_v58, %v4016_v23 }
  0xf3   :  { %v1847_v41 = vadd.f32 %v1319_v30, %v951_v34  ;;  %v4856_v19 = vsel %vm3663_vm7, %v4776_v56, 0.0  ;;  %v4150_v34 = vmul.f32 %v7236_v58, %v7768_v55  ;;  %v4774_v26 = vmul.f32 %v7600_v43, %v4446_v50  ;;  %v5542_v56 = vld [vmem:[%s11691_s1 + $0xe8] sm:$0xf0]  ;;  %v6015_v35 = vld [vmem:[%s11691_s1 + $0x1e4] sm:$0xf] }
  0xf4   :  { %v5670_v52 = vld [vmem:[%s11691_s1 + $0x1e8] sm:$0xf0]  ;;  %v7877_v9 = vmul.f32 0.2, %v7818_v13  ;;  %v7880_v55 = vadd.f32 %v7269_v38, %v4149_v14  ;;  %6091 = vpow2.f32 %v1152_v1  ;;  %v1082_v50 = vsub.f32 0.0, %v1018_v18 }
  0xf5   :  { %5767 = vmatmul.msk.f32.gmra.mxu2 %vm511_vm0, %v1847_v41  ;;  %v4513_v23 = vmul.f32 %v7548_v27, %v1847_v41  ;;  %v4850_v42 = vsel %vm3663_vm7, %v4774_v26, 0.0  ;;  %v1324_v33 = vadd.f32 1.0, %v1323_v63  ;;  %v5533_v59 = vor.u32 %v5982_v12, %v5532_v29  ;;  %v4031_v18 = vpop.permute.xlu2 %4030 }
  0xf6   :  { %11832 = vst [vmem:[#allocation46_spill] sm:$0xff] %v7877_v9  ;;  %4857 = vadd.xlane.f32.xlu0 %v4856_v19  ;;  %4851 = vadd.xlane.f32.xlu1 %v4850_v42  ;;  %v1326_v14 = vand.u32 2147483647, %v7812_v44  ;;  %v5545_v13 = vor.u32 %v5983_v2, %v5542_v56  ;;  %v5673_v1 = vor.u32 %v6015_v35, %v5670_v52  ;;  %v3991_v19 = vpop.permute.xlu0 %3990  ;;  %v952_v2 = vmax.f32 %v7671_v8, 0.0 }
  0xf7   :  { %v7884_v30 = vpop.f32.mrf.mxu3  ;;  %v4587_v3 = vsel %vm511_vm0, %v4513_v23, 0.0  ;;  %v7890_v4 = vadd.f32 %v7269_v38, %v4150_v34  ;;  %v7893_v41 = vadd.f32 %v7269_v38, %v4160_v16  ;;  %v640_v26 = vadd.f32 %v7225_v53, %v639_v31 }
  0xf8   :  { %4588 = vadd.xlane.f32.xlu2 %v4587_v3  ;;  %v6090_v29 = vpop.eup %6089  ;;  %v7899_v42 = vadd.f32 %v7225_v53, %v7645_v28  ;;  %v4152_v63 = vmul.f32 %v7236_v58, %v7820_v10  ;;  %v4383_v12 = vsel %vm4255_vm1, %v7402_v60, %v7439_v49  ;;  %v7908_v31 = vmul.f32 0.2, %v7880_v55  ;;  %v7931_v35 = vpop.f32.mrf.mxu1 }
  0xf9   :  { %v642_v9 = vpop.f32.mrf.mxu0  ;;  %11833 = vst [vmem:[#allocation47_spill] sm:$0xff] %v7890_v4  ;;  %v1322_v3 = vmul.f32 0.6931472, %v6090_v29  ;;  %v1325_v34 = vmul.f32 %v7812_v44, %v1324_v33  ;;  %v1154_v16 = vmul.f32 1.442695, %v1082_v50  ;;  %v4385_v49 = vsel %vm4257_vm2, %v7416_v39, %v7447_v36  ;;  %v3996_v33 = vpop.permute.xlu1 %3995 }
  0xfa   :  { %11834 = vst [vmem:[#allocation48_spill] sm:$0xff] %v7893_v41  ;;  %v7912_v28 = vpop.eup %6091  ;;  %vm1327_vm3 = vcmp.lt.f32.partialorder %v1326_v14, 0.0004427343  ;;  %v4447_v60 = vmul.f32 1.4142135, %v4383_v12  ;;  %v7927_v56 = vadd.f32 %v7269_v38, %v4152_v63  ;;  %v4155_v23 = vmul.f32 %v7236_v58, %v3991_v19 }
  0xfb   :  { %v7918_v8 = vmul.f32 0.2, %v7890_v4  ;;  %v7921_v10 = vmul.f32 0.2, %v7893_v41  ;;  %v1328_v44 = vsel %vm1327_vm3, %v1325_v34, %v1322_v3  ;;  %v4156_v50 = vmul.f32 %v7236_v58, %v3996_v33  ;;  %v7952_v12 = vld [vmem:[%s11694_s4] ss:$0 sm:$0xff] }
  0xfc   :  { %681 = vmatmul.bf16.gmra.mxu0 %v5533_v59  ;;  %5760 = vmatmul.msk.bf16.gmra.mxu3 %vm511_vm0, %v5673_v1  ;;  %v7924_v59 = vadd.f32 %v7772_v51, %v640_v26  ;;  %11837 = vst [vmem:[#allocation51_spill] sm:$0xff] %v7927_v56  ;;  %v1848_v39 = vadd.f32 %v1328_v44, %v952_v2  ;;  %v4449_v14 = vmul.f32 1.4142135, %v4385_v49  ;;  %6093 = vpow2.f32 %v1154_v16 }
  0xfd   :  { %5744 = vmatmul.msk.bf16.gmra.mxu1 %vm511_vm0, %v5545_v13  ;;  %11835 = vst [vmem:[#allocation49_spill] sm:$0xff] %v7918_v8  ;;  %v4153_v13 = vmul.f32 %v7236_v58, %v7844_v37  ;;  %v4775_v36 = vmul.f32 %v7600_v43, %v4447_v60  ;;  %v4163_v51 = vmul.f32 %v7236_v58, %v4031_v18  ;;  %v1329_v29 = vadd.f32 1.0, %v7912_v28  ;;  %v4046_v49 = vpop.permute.xlu2 %4045 }
  0xfe   :  { %11836 = vst [vmem:[#allocation50_spill] sm:$0xff] %v7921_v10  ;;  %5768 = vmatmul.msk.f32.gmra.mxu2 %vm511_vm0, %v1848_v39  ;;  %v4514_v37 = vmul.f32 %v7548_v27, %v1848_v39  ;;  %v1019_v63 = vand.u32 2147483647, %v7924_v59  ;;  %v643_v19 = vadd.f32 %v7225_v53, %v642_v9  ;;  %v4777_v18 = vmul.f32 %v7600_v43, %v4449_v14  ;;  %v4006_v60 = vpop.permute.xlu0 %4005 }
  0xff   :  { %v7934_v52 = vpop.f32.mrf.mxu3  ;;  %v4853_v1 = vsel %vm3663_vm7, %v4775_v36, 0.0  ;;  %v1332_v58 = vmul.f32 -0.5, %v7912_v28  ;;  %v7956_v2 = vadd.f32 %v7952_v12, %v7681_v47  ;;  %v7959_v3 = vadd.f32 %v7269_v38, %v4153_v13  ;;  %v7979_v13 = vld [vmem:[%s11697_s7] ss:$0 sm:$0xff] }
 0x100   :  { %4854 = vadd.xlane.f32.xlu2 %v4853_v1  ;;  %v4590_v34 = vsel %vm511_vm0, %v4514_v37, 0.0  ;;  %6095 = vlog2.f32 %v1329_v29  ;;  %v7963_v53 = vmul.f32 0.2, %v7927_v56  ;;  %v7966_v9 = vadd.f32 %v7269_v38, %v4155_v23 }
 0x101   :  { %v7942_v26 = vpop.f32.mrf.mxu0  ;;  %11838 = vst [vmem:[#allocation52_spill] sm:$0xff] %v7959_v3  ;;  %v7969_v16 = vadd.f32 %v7269_v38, %v4163_v51  ;;  %4591 = vadd.xlane.f32.xlu0 %v4590_v34  ;;  %v4859_v47 = vsel %vm3663_vm7, %v4777_v18, 0.0  ;;  %v953_v33 = vmax.f32 %v7749_v21, 0.0  ;;  %v7974_v44 = vadd.f32 %v7269_v38, %v4156_v50  ;;  %v4011_v10 = vpop.permute.xlu1 %4010 }
 0x102   :  { %11839 = vst [vmem:[#allocation53_spill] sm:$0xff] %v7963_v53  ;;  %v4166_v39 = vmul.f32 %v7979_v13, %v4046_v49  ;;  %4860 = vadd.xlane.f32.xlu1 %v4859_v47  ;;  %v1083_v36 = vsub.f32 0.0, %v1019_v63  ;;  %v7984_v23 = vadd.f32 %v7849_v45, %v643_v19  ;;  %v1333_v51 = vadd.f32 1.0, %v1332_v58  ;;  %v7988_v38 = vpop.eup %6093  ;;  %v8014_v19 = vld [vmem:[%s11698_s8] ss:$0 sm:$0xff]  ;;  %v8019_v58 = vpop.f32.mrf.mxu1  ;;  %v11848_v49 = vld [vmem:[#allocation8_spill] sm:$0xff] }
 0x103   :  { %11840 = vst [vmem:[#allocation54_spill] sm:$0xff] %v7966_v9  ;;  %v4386_v21 = vsel %vm4258_vm4, %v7419_v40, %v7455_v48  ;;  %v7992_v50 = vadd.f32 %v7952_v12, %v7755_v20  ;;  %v7995_v14 = vmul.f32 0.2, %v7959_v3  ;;  %v1335_v1 = vand.u32 2147483647, %v7912_v28 }
 0x104   :  { %11841 = vst [vmem:[#allocation55_spill] sm:$0xff] %v7969_v16  ;;  %v4450_v37 = vmul.f32 1.4142135, %v4386_v21  ;;  %v8001_v45 = vmul.f32 0.2, %v7966_v9  ;;  %v4158_v40 = vmul.f32 %v7979_v13, %v4006_v60  ;;  %vm4259_vm5 = vcmp.ge.f32.partialorder %v7302_v25, 0.0 }
 0x105   :  { %11842 = vst [vmem:[#allocation56_spill] sm:$0xff] %v7974_v44  ;;  %v8004_v63 = vmul.f32 0.2, %v7969_v16  ;;  %v8009_v20 = vmul.f32 0.2, %v7974_v44  ;;  %v8017_v18 = vadd.f32 %v8014_v19, %v4166_v39  ;;  %v4387_v60 = vsel %vm4259_vm5, %v7302_v25, %v11848_v49 }
 0x106   :  { %11843 = vst [vmem:[#allocation57_spill] sm:$0xff] %v7995_v14  ;;  %v6096_v48 = vpop.eup %6095  ;;  %v4778_v34 = vmul.f32 %v7600_v43, %v4450_v37  ;;  %v5540_v21 = vld [vmem:[%s11691_s1 + $0xe0] sm:$0xf]  ;;  %v1156_v16 = vmul.f32 1.442695, %v1083_v36  ;;  %v1334_v37 = vmul.f32 %v7912_v28, %v1333_v51  ;;  %v8039_v14 = vadd.f32 %v7952_v12, %v7808_v0 }
 0x107   :  { %v7998_v29 = vpop.f32.mrf.mxu3  ;;  %11844 = vst [vmem:[#allocation58_spill] sm:$0xff] %v8001_v45  ;;  %v1020_v39 = vand.u32 2147483647, %v7984_v23  ;;  %v1331_v41 = vmul.f32 0.6931472, %v6096_v48  ;;  %v1341_v36 = vmul.f32 -0.5, %v7988_v38  ;;  %v4061_v45 = vpop.permute.xlu2 %4060 }
 0x108   :  { %11845 = vst [vmem:[#allocation59_spill] sm:$0xff] %v8004_v63  ;;  %v5984_v63 = vld [vmem:[%s11691_s1 + $0xe4] sm:$0xf0]  ;;  %vm1336_vm6 = vcmp.lt.f32.partialorder %v1335_v1, 0.0004427343  ;;  %v4862_v25 = vsel %vm3663_vm7, %v4778_v34, 0.0  ;;  %v645_v1 = vadd.f32 %v7952_v12, %v7942_v26  ;;  %v4021_v26 = vpop.permute.xlu0 %4020 }
 0x109   :  { %11846 = vst [vmem:[#allocation60_spill] sm:$0xff] %v8009_v20  ;;  %v8024_v47 = vpop.f32.mrf.mxu0  ;;  %v4451_v49 = vmul.f32 1.4142135, %v4387_v60  ;;  %v1338_v20 = vadd.f32 1.0, %v7988_v38  ;;  %v1337_v3 = vsel %vm1336_vm6, %v1334_v37, %v1331_v41  ;;  %4863 = vadd.xlane.f32.xlu2 %v4862_v25  ;;  %v5985_v28 = vld [vmem:[%s11691_s1 + $0xf4] sm:$0xf]  ;;  %v8058_v60 = vadd.f32 %v8014_v19, %v4158_v40 }
 0x10a   :  { %11847 = vst [vmem:[#allocation61_spill] sm:$0xff] %v8017_v18  ;;  %v5550_v51 = vld [vmem:[%s11691_s1 + $0xf8] sm:$0xf0]  ;;  %v1849_v48 = vadd.f32 %v1337_v3, %v953_v33  ;;  %v6017_v0 = vld [vmem:[%s11691_s1 + $0x1f4] sm:$0xf]  ;;  %v5541_v3 = vor.u32 %v5984_v63, %v5540_v21  ;;  %v1084_v33 = vsub.f32 0.0, %v1020_v39  ;;  %v4161_v40 = vmul.f32 %v7979_v13, %v4021_v26  ;;  %v8088_v26 = vpop.f32.mrf.mxu1 }
 0x10b   :  { %v4779_v34 = vmul.f32 %v7600_v43, %v4451_v49  ;;  %6097 = vlog2.f32 %v1338_v20  ;;  %v5678_v41 = vld [vmem:[%s11691_s1 + $0x1f8] sm:$0xf0]  ;;  %11849 = vst [vmem:[#allocation8_spill] sm:$0xff] %v8058_v60  ;;  %v8061_v37 = vmul.f32 0.2, %v8017_v18  ;;  %v5553_v49 = vor.u32 %v5985_v28, %v5550_v51  ;;  %v11851_v28 = vld [vmem:[#allocation7_spill] sm:$0xff] }
 0x10c   :  { %6099 = vpow2.f32 %v1156_v16  ;;  %5769 = vmatmul.msk.f32.gmra.mxu2 %vm511_vm0, %v1849_v48  ;;  %v4515_v25 = vmul.f32 %v7548_v27, %v1849_v48  ;;  %v4159_v16 = vmul.f32 %v7979_v13, %v4011_v10  ;;  %v1342_v18 = vadd.f32 1.0, %v1341_v36  ;;  %686 = vmatmul.bf16.gmra.mxu0 %v5541_v3 }
 0x10d   :  { %11850 = vst [vmem:[#allocation62_spill] sm:$0xff] %v8061_v37  ;;  %v4865_v20 = vsel %vm3663_vm7, %v4779_v34, 0.0  ;;  %v5681_v37 = vor.u32 %v6017_v0, %v5678_v41  ;;  %v8071_v63 = vadd.f32 %v7931_v35, %v645_v1  ;;  %v1344_v39 = vand.u32 2147483647, %v7988_v38  ;;  %5745 = vmatmul.msk.bf16.gmra.mxu1 %vm511_vm0, %v5553_v49  ;;  %v11853_v35 = vld [vmem:[#allocation9_spill] sm:$0xff]  ;;  %v11854_v1 = vld [vmem:[#allocation15_spill] sm:$0xff] }
 0x10e   :  { %4866 = vadd.xlane.f32.xlu0 %v4865_v20  ;;  %v4593_v21 = vsel %vm511_vm0, %v4515_v25, 0.0  ;;  %vm4262_vm8 = vcmp.ge.f32.partialorder %v11851_v28, 0.0  ;;  %v8081_v48 = vmul.f32 0.2, %v8058_v60  ;;  %vm4260_vm9 = vcmp.ge.f32.partialorder %v11854_v1, 0.0  ;;  %v11855_v20 = vld [vmem:[#allocation19_spill] sm:$0xff] }
 0x10f   :  { %v8066_v44 = vpop.f32.mrf.mxu3  ;;  %4594 = vadd.xlane.f32.xlu1 %v4593_v21  ;;  %5761 = vmatmul.msk.bf16.gmra.mxu3 %vm511_vm0, %v5681_v37  ;;  %v4390_v36 = vsel %vm4262_vm8, %v11851_v28, %v11853_v35  ;;  %v1158_v0 = vmul.f32 1.442695, %v1084_v33  ;;  %v4169_v41 = vmul.f32 %v7979_v13, %v4061_v45  ;;  %v4388_v25 = vsel %vm4260_vm9, %v11854_v1, %v11855_v20  ;;  %v4026_v28 = vpop.permute.xlu1 %4025 }
 0x110   :  { %11852 = vst [vmem:[#allocation7_spill] sm:$0xff] %v8081_v48  ;;  %v4454_v3 = vmul.f32 1.4142135, %v4390_v36  ;;  %v8096_v37 = vadd.f32 %v7952_v12, %v7884_v30  ;;  %v8099_v21 = vadd.f32 %v8014_v19, %v4159_v16  ;;  %v1343_v33 = vmul.f32 %v7988_v38, %v1342_v18 }
 0x111   :  { %v8077_v51 = vpop.f32.mrf.mxu0  ;;  %v6098_v34 = vpop.eup %6097  ;;  %v8103_v45 = vadd.f32 %v8014_v19, %v4161_v40  ;;  %v1021_v36 = vand.u32 2147483647, %v8071_v63  ;;  %v4162_v1 = vmul.f32 %v7979_v13, %v4026_v28  ;;  %vm1345_vm10 = vcmp.lt.f32.partialorder %v1344_v39, 0.0004427343 }
 0x112   :  { %v8092_v49 = vpop.eup %6099  ;;  %11856 = vst [vmem:[#allocation9_spill] sm:$0xff] %v8099_v21  ;;  %v1340_v35 = vmul.f32 0.6931472, %v6098_v34  ;;  %v648_v20 = vadd.f32 %v7952_v12, %v8024_v47  ;;  %v4782_v10 = vmul.f32 %v7600_v43, %v4454_v3  ;;  %v4452_v16 = vmul.f32 1.4142135, %v4388_v25  ;;  %v4036_v39 = vpop.permute.xlu0 %4035 }
 0x113   :  { %11857 = vst [vmem:[#allocation15_spill] sm:$0xff] %v8103_v45  ;;  %6101 = vpow2.f32 %v1158_v0  ;;  %v8111_v34 = vadd.f32 %v8014_v19, %v4169_v41  ;;  %v11859_v38 = vmax.f32 %v7823_v6, 0.0  ;;  %v1347_v40 = vadd.f32 1.0, %v8092_v49 }
 0x114   :  { %v1346_v30 = vsel %vm1345_vm10, %v1343_v33, %v1340_v35  ;;  %v8117_v48 = vmul.f32 0.2, %v8099_v21  ;;  %v4874_v28 = vsel %vm3663_vm7, %v4782_v10, 0.0  ;;  %v4780_v47 = vmul.f32 %v7600_v43, %v4452_v16 }
 0x115   :  { %11858 = vst [vmem:[#allocation19_spill] sm:$0xff] %v8111_v34  ;;  %v1850_v18 = vadd.f32 %v1346_v30, %v11859_v38  ;;  %v1350_v3 = vmul.f32 -0.5, %v8092_v49  ;;  %v1085_v41 = vsub.f32 0.0, %v1021_v36  ;;  %6103 = vlog2.f32 %v1347_v40  ;;  %v4076_v30 = vpop.permute.xlu2 %4075 }
 0x116   :  { %11860 = vst [vmem:[#allocation63_spill] sm:$0xff] %v8117_v48  ;;  %4875 = vadd.xlane.f32.xlu0 %v4874_v28  ;;  %v8130_v33 = vmul.f32 0.2, %v8103_v45  ;;  %v8133_v10 = vadd.f32 %v8014_v19, %v4162_v1  ;;  %v8136_v16 = vadd.f32 %v8019_v58, %v648_v20  ;;  %v4868_v36 = vsel %vm3663_vm7, %v4780_v47, 0.0  ;;  %v11864_v20 = vld [vmem:[#allocation17_spill] sm:$0xff] }
 0x117   :  { %v8122_v25 = vpop.f32.mrf.mxu3  ;;  %5770 = vmatmul.msk.f32.gmra.mxu2 %vm511_vm0, %v1850_v18  ;;  %v4516_v6 = vmul.f32 %v7548_v27, %v1850_v18  ;;  %v8140_v38 = vmul.f32 0.2, %v8111_v34  ;;  %v4164_v27 = vmul.f32 %v7979_v13, %v4036_v39  ;;  %v4172_v18 = vmul.f32 %v7979_v13, %v4076_v30  ;;  %4869 = vadd.xlane.f32.xlu1 %v4868_v36  ;;  %v11865_v30 = vld [vmem:[#allocation24_spill] sm:$0xff]  ;;  %v11866_v36 = vld [vmem:[#allocation21_spill] sm:$0xff]  ;;  %v11868_v34 = vld [vmem:[#allocation26_spill] sm:$0xff] }
 0x118   :  { %11861 = vst [vmem:[#allocation64_spill] sm:$0xff] %v8130_v33  ;;  %v8147_v1 = vadd.f32 %v7952_v12, %v7934_v52  ;;  %v1351_v58 = vadd.f32 1.0, %v1350_v3  ;;  %vm4261_vm11 = vcmp.ge.f32.partialorder %v11864_v20, 0.0  ;;  %v1160_v0 = vmul.f32 1.442695, %v1085_v41  ;;  %v4041_v3 = vpop.permute.xlu1 %4040 }
 0x119   :  { %v8127_v35 = vpop.f32.mrf.mxu0  ;;  %11862 = vst [vmem:[#allocation65_spill] sm:$0xff] %v8133_v10  ;;  %v4596_v40 = vsel %vm511_vm0, %v4516_v6, 0.0  ;;  %v8151_v47 = vpop.eup %6101  ;;  %v1353_v39 = vand.u32 2147483647, %v8092_v49  ;;  %v4389_v6 = vsel %vm4261_vm11, %v11864_v20, %v11865_v30  ;;  %vm4263_vm12 = vcmp.ge.f32.partialorder %v11866_v36, 0.0 }
 0x11a   :  { %11863 = vst [vmem:[#allocation66_spill] sm:$0xff] %v8140_v38  ;;  %4597 = vadd.xlane.f32.xlu2 %v4596_v40  ;;  %v8153_v38 = vpop.f32.mrf.mxu1  ;;  %v8160_v52 = vmul.f32 0.2, %v8133_v10  ;;  %v1022_v40 = vand.u32 2147483647, %v8136_v16  ;;  %v4391_v48 = vsel %vm4263_vm12, %v11866_v36, %v11868_v34  ;;  %v8166_v21 = vadd.f32 %v8014_v19, %v4164_v27 }
 0x11b   :  { %v4453_v28 = vmul.f32 1.4142135, %v4389_v6  ;;  %v6104_v41 = vpop.eup %6103  ;;  %v8169_v33 = vadd.f32 %v8014_v19, %v4172_v18  ;;  %v650_v20 = vadd.f32 %v7952_v12, %v8077_v51  ;;  %v4455_v30 = vmul.f32 1.4142135, %v4391_v48  ;;  %v5986_v27 = vld [vmem:[%s11691_s1 + $0xf4] sm:$0xf0] }
 0x11c   :  { %11867 = vst [vmem:[#allocation17_spill] sm:$0xff] %v8160_v52  ;;  %v5548_v52 = vld [vmem:[%s11691_s1 + $0xf0] sm:$0xf]  ;;  %v1349_v10 = vmul.f32 0.6931472, %v6104_v41  ;;  %v1352_v6 = vmul.f32 %v8092_v49, %v1351_v58  ;;  %v1356_v36 = vadd.f32 1.0, %v8151_v47  ;;  %6105 = vpow2.f32 %v1160_v0  ;;  %v4051_v58 = vpop.permute.xlu0 %4050 }
 0x11d   :  { %11869 = vst [vmem:[#allocation24_spill] sm:$0xff] %v8166_v21  ;;  %v4781_v34 = vmul.f32 %v7600_v43, %v4453_v28  ;;  %v8184_v51 = vadd.f32 %v7952_v12, %v7998_v29  ;;  %vm1354_vm13 = vcmp.lt.f32.partialorder %v1353_v39, 0.0004427343  ;;  %v4783_v48 = vmul.f32 %v7600_v43, %v4455_v30  ;;  %v5987_v49 = vld [vmem:[%s11691_s1 + $0x104] sm:$0xf] }
 0x11e   :  { %11870 = vst [vmem:[#allocation21_spill] sm:$0xff] %v8169_v33  ;;  %v5558_v18 = vld [vmem:[%s11691_s1 + $0x108] sm:$0xf0]  ;;  %v1086_v28 = vsub.f32 0.0, %v1022_v40  ;;  %v1355_v41 = vsel %vm1354_vm13, %v1352_v6, %v1349_v10  ;;  %6107 = vlog2.f32 %v1356_v36  ;;  %v8197_v29 = vadd.f32 %v8088_v26, %v650_v20  ;;  %v8217_v20 = vld [vmem:[%s11699_s9] ss:$0 sm:$0xff] }
 0x11f   :  { %v4871_v0 = vsel %vm3663_vm7, %v4781_v34, 0.0  ;;  %v8194_v60 = vpop.f32.mrf.mxu3  ;;  %v11871_v39 = vmax.f32 %v7924_v59, 0.0  ;;  %v4877_v45 = vsel %vm3663_vm7, %v4783_v48, 0.0  ;;  %v1359_v9 = vmul.f32 -0.5, %v8151_v47 }
 0x120   :  { %v8206_v40 = vmul.f32 0.2, %v8166_v21  ;;  %v4165_v10 = vmul.f32 %v7979_v13, %v4041_v3  ;;  %4878 = vadd.xlane.f32.xlu1 %v4877_v45  ;;  %v5549_v6 = vor.u32 %v5986_v27, %v5548_v52  ;;  %v5561_v34 = vor.u32 %v5987_v49, %v5558_v18  ;;  %v11874_v52 = vld [vmem:[#allocation22_spill] sm:$0xff] }
 0x121   :  { %v1851_v30 = vadd.f32 %v1355_v41, %v11871_v39  ;;  %v8203_v8 = vpop.f32.mrf.mxu0  ;;  %v8210_v26 = vmul.f32 0.2, %v8169_v33  ;;  %v4167_v59 = vmul.f32 %v7979_v13, %v4051_v58  ;;  %v1360_v48 = vadd.f32 1.0, %v1359_v9  ;;  %v11875_v27 = vld [vmem:[#allocation10_spill] sm:$0xff]  ;;  %v4091_v58 = vpop.permute.xlu2 %4090 }
 0x122   :  { %11872 = vst [vmem:[#allocation26_spill] sm:$0xff] %v8206_v40  ;;  %4872 = vadd.xlane.f32.xlu2 %v4871_v0  ;;  %v1162_v3 = vmul.f32 1.442695, %v1086_v28  ;;  %v1362_v45 = vand.u32 2147483647, %v8151_v47  ;;  %691 = vmatmul.bf16.gmra.mxu0 %v5549_v6  ;;  %vm4264_vm14 = vcmp.ge.f32.partialorder %v11874_v52, 0.0  ;;  %v8224_v49 = vpop.eup %6105  ;;  %v823_v0 = vpop.f32.mrf.mxu1  ;;  %v8232_v6 = vadd.f32 %v8014_v19, %v4165_v10 }
 0x123   :  { %11873 = vst [vmem:[#allocation67_spill] sm:$0xff] %v8210_v26  ;;  %5771 = vmatmul.msk.f32.gmra.mxu2 %vm511_vm0, %v1851_v30  ;;  %v4517_v36 = vmul.f32 %v8217_v20, %v1851_v30  ;;  %5746 = vmatmul.msk.bf16.gmra.mxu1 %vm511_vm0, %v5561_v34  ;;  %vm4265_vm15 = vcmp.ge.f32.partialorder %v11875_v27, 0.0  ;;  %v1023_v41 = vand.u32 2147483647, %v8197_v29  ;;  %v11876_v28 = vld [vmem:[#allocation27_spill] sm:$0xff]  ;;  %v4175_v34 = vmul.f32 %v7979_v13, %v4091_v58  ;;  %v4056_v26 = vpop.permute.xlu1 %4055  ;;  %v11878_v40 = vld [vmem:[#allocation12_spill] sm:$0xff] }
 0x124   :  { %v4392_v39 = vsel %vm4264_vm14, %v11874_v52, %v11876_v28  ;;  %v6108_v30 = vpop.eup %6107  ;;  %11877 = vst [vmem:[#allocation22_spill] sm:$0xff] %v8232_v6  ;;  %v4393_v18 = vsel %vm4265_vm15, %v11875_v27, %v11878_v40  ;;  %v8238_v21 = vadd.f32 %v8014_v19, %v4167_v59  ;;  %v1361_v52 = vmul.f32 %v8151_v47, %v1360_v48  ;;  %v4066_v27 = vpop.permute.xlu0 %4065 }
 0x125   :  { %v4599_v9 = vsel %vm511_vm0, %v4517_v36, 0.0  ;;  %v4456_v33 = vmul.f32 1.4142135, %v4392_v39  ;;  %v4168_v36 = vmul.f32 %v7979_v13, %v4056_v26  ;;  %v1358_v4 = vmul.f32 0.6931472, %v6108_v30 }
 0x126   :  { %4600 = vadd.xlane.f32.xlu0 %v4599_v9  ;;  %11879 = vst [vmem:[#allocation10_spill] sm:$0xff] %v8238_v21  ;;  %6109 = vpow2.f32 %v1162_v3  ;;  %v653_v10 = vadd.f32 %v7952_v12, %v8127_v35  ;;  %vm1363_vm1 = vcmp.lt.f32.partialorder %v1362_v45, 0.0004427343  ;;  %v1087_v9 = vsub.f32 0.0, %v1023_v41 }
 0x127   :  { %v4784_v58 = vmul.f32 %v7600_v43, %v4456_v33  ;;  %v1364_v28 = vsel %vm1363_vm1, %v1361_v52, %v1358_v4  ;;  %v4457_v39 = vmul.f32 1.4142135, %v4393_v18  ;;  %v1365_v40 = vadd.f32 1.0, %v8224_v49  ;;  %v8253_v35 = vpop.f32.mrf.mxu3  ;;  %v8264_v33 = vld [vmem:[%s11700_s10] ss:$0 sm:$0xff] }
 0x128   :  { %v8247_v59 = vadd.f32 %v8014_v19, %v4175_v34  ;;  %v11881_v26 = vmax.f32 %v7984_v23, 0.0  ;;  %v1368_v48 = vmul.f32 -0.5, %v8224_v49  ;;  %v8256_v43 = vmul.f32 0.2, %v8232_v6 }
 0x129   :  { %v4880_v47 = vsel %vm3663_vm7, %v4784_v58, 0.0  ;;  %v8259_v4 = vadd.f32 %v8014_v19, %v4168_v36  ;;  %v4785_v23 = vmul.f32 %v8264_v33, %v4457_v39  ;;  %6111 = vlog2.f32 %v1365_v40  ;;  %v657_v3 = vpop.f32.mrf.mxu0 }
 0x12a   :  { %11880 = vst [vmem:[#allocation27_spill] sm:$0xff] %v8247_v59  ;;  %v1852_v30 = vadd.f32 %v1364_v28, %v11881_v26  ;;  %4881 = vadd.xlane.f32.xlu2 %v4880_v47  ;;  %v8268_v45 = vmul.f32 0.2, %v8238_v21  ;;  %v4170_v18 = vmul.f32 %v7979_v13, %v4066_v27  ;;  %v8272_v41 = vadd.f32 %v8153_v38, %v653_v10  ;;  %v11886_v27 = vld [vmem:[#allocation13_spill] sm:$0xff]  ;;  %v11888_v47 = vld [vmem:[#allocation16_spill] sm:$0xff] }
 0x12b   :  { %11882 = vst [vmem:[#allocation12_spill] sm:$0xff] %v8256_v43  ;;  %v1164_v36 = vmul.f32 1.442695, %v1087_v9  ;;  %v4883_v52 = vsel %vm3663_vm7, %v4785_v23, 0.0  ;;  %v655_v58 = vadd.f32 %v7952_v12, %v8203_v8  ;;  %v1369_v28 = vadd.f32 1.0, %v1368_v48  ;;  %v826_v8 = vpop.f32.mrf.mxu1 }
 0x12c   :  { %11883 = vst [vmem:[#allocation68_spill] sm:$0xff] %v8259_v4  ;;  %5772 = vmatmul.msk.f32.gmra.mxu2 %vm511_vm0, %v1852_v30  ;;  %v4518_v34 = vmul.f32 %v8217_v20, %v1852_v30  ;;  %v8279_v39 = vpop.eup %6109  ;;  %v8282_v40 = vmul.f32 0.2, %v8247_v59  ;;  %v8286_v38 = vadd.f32 %v7952_v12, %v8066_v44  ;;  %vm4268_vm2 = vcmp.ge.f32.partialorder %v11886_v27, 0.0  ;;  %v4081_v6 = vpop.permute.xlu0 %4080 }
 0x12d   :  { %11884 = vst [vmem:[#allocation69_spill] sm:$0xff] %v8268_v45  ;;  %v8292_v26 = vmul.f32 0.2, %v8259_v4  ;;  %v1371_v30 = vand.u32 2147483647, %v8224_v49  ;;  %v4396_v48 = vsel %vm4268_vm2, %v11886_v27, %v11888_v47  ;;  %v8298_v44 = vadd.f32 %v8014_v19, %v4170_v18 }
 0x12e   :  { %11885 = vst [vmem:[#allocation70_spill] sm:$0xff] %v8282_v40  ;;  %4884 = vadd.xlane.f32.xlu0 %v4883_v52  ;;  %v4602_v10 = vsel %vm511_vm0, %v4518_v34, 0.0  ;;  %v1024_v23 = vand.u32 2147483647, %v8272_v41  ;;  %v4460_v34 = vmul.f32 1.4142135, %v4396_v48  ;;  %6113 = vpow2.f32 %v1164_v36  ;;  %v4071_v36 = vpop.permute.xlu1 %4070 }
 0x12f   :  { %11887 = vst [vmem:[#allocation13_spill] sm:$0xff] %v8292_v26  ;;  %4603 = vadd.xlane.f32.xlu1 %v4602_v10  ;;  %v11889_v52 = vld [vmem:[#allocation28_spill] sm:$0xff]  ;;  %v6112_v40 = vpop.eup %6111  ;;  %v8302_v9 = vadd.f32 %v823_v0, %v655_v58  ;;  %v1370_v59 = vmul.f32 %v8224_v49, %v1369_v28  ;;  %v11890_v10 = vld [vmem:[#allocation31_spill] sm:$0xff]  ;;  %v5556_v27 = vld [vmem:[%s11691_s1 + $0x100] sm:$0xf]  ;;  %v1374_v28 = vadd.f32 1.0, %v8279_v39  ;;  %v4171_v48 = vmul.f32 %v7979_v13, %v4071_v36 }
 0x130   :  { %vm4266_vm3 = vcmp.ge.f32.partialorder %v11889_v52, 0.0  ;;  %v5988_v18 = vld [vmem:[%s11691_s1 + $0x104] sm:$0xf0]  ;;  %v5989_v47 = vld [vmem:[%s11691_s1 + $0x114] sm:$0xf]  ;;  %v4788_v58 = vmul.f32 %v8264_v33, %v4460_v34  ;;  %v1088_v43 = vsub.f32 0.0, %v1024_v23 }
 0x131   :  { %v4394_v26 = vsel %vm4266_vm3, %v11889_v52, %v11890_v10  ;;  %v1367_v0 = vmul.f32 0.6931472, %v6112_v40  ;;  %vm1372_vm4 = vcmp.lt.f32.partialorder %v1371_v30, 0.0004427343  ;;  %v658_v52 = vadd.f32 %v7952_v12, %v657_v3  ;;  %v5566_v4 = vld [vmem:[%s11691_s1 + $0x118] sm:$0xf0]  ;;  %v659_v53 = vpop.f32.mrf.mxu0 }
 0x132   :  { %v4458_v49 = vmul.f32 1.4142135, %v4394_v26  ;;  %v1377_v10 = vmul.f32 -0.5, %v8279_v39  ;;  %6115 = vlog2.f32 %v1374_v28  ;;  %v911_v26 = vpop.f32.mrf.mxu3  ;;  %v8326_v34 = vmul.f32 0.2, %v8298_v44 }
 0x133   :  { %v1373_v45 = vsel %vm1372_vm4, %v1370_v59, %v1367_v0  ;;  %v4173_v30 = vmul.f32 %v7979_v13, %v4081_v6  ;;  %v11891_v3 = vmax.f32 %v8071_v63, 0.0  ;;  %v4892_v21 = vsel %vm3663_vm7, %v4788_v58, 0.0  ;;  %v11894_v58 = vld [vmem:[#allocation32_spill] sm:$0xff] }
 0x134   :  { %v4786_v40 = vmul.f32 %v8264_v33, %v4458_v49  ;;  %v1025_v56 = vand.u32 2147483647, %v8302_v9  ;;  %v5557_v23 = vor.u32 %v5988_v18, %v5556_v27  ;;  %v5569_v0 = vor.u32 %v5989_v47, %v5566_v4  ;;  %v8334_v49 = vpop.eup %6113  ;;  %v11893_v4 = vld [vmem:[#allocation29_spill] sm:$0xff]  ;;  %v828_v47 = vpop.f32.mrf.mxu1 }
 0x135   :  { %v1853_v36 = vadd.f32 %v1373_v45, %v11891_v3  ;;  %v8337_v28 = vadd.f32 %v8014_v19, %v4171_v48  ;;  %v8341_v63 = vadd.f32 %v826_v8, %v658_v52  ;;  %v1378_v6 = vadd.f32 1.0, %v1377_v10 }
 0x136   :  { %4893 = vadd.xlane.f32.xlu0 %v4892_v21  ;;  %v4886_v59 = vsel %vm3663_vm7, %v4786_v40, 0.0  ;;  %v1166_v45 = vmul.f32 1.442695, %v1088_v43  ;;  %v1380_v21 = vand.u32 2147483647, %v8279_v39  ;;  %696 = vmatmul.bf16.gmra.mxu0 %v5557_v23  ;;  %vm4267_vm5 = vcmp.ge.f32.partialorder %v11893_v4, 0.0 }
 0x137   :  { %11892 = vst [vmem:[#allocation16_spill] sm:$0xff] %v8337_v28  ;;  %5773 = vmatmul.msk.f32.gmra.mxu2 %vm511_vm0, %v1853_v36  ;;  %v4519_v13 = vmul.f32 %v8217_v20, %v1853_v36  ;;  %4887 = vadd.xlane.f32.xlu1 %v4886_v59  ;;  %vm4269_vm6 = vcmp.ge.f32.partialorder %v7585_v61, 0.0  ;;  %v8349_v27 = vadd.f32 %v7952_v12, %v8122_v25  ;;  %v1089_v10 = vsub.f32 0.0, %v1025_v56 }
 0x138   :  { %5747 = vmatmul.msk.bf16.gmra.mxu1 %vm511_vm0, %v5569_v0  ;;  %v4395_v43 = vsel %vm4267_vm5, %v11893_v4, %v11894_v58  ;;  %v6116_v48 = vpop.eup %6115  ;;  %v8356_v52 = vadd.f32 %v8014_v19, %v4173_v30  ;;  %v4397_v3 = vsel %vm4269_vm6, %v7585_v61, %v7686_v57  ;;  %v8361_v25 = vmul.f32 0.2, %v8337_v28 }
 0x139   :  { %v4605_v8 = vsel %vm511_vm0, %v4519_v13, 0.0  ;;  %v4459_v40 = vmul.f32 1.4142135, %v4395_v43  ;;  %v1026_v36 = vand.u32 2147483647, %v8341_v63  ;;  %v1379_v23 = vmul.f32 %v8279_v39, %v1378_v6 }
 0x13a   :  { %4606 = vadd.xlane.f32.xlu2 %v4605_v8  ;;  %11895 = vst [vmem:[#allocation28_spill] sm:$0xff] %v8361_v25  ;;  %v1376_v59 = vmul.f32 0.6931472, %v6116_v48  ;;  %6117 = vpow2.f32 %v1166_v45  ;;  %vm1381_vm8 = vcmp.lt.f32.partialorder %v1380_v21, 0.0004427343  ;;  %v8367_v56 = vadd.f32 %v911_v26, %v7803_v62  ;;  %v913_v6 = vpop.f32.mrf.mxu3  ;;  %v662_v62 = vpop.f32.mrf.mxu0  ;;  %v11897_v48 = vld [vmem:[#allocation34_spill] sm:$0xff] }
 0x13b   :  { %v4787_v0 = vmul.f32 %v8264_v33, %v4459_v40  ;;  %v4461_v19 = vmul.f32 1.4142135, %v4397_v3  ;;  %v660_v13 = vadd.f32 %v7952_v12, %v659_v53  ;;  %v1383_v61 = vadd.f32 1.0, %v8334_v49  ;;  %v11899_v3 = vld [vmem:[#allocation36_spill] sm:$0xff] }
 0x13c   :  { %v1382_v30 = vsel %vm1381_vm8, %v1379_v23, %v1376_v59  ;;  %v1168_v57 = vmul.f32 1.442695, %v1089_v10  ;;  %v11896_v4 = vmax.f32 %v8136_v16, 0.0  ;;  %v1386_v39 = vmul.f32 -0.5, %v8334_v49 }
 0x13d   :  { %v4789_v58 = vmul.f32 %v8264_v33, %v4461_v19  ;;  %v1090_v45 = vsub.f32 0.0, %v1026_v36  ;;  %v4889_v21 = vsel %vm3663_vm7, %v4787_v0, 0.0  ;;  %v8376_v43 = vadd.f32 %v828_v47, %v660_v13  ;;  %v831_v13 = vpop.f32.mrf.mxu1 }
 0x13e   :  { %v1854_v8 = vadd.f32 %v1382_v30, %v11896_v4  ;;  %6119 = vlog2.f32 %v1383_v61  ;;  %v8380_v53 = vadd.f32 %v7952_v12, %v8194_v60  ;;  %vm4270_vm9 = vcmp.ge.f32.partialorder %v11897_v48, 0.0  ;;  %v11900_v4 = vld [vmem:[#allocation14_spill] sm:$0xff] }
 0x13f   :  { %v4895_v26 = vsel %vm3663_vm7, %v4789_v58, 0.0  ;;  %v8387_v10 = vmul.f32 0.2, %v8356_v52  ;;  %v1060_v47 = vand.u32 2147483647, %v8367_v56  ;;  %v4398_v60 = vsel %vm4270_vm9, %v11897_v48, %v11899_v3  ;;  %v11901_v58 = vld [vmem:[#allocation18_spill] sm:$0xff] }
 0x140   :  { %5774 = vmatmul.msk.f32.gmra.mxu2 %vm511_vm0, %v1854_v8  ;;  %v4520_v16 = vmul.f32 %v8217_v20, %v1854_v8  ;;  %4896 = vadd.xlane.f32.xlu1 %v4895_v26  ;;  %v1027_v40 = vand.u32 2147483647, %v8376_v43  ;;  %v8393_v36 = vpop.eup %6117  ;;  %v1387_v0 = vadd.f32 1.0, %v1386_v39  ;;  %v4462_v19 = vmul.f32 1.4142135, %v4398_v60  ;;  %v8407_v60 = vpop.permute.xlu1 %4085 }
 0x141   :  { %11898 = vst [vmem:[#allocation31_spill] sm:$0xff] %v8387_v10  ;;  %6121 = vpow2.f32 %v1168_v57  ;;  %v1170_v30 = vmul.f32 1.442695, %v1090_v45  ;;  %v1389_v61 = vand.u32 2147483647, %v8334_v49  ;;  %vm4271_vm10 = vcmp.ge.f32.partialorder %v11900_v4, 0.0 }
 0x142   :  { %4890 = vadd.xlane.f32.xlu2 %v4889_v21  ;;  %v4608_v23 = vsel %vm511_vm0, %v4520_v16, 0.0  ;;  %v4790_v8 = vmul.f32 %v8264_v33, %v4462_v19  ;;  %v4399_v26 = vsel %vm4271_vm10, %v11900_v4, %v11901_v58  ;;  %v8403_v48 = vadd.f32 %v913_v6, %v7841_v5  ;;  %v5564_v5 = vld [vmem:[%s11691_s1 + $0x110] sm:$0xf]  ;;  %v916_v58 = vpop.f32.mrf.mxu3 }
 0x143   :  { %4609 = vadd.xlane.f32.xlu0 %v4608_v23  ;;  %v663_v21 = vadd.f32 %v7952_v12, %v662_v62  ;;  %v1124_v16 = vsub.f32 0.0, %v1060_v47  ;;  %v1091_v57 = vsub.f32 0.0, %v1027_v40  ;;  %v4463_v45 = vmul.f32 1.4142135, %v4399_v26  ;;  %v5990_v40 = vld [vmem:[%s11691_s1 + $0x114] sm:$0xf0] }
 0x144   :  { %v6120_v39 = vpop.eup %6119  ;;  %v1392_v3 = vadd.f32 1.0, %v8393_v36  ;;  %v1388_v59 = vmul.f32 %v8334_v49, %v1387_v0  ;;  %v1395_v4 = vmul.f32 -0.5, %v8393_v36  ;;  %vm1390_vm11 = vcmp.lt.f32.partialorder %v1389_v61, 0.0004427343  ;;  %v5991_v61 = vld [vmem:[%s11691_s1 + $0x124] sm:$0xf] }
 0x145   :  { %v1385_v23 = vmul.f32 0.6931472, %v6120_v39  ;;  %v8410_v19 = vadd.f32 %v831_v13, %v663_v21  ;;  %v4898_v62 = vsel %vm3663_vm7, %v4790_v8, 0.0  ;;  %v4791_v47 = vmul.f32 %v8264_v33, %v4463_v45  ;;  %v5574_v8 = vld [vmem:[%s11691_s1 + $0x128] sm:$0xf0] }
 0x146   :  { %v8424_v49 = vadd.f32 %v7952_v12, %v8253_v35  ;;  %6123 = vpow2.f32 %v1170_v30  ;;  %v1061_v13 = vand.u32 2147483647, %v8403_v48  ;;  %v1238_v21 = vmul.f32 1.442695, %v1124_v16  ;;  %v11903_v16 = vld [vmem:[#allocation20_spill] sm:$0xff] }
 0x147   :  { %v1391_v0 = vsel %vm1390_vm11, %v1388_v59, %v1385_v23  ;;  %v8433_v26 = vpop.eup %6121  ;;  %v1172_v39 = vmul.f32 1.442695, %v1091_v57  ;;  %v11902_v35 = vmax.f32 %v8197_v29, 0.0  ;;  %6125 = vlog2.f32 %v1392_v3  ;;  %v664_v59 = vpop.f32.mrf.mxu0  ;;  %v11904_v3 = vld [vmem:[#allocation25_spill] sm:$0xff] }
 0x148   :  { %v4901_v30 = vsel %vm3663_vm7, %v4791_v47, 0.0  ;;  %v1028_v23 = vand.u32 2147483647, %v8410_v19  ;;  %v1396_v6 = vadd.f32 1.0, %v1395_v4  ;;  %v5565_v18 = vor.u32 %v5990_v40, %v5564_v5  ;;  %v833_v5 = vpop.f32.mrf.mxu1 }
 0x149   :  { %v1855_v45 = vadd.f32 %v1391_v0, %v11902_v35  ;;  %v5577_v28 = vor.u32 %v5991_v61, %v5574_v8  ;;  %vm4274_vm12 = vcmp.ge.f32.partialorder %v11903_v16, 0.0  ;;  %vm4272_vm13 = vcmp.ge.f32.partialorder %v7697_v46, 0.0 }
 0x14a   :  { %4899 = vadd.xlane.f32.xlu2 %v4898_v62  ;;  %v1125_v29 = vsub.f32 0.0, %v1061_v13  ;;  %v1398_v57 = vand.u32 2147483647, %v8393_v36  ;;  %701 = vmatmul.bf16.gmra.mxu0 %v5565_v18  ;;  %v4402_v62 = vsel %vm4274_vm12, %v11903_v16, %v11904_v3  ;;  %v4400_v4 = vsel %vm4272_vm13, %v7697_v46, %v7778_v17  ;;  %v8457_v17 = vpop.permute.xlu2 %4105 }
 0x14b   :  { %5775 = vmatmul.msk.f32.gmra.mxu2 %vm511_vm0, %v1855_v45  ;;  %4902 = vadd.xlane.f32.xlu0 %v4901_v30  ;;  %v4521_v25 = vmul.f32 %v8217_v20, %v1855_v45  ;;  %v4466_v40 = vmul.f32 1.4142135, %v4402_v62  ;;  %v4464_v0 = vmul.f32 1.4142135, %v4400_v4  ;;  %v8451_v61 = vadd.f32 %v916_v58, %v7861_v22  ;;  %11905 = vst [vmem:[#allocation29_spill] sm:$0xff] %v8457_v17  ;;  %v8463_v58 = vpop.permute.xlu1 %4100 }
 0x14c   :  { %5748 = vmatmul.msk.bf16.gmra.mxu1 %vm511_vm0, %v5577_v28  ;;  %v8453_v13 = vpop.eup %6123  ;;  %6127 = vpow2.f32 %v1238_v21  ;;  %v1092_v18 = vsub.f32 0.0, %v1028_v23  ;;  %v665_v8 = vadd.f32 %v7952_v12, %v664_v59  ;;  %v1401_v35 = vadd.f32 1.0, %v8433_v26  ;;  %11906 = vst [vmem:[#allocation32_spill] sm:$0xff] %v8463_v58 }
 0x14d   :  { %v4611_v47 = vsel %vm511_vm0, %v4521_v25, 0.0  ;;  %v6126_v46 = vpop.eup %6125  ;;  %v4794_v25 = vmul.f32 %v8264_v33, %v4466_v40  ;;  %v4792_v28 = vmul.f32 %v8264_v33, %v4464_v0  ;;  %v1062_v45 = vand.u32 2147483647, %v8451_v61  ;;  %v918_v40 = vpop.f32.mrf.mxu3 }
 0x14e   :  { %4612 = vadd.xlane.f32.xlu1 %v4611_v47  ;;  %v1404_v22 = vmul.f32 -0.5, %v8433_v26  ;;  %v1394_v21 = vmul.f32 0.6931472, %v6126_v46  ;;  %v1397_v30 = vmul.f32 %v8393_v36, %v1396_v6  ;;  %v8466_v23 = vadd.f32 %v833_v5, %v665_v8 }
 0x14f   :  { %6129 = vlog2.f32 %v1401_v35  ;;  %v1240_v16 = vmul.f32 1.442695, %v1125_v29  ;;  %vm1399_vm14 = vcmp.lt.f32.partialorder %v1398_v57, 0.0004427343  ;;  %v1174_v3 = vmul.f32 1.442695, %v1092_v18  ;;  %v667_v5 = vpop.f32.mrf.mxu0 }
 0x150   :  { %6131 = vpow2.f32 %v1172_v39  ;;  %v1400_v62 = vsel %vm1399_vm14, %v1397_v30, %v1394_v21  ;;  %v4910_v4 = vsel %vm3663_vm7, %v4794_v25, 0.0  ;;  %v1126_v47 = vsub.f32 0.0, %v1062_v45 }
 0x151   :  { %v11907_v0 = vmax.f32 %v8272_v41, 0.0  ;;  %v4904_v36 = vsel %vm3663_vm7, %v4792_v28, 0.0  ;;  %v1405_v6 = vadd.f32 1.0, %v1404_v22  ;;  %vm4273_vm15 = vcmp.ge.f32.partialorder %v7700_v11, 0.0  ;;  %v8488_v28 = vpop.permute.xlu0 %4095 }
 0x152   :  { %v8474_v8 = vpop.eup %6127  ;;  %v1029_v39 = vand.u32 2147483647, %v8466_v23  ;;  %v1407_v29 = vand.u32 2147483647, %v8433_v26  ;;  %v4401_v57 = vsel %vm4273_vm15, %v7700_v11, %v7787_v15  ;;  %vm4275_vm1 = vcmp.ge.f32.partialorder %v7740_v24, 0.0 }
 0x153   :  { %v1856_v58 = vadd.f32 %v1400_v62, %v11907_v0  ;;  %4911 = vadd.xlane.f32.xlu0 %v4910_v4  ;;  %v4465_v18 = vmul.f32 1.4142135, %v4401_v57  ;;  %v4403_v35 = vsel %vm4275_vm1, %v7740_v24, %v7798_v54  ;;  %v8486_v46 = vadd.f32 %v918_v40, %v7899_v42  ;;  %v8495_v54 = vpop.xlane.xlu2 %4576  ;;  %v5572_v42 = vld [vmem:[%s11691_s1 + $0x120] sm:$0xf]  ;;  %v8505_v62 = vpop.xlane.xlu1 %4573 }
 0x154   :  { %6133 = vpow2.f32 %v1240_v16  ;;  %v1242_v45 = vmul.f32 1.442695, %v1126_v47  ;;  %v4467_v11 = vmul.f32 1.4142135, %v4403_v35  ;;  %v668_v15 = vadd.f32 %v7952_v12, %v667_v5  ;;  %v5992_v16 = vld [vmem:[%s11691_s1 + $0x124] sm:$0xf0] }
 0x155   :  { %5776 = vmatmul.msk.f32.gmra.mxu2 %vm511_vm0, %v1856_v58  ;;  %v4522_v41 = vmul.f32 %v8217_v20, %v1856_v58  ;;  %v6130_v25 = vpop.eup %6129  ;;  %6135 = vpow2.f32 %v1174_v3  ;;  %v836_v58 = vpop.f32.mrf.mxu1  ;;  %v1406_v24 = vmul.f32 %v8433_v26, %v1405_v6  ;;  %v1093_v12 = vsub.f32 0.0, %v1029_v39  ;;  %v5993_v26 = vld [vmem:[%s11691_s1 + $0x134] sm:$0xf]  ;;  %v5582_v6 = vld [vmem:[%s11691_s1 + $0x138] sm:$0xf0] }
 0x156   :  { %4905 = vadd.xlane.f32.xlu1 %v4904_v36  ;;  %v8491_v22 = vpop.eup %6131  ;;  %v1403_v30 = vmul.f32 0.6931472, %v6130_v25  ;;  %vm1408_vm2 = vcmp.lt.f32.partialorder %v1407_v29, 0.0004427343  ;;  %v8503_v3 = vadd.f32 %v836_v58, %v668_v15  ;;  %v1410_v4 = vadd.f32 1.0, %v8453_v13 }
 0x157   :  { %v4614_v21 = vsel %vm511_vm0, %v4522_v41, 0.0  ;;  %v4793_v40 = vmul.f32 %v8264_v33, %v4465_v18  ;;  %v4795_v0 = vmul.f32 %v8264_v33, %v4467_v11  ;;  %v1063_v36 = vand.u32 2147483647, %v8486_v46  ;;  %v8520_v5 = vld [vmem:[%s11696_s6] ss:$0 sm:$0xff]  ;;  %v2127_v18 = vpop.f32.mrf.mxu2 }
 0x158   :  { %4615 = vadd.xlane.f32.xlu2 %v4614_v21  ;;  %v1409_v47 = vsel %vm1408_vm2, %v1406_v24, %v1403_v30  ;;  %6137 = vpow2.f32 %v1242_v45  ;;  %v11908_v29 = vmax.f32 %v8302_v9, 0.0  ;;  %v1413_v41 = vmul.f32 -0.5, %v8453_v13 }
 0x159   :  { %v1030_v11 = vand.u32 2147483647, %v8503_v3  ;;  %6139 = vlog2.f32 %v1410_v4  ;;  %v1176_v58 = vmul.f32 1.442695, %v1093_v12  ;;  %v5573_v30 = vor.u32 %v5992_v16, %v5572_v42  ;;  %v11909_v42 = vld [vmem:[#allocation23_spill] sm:$0xff] }
 0x15a   :  { %v1857_v57 = vadd.f32 %v1409_v47, %v11908_v29  ;;  %v8529_v15 = vpop.eup %6133  ;;  %v5585_v45 = vor.u32 %v5993_v26, %v5582_v6  ;;  %v4907_v9 = vsel %vm3663_vm7, %v4793_v40, 0.0  ;;  %v4913_v47 = vsel %vm3663_vm7, %v4795_v0, 0.0  ;;  %v11910_v40 = vld [vmem:[#allocation30_spill] sm:$0xff] }
 0x15b   :  { %v8532_v24 = vpop.eup %6135  ;;  %v1127_v29 = vsub.f32 0.0, %v1063_v36  ;;  %v2128_v25 = vadd.f32 %v8520_v5, %v2127_v18  ;;  %v1414_v35 = vadd.f32 1.0, %v1413_v41  ;;  %v1416_v12 = vand.u32 2147483647, %v8453_v13  ;;  %706 = vmatmul.bf16.gmra.mxu0 %v5573_v30  ;;  %v921_v36 = vpop.f32.mrf.mxu3 }
 0x15c   :  { %v4523_v21 = vmul.f32 %v8217_v20, %v1857_v57  ;;  %vm4277_vm3 = vcmp.ge.f32.partialorder %v11909_v42, 0.0  ;;  %v1094_v16 = vsub.f32 0.0, %v1030_v11  ;;  %5749 = vmatmul.msk.bf16.gmra.mxu1 %vm511_vm0, %v5585_v45  ;;  %v1716_v6 = vadd.f32 1.0, %v8474_v8  ;;  %v8549_v41 = vpop.permute.xlu0 %4110 }
 0x15d   :  { %5777 = vmatmul.msk.f32.gmra.mxu2 %vm511_vm0, %v1857_v57  ;;  %v5826_v26 = vmul.f32 -1.442695, %v2128_v25  ;;  %v4405_v0 = vsel %vm4277_vm3, %v11909_v42, %v11910_v40  ;;  %11911 = vst [vmem:[#allocation34_spill] sm:$0xff] %v8549_v41  ;;  %6141 = vpow2.f32 %v1176_v58  ;;  %v8552_v11 = vadd.f32 %v921_v36, %v7956_v2  ;;  %v8563_v40 = vld [vmem:[#allocation2] ss:$0 sm:$0xff]  ;;  %v4834_v36 = vpop.xlane.xlu1 %4833 }
 0x15e   :  { %v4617_v4 = vsel %vm511_vm0, %v4523_v21, 0.0  ;;  %4914 = vadd.xlane.f32.xlu1 %v4913_v47  ;;  %v8547_v57 = vpop.eup %6137  ;;  %v4469_v18 = vmul.f32 1.4142135, %v4405_v0  ;;  %v1719_v25 = vmul.f32 -0.5, %v8474_v8  ;;  %v1415_v42 = vmul.f32 %v8453_v13, %v1414_v35  ;;  %v669_v0 = vpop.f32.mrf.mxu0  ;;  %v8574_v35 = vld [vmem:[%s11694_s4] ss:$0 sm:$0xff] }
 0x15f   :  { %4618 = vadd.xlane.f32.xlu0 %v4617_v4  ;;  %v6140_v21 = vpop.eup %6139  ;;  %6143 = vpow2.f32 %v5826_v26  ;;  %v4837_v4 = vpop.xlane.xlu2 %4836  ;;  %v1244_v30 = vmul.f32 1.442695, %v1127_v29  ;;  %v8565_v39 = vmul.f32 1.442695, %v1094_v16  ;;  %vm1417_vm4 = vcmp.lt.f32.partialorder %v1416_v12, 0.0004427343 }
 0x160   :  { %4908 = vadd.xlane.f32.xlu2 %v4907_v9  ;;  %v1412_v9 = vmul.f32 0.6931472, %v6140_v21  ;;  %v4797_v2 = vmul.f32 %v8264_v33, %v4469_v18  ;;  %6145 = vlog2.f32 %v1716_v6  ;;  %v1064_v47 = vand.u32 2147483647, %v8552_v11 }
 0x161   :  { %v1720_v45 = vadd.f32 1.0, %v1719_v25  ;;  %v5025_v58 = vadd.f32 %v4837_v4, %v8495_v54  ;;  %v11912_v21 = vmax.f32 %v8341_v63, 0.0  ;;  %v670_v29 = vadd.f32 %v8574_v35, %v669_v0 }
 0x162   :  { %v1418_v26 = vsel %vm1417_vm4, %v1415_v42, %v1412_v9  ;;  %v5024_v12 = vadd.f32 %v4834_v36, %v8505_v62  ;;  %v1419_v16 = vadd.f32 1.0, %v8491_v22  ;;  %v4919_v18 = vsel %vm3663_vm7, %v4797_v2, 0.0  ;;  %v838_v9 = vpop.f32.mrf.mxu1 }
 0x163   :  { %v1858_v13 = vadd.f32 %v1418_v26, %v11912_v21  ;;  %v8579_v6 = vpop.eup %6141  ;;  %v1722_v54 = vand.u32 2147483647, %v8474_v8  ;;  %v5093_v63 = vadd.f32 %v8563_v40, %v5025_v58  ;;  %v1422_v25 = vmul.f32 -0.5, %v8491_v22  ;;  %v6581_v58 = vld [vmem:[%s11692_s2 + $0x8] sm:$0xff] }
 0x164   :  { %v8588_v62 = vstv %s8545_s17  ;;  %v5092_v0 = vadd.f32 %v8563_v40, %v5024_v12  ;;  %6147 = vlog2.f32 %v1419_v16  ;;  %v1128_v36 = vsub.f32 0.0, %v1064_v47  ;;  %v8598_v59 = vpop.xlane.xlu0 %4579  ;;  %v6582_v12 = vld [vmem:[%s11692_s2] sm:$0xff] }
 0x165   :  { %v6144_v4 = vpop.eup %6143  ;;  %5778 = vmatmul.msk.f32.gmra.mxu2 %vm511_vm0, %v1858_v13  ;;  %v4524_v42 = vmul.f32 %v8217_v20, %v1858_v13  ;;  %v5157_v26 = vadd.f32 %v6581_v58, %v5093_v63  ;;  %v8596_v21 = vadd.f32 %v838_v9, %v670_v29  ;;  %v1721_v41 = vmul.f32 %v8474_v8, %v1720_v45 }
 0x166   :  { %v8591_v2 = vadd.f32 1.0, %v6144_v4  ;;  %v5156_v16 = vadd.f32 %v6582_v12, %v5092_v0  ;;  %v1423_v47 = vadd.f32 1.0, %v1422_v25  ;;  %vm8606_vm5 = vcmp.lt.f32.partialorder %v1722_v54, 0.0004427343 }
 0x167   :  { %4920 = vadd.xlane.f32.xlu0 %v4919_v18  ;;  %v6146_v18 = vpop.eup %6145  ;;  %v4620_v13 = vsel %vm511_vm0, %v4524_v42, 0.0  ;;  %v8611_v29 = vstv %s8558_s11  ;;  %vm4278_vm6 = vcmp.ge.f32.partialorder %v7781_v7, 0.0  ;;  %v5224_v8 = vmax.f32 %v8588_v62, %v5157_v26  ;;  %v2130_v42 = vpop.f32.mrf.mxu2 }
 0x168   :  { %6149 = vrcp.f32 %v8591_v2  ;;  %4621 = vadd.xlane.f32.xlu1 %v4620_v13  ;;  %v1718_v4 = vmul.f32 0.6931472, %v6146_v18  ;;  %v5223_v45 = vmax.f32 %v8588_v62, %v5156_v16  ;;  %v1425_v9 = vand.u32 2147483647, %v8491_v22 }
 0x169   :  { %v8618_v0 = vmul.f32 1.442695, %v1128_v36  ;;  %vm5352_vm8 = vcmask 7168   ;;  %v1031_v54 = vand.u32 2147483647, %v8596_v21  ;;  %v5289_v18 = vmin.f32 %v8611_v29, %v5224_v8 }
 0x16a   :  { %v6148_v58 = vpop.eup %6147  ;;  %v1724_v13 = vsel %vm8606_vm5, %v1721_v41, %v1718_v4  ;;  %v5288_v26 = vmin.f32 %v8611_v29, %v5223_v45  ;;  %v1424_v12 = vmul.f32 %v8491_v22, %v1423_v47  ;;  %v11915_v16 = vmax.f32 %v8367_v56, 0.0  ;;  %v923_v45 = vpop.f32.mrf.mxu3 }
 0x16b   :  { %v1421_v25 = vmul.f32 0.6931472, %v6148_v58  ;;  %v2131_v36 = vadd.f32 %v8520_v5, %v2130_v42  ;;  %v4406_v10 = vsel %vm4278_vm6, %v7781_v7, %v7815_v32  ;;  %6151 = vpow2.f32 %v1244_v30  ;;  %5354 = vst.msk [vmem:[%s11703_s13 + $0x8] sm:$0xff] %vm5352_vm8, %v5289_v18  ;;  %v4843_v18 = vpop.xlane.xlu1 %4842 }
 0x16c   :  { %v8628_v17 = vadd.f32 %v1724_v13, %v11915_v16  ;;  %vm1426_vm9 = vcmp.lt.f32.partialorder %v1425_v9, 0.0004427343  ;;  %v4470_v22 = vmul.f32 1.4142135, %v4406_v10  ;;  %v1725_v56 = vadd.f32 1.0, %v8529_v15  ;;  %5353 = vst.msk [vmem:[%s11703_s13] sm:$0xff] %vm5352_vm8, %v5288_v26  ;;  %v4583_v9 = vpop.xlane.xlu2 %4582  ;;  %v4840_v13 = vpop.xlane.xlu0 %4839 }
 0x16d   :  { %v1427_v7 = vsel %vm1426_vm9, %v1424_v12, %v1421_v25  ;;  %v5827_v32 = vmul.f32 -1.442695, %v2131_v36  ;;  %v1728_v30 = vmul.f32 -0.5, %v8529_v15  ;;  %vm2580_vm10 = vweird.f32 %v8591_v2  ;;  %v672_v16 = vpop.f32.mrf.mxu0 }
 0x16e   :  { %11916 = vst [vmem:[#allocation36_spill] sm:$0xff] %v8628_v17  ;;  %v6150_v41 = vpop.eup %6149  ;;  %v4558_v47 = vmul.f32 %v8217_v20, %v8628_v17  ;;  %v11917_v10 = vmax.f32 %v8376_v43, 0.0  ;;  %v4798_v8 = vmul.f32 %v8264_v33, %v4470_v22  ;;  %v2584_v42 = vand.u32 2147483647, %v8591_v2 }
 0x16f   :  { %v2576_v63 = vmul.f32 %v6150_v41, %v8591_v2  ;;  %v2586_v58 = vand.u32 2147483648, %v8591_v2  ;;  %6153 = vpow2.f32 %v5827_v32  ;;  %v1095_v12 = vsub.f32 0.0, %v1031_v54 }
 0x170   :  { %v1859_v4 = vadd.f32 %v1427_v7, %v11917_v10  ;;  %v4722_v25 = vsel %vm511_vm0, %v4558_v47, 0.0  ;;  %v4922_v43 = vsel %vm3663_vm7, %v4798_v8, 0.0  ;;  %6155 = vlog2.f32 %v1725_v56 }
 0x171   :  { %v2577_v26 = vsub.f32 1.0, %v2576_v63  ;;  %4723 = vadd.xlane.f32.xlu2 %v4722_v25  ;;  %vm2581_vm11 = vweird.f32 %v6150_v41  ;;  %4923 = vadd.xlane.f32.xlu1 %v4922_v43  ;;  %v8658_v36 = vadd.f32 %v923_v45, %v7992_v50  ;;  %v1729_v22 = vadd.f32 1.0, %v1728_v30  ;;  %v8661_v7 = vpop.eup %6151 }
 0x172   :  { %5779 = vmatmul.msk.f32.gmra.mxu2 %vm511_vm0, %v1859_v4  ;;  %v1731_v47 = vand.u32 2147483647, %v8529_v15  ;;  %v4525_v63 = vmul.f32 %v8217_v20, %v1859_v4  ;;  %v5026_v54 = vadd.f32 %v4840_v13, %v8598_v59  ;;  %v5027_v10 = vadd.f32 %v4843_v18, %v4583_v9  ;;  %vm2582_vm13 = vmor %vm2580_vm10, %vm2581_vm11  ;;  %v5590_v9 = vld [vmem:[%s11691_s1 + $0x148] sm:$0xf0] }
 0x173   :  { %v2578_v32 = vmul.f32 %v6150_v41, %v2577_v26  ;;  %vm8665_vm12 = vcmp.eq.f32.partialorder %v2584_v42, 8.507059e+37  ;;  %v2587_v56 = vor.u32 1.1754944e-38, %v2586_v58  ;;  %v673_v25 = vadd.f32 %v8574_v35, %v672_v16  ;;  %v841_v58 = vpop.f32.mrf.mxu1 }
 0x174   :  { %v1428_v50 = vadd.f32 1.0, %v8532_v24  ;;  %v1180_v45 = vmul.f32 1.442695, %v1095_v12  ;;  %v5094_v43 = vadd.f32 %v8563_v40, %v5026_v54  ;;  %v1431_v26 = vmul.f32 -0.5, %v8532_v24 }
 0x175   :  { %v2579_v30 = vadd.f32 %v6150_v41, %v2578_v32  ;;  %v6154_v17 = vpop.eup %6153  ;;  %v1065_v59 = vand.u32 2147483647, %v8658_v36  ;;  %v1730_v4 = vmul.f32 %v8529_v15, %v1729_v22  ;;  %vm8678_vm14 = vcmp.lt.f32.partialorder %v1731_v47, 0.0004427343  ;;  %v6583_v15 = vld [vmem:[%s11692_s2 + $0x10] sm:$0xff] }
 0x176   :  { %6157 = vlog2.f32 %v1428_v50  ;;  %v6156_v42 = vpop.eup %6155  ;;  %v8682_v18 = vadd.f32 1.0, %v6154_v17  ;;  %v4623_v12 = vsel %vm511_vm0, %v4525_v63, 0.0  ;;  %v5095_v16 = vadd.f32 %v8563_v40, %v5027_v10 }
 0x177   :  { %v2583_v13 = vsel %vm2582_vm13, %v6150_v41, %v2579_v30  ;;  %v1727_v32 = vmul.f32 0.6931472, %v6156_v42  ;;  %v8688_v54 = vadd.f32 %v841_v58, %v673_v25  ;;  %v5158_v22 = vadd.f32 %v6583_v15, %v5094_v43  ;;  %v5994_v25 = vld [vmem:[%s11691_s1 + $0x134] sm:$0xf0]  ;;  %v2133_v42 = vpop.f32.mrf.mxu2 }
 0x178   :  { %v2588_v2 = vsel %vm8665_vm12, %v2587_v56, %v2583_v13  ;;  %v967_v41 = vmax.f32 %v8596_v21, 0.0  ;;  %6159 = vrcp.f32 %v8682_v18  ;;  %v1432_v17 = vadd.f32 1.0, %v1431_v26  ;;  %v5580_v56 = vld [vmem:[%s11691_s1 + $0x130] sm:$0xf]  ;;  %v6584_v43 = vld [vmem:[%s11692_s2 + $0x18] sm:$0xff] }
 0x179   :  { %v3535_v47 = vmul.f32 1.002, %v2588_v2  ;;  %4624 = vadd.xlane.f32.xlu2 %v4623_v12  ;;  %6161 = vpow2.f32 %v8565_v39  ;;  %v1733_v63 = vsel %vm8678_vm14, %v1730_v4, %v1727_v32  ;;  %v5225_v10 = vmax.f32 %v8588_v62, %v5158_v22  ;;  %v5995_v4 = vld [vmem:[%s11691_s1 + $0x144] sm:$0xf] }
 0x17a   :  { %v1434_v8 = vand.u32 2147483647, %v8532_v24  ;;  %6163 = vpow2.f32 %v8618_v0  ;;  %v11922_v39 = vmax.f32 %v8403_v48, 0.0  ;;  %v5159_v26 = vadd.f32 %v6584_v43, %v5095_v16 }
 0x17b   :  { %v5890_v50 = vadd.f32 -0.001, %v3535_v47  ;;  %6165 = vpow2.f32 %v1180_v45  ;;  %v1129_v0 = vsub.f32 0.0, %v1065_v59  ;;  %v1032_v48 = vand.u32 2147483647, %v8688_v54 }
 0x17c   :  { %v8709_v30 = vadd.f32 %v1733_v63, %v11922_v39  ;;  %v6158_v58 = vpop.eup %6157  ;;  %v5290_v13 = vmin.f32 %v8611_v29, %v5225_v10  ;;  %v5226_v16 = vmax.f32 %v8588_v62, %v5159_v26  ;;  %v1433_v32 = vmul.f32 %v8532_v24, %v1432_v17  ;;  %v11923_v10 = vld [vmem:[#allocation40_spill] sm:$0xff]  ;;  %v926_v39 = vpop.f32.mrf.mxu3 }
 0x17d   :  { %3664 = vst.msk [vmem:[%s11702_s12] sm:$0xff] %vm3663_vm7, %v5890_v50  ;;  %v1430_v2 = vmul.f32 0.6931472, %v6158_v58  ;;  %vm1435_vm15 = vcmp.lt.f32.partialorder %v1434_v8, 0.0004427343  ;;  %v5581_v45 = vor.u32 %v5994_v25, %v5580_v56  ;;  %v5593_v59 = vor.u32 %v5995_v4, %v5590_v9  ;;  %v11925_v4 = vld [vmem:[#allocation43_spill] sm:$0xff] }
 0x17e   :  { %v4559_v12 = vmul.f32 %v8217_v20, %v8709_v30  ;;  %5355 = vst.msk [vmem:[%s11703_s13 + $0x10] sm:$0xff] %vm5352_vm8, %v5290_v13  ;;  %v2134_v15 = vadd.f32 %v8520_v5, %v2133_v42  ;;  %v8735_v22 = vpop.eup %6159  ;;  %v5291_v20 = vmin.f32 %v8611_v29, %v5226_v16  ;;  %vm4276_vm1 = vcmp.ge.f32.partialorder %v11923_v10, 0.0  ;;  %v4846_v16 = vpop.xlane.xlu2 %4845 }
 0x17f   :  { %v1436_v63 = vsel %vm1435_vm15, %v1433_v32, %v1430_v2  ;;  %v8740_v24 = vpop.eup %6161  ;;  %v2591_v17 = vmul.f32 %v8735_v22, %v8682_v18  ;;  %v8744_v50 = vmul.f32 1.442695, %v1129_v0  ;;  %v11924_v8 = vmax.f32 %v8410_v19, 0.0  ;;  %711 = vmatmul.bf16.gmra.mxu0 %v5581_v45  ;;  %5750 = vmatmul.msk.bf16.gmra.mxu1 %vm511_vm0, %v5593_v59  ;;  %v4586_v2 = vpop.xlane.xlu1 %4585  ;;  %v8770_v59 = vld [vmem:[%s11699_s9] ss:$0 sm:$0xff] }
 0x180   :  { %v4725_v47 = vsel %vm511_vm0, %v4559_v12, 0.0  ;;  %v5828_v25 = vmul.f32 -1.442695, %v2134_v15  ;;  %v8748_v43 = vpop.eup %6163  ;;  %v2599_v26 = vand.u32 2147483647, %v8682_v18  ;;  %5356 = vst.msk [vmem:[%s11703_s13 + $0x18] sm:$0xff] %vm5352_vm8, %v5291_v20  ;;  %v4404_v9 = vsel %vm4276_vm1, %v11923_v10, %v11925_v4 }
 0x181   :  { %4726 = vadd.xlane.f32.xlu0 %v4725_v47  ;;  %v1860_v56 = vadd.f32 %v1436_v63, %v11924_v8  ;;  %v1734_v19 = vadd.f32 1.0, %v8547_v57  ;;  %v1737_v42 = vmul.f32 -0.5, %v8547_v57  ;;  %v8760_v58 = vpop.eup %6165  ;;  %v2592_v0 = vsub.f32 1.0, %v2591_v17  ;;  %v674_v47 = vpop.f32.mrf.mxu0 }
 0x182   :  { %v2601_v13 = vand.u32 2147483648, %v8682_v18  ;;  %6167 = vpow2.f32 %v5828_v25  ;;  %v4468_v12 = vmul.f32 1.4142135, %v4404_v9  ;;  %v1096_v32 = vsub.f32 0.0, %v1032_v48 }
 0x183   :  { %5780 = vmatmul.msk.f32.gmra.mxu2 %vm511_vm0, %v1860_v56  ;;  %v8765_v45 = vadd.f32 %v926_v39, %v8039_v14  ;;  %v4526_v15 = vmul.f32 %v8770_v59, %v1860_v56  ;;  %6169 = vlog2.f32 %v1734_v19  ;;  %v2593_v20 = vmul.f32 %v8735_v22, %v2592_v0 }
 0x184   :  { %vm2596_vm2 = vweird.f32 %v8735_v22  ;;  %v4796_v63 = vmul.f32 %v8264_v33, %v4468_v12  ;;  %v1738_v10 = vadd.f32 1.0, %v1737_v42  ;;  %vm2595_vm3 = vweird.f32 %v8682_v18 }
 0x185   :  { %vm8777_vm4 = vcmp.eq.f32.partialorder %v2599_v26, 8.507059e+37  ;;  %v1740_v48 = vand.u32 2147483647, %v8547_v57  ;;  %v5028_v17 = vadd.f32 %v4846_v16, %v4586_v2  ;;  %v2594_v8 = vadd.f32 %v8735_v22, %v2593_v20  ;;  %vm8786_vm5 = vmor %vm2595_vm3, %vm2596_vm2  ;;  %v2136_v16 = vpop.f32.mrf.mxu2 }
 0x186   :  { %v4916_v56 = vsel %vm3663_vm7, %v4796_v63, 0.0  ;;  %v675_v25 = vadd.f32 %v8574_v35, %v674_v47  ;;  %v1437_v39 = vadd.f32 1.0, %v8579_v6  ;;  %v2602_v18 = vor.u32 1.1754944e-38, %v2601_v13  ;;  %v843_v13 = vpop.f32.mrf.mxu1 }
 0x187   :  { %v1066_v26 = vand.u32 2147483647, %v8765_v45  ;;  %v4626_v4 = vsel %vm511_vm0, %v4526_v15, 0.0  ;;  %4917 = vadd.xlane.f32.xlu2 %v4916_v56  ;;  %v5096_v9 = vadd.f32 %v8563_v40, %v5028_v17  ;;  %v2598_v42 = vsel %vm8786_vm5, %v8735_v22, %v2594_v8 }
 0x188   :  { %v6168_v19 = vpop.eup %6167  ;;  %v1182_v0 = vmul.f32 1.442695, %v1096_v32  ;;  %v1739_v12 = vmul.f32 %v8547_v57, %v1738_v10  ;;  %6171 = vlog2.f32 %v1437_v39  ;;  %v2603_v47 = vsel %vm8777_vm4, %v2602_v18, %v2598_v42  ;;  %v6586_v57 = vld [vmem:[%s11692_s2 + $0x20] sm:$0xff] }
 0x189   :  { %4627 = vadd.xlane.f32.xlu0 %v4626_v4  ;;  %v6170_v2 = vpop.eup %6169  ;;  %v8799_v15 = vadd.f32 1.0, %v6168_v19  ;;  %vm8801_vm6 = vcmp.lt.f32.partialorder %v1740_v48, 0.0004427343  ;;  %v1440_v63 = vmul.f32 -0.5, %v8579_v6  ;;  %v3536_v22 = vmul.f32 1.002, %v2603_v47 }
 0x18a   :  { %v1736_v32 = vmul.f32 0.6931472, %v6170_v2  ;;  %v8806_v17 = vadd.f32 %v843_v13, %v675_v25  ;;  %v5160_v10 = vadd.f32 %v6586_v57, %v5096_v9  ;;  %v1001_v14 = vmax.f32 %v8658_v36, 0.0 }
 0x18b   :  { %6173 = vrcp.f32 %v8799_v15  ;;  %v1130_v8 = vsub.f32 0.0, %v1066_v26  ;;  %v2137_v48 = vadd.f32 %v8520_v5, %v2136_v16  ;;  %v5891_v56 = vadd.f32 -0.001, %v3536_v22  ;;  %v11933_v16 = vld [vmem:[#allocation33_spill] sm:$0xff] }
 0x18c   :  { %v1742_v39 = vsel %vm8801_vm6, %v1739_v12, %v1736_v32  ;;  %v5227_v33 = vmax.f32 %v8588_v62, %v5160_v10  ;;  %v1443_v25 = vand.u32 2147483647, %v8579_v6  ;;  %6175 = vpow2.f32 %v8744_v50 }
 0x18d   :  { %v11932_v4 = vmax.f32 %v8451_v61, 0.0  ;;  %v1441_v19 = vadd.f32 1.0, %v1440_v63  ;;  %3665 = vst.msk [vmem:[%s11702_s12 + $0x8] sm:$0xff] %vm3663_vm7, %v5891_v56  ;;  %6177 = vpow2.f32 %v1182_v0  ;;  %v1033_v42 = vand.u32 2147483647, %v8806_v17  ;;  %v11934_v0 = vld [vmem:[#allocation37_spill] sm:$0xff] }
 0x18e   :  { %v6172_v26 = vpop.eup %6171  ;;  %v5292_v12 = vmin.f32 %v8611_v29, %v5227_v33  ;;  %vm4280_vm9 = vcmp.ge.f32.partialorder %v11933_v16, 0.0  ;;  %v5829_v13 = vmul.f32 -1.442695, %v2137_v48  ;;  %v8834_v47 = vmul.f32 1.442695, %v1130_v8  ;;  %v4589_v8 = vpop.xlane.xlu2 %4588 }
 0x18f   :  { %v8822_v9 = vadd.f32 %v1742_v39, %v11932_v4  ;;  %v1439_v61 = vmul.f32 0.6931472, %v6172_v26  ;;  %v1442_v2 = vmul.f32 %v8579_v6, %v1441_v19  ;;  %vm1444_vm10 = vcmp.lt.f32.partialorder %v1443_v25, 0.0004427343  ;;  %v928_v6 = vpop.f32.mrf.mxu3  ;;  %v677_v4 = vpop.f32.mrf.mxu0 }
 0x190   :  { %5357 = vst.msk [vmem:[%s11703_s13 + $0x20] sm:$0xff] %vm5352_vm8, %v5292_v12  ;;  %v4408_v20 = vsel %vm4280_vm9, %v11933_v16, %v11934_v0  ;;  %v1743_v63 = vadd.f32 1.0, %v8661_v7  ;;  %6179 = vpow2.f32 %v5829_v13  ;;  %v2614_v56 = vand.u32 2147483647, %v8799_v15  ;;  %v4849_v12 = vpop.xlane.xlu0 %4848  ;;  %v8854_v16 = vld [vmem:[%s11700_s10] ss:$0 sm:$0xff] }
 0x191   :  { %v4560_v50 = vmul.f32 %v8770_v59, %v8822_v9  ;;  %v6174_v22 = vpop.eup %6173  ;;  %v1445_v57 = vsel %vm1444_vm10, %v1442_v2, %v1439_v61  ;;  %v4472_v10 = vmul.f32 1.4142135, %v4408_v20  ;;  %v2616_v39 = vand.u32 2147483648, %v8799_v15 }
 0x192   :  { %v2606_v48 = vmul.f32 %v6174_v22, %v8799_v15  ;;  %v11935_v33 = vmax.f32 %v8466_v23, 0.0  ;;  %v8849_v19 = vpop.eup %6175  ;;  %v1097_v26 = vsub.f32 0.0, %v1033_v42  ;;  %6181 = vlog2.f32 %v1743_v63 }
 0x193   :  { %v4728_v32 = vsel %vm511_vm0, %v4560_v50, 0.0  ;;  %v4800_v50 = vmul.f32 %v8854_v16, %v4472_v10  ;;  %v1746_v61 = vmul.f32 -0.5, %v8661_v7  ;;  %v8858_v2 = vpop.eup %6177  ;;  %vm2610_vm11 = vweird.f32 %v8799_v15  ;;  %v5588_v15 = vld [vmem:[%s11691_s1 + $0x140] sm:$0xf] }
 0x194   :  { %4729 = vadd.xlane.f32.xlu1 %v4728_v32  ;;  %v1861_v25 = vadd.f32 %v1445_v57, %v11935_v33  ;;  %v2607_v13 = vsub.f32 1.0, %v2606_v48  ;;  %v8863_v23 = vadd.f32 %v928_v6, %v8096_v37  ;;  %v5029_v42 = vadd.f32 %v4849_v12, %v4589_v8  ;;  %v846_v57 = vpop.f32.mrf.mxu1  ;;  %v2139_v37 = vpop.f32.mrf.mxu2 }
 0x195   :  { %v4928_v0 = vsel %vm3663_vm7, %v4800_v50, 0.0  ;;  %v1747_v20 = vadd.f32 1.0, %v1746_v61  ;;  %v678_v63 = vadd.f32 %v8574_v35, %v677_v4  ;;  %vm2611_vm12 = vweird.f32 %v6174_v22  ;;  %v6588_v50 = vld [vmem:[%s11692_s2 + $0x28] sm:$0xff] }
 0x196   :  { %5781 = vmatmul.msk.f32.gmra.mxu2 %vm511_vm0, %v1861_v25  ;;  %v4527_v32 = vmul.f32 %v8770_v59, %v1861_v25  ;;  %v2608_v10 = vmul.f32 %v6174_v22, %v2607_v13  ;;  %4929 = vadd.xlane.f32.xlu0 %v4928_v0  ;;  %v1749_v48 = vand.u32 2147483647, %v8661_v7  ;;  %v5097_v33 = vadd.f32 %v8563_v40, %v5029_v42  ;;  %v6180_v18 = vpop.eup %6179  ;;  %vm2612_vm14 = vmor %vm2610_vm11, %vm2611_vm12 }
 0x197   :  { %vm8870_vm13 = vcmp.eq.f32.partialorder %v2614_v56, 8.507059e+37  ;;  %v2617_v6 = vor.u32 1.1754944e-38, %v2616_v39  ;;  %v8874_v8 = vmul.f32 1.442695, %v1097_v26  ;;  %v8876_v12 = vadd.f32 %v846_v57, %v678_v63 }
 0x198   :  { %v2609_v25 = vadd.f32 %v6174_v22, %v2608_v10  ;;  %v8878_v4 = vadd.f32 1.0, %v6180_v18  ;;  %v5161_v61 = vadd.f32 %v6588_v50, %v5097_v33  ;;  %v1446_v13 = vadd.f32 1.0, %v8740_v24  ;;  %v6182_v42 = vpop.eup %6181  ;;  %v5997_v10 = vld [vmem:[%s11691_s1 + $0x154] sm:$0xf] }
 0x199   :  { %v1067_v56 = vand.u32 2147483647, %v8863_v23  ;;  %v1748_v39 = vmul.f32 %v8661_v7, %v1747_v20  ;;  %v4629_v26 = vsel %vm511_vm0, %v4527_v32, 0.0  ;;  %v1034_v18 = vand.u32 2147483647, %v8876_v12 }
 0x19a   :  { %v2613_v0 = vsel %vm2612_vm14, %v6174_v22, %v2609_v25  ;;  %6183 = vrcp.f32 %v8878_v4  ;;  %vm8892_vm15 = vcmp.lt.f32.partialorder %v1749_v48, 0.0004427343  ;;  %v1449_v57 = vmul.f32 -0.5, %v8740_v24  ;;  %v5996_v32 = vld [vmem:[%s11691_s1 + $0x144] sm:$0xf0] }
 0x19b   :  { %v2618_v7 = vsel %vm8870_vm13, %v2617_v6, %v2613_v0  ;;  %6185 = vpow2.f32 %v8834_v47  ;;  %v1745_v20 = vmul.f32 0.6931472, %v6182_v42  ;;  %v5228_v22 = vmax.f32 %v8588_v62, %v5161_v61  ;;  %v5598_v47 = vld [vmem:[%s11691_s1 + $0x158] sm:$0xf0] }
 0x19c   :  { %4630 = vadd.xlane.f32.xlu1 %v4629_v26  ;;  %v3537_v48 = vmul.f32 1.002, %v2618_v7  ;;  %v1098_v25 = vsub.f32 0.0, %v1034_v18  ;;  %6187 = vlog2.f32 %v1446_v13  ;;  %v1131_v6 = vsub.f32 0.0, %v1067_v56 }
 0x19d   :  { %v1751_v50 = vsel %vm8892_vm15, %v1748_v39, %v1745_v20  ;;  %v5293_v61 = vmin.f32 %v8611_v29, %v5228_v22  ;;  %v1452_v42 = vand.u32 2147483647, %v8740_v24  ;;  %v11940_v0 = vmax.f32 %v8486_v46, 0.0 }
 0x19e   :  { %v5892_v26 = vadd.f32 -0.001, %v3537_v48  ;;  %v1186_v18 = vmul.f32 1.442695, %v1098_v25  ;;  %v1450_v13 = vadd.f32 1.0, %v1449_v57  ;;  %v5589_v56 = vor.u32 %v5996_v32, %v5588_v15  ;;  %v8939_v32 = vpop.xlane.xlu0 %4857  ;;  %v931_v25 = vpop.f32.mrf.mxu3 }
 0x19f   :  { %v8920_v7 = vadd.f32 %v1751_v50, %v11940_v0  ;;  %v2629_v33 = vand.u32 2147483647, %v8878_v4  ;;  %5358 = vst.msk [vmem:[%s11703_s13 + $0x28] sm:$0xff] %vm5352_vm8, %v5293_v61  ;;  %v5601_v39 = vor.u32 %v5997_v10, %v5598_v47  ;;  %v2140_v63 = vadd.f32 %v8520_v5, %v2139_v37 }
 0x1a0   :  { %v6184_v20 = vpop.eup %6183  ;;  %3666 = vst.msk [vmem:[%s11702_s12 + $0x10] sm:$0xff] %vm3663_vm7, %v5892_v26  ;;  %v2631_v46 = vand.u32 2147483648, %v8878_v4  ;;  %6189 = vpow2.f32 %v1186_v18  ;;  %vm4281_vm1 = vcmp.ge.f32.partialorder %v7880_v55, 0.0  ;;  %vm8941_vm2 = vcmp.lt.f32.partialorder %v1452_v42, 0.0004427343  ;;  %716 = vmatmul.bf16.gmra.mxu0 %v5589_v56 }
 0x1a1   :  { %v4561_v57 = vmul.f32 %v8770_v59, %v8920_v7  ;;  %v8936_v22 = vpop.eup %6185  ;;  %v2621_v15 = vmul.f32 %v6184_v20, %v8878_v4  ;;  %5751 = vmatmul.msk.bf16.gmra.mxu1 %vm511_vm0, %v5601_v39  ;;  %v5830_v48 = vmul.f32 -1.442695, %v2140_v63  ;;  %v1752_v47 = vadd.f32 1.0, %v8748_v43  ;;  %v679_v39 = vpop.f32.mrf.mxu0 }
 0x1a2   :  { %v6188_v37 = vpop.eup %6187  ;;  %v1451_v61 = vmul.f32 %v8740_v24, %v1450_v13  ;;  %v8950_v26 = vadd.f32 %v931_v25, %v8147_v1  ;;  %v1755_v42 = vmul.f32 -0.5, %v8748_v43  ;;  %v4409_v56 = vsel %vm4281_vm1, %v7880_v55, %v7908_v31 }
 0x1a3   :  { %v4731_v50 = vsel %vm511_vm0, %v4561_v57, 0.0  ;;  %v2622_v0 = vsub.f32 1.0, %v2621_v15  ;;  %v1448_v18 = vmul.f32 0.6931472, %v6188_v37  ;;  %6191 = vpow2.f32 %v5830_v48 }
 0x1a4   :  { %4732 = vadd.xlane.f32.xlu2 %v4731_v50  ;;  %vm2626_vm3 = vweird.f32 %v6184_v20  ;;  %v1068_v63 = vand.u32 2147483647, %v8950_v26  ;;  %6193 = vlog2.f32 %v1752_v47  ;;  %v1758_v24 = vand.u32 2147483647, %v8748_v43 }
 0x1a5   :  { %v2623_v1 = vmul.f32 %v6184_v20, %v2622_v0  ;;  %v1454_v13 = vsel %vm8941_vm2, %v1451_v61, %v1448_v18  ;;  %v1756_v57 = vadd.f32 1.0, %v1755_v42  ;;  %v4473_v15 = vmul.f32 1.4142135, %v4409_v56  ;;  %v848_v61 = vpop.f32.mrf.mxu1  ;;  %v4852_v0 = vpop.xlane.xlu1 %4851 }
 0x1a6   :  { %v8961_v25 = vpop.eup %6189  ;;  %6195 = vpow2.f32 %v8874_v8  ;;  %v1252_v48 = vmul.f32 1.442695, %v1131_v6  ;;  %v11943_v55 = vmax.f32 %v8503_v3, 0.0  ;;  %v680_v37 = vadd.f32 %v8574_v35, %v679_v39 }
 0x1a7   :  { %v2624_v50 = vadd.f32 %v6184_v20, %v2623_v1  ;;  %vm2625_vm4 = vweird.f32 %v8878_v4  ;;  %vm8968_vm5 = vcmp.eq.f32.partialorder %v2629_v33, 8.507059e+37  ;;  %v1482_v10 = vadd.f32 1.0, %v8961_v25 }
 0x1a8   :  { %v1862_v31 = vadd.f32 %v1454_v13, %v11943_v55  ;;  %vm2627_vm6 = vmor %vm2625_vm4, %vm2626_vm3  ;;  %v2632_v42 = vor.u32 1.1754944e-38, %v2631_v46  ;;  %vm8975_vm9 = vcmp.lt.f32.partialorder %v1758_v24, 0.0004427343  ;;  %v4801_v4 = vmul.f32 %v8854_v16, %v4473_v15 }
 0x1a9   :  { %v6192_v33 = vpop.eup %6191  ;;  %v2628_v6 = vsel %vm2627_vm6, %v6184_v20, %v2624_v50  ;;  %v1132_v18 = vsub.f32 0.0, %v1068_v63  ;;  %v1757_v56 = vmul.f32 %v8748_v43, %v1756_v57  ;;  %v8982_v39 = vadd.f32 %v848_v61, %v680_v37  ;;  %v4592_v63 = vpop.xlane.xlu0 %4591 }
 0x1aa   :  { %5782 = vmatmul.msk.f32.gmra.mxu2 %vm511_vm0, %v1862_v31  ;;  %v4528_v8 = vmul.f32 %v8770_v59, %v1862_v31  ;;  %v6194_v1 = vpop.eup %6193  ;;  %v2633_v46 = vsel %vm8968_vm5, %v2632_v42, %v2628_v6  ;;  %6197 = vlog2.f32 %v1482_v10  ;;  %v8986_v24 = vadd.f32 1.0, %v6192_v33  ;;  %v2142_v61 = vpop.f32.mrf.mxu2 }
 0x1ab   :  { %v3538_v55 = vmul.f32 1.002, %v2633_v46  ;;  %6199 = vpow2.f32 %v1252_v48  ;;  %v1754_v15 = vmul.f32 0.6931472, %v6194_v1  ;;  %v4931_v20 = vsel %vm3663_vm7, %v4801_v4, 0.0  ;;  %v11949_v46 = vld [vmem:[#allocation44_spill] sm:$0xff] }
 0x1ac   :  { %v4632_v13 = vsel %vm511_vm0, %v4528_v8, 0.0  ;;  %v8990_v31 = vpop.eup %6195  ;;  %v1485_v37 = vmul.f32 -0.5, %v8961_v25  ;;  %6201 = vrcp.f32 %v8986_v24  ;;  %4932 = vadd.xlane.f32.xlu1 %v4931_v20  ;;  %v1488_v47 = vand.u32 2147483647, %v8961_v25 }
 0x1ad   :  { %4633 = vadd.xlane.f32.xlu2 %v4632_v13  ;;  %v5893_v50 = vadd.f32 -0.001, %v3538_v55  ;;  %v1760_v48 = vsel %vm8975_vm9, %v1757_v56, %v1754_v15  ;;  %v1035_v10 = vand.u32 2147483647, %v8982_v39  ;;  %v970_v42 = vmax.f32 %v8876_v12, 0.0 }
 0x1ae   :  { %v1254_v8 = vmul.f32 1.442695, %v1132_v18  ;;  %v11948_v4 = vmax.f32 %v8552_v11, 0.0  ;;  %v5030_v6 = vadd.f32 %v4852_v0, %v4592_v63  ;;  %v1455_v56 = vadd.f32 1.0, %v8760_v58 }
 0x1af   :  { %3667 = vst.msk [vmem:[%s11702_s12 + $0x18] sm:$0xff] %vm3663_vm7, %v5893_v50  ;;  %v1099_v3 = vsub.f32 0.0, %v1035_v10  ;;  %vm4279_vm10 = vcmp.ge.f32.partialorder %v11949_v46, 0.0  ;;  %v1458_v0 = vmul.f32 -0.5, %v8760_v58  ;;  %v2143_v55 = vadd.f32 %v8520_v5, %v2142_v61  ;;  %v933_v5 = vpop.f32.mrf.mxu3 }
 0x1b0   :  { %v9003_v33 = vadd.f32 %v1760_v48, %v11948_v4  ;;  %v6198_v13 = vpop.eup %6197  ;;  %v5098_v11 = vadd.f32 %v8563_v40, %v5030_v6  ;;  %v1486_v20 = vadd.f32 1.0, %v1485_v37  ;;  %vm9019_vm11 = vcmp.lt.f32.partialorder %v1488_v47, 0.0004427343  ;;  %v6589_v40 = vld [vmem:[%s11692_s2 + $0x30] sm:$0xff]  ;;  %v9028_v47 = vpop.xlane.xlu1 %4860 }
 0x1b1   :  { %v9017_v15 = vpop.eup %6199  ;;  %v1188_v50 = vmul.f32 1.442695, %v1099_v3  ;;  %6203 = vlog2.f32 %v1455_v56  ;;  %v5831_v6 = vmul.f32 -1.442695, %v2143_v55  ;;  %v1484_v61 = vmul.f32 0.6931472, %v6198_v13 }
 0x1b2   :  { %v4562_v18 = vmul.f32 %v8770_v59, %v9003_v33  ;;  %v6202_v48 = vpop.eup %6201  ;;  %6205 = vpow2.f32 %v1254_v8  ;;  %v5162_v4 = vadd.f32 %v6589_v40, %v5098_v11  ;;  %v1461_v3 = vand.u32 2147483647, %v8760_v58  ;;  %v4855_v11 = vpop.xlane.xlu2 %4854  ;;  %v11952_v55 = vld [vmem:[#allocation46_spill] sm:$0xff] }
 0x1b3   :  { %v2636_v37 = vmul.f32 %v6202_v48, %v8986_v24  ;;  %6207 = vpow2.f32 %v1188_v50  ;;  %v1459_v56 = vadd.f32 1.0, %v1458_v0  ;;  %v4407_v13 = vsel %vm4279_vm10, %v11949_v46, %v11952_v55 }
 0x1b4   :  { %v4734_v10 = vsel %vm511_vm0, %v4562_v18, 0.0  ;;  %v5229_v8 = vmax.f32 %v8588_v62, %v5162_v4  ;;  %6209 = vpow2.f32 %v5831_v6  ;;  %v9033_v18 = vadd.f32 %v933_v5, %v8184_v51 }
 0x1b5   :  { %4735 = vadd.xlane.f32.xlu0 %v4734_v10  ;;  %v2637_v1 = vsub.f32 1.0, %v2636_v37  ;;  %v1761_v50 = vadd.f32 1.0, %v8849_v19  ;;  %v1764_v10 = vmul.f32 -0.5, %v8849_v19  ;;  %v1487_v40 = vmul.f32 %v8961_v25, %v1486_v20 }
 0x1b6   :  { %v2644_v4 = vand.u32 2147483647, %v8986_v24  ;;  %v2646_v0 = vand.u32 2147483648, %v8986_v24  ;;  %v5294_v51 = vmin.f32 %v8611_v29, %v5229_v8  ;;  %vm2641_vm12 = vweird.f32 %v6202_v48 }
 0x1b7   :  { %v6204_v6 = vpop.eup %6203  ;;  %v2638_v5 = vmul.f32 %v6202_v48, %v2637_v1  ;;  %v4471_v37 = vmul.f32 1.4142135, %v4407_v13  ;;  %6211 = vlog2.f32 %v1761_v50  ;;  %vm2640_vm13 = vweird.f32 %v8986_v24  ;;  %v682_v50 = vpop.f32.mrf.mxu0 }
 0x1b8   :  { %v9045_v57 = vpop.eup %6205  ;;  %5359 = vst.msk [vmem:[%s11703_s13 + $0x30] sm:$0xff] %vm5352_vm8, %v5294_v51  ;;  %v1457_v25 = vmul.f32 0.6931472, %v6204_v6  ;;  %v1460_v46 = vmul.f32 %v8760_v58, %v1459_v56  ;;  %vm1462_vm14 = vcmp.lt.f32.partialorder %v1461_v3, 0.0004427343  ;;  %v1490_v1 = vsel %vm9019_vm11, %v1487_v40, %v1484_v61  ;;  %vm2642_vm15 = vmor %vm2640_vm13, %vm2641_vm12 }
 0x1b9   :  { %v9053_v20 = vpop.eup %6207  ;;  %v2639_v8 = vadd.f32 %v6202_v48, %v2638_v5  ;;  %v1069_v55 = vand.u32 2147483647, %v9033_v18  ;;  %v1765_v13 = vadd.f32 1.0, %v1764_v10  ;;  %vm2645_vm1 = vcmp.eq.f32.partialorder %v2644_v4, 8.507059e+37 }
 0x1ba   :  { %v6210_v24 = vpop.eup %6209  ;;  %v2647_v43 = vor.u32 1.1754944e-38, %v2646_v0  ;;  %v1463_v51 = vsel %vm1462_vm14, %v1460_v46, %v1457_v25  ;;  %v1767_v6 = vand.u32 2147483647, %v8849_v19  ;;  %v4799_v63 = vmul.f32 %v8854_v16, %v4471_v37  ;;  %v851_v37 = vpop.f32.mrf.mxu1 }
 0x1bb   :  { %v2643_v58 = vsel %vm2642_vm15, %v6202_v48, %v2639_v8  ;;  %v1863_v3 = vadd.f32 %v1463_v51, %v967_v41  ;;  %v9062_v56 = vadd.f32 1.0, %v6210_v24  ;;  %v9067_v61 = vadd.f32 %v1490_v1, %v970_v42  ;;  %v4595_v48 = vpop.xlane.xlu1 %4594  ;;  %v9085_v8 = vpop.xlane.xlu2 %4863 }
 0x1bc   :  { %v2648_v10 = vsel %vm2645_vm1, %v2647_v43, %v2643_v58  ;;  %v683_v4 = vadd.f32 %v8574_v35, %v682_v50  ;;  %v9073_v21 = vsub.f32 0.0, %v1069_v55  ;;  %v1766_v41 = vmul.f32 %v8849_v19, %v1765_v13  ;;  %v11955_v35 = vld [vmem:[#allocation35_spill] sm:$0xff] }
 0x1bd   :  { %v6212_v0 = vpop.eup %6211  ;;  %v3539_v5 = vmul.f32 1.002, %v2648_v10  ;;  %5783 = vmatmul.msk.f32.gmra.mxu2 %vm511_vm0, %v1863_v3  ;;  %6213 = vrcp.f32 %v9062_v56  ;;  %v1491_v12 = vadd.f32 1.0, %v9053_v20  ;;  %v4529_v42 = vmul.f32 %v8770_v59, %v1863_v3  ;;  %v9105_v10 = vld [vmem:[#allocation2] ss:$0 sm:$0xff] }
 0x1be   :  { %vm9078_vm2 = vcmp.lt.f32.partialorder %v1767_v6, 0.0004427343  ;;  %vm4283_vm3 = vcmp.ge.f32.partialorder %v11955_v35, 0.0  ;;  %v1494_v46 = vmul.f32 -0.5, %v9053_v20  ;;  %v4925_v1 = vsel %vm3663_vm7, %v4799_v63, 0.0 }
 0x1bf   :  { %v5894_v25 = vadd.f32 -0.001, %v3539_v5  ;;  %v1763_v19 = vmul.f32 0.6931472, %v6212_v0  ;;  %v2659_v55 = vand.u32 2147483647, %v9062_v56  ;;  %4926 = vadd.xlane.f32.xlu2 %v4925_v1  ;;  %v9089_v50 = vadd.f32 %v851_v37, %v683_v4 }
 0x1c0   :  { %v4635_v13 = vsel %vm511_vm0, %v4529_v42, 0.0  ;;  %v5031_v24 = vadd.f32 %v4855_v11, %v4595_v48  ;;  %v2661_v51 = vand.u32 2147483648, %v9062_v56  ;;  %v1464_v58 = vadd.f32 1.0, %v8858_v2  ;;  %v5596_v0 = vld [vmem:[%s11691_s1 + $0x150] sm:$0xf] }
 0x1c1   :  { %3668 = vst.msk [vmem:[%s11702_s12 + $0x20] sm:$0xff] %vm3663_vm7, %v5894_v25  ;;  %4636 = vadd.xlane.f32.xlu0 %v4635_v13  ;;  %v1769_v6 = vsel %vm9078_vm2, %v1766_v41, %v1763_v19  ;;  %v1467_v3 = vmul.f32 -0.5, %v8858_v2  ;;  %6215 = vlog2.f32 %v1491_v12  ;;  %v1036_v11 = vand.u32 2147483647, %v9089_v50  ;;  %v5998_v5 = vld [vmem:[%s11691_s1 + $0x154] sm:$0xf0] }
 0x1c2   :  { %v9102_v63 = vadd.f32 %v1769_v6, %v1001_v14  ;;  %v5099_v4 = vadd.f32 %v9105_v10, %v5031_v24  ;;  %v9114_v48 = vadd.f32 1.0, %v1494_v46  ;;  %vm2655_vm4 = vweird.f32 %v9062_v56  ;;  %v5999_v37 = vld [vmem:[%s11691_s1 + $0x164] sm:$0xf]  ;;  %v5606_v25 = vld [vmem:[%s11691_s1 + $0x168] sm:$0xf0]  ;;  %v2145_v46 = vpop.f32.mrf.mxu2  ;;  %v6591_v13 = vld [vmem:[%s11692_s2 + $0x38] sm:$0xff] }
 0x1c3   :  { %v6214_v41 = vpop.eup %6213  ;;  %6217 = vlog2.f32 %v1464_v58  ;;  %v1100_v42 = vsub.f32 0.0, %v1036_v11  ;;  %v1468_v43 = vadd.f32 1.0, %v1467_v3  ;;  %vm9127_vm5 = vcmp.eq.f32.partialorder %v2659_v55, 8.507059e+37 }
 0x1c4   :  { %11956 = vst [vmem:[#allocation14_spill] sm:$0xff] %v9102_v63  ;;  %v2651_v14 = vmul.f32 %v6214_v41, %v9062_v56  ;;  %v4563_v12 = vmul.f32 %v8770_v59, %v9102_v63  ;;  %v2662_v19 = vor.u32 1.1754944e-38, %v2661_v51  ;;  %v5163_v24 = vadd.f32 %v6591_v13, %v5099_v4  ;;  %v9140_v51 = vld [vmem:[%s11696_s6] ss:$0 sm:$0xff] }
 0x1c5   :  { %v5597_v6 = vor.u32 %v5998_v5, %v5596_v0  ;;  %v1190_v11 = vmul.f32 1.442695, %v1100_v42  ;;  %v1470_v40 = vand.u32 2147483647, %v8858_v2  ;;  %vm2656_vm6 = vweird.f32 %v6214_v41 }
 0x1c6   :  { %v2652_v58 = vsub.f32 1.0, %v2651_v14  ;;  %v4737_v3 = vsel %vm511_vm0, %v4563_v12, 0.0  ;;  %v5230_v55 = vmax.f32 %v8588_v62, %v5163_v24  ;;  %v5609_v36 = vor.u32 %v5999_v37, %v5606_v25  ;;  %v11959_v12 = vld [vmem:[#allocation38_spill] sm:$0xff]  ;;  %v936_v24 = vpop.f32.mrf.mxu3  ;;  %vm2657_vm9 = vmor %vm2655_vm4, %vm2656_vm6 }
 0x1c7   :  { %4738 = vadd.xlane.f32.xlu1 %v4737_v3  ;;  %721 = vmatmul.bf16.gmra.mxu0 %v5597_v6  ;;  %v2146_v4 = vadd.f32 %v9140_v51, %v2145_v46  ;;  %v6216_v0 = vpop.eup %6215  ;;  %6219 = vpow2.f32 %v1190_v11  ;;  %v1469_v14 = vmul.f32 %v8858_v2, %v1468_v43  ;;  %v4411_v42 = vsel %vm4283_vm3, %v11955_v35, %v11959_v12  ;;  %v4598_v3 = vpop.xlane.xlu2 %4597 }
 0x1c8   :  { %v2653_v5 = vmul.f32 %v6214_v41, %v2652_v58  ;;  %v5295_v37 = vmin.f32 %v8611_v29, %v5230_v55  ;;  %5752 = vmatmul.msk.bf16.gmra.mxu1 %vm511_vm0, %v5609_v36  ;;  %v4475_v6 = vmul.f32 1.4142135, %v4411_v42  ;;  %v1770_v46 = vadd.f32 1.0, %v8936_v22 }
 0x1c9   :  { %v6218_v13 = vpop.eup %6217  ;;  %v5832_v25 = vmul.f32 -1.442695, %v2146_v4  ;;  %v9152_v2 = vadd.f32 %v936_v24, %v8286_v38  ;;  %v1773_v43 = vmul.f32 -0.5, %v8936_v22  ;;  %vm1471_vm10 = vcmp.lt.f32.partialorder %v1470_v40, 0.0004427343 }
 0x1ca   :  { %v2654_v58 = vadd.f32 %v6214_v41, %v2653_v5  ;;  %v1466_v11 = vmul.f32 0.6931472, %v6218_v13  ;;  %5360 = vst.msk [vmem:[%s11703_s13 + $0x38] sm:$0xff] %vm5352_vm8, %v5295_v37  ;;  %v4803_v35 = vmul.f32 %v8854_v16, %v4475_v6  ;;  %v5032_v36 = vadd.f32 %v8939_v32, %v4598_v3  ;;  %v684_v6 = vpop.f32.mrf.mxu0 }
 0x1cb   :  { %6221 = vpow2.f32 %v5832_v25  ;;  %v1493_v55 = vmul.f32 0.6931472, %v6216_v0  ;;  %v1070_v5 = vand.u32 2147483647, %v9152_v2  ;;  %v11960_v12 = vmax.f32 %v8688_v54, 0.0  ;;  %v9172_v0 = vpop.xlane.xlu0 %4866  ;;  %v2148_v54 = vpop.f32.mrf.mxu2 }
 0x1cc   :  { %v2658_v38 = vsel %vm2657_vm9, %v6214_v41, %v2654_v58  ;;  %v1472_v4 = vsel %vm1471_vm10, %v1469_v14, %v1466_v11  ;;  %v4937_v13 = vsel %vm3663_vm7, %v4803_v35, 0.0  ;;  %6223 = vlog2.f32 %v1770_v46 }
 0x1cd   :  { %v2663_v56 = vsel %vm9127_vm5, %v2662_v19, %v2658_v38  ;;  %v1864_v42 = vadd.f32 %v1472_v4, %v11960_v12  ;;  %v6220_v40 = vpop.eup %6219  ;;  %v1256_v32 = vmul.f32 1.442695, %v9073_v21  ;;  %4938 = vadd.xlane.f32.xlu0 %v4937_v13  ;;  %v1774_v41 = vadd.f32 1.0, %v1773_v43  ;;  %v6593_v43 = vld [vmem:[%s11692_s2 + $0x40] sm:$0xff]  ;;  %v11964_v38 = vld [vmem:[#allocation51_spill] sm:$0xff] }
 0x1ce   :  { %v3540_v37 = vmul.f32 1.002, %v2663_v56  ;;  %v1496_v1 = vmul.f32 %v9053_v20, %v9114_v48  ;;  %v11961_v19 = vand.u32 2147483647, %v9053_v20  ;;  %v1500_v14 = vadd.f32 1.0, %v6220_v40 }
 0x1cf   :  { %5784 = vmatmul.msk.f32.gmra.mxu2 %vm511_vm0, %v1864_v42  ;;  %v5100_v24 = vadd.f32 %v9105_v10, %v5032_v36  ;;  %v1503_v46 = vmul.f32 -0.5, %v6220_v40  ;;  %v1776_v3 = vand.u32 2147483647, %v8936_v22  ;;  %v4530_v58 = vmul.f32 %v8770_v59, %v1864_v42 }
 0x1d0   :  { %vm9178_vm11 = vcmp.lt.f32.partialorder %v11961_v19, 0.0004427343  ;;  %v5895_v21 = vadd.f32 -0.001, %v3540_v37  ;;  %v1134_v48 = vsub.f32 0.0, %v1070_v5  ;;  %vm4284_vm12 = vcmp.ge.f32.partialorder %v11964_v38, 0.0 }
 0x1d1   :  { %v6222_v11 = vpop.eup %6221  ;;  %v1499_v20 = vsel %vm9178_vm11, %v1496_v1, %v1493_v55  ;;  %v5164_v35 = vadd.f32 %v6593_v43, %v5100_v24  ;;  %v1775_v4 = vmul.f32 %v8936_v22, %v1774_v41  ;;  %v4638_v56 = vsel %vm511_vm0, %v4530_v58, 0.0  ;;  %v9203_v55 = vld [vmem:[%s11694_s4] ss:$0 sm:$0xff]  ;;  %v853_v1 = vpop.f32.mrf.mxu1 }
 0x1d2   :  { %3669 = vst.msk [vmem:[%s11702_s12 + $0x28] sm:$0xff] %vm3663_vm7, %v5895_v21  ;;  %v9196_v36 = vadd.f32 1.0, %v6222_v11  ;;  %v685_v5 = vadd.f32 %v9203_v55, %v684_v6  ;;  %v6224_v12 = vpop.eup %6223  ;;  %6225 = vlog2.f32 %v1500_v14  ;;  %4639 = vadd.xlane.f32.xlu1 %v4638_v56  ;;  %v1473_v13 = vadd.f32 1.0, %v8990_v31  ;;  %v11968_v11 = vld [vmem:[#allocation53_spill] sm:$0xff] }
 0x1d3   :  { %v5231_v42 = vmax.f32 %v8588_v62, %v5164_v35  ;;  %v1476_v37 = vmul.f32 -0.5, %v8990_v31  ;;  %v1504_v22 = vadd.f32 1.0, %v1503_v46  ;;  %v1506_v41 = vand.u32 2147483647, %v6220_v40 }
 0x1d4   :  { %6227 = vrcp.f32 %v9196_v36  ;;  %vm9210_vm13 = vcmp.lt.f32.partialorder %v1776_v3, 0.0004427343  ;;  %v1772_v24 = vmul.f32 0.6931472, %v6224_v12  ;;  %v9215_v6 = vadd.f32 %v853_v1, %v685_v5 }
 0x1d5   :  { %v5296_v14 = vmin.f32 %v8611_v29, %v5231_v42  ;;  %6229 = vlog2.f32 %v1473_v13  ;;  %v11967_v21 = vmax.f32 %v8982_v39, 0.0  ;;  %v4412_v3 = vsel %vm4284_vm12, %v11964_v38, %v11968_v11 }
 0x1d6   :  { %6231 = vpow2.f32 %v1256_v32  ;;  %v1778_v43 = vsel %vm9210_vm13, %v1775_v4, %v1772_v24  ;;  %v1037_v39 = vand.u32 2147483647, %v9215_v6  ;;  %v2149_v32 = vadd.f32 %v9140_v51, %v2148_v54  ;;  %v9242_v4 = vpop.xlane.xlu0 %4875 }
 0x1d7   :  { %v9219_v58 = vadd.f32 %v1499_v20, %v11967_v21  ;;  %5361 = vst.msk [vmem:[%s11703_s13 + $0x40] sm:$0xff] %vm5352_vm8, %v5296_v14  ;;  %v1477_v20 = vadd.f32 1.0, %v1476_v37  ;;  %v2674_v35 = vand.u32 2147483647, %v9196_v36  ;;  %v9236_v5 = vmul.f32 1.442695, %v1134_v48  ;;  %v938_v14 = vpop.f32.mrf.mxu3 }
 0x1d8   :  { %v11969_v38 = vmax.f32 %v8765_v45, 0.0  ;;  %v6226_v42 = vpop.eup %6225  ;;  %v9244_v13 = vmul.f32 %v6220_v40, %v1504_v22  ;;  %vm9246_vm14 = vcmp.lt.f32.partialorder %v1506_v41, 0.0004427343  ;;  %v1101_v37 = vsub.f32 0.0, %v1037_v39 }
 0x1d9   :  { %v1479_v19 = vand.u32 2147483647, %v8990_v31  ;;  %v5833_v54 = vmul.f32 -1.442695, %v2149_v32  ;;  %v2676_v48 = vand.u32 2147483648, %v9196_v36  ;;  %v1779_v21 = vadd.f32 1.0, %v9017_v15 }
 0x1da   :  { %v9240_v12 = vadd.f32 %v1778_v43, %v11969_v38  ;;  %v6228_v24 = vpop.eup %6227  ;;  %v1782_v40 = vmul.f32 -0.5, %v9017_v15  ;;  %v1192_v11 = vmul.f32 1.442695, %v1101_v37  ;;  %v1478_v43 = vmul.f32 %v8990_v31, %v1477_v20  ;;  %v687_v37 = vpop.f32.mrf.mxu0 }
 0x1db   :  { %v6230_v22 = vpop.eup %6229  ;;  %v2666_v41 = vmul.f32 %v6228_v24, %v9196_v36  ;;  %v4476_v39 = vmul.f32 1.4142135, %v4412_v3  ;;  %6233 = vpow2.f32 %v5833_v54  ;;  %v9262_v25 = vadd.f32 %v938_v14, %v8349_v27 }
 0x1dc   :  { %11970 = vst [vmem:[#allocation18_spill] sm:$0xff] %v9240_v12  ;;  %v4564_v45 = vmul.f32 %v8770_v59, %v9240_v12  ;;  %v9258_v38 = vpop.eup %6231  ;;  %v1475_v56 = vmul.f32 0.6931472, %v6230_v22  ;;  %vm9264_vm15 = vcmp.eq.f32.partialorder %v2674_v35, 8.507059e+37  ;;  %6235 = vpow2.f32 %v1192_v11  ;;  %v11976_v11 = vld [vmem:[#allocation47_spill] sm:$0xff] }
 0x1dd   :  { %v2667_v46 = vsub.f32 1.0, %v2666_v41  ;;  %vm1480_vm1 = vcmp.lt.f32.partialorder %v1479_v19, 0.0004427343  ;;  %v1502_v31 = vmul.f32 0.6931472, %v6226_v42  ;;  %6237 = vlog2.f32 %v1779_v21 }
 0x1de   :  { %v4740_v32 = vsel %vm511_vm0, %v4564_v45, 0.0  ;;  %v1481_v3 = vsel %vm1480_vm1, %v1478_v43, %v1475_v56  ;;  %v1783_v20 = vadd.f32 1.0, %v1782_v40  ;;  %vm2671_vm2 = vweird.f32 %v6228_v24  ;;  %v9268_v45 = vpop.xlane.xlu1 %4869 }
 0x1df   :  { %4741 = vadd.xlane.f32.xlu2 %v4740_v32  ;;  %v2668_v63 = vmul.f32 %v6228_v24, %v2667_v46  ;;  %v11975_v27 = vmax.f32 %v8806_v17, 0.0  ;;  %v1071_v35 = vand.u32 2147483647, %v9262_v25  ;;  %v2677_v14 = vor.u32 1.1754944e-38, %v2676_v48  ;;  %v5604_v17 = vld [vmem:[%s11691_s1 + $0x160] sm:$0xf] }
 0x1e0   :  { %v973_v22 = vmax.f32 %v9215_v6, 0.0  ;;  %v4804_v41 = vmul.f32 %v8854_v16, %v4476_v39  ;;  %v688_v19 = vadd.f32 %v9203_v55, %v687_v37  ;;  %vm2670_vm3 = vweird.f32 %v9196_v36  ;;  %v6000_v48 = vld [vmem:[%s11691_s1 + $0x164] sm:$0xf0]  ;;  %v856_v39 = vpop.f32.mrf.mxu1 }
 0x1e1   :  { %v1865_v54 = vadd.f32 %v1481_v3, %v11975_v27  ;;  %v2669_v42 = vadd.f32 %v6228_v24, %v2668_v63  ;;  %v1785_v46 = vand.u32 2147483647, %v9017_v15  ;;  %v6234_v21 = vpop.eup %6233  ;;  %v1508_v63 = vsel %vm9246_vm14, %v9244_v13, %v1502_v31  ;;  %vm2672_vm4 = vmor %vm2670_vm3, %vm2671_vm2 }
 0x1e2   :  { %v1784_v36 = vmul.f32 %v9017_v15, %v1783_v20  ;;  %v4940_v40 = vsel %vm3663_vm7, %v4804_v41, 0.0  ;;  %vm4282_vm5 = vcmp.ge.f32.partialorder %v11976_v11, 0.0  ;;  %v9293_v43 = vpop.eup %6235  ;;  %v9295_v37 = vadd.f32 1.0, %v6234_v21  ;;  %v6001_v41 = vld [vmem:[%s11691_s1 + $0x174] sm:$0xf] }
 0x1e3   :  { %5785 = vmatmul.msk.f32.gmra.mxu2 %vm511_vm0, %v1865_v54  ;;  %v4531_v56 = vmul.f32 %v8770_v59, %v1865_v54  ;;  %v4601_v59 = vpop.xlane.xlu0 %4600  ;;  %v2673_v32 = vsel %vm2672_vm4, %v6228_v24, %v2669_v42  ;;  %v1135_v3 = vsub.f32 0.0, %v1071_v35  ;;  %4941 = vadd.xlane.f32.xlu1 %v4940_v40  ;;  %v5605_v27 = vor.u32 %v6000_v48, %v5604_v17  ;;  %v6238_v1 = vpop.eup %6237  ;;  %v11979_v42 = vld [vmem:[#allocation49_spill] sm:$0xff] }
 0x1e4   :  { %v2678_v13 = vsel %vm9264_vm15, %v2677_v14, %v2673_v32  ;;  %v1509_v15 = vadd.f32 1.0, %v9293_v43  ;;  %v9301_v20 = vadd.f32 %v856_v39, %v688_v19  ;;  %6239 = vrcp.f32 %v9295_v37  ;;  %v5614_v19 = vld [vmem:[%s11691_s1 + $0x178] sm:$0xf0]  ;;  %v2151_v48 = vpop.f32.mrf.mxu2 }
 0x1e5   :  { %v4641_v31 = vsel %vm511_vm0, %v4531_v56, 0.0  ;;  %v3541_v54 = vmul.f32 1.002, %v2678_v13  ;;  %vm9304_vm6 = vcmp.lt.f32.partialorder %v1785_v46, 0.0004427343  ;;  %v5033_v35 = vadd.f32 %v9028_v47, %v4601_v59  ;;  %726 = vmatmul.bf16.gmra.mxu0 %v5605_v27 }
 0x1e6   :  { %6241 = vlog2.f32 %v1509_v15  ;;  %v1512_v12 = vmul.f32 -0.5, %v9293_v43  ;;  %v4410_v46 = vsel %vm4282_vm5, %v11976_v11, %v11979_v42  ;;  %v1515_v56 = vand.u32 2147483647, %v9293_v43  ;;  %v9336_v27 = vpop.xlane.xlu1 %4878 }
 0x1e7   :  { %4642 = vadd.xlane.f32.xlu2 %v4641_v31  ;;  %v5896_v47 = vadd.f32 -0.001, %v3541_v54  ;;  %6243 = vpow2.f32 %v9236_v5  ;;  %v1781_v17 = vmul.f32 0.6931472, %v6238_v1  ;;  %v11980_v21 = vmax.f32 %v9089_v50, 0.0 }
 0x1e8   :  { %v2689_v59 = vand.u32 2147483647, %v9295_v37  ;;  %v1260_v39 = vmul.f32 1.442695, %v1135_v3  ;;  %v1038_v32 = vand.u32 2147483647, %v9301_v20  ;;  %v5101_v11 = vadd.f32 %v9105_v10, %v5033_v35  ;;  %v9351_v35 = vpop.xlane.xlu2 %4872 }
 0x1e9   :  { %v9325_v40 = vadd.f32 %v1508_v63, %v11980_v21  ;;  %3670 = vst.msk [vmem:[%s11702_s12 + $0x30] sm:$0xff] %vm3663_vm7, %v5896_v47  ;;  %v1787_v5 = vsel %vm9304_vm6, %v1784_v36, %v1781_v17  ;;  %v5617_v50 = vor.u32 %v6001_v41, %v5614_v19  ;;  %v4474_v63 = vmul.f32 1.4142135, %v4410_v46  ;;  %v6595_v41 = vld [vmem:[%s11692_s2 + $0x48] sm:$0xff]  ;;  %v9365_v46 = vld [vmem:[%s11699_s9] ss:$0 sm:$0xff] }
 0x1ea   :  { %vm2685_vm9 = vweird.f32 %v9295_v37  ;;  %v11981_v3 = vmax.f32 %v8863_v23, 0.0  ;;  %v1102_v13 = vsub.f32 0.0, %v1038_v32  ;;  %v2152_v15 = vadd.f32 %v9140_v51, %v2151_v48  ;;  %v6240_v31 = vpop.eup %6239  ;;  %v941_v32 = vpop.f32.mrf.mxu3 }
 0x1eb   :  { %5786 = vmatmul.msk.f32.gmra.mxu2 %vm511_vm0, %v9067_v61  ;;  %v1513_v36 = vadd.f32 1.0, %v1512_v12  ;;  %vm9346_vm10 = vcmp.lt.f32.partialorder %v1515_v56, 0.0004427343  ;;  %v2691_v24 = vand.u32 2147483648, %v9295_v37  ;;  %v5165_v23 = vadd.f32 %v6595_v41, %v5101_v11  ;;  %5753 = vmatmul.msk.bf16.gmra.mxu1 %vm511_vm0, %v5617_v50  ;;  %v689_v41 = vpop.f32.mrf.mxu0 }
 0x1ec   :  { %v9343_v1 = vadd.f32 %v1787_v5, %v11981_v3  ;;  %v6242_v19 = vpop.eup %6241  ;;  %v2681_v42 = vmul.f32 %v6240_v31, %v9295_v37  ;;  %vm9358_vm11 = vcmp.eq.f32.partialorder %v2689_v59, 8.507059e+37  ;;  %v1194_v56 = vmul.f32 1.442695, %v1102_v13 }
 0x1ed   :  { %v9369_v17 = vpop.eup %6243  ;;  %6245 = vpow2.f32 %v1260_v39  ;;  %v5232_v48 = vmax.f32 %v8588_v62, %v5165_v23  ;;  %v5834_v21 = vmul.f32 -1.442695, %v2152_v15  ;;  %v4802_v59 = vmul.f32 %v8854_v16, %v4474_v63  ;;  %v11987_v63 = vld [vmem:[#allocation39_spill] sm:$0xff] }
 0x1ee   :  { %11982 = vst [vmem:[#allocation20_spill] sm:$0xff] %v9343_v1  ;;  %v4565_v47 = vmul.f32 %v9365_v46, %v9343_v1  ;;  %v2682_v5 = vsub.f32 1.0, %v2681_v42  ;;  %6247 = vpow2.f32 %v1194_v56  ;;  %v9375_v50 = vadd.f32 %v941_v32, %v8380_v53  ;;  %v4604_v32 = vpop.xlane.xlu1 %4603 }
 0x1ef   :  { %v1511_v3 = vmul.f32 0.6931472, %v6242_v19  ;;  %v5297_v13 = vmin.f32 %v8611_v29, %v5232_v48  ;;  %6249 = vpow2.f32 %v5834_v21  ;;  %v4532_v39 = vmul.f32 %v9365_v46, %v9067_v61 }
 0x1f0   :  { %v4743_v11 = vsel %vm511_vm0, %v4565_v47, 0.0  ;;  %v2683_v15 = vmul.f32 %v6240_v31, %v2682_v5  ;;  %vm2686_vm12 = vweird.f32 %v6240_v31  ;;  %v1072_v16 = vand.u32 2147483647, %v9375_v50 }
 0x1f1   :  { %4744 = vadd.xlane.f32.xlu0 %v4743_v11  ;;  %vm4286_vm13 = vcmp.ge.f32.partialorder %v11987_v63, 0.0  ;;  %v1514_v23 = vmul.f32 %v9293_v43, %v1513_v36  ;;  %5362 = vst.msk [vmem:[%s11703_s13 + $0x48] sm:$0xff] %vm5352_vm8, %v5297_v13  ;;  %v4934_v53 = vsel %vm3663_vm7, %v4802_v59, 0.0  ;;  %v1788_v19 = vadd.f32 1.0, %v9045_v57  ;;  %vm2687_vm14 = vmor %vm2685_vm9, %vm2686_vm12  ;;  %v11988_v59 = vld [vmem:[#allocation41_spill] sm:$0xff]  ;;  %v858_v11 = vpop.f32.mrf.mxu1 }
 0x1f2   :  { %v1791_v61 = vmul.f32 -0.5, %v9045_v57  ;;  %v2684_v42 = vadd.f32 %v6240_v31, %v2683_v15  ;;  %v2692_v47 = vor.u32 1.1754944e-38, %v2691_v24  ;;  %v974_v56 = vmax.f32 %v9301_v20, 0.0  ;;  %4935 = vadd.xlane.f32.xlu2 %v4934_v53 }
 0x1f3   :  { %5787 = vmatmul.msk.f32.gmra.mxu2 %vm511_vm0, %v9219_v58  ;;  %v690_v43 = vadd.f32 %v9203_v55, %v689_v41  ;;  %v9394_v36 = vpop.eup %6245  ;;  %v1517_v48 = vsel %vm9346_vm10, %v1514_v23, %v1511_v3  ;;  %v4644_v21 = vsel %vm511_vm0, %v4532_v39, 0.0  ;;  %6251 = vlog2.f32 %v1788_v19  ;;  %v9409_v39 = vpop.xlane.xlu2 %4881 }
 0x1f4   :  { %v4414_v24 = vsel %vm4286_vm13, %v11987_v63, %v11988_v59  ;;  %v6248_v5 = vpop.eup %6247  ;;  %v2688_v13 = vsel %vm2687_vm14, %v6240_v31, %v2684_v42  ;;  %v1136_v41 = vsub.f32 0.0, %v1072_v16  ;;  %v1792_v15 = vadd.f32 1.0, %v1791_v61  ;;  %v2154_v42 = vpop.f32.mrf.mxu2 }
 0x1f5   :  { %v1794_v54 = vand.u32 2147483647, %v9045_v57  ;;  %v6250_v3 = vpop.eup %6249  ;;  %v2693_v37 = vsel %vm9358_vm11, %v2692_v47, %v2688_v13  ;;  %v1518_v23 = vadd.f32 1.0, %v6248_v5  ;;  %v9411_v53 = vadd.f32 %v858_v11, %v690_v43  ;;  %v9442_v11 = vld [vmem:[%s11700_s10] ss:$0 sm:$0xff] }
 0x1f6   :  { %v5034_v19 = vadd.f32 %v9085_v8, %v4604_v32  ;;  %v3542_v14 = vmul.f32 1.002, %v2693_v37  ;;  %v1521_v63 = vmul.f32 -0.5, %v6248_v5  ;;  %v9414_v59 = vadd.f32 1.0, %v6250_v3  ;;  %v6598_v3 = vld [vmem:[%s11692_s2 + $0x50] sm:$0xff] }
 0x1f7   :  { %v4478_v31 = vmul.f32 1.4142135, %v4414_v24  ;;  %v9418_v16 = vadd.f32 %v1517_v48, %v973_v22  ;;  %6253 = vlog2.f32 %v1518_v23  ;;  %v1524_v61 = vand.u32 2147483647, %v6248_v5  ;;  %v11991_v48 = vld [vmem:[#allocation54_spill] sm:$0xff] }
 0x1f8   :  { %v5897_v47 = vadd.f32 -0.001, %v3542_v14  ;;  %6255 = vrcp.f32 %v9414_v59  ;;  %v1793_v8 = vmul.f32 %v9045_v57, %v1792_v15  ;;  %vm9423_vm15 = vcmp.lt.f32.partialorder %v1794_v54, 0.0004427343 }
 0x1f9   :  { %4645 = vadd.xlane.f32.xlu0 %v4644_v21  ;;  %v6252_v32 = vpop.eup %6251  ;;  %v9427_v24 = vmul.f32 1.442695, %v1136_v41  ;;  %v1039_v6 = vand.u32 2147483647, %v9411_v53  ;;  %v5102_v22 = vadd.f32 %v9105_v10, %v5034_v19  ;;  %vm4287_vm1 = vcmp.ge.f32.partialorder %v11991_v48, 0.0 }
 0x1fa   :  { %3671 = vst.msk [vmem:[%s11702_s12 + $0x38] sm:$0xff] %vm3663_vm7, %v5897_v47  ;;  %v1522_v57 = vadd.f32 1.0, %v1521_v63  ;;  %v1790_v14 = vmul.f32 0.6931472, %v6252_v32  ;;  %v2155_v21 = vadd.f32 %v9140_v51, %v2154_v42  ;;  %v4806_v13 = vmul.f32 %v9442_v11, %v4478_v31  ;;  %v943_v42 = vpop.f32.mrf.mxu3 }
 0x1fb   :  { %5788 = vmatmul.msk.f32.gmra.mxu2 %vm511_vm0, %v9325_v40  ;;  %vm9445_vm2 = vcmp.lt.f32.partialorder %v1524_v61, 0.0004427343  ;;  %v1103_v54 = vsub.f32 0.0, %v1039_v6  ;;  %v5166_v37 = vadd.f32 %v6598_v3, %v5102_v22  ;;  %v2704_v23 = vand.u32 2147483647, %v9414_v59 }
 0x1fc   :  { %v1796_v19 = vsel %vm9423_vm15, %v1793_v8, %v1790_v14  ;;  %v5835_v63 = vmul.f32 -1.442695, %v2155_v21  ;;  %v1797_v31 = vadd.f32 1.0, %v9258_v38  ;;  %vm2700_vm3 = vweird.f32 %v9414_v59  ;;  %v9466_v14 = vpop.xlane.xlu0 %4884 }
 0x1fd   :  { %v6254_v61 = vpop.eup %6253  ;;  %v11994_v47 = vmax.f32 %v8950_v26, 0.0  ;;  %v1196_v6 = vmul.f32 1.442695, %v1103_v54  ;;  %v5233_v12 = vmax.f32 %v8588_v62, %v5166_v37  ;;  %v9464_v22 = vadd.f32 %v943_v42, %v8424_v49  ;;  %v4607_v37 = vpop.xlane.xlu2 %4606 }
 0x1fe   :  { %v6256_v3 = vpop.eup %6255  ;;  %v1520_v43 = vmul.f32 0.6931472, %v6254_v61  ;;  %v1523_v8 = vmul.f32 %v6248_v5, %v1522_v57  ;;  %6257 = vpow2.f32 %v5835_v63  ;;  %v4946_v21 = vsel %vm3663_vm7, %v4806_v13, 0.0  ;;  %v692_v63 = vpop.f32.mrf.mxu0 }
 0x1ff   :  { %v9460_v32 = vadd.f32 %v1796_v19, %v11994_v47  ;;  %v2696_v15 = vmul.f32 %v6256_v3, %v9414_v59  ;;  %6259 = vpow2.f32 %v1196_v6  ;;  %v1800_v54 = vmul.f32 -0.5, %v9258_v38 }
 0x200   :  { %v2706_v49 = vand.u32 2147483648, %v9414_v59  ;;  %v5298_v19 = vmin.f32 %v8611_v29, %v5233_v12  ;;  %v1073_v5 = vand.u32 2147483647, %v9464_v22  ;;  %v1803_v57 = vand.u32 2147483647, %v9258_v38 }
 0x201   :  { %11995 = vst [vmem:[#allocation25_spill] sm:$0xff] %v9460_v32  ;;  %v4566_v26 = vmul.f32 %v9365_v46, %v9460_v32  ;;  %4947 = vadd.xlane.f32.xlu0 %v4946_v21  ;;  %v1526_v13 = vsel %vm9445_vm2, %v1523_v8, %v1520_v43  ;;  %v2697_v42 = vsub.f32 1.0, %v2696_v15  ;;  %6261 = vlog2.f32 %v1797_v31 }
 0x202   :  { %vm2701_vm4 = vweird.f32 %v6256_v3  ;;  %vm9482_vm5 = vcmp.eq.f32.partialorder %v2704_v23, 8.507059e+37  ;;  %5363 = vst.msk [vmem:[%s11703_s13 + $0x50] sm:$0xff] %vm5352_vm8, %v5298_v19  ;;  %v1137_v12 = vsub.f32 0.0, %v1073_v5  ;;  %v5035_v41 = vadd.f32 %v9172_v0, %v4607_v37  ;;  %v861_v37 = vpop.f32.mrf.mxu1 }
 0x203   :  { %v4746_v61 = vsel %vm511_vm0, %v4566_v26, 0.0  ;;  %5789 = vmatmul.msk.f32.gmra.mxu2 %vm511_vm0, %v9418_v16  ;;  %v2698_v15 = vmul.f32 %v6256_v3, %v2697_v42  ;;  %v1801_v6 = vadd.f32 1.0, %v1800_v54  ;;  %v4533_v31 = vmul.f32 %v9365_v46, %v9219_v58  ;;  %vm2702_vm9 = vmor %vm2700_vm3, %vm2701_vm4 }
 0x204   :  { %4747 = vadd.xlane.f32.xlu1 %v4746_v61  ;;  %v693_v43 = vadd.f32 %v9203_v55, %v692_v63  ;;  %v6258_v23 = vpop.eup %6257  ;;  %v9496_v8 = vadd.f32 %v1526_v13, %v974_v56  ;;  %v2707_v21 = vor.u32 1.1754944e-38, %v2706_v49  ;;  %v1264_v26 = vmul.f32 1.442695, %v1137_v12  ;;  %v11998_v61 = vld [vmem:[#allocation58_spill] sm:$0xff]  ;;  %v5612_v12 = vld [vmem:[%s11691_s1 + $0x170] sm:$0xf] }
 0x205   :  { %v4415_v19 = vsel %vm4287_vm1, %v11991_v48, %v11998_v61  ;;  %v6260_v0 = vpop.eup %6259  ;;  %v2699_v54 = vadd.f32 %v6256_v3, %v2698_v15  ;;  %v9502_v5 = vadd.f32 1.0, %v6258_v23  ;;  %vm9504_vm6 = vcmp.lt.f32.partialorder %v1803_v57, 0.0004427343  ;;  %v9522_v15 = vpop.xlane.xlu0 %4893  ;;  %v5622_v23 = vld [vmem:[%s11691_s1 + $0x188] sm:$0xf0]  ;;  %v6600_v61 = vld [vmem:[%s11692_s2 + $0x58] sm:$0xff] }
 0x206   :  { %v5103_v20 = vadd.f32 %v9105_v10, %v5035_v41  ;;  %v1527_v56 = vadd.f32 1.0, %v6260_v0  ;;  %v1530_v49 = vmul.f32 -0.5, %v6260_v0  ;;  %6263 = vpow2.f32 %v1264_v26 }
 0x207   :  { %v9512_v63 = vadd.f32 %v861_v37, %v693_v43  ;;  %v6262_v48 = vpop.eup %6261  ;;  %v2703_v13 = vsel %vm2702_vm9, %v6256_v3, %v2699_v54  ;;  %6265 = vrcp.f32 %v9502_v5  ;;  %v1802_v57 = vmul.f32 %v9258_v38, %v1801_v6  ;;  %v6002_v3 = vld [vmem:[%s11691_s1 + $0x174] sm:$0xf0]  ;;  %v6003_v38 = vld [vmem:[%s11691_s1 + $0x184] sm:$0xf]  ;;  %v9533_v6 = vld [vmem:[%s11697_s7] ss:$0 sm:$0xff] }
 0x208   :  { %v4647_v42 = vsel %vm511_vm0, %v4533_v31, 0.0  ;;  %v2708_v59 = vsel %vm9482_vm5, %v2707_v21, %v2703_v13  ;;  %6267 = vlog2.f32 %v1527_v56  ;;  %v1533_v41 = vand.u32 2147483647, %v6260_v0  ;;  %v2157_v21 = vpop.f32.mrf.mxu2 }
 0x209   :  { %v9537_v47 = vmul.f32 %v9533_v6, %v8407_v60  ;;  %v3543_v31 = vmul.f32 1.002, %v2708_v59  ;;  %6269 = vpow2.f32 %v9427_v24  ;;  %v1799_v43 = vmul.f32 0.6931472, %v6262_v48 }
 0x20a   :  { %v1531_v26 = vadd.f32 1.0, %v1530_v49  ;;  %v5167_v37 = vadd.f32 %v6600_v61, %v5103_v20  ;;  %v1040_v60 = vand.u32 2147483647, %v9512_v63  ;;  %v4479_v54 = vmul.f32 1.4142135, %v4415_v19 }
 0x20b   :  { %5790 = vmatmul.msk.f32.gmra.mxu2 %vm511_vm0, %v9496_v8  ;;  %v5898_v24 = vadd.f32 -0.001, %v3543_v31  ;;  %v1805_v48 = vsel %vm9504_vm6, %v1802_v57, %v1799_v43  ;;  %v5613_v13 = vor.u32 %v6002_v3, %v5612_v12  ;;  %vm2715_vm10 = vweird.f32 %v9502_v5 }
 0x20c   :  { %4648 = vadd.xlane.f32.xlu1 %v4647_v42  ;;  %v9552_v59 = vpop.eup %6263  ;;  %v12001_v49 = vmax.f32 %v9033_v18, 0.0  ;;  %v5234_v20 = vmax.f32 %v8588_v62, %v5167_v37  ;;  %v1104_v42 = vsub.f32 0.0, %v1040_v60  ;;  %v5625_v61 = vor.u32 %v6003_v38, %v5622_v23 }
 0x20d   :  { %v6266_v19 = vpop.eup %6265  ;;  %3672 = vst.msk [vmem:[%s11702_s12 + $0x40] sm:$0xff] %vm3663_vm7, %v5898_v24  ;;  %vm9564_vm11 = vcmp.lt.f32.partialorder %v1533_v41, 0.0004427343  ;;  %v2721_v57 = vand.u32 2147483648, %v9502_v5  ;;  %v1833_v18 = vadd.f32 1.0, %v9552_v59  ;;  %731 = vmatmul.bf16.gmra.mxu0 %v5613_v13  ;;  %v2158_v12 = vadd.f32 %v9140_v51, %v2157_v21  ;;  %v9580_v21 = vpop.xlane.xlu1 %4887 }
 0x20e   :  { %v9557_v32 = vadd.f32 %v1805_v48, %v12001_v49  ;;  %v6268_v3 = vpop.eup %6267  ;;  %v1532_v31 = vmul.f32 %v6260_v0, %v1531_v26  ;;  %v2711_v38 = vmul.f32 %v6266_v19, %v9502_v5  ;;  %v5299_v23 = vmin.f32 %v8611_v29, %v5234_v20  ;;  %5754 = vmatmul.msk.bf16.gmra.mxu1 %vm511_vm0, %v5625_v61 }
 0x20f   :  { %v9576_v41 = vpop.eup %6269  ;;  %v1529_v37 = vmul.f32 0.6931472, %v6268_v3  ;;  %6271 = vlog2.f32 %v1833_v18  ;;  %v1836_v60 = vmul.f32 -0.5, %v9552_v59  ;;  %v1839_v24 = vand.u32 2147483647, %v9552_v59  ;;  %v694_v18 = vpop.f32.mrf.mxu0  ;;  %v12005_v3 = vld [vmem:[#allocation52_spill] sm:$0xff] }
 0x210   :  { %12002 = vst [vmem:[#allocation23_spill] sm:$0xff] %v9557_v32  ;;  %v4567_v43 = vmul.f32 %v9365_v46, %v9557_v32  ;;  %v2712_v0 = vsub.f32 1.0, %v2711_v38  ;;  %v1198_v48 = vmul.f32 1.442695, %v1104_v42  ;;  %v4807_v13 = vmul.f32 %v9442_v11, %v4479_v54  ;;  %v4610_v54 = vpop.xlane.xlu0 %4609 }
 0x211   :  { %5364 = vst.msk [vmem:[%s11703_s13 + $0x58] sm:$0xff] %vm5352_vm8, %v5299_v23  ;;  %v1535_v49 = vsel %vm9564_vm11, %v1532_v31, %v1529_v37  ;;  %vm2716_vm12 = vweird.f32 %v6266_v19  ;;  %v5836_v20 = vmul.f32 -1.442695, %v2158_v12  ;;  %v1806_v61 = vadd.f32 1.0, %v9369_v17  ;;  %v2160_v23 = vpop.f32.mrf.mxu2 }
 0x212   :  { %v4749_v26 = vsel %vm511_vm0, %v4567_v43, 0.0  ;;  %vm4285_vm13 = vcmp.ge.f32.partialorder %v12005_v3, 0.0  ;;  %v12006_v38 = vmax.f32 %v9411_v53, 0.0  ;;  %v2713_v56 = vmul.f32 %v6266_v19, %v2712_v0  ;;  %vm2717_vm14 = vmor %vm2715_vm10, %vm2716_vm12 }
 0x213   :  { %4750 = vadd.xlane.f32.xlu2 %v4749_v26  ;;  %6273 = vpow2.f32 %v1198_v48  ;;  %v1809_v42 = vmul.f32 -0.5, %v9369_v17  ;;  %v1812_v58 = vand.u32 2147483647, %v9369_v17  ;;  %v4534_v12 = vmul.f32 %v9365_v46, %v9325_v40  ;;  %v863_v48 = vpop.f32.mrf.mxu1 }
 0x214   :  { %v9594_v43 = vadd.f32 %v1535_v49, %v12006_v38  ;;  %6275 = vpow2.f32 %v5836_v20  ;;  %v4949_v31 = vsel %vm3663_vm7, %v4807_v13, 0.0  ;;  %v2714_v37 = vadd.f32 %v6266_v19, %v2713_v56 }
 0x215   :  { %v1837_v26 = vadd.f32 1.0, %v1836_v60  ;;  %6277 = vlog2.f32 %v1806_v61  ;;  %4950 = vadd.xlane.f32.xlu1 %v4949_v31  ;;  %v695_v53 = vadd.f32 %v9203_v55, %v694_v18  ;;  %v6272_v0 = vpop.eup %6271  ;;  %v2722_v49 = vor.u32 1.1754944e-38, %v2721_v57 }
 0x216   :  { %5791 = vmatmul.msk.f32.gmra.mxu2 %vm511_vm0, %v9594_v43  ;;  %v1810_v40 = vadd.f32 1.0, %v1809_v42  ;;  %v5036_v13 = vadd.f32 %v9268_v45, %v4610_v54  ;;  %v2161_v56 = vadd.f32 %v9140_v51, %v2160_v23  ;;  %v2718_v60 = vsel %vm2717_vm14, %v6266_v19, %v2714_v37 }
 0x217   :  { %v12007_v20 = vand.u32 2147483647, %v9502_v5  ;;  %vm9611_vm1 = vcmp.lt.f32.partialorder %v1839_v24, 0.0004427343  ;;  %v9615_v18 = vadd.f32 %v863_v48, %v695_v53  ;;  %vm9617_vm2 = vcmp.lt.f32.partialorder %v1812_v58, 0.0004427343  ;;  %v9626_v58 = vpop.xlane.xlu1 %4896 }
 0x218   :  { %v4650_v57 = vsel %vm511_vm0, %v4534_v12, 0.0  ;;  %v5104_v45 = vadd.f32 %v9105_v10, %v5036_v13  ;;  %v1835_v42 = vmul.f32 0.6931472, %v6272_v0  ;;  %v1838_v5 = vmul.f32 %v9552_v59, %v1837_v26  ;;  %v9630_v10 = vpop.xlane.xlu2 %4890  ;;  %v6601_v59 = vld [vmem:[%s11692_s2 + $0x60] sm:$0xff] }
 0x219   :  { %vm2720_vm15 = vcmp.eq.f32.partialorder %v12007_v20, 8.507059e+37  ;;  %v6274_v51 = vpop.eup %6273  ;;  %v1041_v24 = vand.u32 2147483647, %v9615_v18  ;;  %v1811_v53 = vmul.f32 %v9369_v17, %v1810_v40  ;;  %v5837_v48 = vmul.f32 -1.442695, %v2161_v56 }
 0x21a   :  { %v2723_v38 = vsel %vm2720_vm15, %v2722_v49, %v2718_v60  ;;  %v6276_v54 = vpop.eup %6275  ;;  %v1536_v23 = vadd.f32 1.0, %v6274_v51  ;;  %v1539_v37 = vmul.f32 -0.5, %v6274_v51  ;;  %v5168_v26 = vadd.f32 %v6601_v59, %v5104_v45 }
 0x21b   :  { %v3544_v19 = vmul.f32 1.002, %v2723_v38  ;;  %4651 = vadd.xlane.f32.xlu2 %v4650_v57  ;;  %v6278_v49 = vpop.eup %6277  ;;  %v9628_v60 = vadd.f32 1.0, %v6276_v54  ;;  %v1105_v0 = vsub.f32 0.0, %v1041_v24  ;;  %v1009_v13 = vmax.f32 %v9464_v22, 0.0  ;;  %v12012_v38 = vld [vmem:[#allocation57_spill] sm:$0xff] }
 0x21c   :  { %v976_v17 = vmax.f32 %v9512_v63, 0.0  ;;  %6279 = vlog2.f32 %v1536_v23  ;;  %v1808_v40 = vmul.f32 0.6931472, %v6278_v49  ;;  %v1841_v56 = vsel %vm9611_vm1, %v1838_v5, %v1835_v42  ;;  %v12013_v24 = vld [vmem:[#allocation42_spill] sm:$0xff]  ;;  %v697_v23 = vpop.f32.mrf.mxu0 }
 0x21d   :  { %v5899_v12 = vadd.f32 -0.001, %v3544_v19  ;;  %6281 = vrcp.f32 %v9628_v60  ;;  %v4413_v22 = vsel %vm4285_vm13, %v12005_v3, %v12012_v38  ;;  %v1542_v63 = vand.u32 2147483647, %v6274_v51  ;;  %v866_v38 = vpop.f32.mrf.mxu1 }
 0x21e   :  { %v1814_v57 = vsel %vm9617_vm2, %v1811_v53, %v1808_v40  ;;  %v1200_v45 = vmul.f32 1.442695, %v1105_v0  ;;  %v5235_v19 = vmax.f32 %v8588_v62, %v5168_v26  ;;  %vm4289_vm3 = vcmp.ge.f32.partialorder %v12013_v24, 0.0 }
 0x21f   :  { %3673 = vst.msk [vmem:[%s11702_s12 + $0x48] sm:$0xff] %vm3663_vm7, %v5899_v12  ;;  %v1540_v61 = vadd.f32 1.0, %v1539_v37  ;;  %v2734_v42 = vand.u32 2147483647, %v9628_v60  ;;  %v12014_v5 = vmax.f32 %v9152_v2, 0.0  ;;  %6283 = vpow2.f32 %v5837_v48 }
 0x220   :  { %v2736_v3 = vand.u32 2147483648, %v9628_v60  ;;  %6285 = vpow2.f32 %v1200_v45  ;;  %v5300_v31 = vmin.f32 %v8611_v29, %v5235_v19  ;;  %v4477_v53 = vmul.f32 1.4142135, %v4413_v22 }
 0x221   :  { %v9656_v54 = vadd.f32 %v1814_v57, %v12014_v5  ;;  %v9660_v49 = vadd.f32 %v1841_v56, %v1009_v13  ;;  %v1815_v37 = vadd.f32 1.0, %v9394_v36  ;;  %v1818_v0 = vmul.f32 -0.5, %v9394_v36 }
 0x222   :  { %v6280_v2 = vpop.eup %6279  ;;  %vm9666_vm4 = vcmp.lt.f32.partialorder %v1542_v63, 0.0004427343  ;;  %vm2730_vm5 = vweird.f32 %v9628_v60  ;;  %5365 = vst.msk [vmem:[%s11703_s13 + $0x60] sm:$0xff] %vm5352_vm8, %v5300_v31  ;;  %v4805_v48 = vmul.f32 %v9442_v11, %v4477_v53  ;;  %v698_v26 = vadd.f32 %v9203_v55, %v697_v23  ;;  %v4613_v31 = vpop.xlane.xlu1 %4612 }
 0x223   :  { %12015 = vst [vmem:[#allocation30_spill] sm:$0xff] %v9656_v54  ;;  %v4568_v12 = vmul.f32 %v9365_v46, %v9656_v54  ;;  %v6282_v13 = vpop.eup %6281  ;;  %v1538_v40 = vmul.f32 0.6931472, %v6280_v2  ;;  %v1541_v56 = vmul.f32 %v6274_v51, %v1540_v61  ;;  %6287 = vlog2.f32 %v1815_v37  ;;  %v2163_v55 = vpop.f32.mrf.mxu2  ;;  %v6604_v54 = vld [vmem:[%s11692_s2 + $0x68] sm:$0xff] }
 0x224   :  { %12016 = vst [vmem:[#allocation40_spill] sm:$0xff] %v9660_v49  ;;  %v2726_v63 = vmul.f32 %v6282_v13, %v9628_v60  ;;  %vm9679_vm6 = vcmp.eq.f32.partialorder %v2734_v42, 8.507059e+37  ;;  %v2737_v45 = vor.u32 1.1754944e-38, %v2736_v3  ;;  %v4943_v19 = vsel %vm3663_vm7, %v4805_v48, 0.0  ;;  %v9688_v53 = vpop.xlane.xlu2 %4899 }
 0x225   :  { %v4752_v22 = vsel %vm511_vm0, %v4568_v12, 0.0  ;;  %v1819_v5 = vadd.f32 1.0, %v1818_v0  ;;  %v6284_v23 = vpop.eup %6283  ;;  %v1544_v51 = vsel %vm9666_vm4, %v1541_v56, %v1538_v40  ;;  %v4535_v61 = vmul.f32 %v9365_v46, %v9418_v16  ;;  %4944 = vadd.xlane.f32.xlu2 %v4943_v19  ;;  %v9701_v16 = vld [vmem:[%s11696_s6] ss:$0 sm:$0xff] }
 0x226   :  { %4753 = vadd.xlane.f32.xlu0 %v4752_v22  ;;  %v1821_v42 = vand.u32 2147483647, %v9394_v36  ;;  %v9691_v12 = vadd.f32 %v866_v38, %v698_v26  ;;  %v6286_v3 = vpop.eup %6285  ;;  %v9693_v37 = vadd.f32 %v1544_v51, %v976_v17  ;;  %v2727_v0 = vsub.f32 1.0, %v2726_v63  ;;  %v12023_v19 = vld [vmem:[#allocation45_spill] sm:$0xff] }
 0x227   :  { %v9695_v2 = vadd.f32 1.0, %v6284_v23  ;;  %v5037_v48 = vadd.f32 %v9351_v35, %v4613_v31  ;;  %v1545_v59 = vadd.f32 1.0, %v6286_v3  ;;  %v1548_v40 = vmul.f32 -0.5, %v6286_v3 }
 0x228   :  { %v1551_v56 = vand.u32 2147483647, %v6286_v3  ;;  %v2164_v22 = vadd.f32 %v9701_v16, %v2163_v55  ;;  %v2728_v26 = vmul.f32 %v6282_v13, %v2727_v0  ;;  %vm2731_vm9 = vweird.f32 %v6282_v13  ;;  %5792 = vmatmul.msk.f32.gmra.mxu2 %vm511_vm0, %v9693_v37  ;;  %v9727_v0 = vld [vmem:[#allocation2] ss:$0 sm:$0xff] }
 0x229   :  { %6289 = vrcp.f32 %v9695_v2  ;;  %v1820_v17 = vmul.f32 %v9394_v36, %v1819_v5  ;;  %v6288_v35 = vpop.eup %6287  ;;  %v4653_v38 = vsel %vm511_vm0, %v4535_v61, 0.0  ;;  %vm9709_vm10 = vcmp.lt.f32.partialorder %v1821_v42, 0.0004427343  ;;  %vm2732_vm11 = vmor %vm2730_vm5, %vm2731_vm9  ;;  %v9725_v42 = vpop.xlane.xlu0 %4902 }
 0x22a   :  { %6291 = vlog2.f32 %v1545_v59  ;;  %v4417_v31 = vsel %vm4289_vm3, %v12013_v24, %v12023_v19  ;;  %v2729_v55 = vadd.f32 %v6282_v13, %v2728_v26  ;;  %v2749_v23 = vand.u32 2147483647, %v9695_v2 }
 0x22b   :  { %v1817_v36 = vmul.f32 0.6931472, %v6288_v35  ;;  %v1042_v5 = vand.u32 2147483647, %v9691_v12  ;;  %v1549_v51 = vadd.f32 1.0, %v1548_v40  ;;  %v5105_v24 = vadd.f32 %v9727_v0, %v5037_v48 }
 0x22c   :  { %vm9721_vm12 = vcmp.lt.f32.partialorder %v1551_v56, 0.0004427343  ;;  %v5838_v59 = vmul.f32 -1.442695, %v2164_v22  ;;  %v2733_v26 = vsel %vm2732_vm11, %v6282_v13, %v2729_v55  ;;  %v4481_v60 = vmul.f32 1.4142135, %v4417_v31 }
 0x22d   :  { %v1823_v35 = vsel %vm9709_vm10, %v1820_v17, %v1817_v36  ;;  %v1106_v19 = vsub.f32 0.0, %v1042_v5  ;;  %v2738_v40 = vsel %vm9679_vm6, %v2737_v45, %v2733_v26  ;;  %v12026_v56 = vmax.f32 %v9262_v25, 0.0  ;;  %v4616_v36 = vpop.xlane.xlu2 %4615 }
 0x22e   :  { %4654 = vadd.xlane.f32.xlu0 %v4653_v38  ;;  %v5169_v48 = vadd.f32 %v6604_v54, %v5105_v24  ;;  %6293 = vpow2.f32 %v5838_v59  ;;  %v3545_v22 = vmul.f32 1.002, %v2738_v40  ;;  %v2751_v38 = vand.u32 2147483648, %v9695_v2  ;;  %v699_v59 = vpop.f32.mrf.mxu0 }
 0x22f   :  { %v9736_v20 = vadd.f32 %v1823_v35, %v12026_v56  ;;  %v6290_v13 = vpop.eup %6289  ;;  %v1202_v17 = vmul.f32 1.442695, %v1106_v19  ;;  %v1824_v63 = vadd.f32 1.0, %v9576_v41  ;;  %v4809_v55 = vmul.f32 %v9442_v11, %v4481_v60 }
 0x230   :  { %v6292_v31 = vpop.eup %6291  ;;  %v2741_v57 = vmul.f32 %v6290_v13, %v9695_v2  ;;  %v5236_v45 = vmax.f32 %v8588_v62, %v5169_v48  ;;  %v5900_v54 = vadd.f32 -0.001, %v3545_v22  ;;  %v1550_v24 = vmul.f32 %v6286_v3, %v1549_v51 }
 0x231   :  { %12027 = vst [vmem:[#allocation43_spill] sm:$0xff] %v9736_v20  ;;  %v4569_v25 = vmul.f32 %v9365_v46, %v9736_v20  ;;  %v1547_v5 = vmul.f32 0.6931472, %v6292_v31  ;;  %6295 = vpow2.f32 %v1202_v17  ;;  %vm2746_vm13 = vweird.f32 %v6290_v13  ;;  %v9770_v17 = vld [vmem:[%s11694_s4] ss:$0 sm:$0xff] }
 0x232   :  { %v2742_v26 = vsub.f32 1.0, %v2741_v57  ;;  %v5301_v19 = vmin.f32 %v8611_v29, %v5236_v45  ;;  %6297 = vlog2.f32 %v1824_v63  ;;  %3674 = vst.msk [vmem:[%s11702_s12 + $0x50] sm:$0xff] %vm3663_vm7, %v5900_v54  ;;  %v1827_v3 = vmul.f32 -0.5, %v9576_v41  ;;  %v2166_v57 = vpop.f32.mrf.mxu2 }
 0x233   :  { %v4755_v35 = vsel %vm511_vm0, %v4569_v25, 0.0  ;;  %v1553_v60 = vsel %vm9721_vm12, %v1550_v24, %v1547_v5  ;;  %v5038_v51 = vadd.f32 %v9242_v4, %v4616_v36  ;;  %v12028_v56 = vmax.f32 %v9615_v18, 0.0  ;;  %v868_v25 = vpop.f32.mrf.mxu1  ;;  %v9784_v5 = vpop.xlane.xlu0 %4911 }
 0x234   :  { %4756 = vadd.xlane.f32.xlu1 %v4755_v35  ;;  %v6294_v40 = vpop.eup %6293  ;;  %v2743_v22 = vmul.f32 %v6290_v13, %v2742_v26  ;;  %5366 = vst.msk [vmem:[%s11703_s13 + $0x68] sm:$0xff] %vm5352_vm8, %v5301_v19  ;;  %v4955_v61 = vsel %vm3663_vm7, %v4809_v55, 0.0  ;;  %v700_v4 = vadd.f32 %v9770_v17, %v699_v59  ;;  %vm2745_vm14 = vweird.f32 %v9695_v2 }
 0x235   :  { %v9760_v48 = vadd.f32 %v1553_v60, %v12028_v56  ;;  %v978_v18 = vmax.f32 %v9691_v12, 0.0  ;;  %v9775_v63 = vadd.f32 1.0, %v6294_v40  ;;  %v1830_v31 = vand.u32 2147483647, %v9576_v41  ;;  %vm2747_vm1 = vmor %vm2745_vm14, %vm2746_vm13 }
 0x236   :  { %4956 = vadd.xlane.f32.xlu0 %v4955_v61  ;;  %v2744_v45 = vadd.f32 %v6290_v13, %v2743_v22  ;;  %vm9778_vm15 = vcmp.eq.f32.partialorder %v2749_v23, 8.507059e+37  ;;  %v2752_v36 = vor.u32 1.1754944e-38, %v2751_v38  ;;  %v4536_v54 = vmul.f32 %v9365_v46, %v9496_v8 }
 0x237   :  { %5793 = vmatmul.msk.f32.gmra.mxu2 %vm511_vm0, %v9760_v48  ;;  %v6296_v2 = vpop.eup %6295  ;;  %6299 = vrcp.f32 %v9775_v63  ;;  %v1828_v24 = vadd.f32 1.0, %v1827_v3  ;;  %v5106_v23 = vadd.f32 %v9727_v0, %v5038_v51  ;;  %v9791_v59 = vadd.f32 %v868_v25, %v700_v4  ;;  %v9800_v3 = vpop.xlane.xlu1 %4905  ;;  %v6606_v25 = vld [vmem:[%s11692_s2 + $0x70] sm:$0xff] }
 0x238   :  { %v6298_v26 = vpop.eup %6297  ;;  %v2748_v38 = vsel %vm2747_vm1, %v6290_v13, %v2744_v45  ;;  %v1554_v35 = vadd.f32 1.0, %v6296_v2  ;;  %v1557_v19 = vmul.f32 -0.5, %v6296_v2  ;;  %v2167_v8 = vadd.f32 %v9701_v16, %v2166_v57 }
 0x239   :  { %v2753_v60 = vsel %vm9778_vm15, %v2752_v36, %v2748_v38  ;;  %v1560_v40 = vand.u32 2147483647, %v6296_v2  ;;  %v1826_v56 = vmul.f32 0.6931472, %v6298_v26  ;;  %vm9796_vm2 = vcmp.lt.f32.partialorder %v1830_v31, 0.0004427343 }
 0x23a   :  { %v3546_v51 = vmul.f32 1.002, %v2753_v60  ;;  %6301 = vlog2.f32 %v1554_v35  ;;  %v1558_v61 = vadd.f32 1.0, %v1557_v19  ;;  %v4656_v13 = vsel %vm511_vm0, %v4536_v54, 0.0  ;;  %v702_v19 = vpop.f32.mrf.mxu0  ;;  %v12035_v60 = vld [vmem:[#allocation15_spill] sm:$0xff] }
 0x23b   :  { %v2764_v4 = vand.u32 2147483647, %v9775_v63  ;;  %v1829_v57 = vmul.f32 %v9576_v41, %v1828_v24  ;;  %v5170_v45 = vadd.f32 %v6606_v25, %v5106_v23  ;;  %v1043_v31 = vand.u32 2147483647, %v9791_v59 }
 0x23c   :  { %4657 = vadd.xlane.f32.xlu1 %v4656_v13  ;;  %v5901_v55 = vadd.f32 -0.001, %v3546_v51  ;;  %v2766_v36 = vand.u32 2147483648, %v9775_v63  ;;  %v5839_v26 = vmul.f32 -1.442695, %v2167_v8  ;;  %v4571_v38 = vmul.f32 %v9365_v46, %v9660_v49 }
 0x23d   :  { %v6300_v54 = vpop.eup %6299  ;;  %vm9812_vm3 = vcmp.lt.f32.partialorder %v1560_v40, 0.0004427343  ;;  %v1832_v41 = vsel %vm9796_vm2, %v1829_v57, %v1826_v56  ;;  %v5237_v24 = vmax.f32 %v8588_v62, %v5170_v45  ;;  %v1107_v23 = vsub.f32 0.0, %v1043_v31 }
 0x23e   :  { %vm4293_vm4 = vcmp.ge.f32.partialorder %v12035_v60, 0.0  ;;  %3675 = vst.msk [vmem:[%s11702_s12 + $0x58] sm:$0xff] %vm3663_vm7, %v5901_v55  ;;  %v1559_v8 = vmul.f32 %v6296_v2, %v1558_v61  ;;  %v2756_v40 = vmul.f32 %v6300_v54, %v9775_v63  ;;  %v12036_v51 = vmax.f32 %v9375_v50, 0.0  ;;  %v12038_v2 = vld [vmem:[#allocation8_spill] sm:$0xff]  ;;  %v4619_v50 = vpop.xlane.xlu0 %4618 }
 0x23f   :  { %6303 = vpow2.f32 %v5839_v26  ;;  %vm2761_vm5 = vweird.f32 %v6300_v54  ;;  %v5302_v56 = vmin.f32 %v8611_v29, %v5237_v24  ;;  %v1204_v22 = vmul.f32 1.442695, %v1107_v23  ;;  %v12039_v26 = vld [vmem:[#allocation7_spill] sm:$0xff]  ;;  %v2169_v23 = vpop.f32.mrf.mxu2 }
 0x240   :  { %v9827_v13 = vadd.f32 %v1832_v41, %v12036_v51  ;;  %v4761_v57 = vsel %vm511_vm0, %v4571_v38, 0.0  ;;  %v6302_v25 = vpop.eup %6301  ;;  %v2757_v45 = vsub.f32 1.0, %v2756_v40  ;;  %vm4290_vm6 = vcmp.ge.f32.partialorder %v12038_v2, 0.0  ;;  %v871_v41 = vpop.f32.mrf.mxu1 }
 0x241   :  { %4762 = vadd.xlane.f32.xlu0 %v4761_v57  ;;  %v703_v61 = vadd.f32 %v9770_v17, %v702_v19  ;;  %v1556_v55 = vmul.f32 0.6931472, %v6302_v25  ;;  %5367 = vst.msk [vmem:[%s11703_s13 + $0x70] sm:$0xff] %vm5352_vm8, %v5302_v56  ;;  %6305 = vpow2.f32 %v1204_v22  ;;  %v4418_v38 = vsel %vm4290_vm6, %v12038_v2, %v12039_v26  ;;  %v9849_v22 = vpop.xlane.xlu1 %4914  ;;  %v12040_v26 = vld [vmem:[#allocation56_spill] sm:$0xff] }
 0x242   :  { %12037 = vst [vmem:[#allocation33_spill] sm:$0xff] %v9827_v13  ;;  %v4570_v31 = vmul.f32 %v9365_v46, %v9827_v13  ;;  %v5039_v24 = vadd.f32 %v9336_v27, %v4619_v50  ;;  %v2758_v40 = vmul.f32 %v6300_v54, %v2757_v45  ;;  %v4482_v57 = vmul.f32 1.4142135, %v4418_v38 }
 0x243   :  { %v9843_v19 = vadd.f32 %v871_v41, %v703_v61  ;;  %v1562_v25 = vsel %vm9812_vm3, %v1559_v8, %v1556_v55  ;;  %vm2760_vm9 = vweird.f32 %v9775_v63  ;;  %v2170_v2 = vadd.f32 %v9701_v16, %v2169_v23  ;;  %v6607_v55 = vld [vmem:[%s11692_s2 + $0x78] sm:$0xff] }
 0x244   :  { %v4758_v51 = vsel %vm511_vm0, %v4570_v31, 0.0  ;;  %v5107_v56 = vadd.f32 %v9727_v0, %v5039_v24  ;;  %v9854_v45 = vadd.f32 %v1562_v25, %v978_v18  ;;  %v2759_v31 = vadd.f32 %v6300_v54, %v2758_v40  ;;  %vm2762_vm10 = vmor %vm2760_vm9, %vm2761_vm5 }
 0x245   :  { %4759 = vadd.xlane.f32.xlu2 %v4758_v51  ;;  %v6304_v27 = vpop.eup %6303  ;;  %v2767_v61 = vor.u32 1.1754944e-38, %v2766_v36  ;;  %v4810_v50 = vmul.f32 %v9442_v11, %v4482_v57  ;;  %v1044_v8 = vand.u32 2147483647, %v9843_v19  ;;  %vm4288_vm11 = vcmp.ge.f32.partialorder %v12040_v26, 0.0  ;;  %v9877_v51 = vpop.xlane.xlu2 %4908 }
 0x246   :  { %v9858_v35 = vadd.f32 1.0, %v6304_v27  ;;  %v5171_v41 = vadd.f32 %v6607_v55, %v5107_v56  ;;  %v2763_v12 = vsel %vm2762_vm10, %v6300_v54, %v2759_v31  ;;  %vm2765_vm12 = vcmp.eq.f32.partialorder %v2764_v4, 8.507059e+37  ;;  %5794 = vmatmul.msk.f32.gmra.mxu2 %vm511_vm0, %v9854_v45 }
 0x247   :  { %v4537_v18 = vmul.f32 %v9365_v46, %v9594_v43  ;;  %v4958_v36 = vsel %vm3663_vm7, %v4810_v50, 0.0  ;;  %v6306_v38 = vpop.eup %6305  ;;  %v9874_v24 = vmul.f32 %v9533_v6, %v8488_v28  ;;  %v2768_v23 = vsel %vm2765_vm12, %v2767_v61, %v2763_v12  ;;  %v12041_v43 = vld [vmem:[#allocation60_spill] sm:$0xff]  ;;  %v704_v50 = vpop.f32.mrf.mxu0 }
 0x248   :  { %6307 = vrcp.f32 %v9858_v35  ;;  %4959 = vadd.xlane.f32.xlu1 %v4958_v36  ;;  %v5840_v54 = vmul.f32 -1.442695, %v2170_v2  ;;  %v3547_v63 = vmul.f32 1.002, %v2768_v23  ;;  %v1563_v4 = vadd.f32 1.0, %v6306_v38  ;;  %v12042_v6 = vld [vmem:[#allocation64_spill] sm:$0xff] }
 0x249   :  { %v1566_v40 = vmul.f32 -0.5, %v6306_v38  ;;  %v4416_v57 = vsel %vm4288_vm11, %v12040_v26, %v12041_v43  ;;  %v1569_v25 = vand.u32 2147483647, %v6306_v38  ;;  %v1108_v56 = vsub.f32 0.0, %v1044_v8  ;;  %v2172_v43 = vpop.f32.mrf.mxu2 }
 0x24a   :  { %v5238_v28 = vmax.f32 %v8588_v62, %v5171_v41  ;;  %v4421_v27 = vsel %vm4293_vm4, %v12035_v60, %v12042_v6  ;;  %v5902_v2 = vadd.f32 -0.001, %v3547_v63  ;;  %v979_v31 = vmax.f32 %v9791_v59, 0.0  ;;  %v4622_v63 = vpop.xlane.xlu1 %4621  ;;  %v12046_v6 = vld [vmem:[#allocation9_spill] sm:$0xff] }
 0x24b   :  { %6309 = vlog2.f32 %v1563_v4  ;;  %v4659_v61 = vsel %vm511_vm0, %v4537_v18, 0.0  ;;  %v2779_v55 = vand.u32 2147483647, %v9858_v35  ;;  %v1206_v26 = vmul.f32 1.442695, %v1108_v56  ;;  %v873_v4 = vpop.f32.mrf.mxu1 }
 0x24c   :  { %v5303_v8 = vmin.f32 %v8611_v29, %v5238_v28  ;;  %6311 = vpow2.f32 %v5840_v54  ;;  %3676 = vst.msk [vmem:[%s11702_s12 + $0x60] sm:$0xff] %vm3663_vm7, %v5902_v2  ;;  %v1567_v60 = vadd.f32 1.0, %v1566_v40  ;;  %v4538_v59 = vmul.f32 %v9365_v46, %v9693_v37 }
 0x24d   :  { %4660 = vadd.xlane.f32.xlu2 %v4659_v61  ;;  %v4480_v41 = vmul.f32 1.4142135, %v4416_v57  ;;  %v4485_v12 = vmul.f32 1.4142135, %v4421_v27  ;;  %vm9898_vm13 = vcmp.lt.f32.partialorder %v1569_v25, 0.0004427343  ;;  %6313 = vpow2.f32 %v1206_v26 }
 0x24e   :  { %v6308_v18 = vpop.eup %6307  ;;  %v2781_v23 = vand.u32 2147483648, %v9858_v35  ;;  %5368 = vst.msk [vmem:[%s11703_s13 + $0x78] sm:$0xff] %vm5352_vm8, %v5303_v8  ;;  %v705_v54 = vadd.f32 %v9770_v17, %v704_v50  ;;  %v4662_v37 = vsel %vm511_vm0, %v4538_v59, 0.0  ;;  %v12045_v57 = vld [vmem:[#allocation48_spill] sm:$0xff]  ;;  %v5040_v28 = vadd.f32 %v9409_v39, %v4622_v63  ;;  %v9917_v50 = vpop.xlane.xlu2 %4723 }
 0x24f   :  { %v2771_v46 = vmul.f32 %v6308_v18, %v9858_v35  ;;  %v4808_v40 = vmul.f32 %v9442_v11, %v4480_v41  ;;  %vm4292_vm14 = vcmp.ge.f32.partialorder %v12045_v57, 0.0  ;;  %4663 = vadd.xlane.f32.xlu0 %v4662_v37  ;;  %v4813_v25 = vmul.f32 %v9442_v11, %v4485_v12 }
 0x250   :  { %v9913_v56 = vadd.f32 %v873_v4, %v705_v54  ;;  %vm4291_vm15 = vcmp.ge.f32.partialorder %v12046_v6, 0.0  ;;  %v1568_v2 = vmul.f32 %v6306_v38, %v1567_v60  ;;  %vm2776_vm1 = vweird.f32 %v6308_v18  ;;  %v9923_v4 = vpop.xlane.xlu0 %4920  ;;  %v12047_v38 = vld [vmem:[#allocation50_spill] sm:$0xff] }
 0x251   :  { %v6310_v27 = vpop.eup %6309  ;;  %v2772_v61 = vsub.f32 1.0, %v2771_v46  ;;  %v2173_v26 = vadd.f32 %v9701_v16, %v2172_v43  ;;  %v4952_v41 = vsel %vm3663_vm7, %v4808_v40, 0.0  ;;  %v4967_v12 = vsel %vm3663_vm7, %v4813_v25, 0.0  ;;  %v12048_v46 = vld [vmem:[#allocation63_spill] sm:$0xff] }
 0x252   :  { %v6312_v8 = vpop.eup %6311  ;;  %v1565_v59 = vmul.f32 0.6931472, %v6310_v27  ;;  %v1045_v54 = vand.u32 2147483647, %v9913_v56  ;;  %4968 = vadd.xlane.f32.xlu1 %v4967_v12  ;;  %v4420_v60 = vsel %vm4292_vm14, %v12045_v57, %v12047_v38  ;;  %v4419_v37 = vsel %vm4291_vm15, %v12046_v6, %v12048_v46  ;;  %v707_v46 = vpop.f32.mrf.mxu0 }
 0x253   :  { %v2773_v39 = vmul.f32 %v6308_v18, %v2772_v61  ;;  %v9925_v63 = vadd.f32 1.0, %v6312_v8  ;;  %v9935_v40 = vpop.eup %6313  ;;  %vm2775_vm2 = vweird.f32 %v9858_v35  ;;  %v5108_v27 = vadd.f32 %v9727_v0, %v5040_v28 }
 0x254   :  { %v1571_v43 = vsel %vm9898_vm13, %v1568_v2, %v1565_v59  ;;  %v1109_v25 = vsub.f32 0.0, %v1045_v54  ;;  %v1572_v57 = vadd.f32 1.0, %v9935_v40  ;;  %v1575_v12 = vmul.f32 -0.5, %v9935_v40  ;;  %vm2777_vm3 = vmor %vm2775_vm2, %vm2776_vm1 }
 0x255   :  { %4953 = vadd.xlane.f32.xlu2 %v4952_v41  ;;  %v9941_v61 = vadd.f32 %v1571_v43, %v979_v31  ;;  %v2774_v8 = vadd.f32 %v6308_v18, %v2773_v39  ;;  %v2782_v6 = vor.u32 1.1754944e-38, %v2781_v23  ;;  %6315 = vrcp.f32 %v9925_v63  ;;  %v12049_v39 = vld [vmem:[#allocation55_spill] sm:$0xff]  ;;  %v12050_v23 = vld [vmem:[#allocation24_spill] sm:$0xff] }
 0x256   :  { %v4484_v36 = vmul.f32 1.4142135, %v4420_v60  ;;  %v4483_v2 = vmul.f32 1.4142135, %v4419_v37  ;;  %vm2780_vm4 = vcmp.eq.f32.partialorder %v2779_v55, 8.507059e+37  ;;  %6317 = vlog2.f32 %v1572_v57  ;;  %v6608_v55 = vld [vmem:[%s11692_s2 + $0x80] sm:$0xff] }
 0x257   :  { %v2778_v59 = vsel %vm2777_vm3, %v6308_v18, %v2774_v8  ;;  %v5841_v35 = vmul.f32 -1.442695, %v2173_v26  ;;  %5795 = vmatmul.msk.f32.gmra.mxu2 %vm511_vm0, %v9941_v61  ;;  %v980_v28 = vmax.f32 %v9843_v19, 0.0  ;;  %v1208_v54 = vmul.f32 1.442695, %v1109_v25  ;;  %v12051_v37 = vld [vmem:[#allocation65_spill] sm:$0xff] }
 0x258   :  { %v2783_v31 = vsel %vm2780_vm4, %v2782_v6, %v2778_v59  ;;  %vm4295_vm5 = vcmp.ge.f32.partialorder %v12049_v39, 0.0  ;;  %vm4296_vm6 = vcmp.ge.f32.partialorder %v12050_v23, 0.0  ;;  %v1576_v60 = vadd.f32 1.0, %v1575_v12  ;;  %v9963_v25 = vld [vmem:[%s11699_s9] ss:$0 sm:$0xff]  ;;  %v4625_v6 = vpop.xlane.xlu2 %4624 }
 0x259   :  { %v3548_v38 = vmul.f32 1.002, %v2783_v31  ;;  %v1578_v18 = vand.u32 2147483647, %v9935_v40  ;;  %v5172_v26 = vadd.f32 %v6608_v55, %v5108_v27  ;;  %vm4294_vm9 = vcmp.ge.f32.partialorder %v12051_v37, 0.0 }
 0x25a   :  { %6319 = vpow2.f32 %v1208_v54  ;;  %v4812_v19 = vmul.f32 %v9442_v11, %v4484_v36  ;;  %v4811_v43 = vmul.f32 %v9442_v11, %v4483_v2  ;;  %v4539_v8 = vmul.f32 %v9963_v25, %v9760_v48  ;;  %v9972_v2 = vpop.xlane.xlu0 %4726  ;;  %v2175_v54 = vpop.f32.mrf.mxu2 }
 0x25b   :  { %v5903_v57 = vadd.f32 -0.001, %v3548_v38  ;;  %v5239_v12 = vmax.f32 %v8588_v62, %v5172_v26  ;;  %6321 = vpow2.f32 %v5841_v35  ;;  %v708_v27 = vadd.f32 %v9770_v17, %v707_v46  ;;  %v6316_v59 = vpop.eup %6315  ;;  %v876_v35 = vpop.f32.mrf.mxu1 }
 0x25c   :  { %vm2790_vm10 = vweird.f32 %v9925_v63  ;;  %v4964_v11 = vsel %vm3663_vm7, %v4812_v19, 0.0  ;;  %v4961_v36 = vsel %vm3663_vm7, %v4811_v43, 0.0  ;;  %v5041_v31 = vadd.f32 %v9466_v14, %v4625_v6  ;;  %v6318_v48 = vpop.eup %6317 }
 0x25d   :  { %3677 = vst.msk [vmem:[%s11702_s12 + $0x68] sm:$0xff] %vm3663_vm7, %v5903_v57  ;;  %v2786_v38 = vmul.f32 %v6316_v59, %v9925_v63  ;;  %v2794_v55 = vand.u32 2147483647, %v9925_v63  ;;  %v5304_v26 = vmin.f32 %v8611_v29, %v5239_v12  ;;  %4965 = vadd.xlane.f32.xlu0 %v4964_v11  ;;  %4962 = vadd.xlane.f32.xlu2 %v4961_v36  ;;  %v4665_v46 = vsel %vm511_vm0, %v4539_v8, 0.0 }
 0x25e   :  { %v1574_v19 = vmul.f32 0.6931472, %v6318_v48  ;;  %v1577_v14 = vmul.f32 %v9935_v40, %v1576_v60  ;;  %4666 = vadd.xlane.f32.xlu1 %v4665_v46  ;;  %v9984_v43 = vadd.f32 %v876_v35, %v708_v27  ;;  %v5109_v6 = vadd.f32 %v9727_v0, %v5041_v31  ;;  %v9994_v60 = vpop.xlane.xlu1 %4923 }
 0x25f   :  { %vm1579_vm11 = vcmp.lt.f32.partialorder %v1578_v18, 0.0004427343  ;;  %v2787_v57 = vsub.f32 1.0, %v2786_v38  ;;  %v2796_v41 = vand.u32 2147483648, %v9925_v63  ;;  %5369 = vst.msk [vmem:[%s11703_s13 + $0x80] sm:$0xff] %vm5352_vm8, %v5304_v26  ;;  %v2176_v12 = vadd.f32 %v9701_v16, %v2175_v54  ;;  %v6610_v18 = vld [vmem:[%s11692_s2 + $0x88] sm:$0xff] }
 0x260   :  { %v6320_v8 = vpop.eup %6319  ;;  %v1580_v11 = vsel %vm1579_vm11, %v1577_v14, %v1574_v19  ;;  %vm2791_vm12 = vweird.f32 %v6316_v59  ;;  %v1046_v40 = vand.u32 2147483647, %v9984_v43  ;;  %v5173_v27 = vadd.f32 %v6610_v18, %v5109_v6 }
 0x261   :  { %v6322_v36 = vpop.eup %6321  ;;  %v9999_v31 = vadd.f32 %v1580_v11, %v980_v28  ;;  %v2788_v48 = vmul.f32 %v6316_v59, %v2787_v57  ;;  %v1581_v35 = vadd.f32 1.0, %v6320_v8  ;;  %v1584_v38 = vmul.f32 -0.5, %v6320_v8  ;;  %vm2792_vm14 = vmor %vm2790_vm10, %vm2791_vm12  ;;  %v12055_v57 = vld [vmem:[#allocation26_spill] sm:$0xff] }
 0x262   :  { %vm10001_vm13 = vcmp.eq.f32.partialorder %v2794_v55, 8.507059e+37  ;;  %v10005_v26 = vadd.f32 1.0, %v6322_v36  ;;  %v1110_v46 = vsub.f32 0.0, %v1046_v40  ;;  %v5240_v19 = vmax.f32 %v8588_v62, %v5173_v27  ;;  %v12054_v55 = vld [vmem:[#allocation59_spill] sm:$0xff]  ;;  %v709_v27 = vpop.f32.mrf.mxu0  ;;  %v12056_v36 = vld [vmem:[#allocation17_spill] sm:$0xff] }
 0x263   :  { %v2789_v14 = vadd.f32 %v6316_v59, %v2788_v48  ;;  %6323 = vlog2.f32 %v1581_v35  ;;  %v1587_v49 = vand.u32 2147483647, %v6320_v8  ;;  %v5842_v13 = vmul.f32 -1.442695, %v2176_v12  ;;  %5796 = vmatmul.msk.f32.gmra.mxu2 %vm511_vm0, %v9999_v31  ;;  %v4628_v35 = vpop.xlane.xlu0 %4627 }
 0x264   :  { %v2797_v28 = vor.u32 1.1754944e-38, %v2796_v41  ;;  %6325 = vrcp.f32 %v10005_v26  ;;  %v4423_v6 = vsel %vm4295_vm5, %v12049_v39, %v12054_v55  ;;  %v4424_v12 = vsel %vm4296_vm6, %v12050_v23, %v12055_v57  ;;  %v10048_v57 = vld [vmem:[%s11700_s10] ss:$0 sm:$0xff]  ;;  %v6612_v23 = vld [vmem:[%s11692_s2 + $0x90] sm:$0xff] }
 0x265   :  { %v2793_v11 = vsel %vm2792_vm14, %v6316_v59, %v2789_v14  ;;  %v1585_v40 = vadd.f32 1.0, %v1584_v38  ;;  %v1210_v18 = vmul.f32 1.442695, %v1110_v46  ;;  %v4422_v63 = vsel %vm4294_vm9, %v12051_v37, %v12056_v36 }
 0x266   :  { %v2798_v41 = vsel %vm10001_vm13, %v2797_v28, %v2793_v11  ;;  %v5305_v39 = vmin.f32 %v8611_v29, %v5240_v19  ;;  %6327 = vpow2.f32 %v5842_v13  ;;  %vm10030_vm15 = vcmp.lt.f32.partialorder %v1587_v49, 0.0004427343  ;;  %v12059_v49 = vld [vmem:[#allocation10_spill] sm:$0xff]  ;;  %v878_v28 = vpop.f32.mrf.mxu1 }
 0x267   :  { %v3549_v55 = vmul.f32 1.002, %v2798_v41  ;;  %6329 = vpow2.f32 %v1210_v18  ;;  %v4487_v59 = vmul.f32 1.4142135, %v4423_v6  ;;  %v4540_v37 = vmul.f32 %v9963_v25, %v9854_v45 }
 0x268   :  { %5370 = vst.msk [vmem:[%s11703_s13 + $0x88] sm:$0xff] %vm5352_vm8, %v5305_v39  ;;  %v4488_v38 = vmul.f32 1.4142135, %v4424_v12  ;;  %v710_v54 = vadd.f32 %v9770_v17, %v709_v27  ;;  %v5042_v13 = vadd.f32 %v9580_v21, %v4628_v35  ;;  %vm4299_vm1 = vcmp.ge.f32.partialorder %v12059_v49, 0.0  ;;  %v2178_v12 = vpop.f32.mrf.mxu2 }
 0x269   :  { %v6324_v46 = vpop.eup %6323  ;;  %v5904_v19 = vadd.f32 -0.001, %v3549_v55  ;;  %v1586_v14 = vmul.f32 %v6320_v8, %v1585_v40  ;;  %vm2805_vm2 = vweird.f32 %v10005_v26  ;;  %v2809_v6 = vand.u32 2147483647, %v10005_v26  ;;  %v10055_v40 = vpop.xlane.xlu1 %4729 }
 0x26a   :  { %v4815_v45 = vmul.f32 %v10048_v57, %v4487_v59  ;;  %v6326_v11 = vpop.eup %6325  ;;  %v1583_v21 = vmul.f32 0.6931472, %v6324_v46  ;;  %v4668_v18 = vsel %vm511_vm0, %v4540_v37, 0.0  ;;  %v4816_v27 = vmul.f32 %v10048_v57, %v4488_v38 }
 0x26b   :  { %v10053_v8 = vadd.f32 %v878_v28, %v710_v54  ;;  %3678 = vst.msk [vmem:[%s11702_s12 + $0x70] sm:$0xff] %vm3663_vm7, %v5904_v19  ;;  %v2801_v36 = vmul.f32 %v6326_v11, %v10005_v26  ;;  %v2811_v41 = vand.u32 2147483648, %v10005_v26  ;;  %4669 = vadd.xlane.f32.xlu2 %v4668_v18  ;;  %v5110_v35 = vadd.f32 %v9727_v0, %v5042_v13  ;;  %v10069_v54 = vpop.xlane.xlu2 %4917 }
 0x26c   :  { %v4973_v39 = vsel %vm3663_vm7, %v4815_v45, 0.0  ;;  %v6328_v55 = vpop.eup %6327  ;;  %v1589_v59 = vsel %vm10030_vm15, %v1586_v14, %v1583_v21  ;;  %v4976_v37 = vsel %vm3663_vm7, %v4816_v27, 0.0  ;;  %v2179_v46 = vadd.f32 %v9701_v16, %v2178_v12  ;;  %v12061_v21 = vld [vmem:[#allocation61_spill] sm:$0xff] }
 0x26d   :  { %4974 = vadd.xlane.f32.xlu0 %v4973_v39  ;;  %v1047_v38 = vand.u32 2147483647, %v10053_v8  ;;  %v6330_v19 = vpop.eup %6329  ;;  %v12060_v28 = vmax.f32 %v9913_v56, 0.0  ;;  %v2802_v18 = vsub.f32 1.0, %v2801_v36  ;;  %v10076_v13 = vadd.f32 1.0, %v6328_v55  ;;  %4977 = vadd.xlane.f32.xlu1 %v4976_v37 }
 0x26e   :  { %v5174_v14 = vadd.f32 %v6612_v23, %v5110_v35  ;;  %vm4298_vm3 = vcmp.ge.f32.partialorder %v12061_v21, 0.0  ;;  %v1590_v27 = vadd.f32 1.0, %v6330_v19  ;;  %v1593_v39 = vmul.f32 -0.5, %v6330_v19  ;;  %v712_v23 = vpop.f32.mrf.mxu0 }
 0x26f   :  { %v10074_v45 = vadd.f32 %v1589_v59, %v12060_v28  ;;  %v1596_v48 = vand.u32 2147483647, %v6330_v19  ;;  %v1111_v12 = vsub.f32 0.0, %v1047_v38  ;;  %v2803_v20 = vmul.f32 %v6326_v11, %v2802_v18 }
 0x270   :  { %vm2806_vm4 = vweird.f32 %v6326_v11  ;;  %6331 = vrcp.f32 %v10076_v13  ;;  %v4486_v56 = vmul.f32 1.4142135, %v4422_v63  ;;  %vm10085_vm5 = vcmp.eq.f32.partialorder %v2809_v6, 8.507059e+37  ;;  %v10142_v63 = vpop.xlane.xlu0 %4929 }
 0x271   :  { %5797 = vmatmul.msk.f32.gmra.mxu2 %vm511_vm0, %v10074_v45  ;;  %v2812_v55 = vor.u32 1.1754944e-38, %v2811_v41  ;;  %6333 = vlog2.f32 %v1590_v27  ;;  %v2804_v59 = vadd.f32 %v6326_v11, %v2803_v20  ;;  %v1594_v37 = vadd.f32 1.0, %v1593_v39  ;;  %vm2807_vm6 = vmor %vm2805_vm2, %vm2806_vm4  ;;  %v881_v20 = vpop.f32.mrf.mxu1 }
 0x272   :  { %v1212_v28 = vmul.f32 1.442695, %v1111_v12  ;;  %v5241_v38 = vmax.f32 %v8588_v62, %v5174_v14  ;;  %vm10093_vm9 = vcmp.lt.f32.partialorder %v1596_v48, 0.0004427343  ;;  %v2826_v6 = vand.u32 2147483648, %v10076_v13 }
 0x273   :  { %v5843_v18 = vmul.f32 -1.442695, %v2179_v46  ;;  %v4541_v41 = vmul.f32 %v9963_v25, %v9941_v61  ;;  %v2808_v27 = vsel %vm2807_vm6, %v6326_v11, %v2804_v59  ;;  %v4814_v14 = vmul.f32 %v10048_v57, %v4486_v56  ;;  %v12066_v46 = vld [vmem:[#allocation69_spill] sm:$0xff]  ;;  %v4631_v11 = vpop.xlane.xlu1 %4630 }
 0x274   :  { %6335 = vpow2.f32 %v1212_v28  ;;  %v5306_v39 = vmin.f32 %v8611_v29, %v5241_v38  ;;  %v2813_v26 = vsel %vm10085_vm5, %v2812_v55, %v2808_v27  ;;  %vm2820_vm10 = vweird.f32 %v10076_v13  ;;  %v2181_v28 = vpop.f32.mrf.mxu2  ;;  %v10118_v27 = vpop.xlane.xlu2 %4732 }
 0x275   :  { %6337 = vpow2.f32 %v5843_v18  ;;  %v4671_v48 = vsel %vm511_vm0, %v4541_v41, 0.0  ;;  %v4427_v61 = vsel %vm4299_vm1, %v12059_v49, %v12066_v46  ;;  %v3550_v59 = vmul.f32 1.002, %v2813_v26  ;;  %v12067_v18 = vld [vmem:[#allocation22_spill] sm:$0xff] }
 0x276   :  { %v6332_v12 = vpop.eup %6331  ;;  %5371 = vst.msk [vmem:[%s11703_s13 + $0x90] sm:$0xff] %vm5352_vm8, %v5306_v39  ;;  %4672 = vadd.xlane.f32.xlu0 %v4671_v48  ;;  %v4970_v56 = vsel %vm3663_vm7, %v4814_v14, 0.0  ;;  %v4491_v36 = vmul.f32 1.4142135, %v4427_v61  ;;  %v713_v55 = vadd.f32 %v9770_v17, %v712_v23  ;;  %vm4297_vm11 = vcmp.ge.f32.partialorder %v12067_v18, 0.0 }
 0x277   :  { %v6334_v38 = vpop.eup %6333  ;;  %v1595_v41 = vmul.f32 %v6330_v19, %v1594_v37  ;;  %v2816_v49 = vmul.f32 %v6332_v12, %v10076_v13  ;;  %4971 = vadd.xlane.f32.xlu2 %v4970_v56  ;;  %v5043_v26 = vadd.f32 %v9630_v10, %v4631_v11  ;;  %v2182_v39 = vadd.f32 %v9701_v16, %v2181_v28 }
 0x278   :  { %v5905_v48 = vadd.f32 -0.001, %v3550_v59  ;;  %v1592_v46 = vmul.f32 0.6931472, %v6334_v38  ;;  %v4819_v14 = vmul.f32 %v10048_v57, %v4491_v36  ;;  %v10123_v61 = vadd.f32 %v881_v20, %v713_v55  ;;  %v12068_v20 = vld [vmem:[#allocation62_spill] sm:$0xff] }
 0x279   :  { %v2817_v23 = vsub.f32 1.0, %v2816_v49  ;;  %vm2821_vm12 = vweird.f32 %v6332_v12  ;;  %v5111_v35 = vadd.f32 %v9727_v0, %v5043_v26  ;;  %v5844_v19 = vmul.f32 -1.442695, %v2182_v39 }
 0x27a   :  { %v6336_v37 = vpop.eup %6335  ;;  %3679 = vst.msk [vmem:[%s11702_s12 + $0x78] sm:$0xff] %vm3663_vm7, %v5905_v48  ;;  %v1598_v10 = vsel %vm10093_vm9, %v1595_v41, %v1592_v46  ;;  %v4985_v11 = vsel %vm3663_vm7, %v4819_v14, 0.0  ;;  %v1048_v59 = vand.u32 2147483647, %v10123_v61  ;;  %v4426_v56 = vsel %vm4298_vm3, %v12061_v21, %v12068_v20  ;;  %v6613_v46 = vld [vmem:[%s11692_s2 + $0x98] sm:$0xff]  ;;  %vm2822_vm13 = vmor %vm2820_vm10, %vm2821_vm12  ;;  %v883_v20 = vpop.f32.mrf.mxu1 }
 0x27b   :  { %v6338_v36 = vpop.eup %6337  ;;  %v12069_v55 = vmax.f32 %v9984_v43, 0.0  ;;  %v2818_v38 = vmul.f32 %v6332_v12, %v2817_v23  ;;  %v1599_v49 = vadd.f32 1.0, %v6336_v37  ;;  %v1602_v26 = vmul.f32 -0.5, %v6336_v37  ;;  %4986 = vadd.xlane.f32.xlu1 %v4985_v11  ;;  %v10154_v23 = vld [vmem:[%s11698_s8] ss:$0 sm:$0xff] }
 0x27c   :  { %v1605_v41 = vand.u32 2147483647, %v6336_v37  ;;  %v10144_v39 = vadd.f32 1.0, %v6338_v36  ;;  %v1112_v48 = vsub.f32 0.0, %v1048_v59  ;;  %v5175_v21 = vadd.f32 %v6613_v46, %v5111_v35 }
 0x27d   :  { %v10140_v28 = vadd.f32 %v1598_v10, %v12069_v55  ;;  %v2819_v14 = vadd.f32 %v6332_v12, %v2818_v38  ;;  %6339 = vlog2.f32 %v1599_v49  ;;  %v1603_v43 = vadd.f32 1.0, %v1602_v26  ;;  %v714_v38 = vpop.f32.mrf.mxu0 }
 0x27e   :  { %v4490_v10 = vmul.f32 1.4142135, %v4426_v56  ;;  %v10158_v11 = vadd.f32 %v10154_v23, %v9537_v47  ;;  %v2827_v35 = vor.u32 1.1754944e-38, %v2826_v6  ;;  %v983_v59 = vmax.f32 %v10053_v8, 0.0  ;;  %v12073_v8 = vld [vmem:[#allocation19_spill] sm:$0xff] }
 0x27f   :  { %5798 = vmatmul.msk.f32.gmra.mxu2 %vm511_vm0, %v10140_v28  ;;  %6341 = vrcp.f32 %v10144_v39  ;;  %v2823_v56 = vsel %vm2822_vm13, %v6332_v12, %v2819_v14  ;;  %v12070_v36 = vand.u32 2147483647, %v10076_v13  ;;  %v1214_v47 = vmul.f32 1.442695, %v1112_v48  ;;  %v4634_v12 = vpop.xlane.xlu2 %4633  ;;  %v12074_v48 = vld [vmem:[#allocation12_spill] sm:$0xff] }
 0x280   :  { %vm10170_vm15 = vcmp.lt.f32.partialorder %v1605_v41, 0.0004427343  ;;  %v5242_v6 = vmax.f32 %v8588_v62, %v5175_v21  ;;  %6343 = vpow2.f32 %v5844_v19  ;;  %vm4301_vm1 = vcmp.ge.f32.partialorder %v12073_v8, 0.0  ;;  %v2184_v21 = vpop.f32.mrf.mxu2 }
 0x281   :  { %vm2825_vm14 = vcmp.eq.f32.partialorder %v12070_v36, 8.507059e+37  ;;  %v1604_v32 = vmul.f32 %v6336_v37, %v1603_v43  ;;  %6345 = vpow2.f32 %v1214_v47  ;;  %v4818_v13 = vmul.f32 %v10048_v57, %v4490_v10 }
 0x282   :  { %v2828_v49 = vsel %vm2825_vm14, %v2827_v35, %v2823_v56  ;;  %v5307_v14 = vmin.f32 %v8611_v29, %v5242_v6  ;;  %v4425_v41 = vsel %vm4297_vm11, %v12067_v18, %v12074_v48  ;;  %v4542_v35 = vmul.f32 %v9963_v25, %v9999_v31  ;;  %v886_v55 = vpop.f32.mrf.mxu1 }
 0x283   :  { %v3551_v46 = vmul.f32 1.002, %v2828_v49  ;;  %v715_v19 = vadd.f32 %v9770_v17, %v714_v38  ;;  %v6340_v56 = vpop.eup %6339  ;;  %vm4302_vm2 = vcmp.ge.f32.partialorder %v8298_v44, 0.0  ;;  %v4982_v43 = vsel %vm3663_vm7, %v4818_v13, 0.0 }
 0x284   :  { %v4489_v10 = vmul.f32 1.4142135, %v4425_v41  ;;  %v5044_v36 = vadd.f32 %v9522_v15, %v4634_v12  ;;  %v1601_v49 = vmul.f32 0.6931472, %v6340_v56  ;;  %5372 = vst.msk [vmem:[%s11703_s13 + $0x98] sm:$0xff] %vm5352_vm8, %v5307_v14  ;;  %4983 = vadd.xlane.f32.xlu0 %v4982_v43  ;;  %v4674_v31 = vsel %vm511_vm0, %v4542_v35, 0.0  ;;  %v10204_v12 = vpop.xlane.xlu0 %4735 }
 0x285   :  { %v5906_v37 = vadd.f32 -0.001, %v3551_v46  ;;  %v6342_v47 = vpop.eup %6341  ;;  %v10193_v18 = vadd.f32 %v883_v20, %v715_v19  ;;  %v2185_v38 = vadd.f32 %v9701_v16, %v2184_v21  ;;  %v2839_v6 = vand.u32 2147483647, %v10144_v39  ;;  %4675 = vadd.xlane.f32.xlu1 %v4674_v31 }
 0x286   :  { %v2831_v15 = vmul.f32 %v6342_v47, %v10144_v39  ;;  %v2841_v46 = vand.u32 2147483648, %v10144_v39  ;;  %v4817_v13 = vmul.f32 %v10048_v57, %v4489_v10  ;;  %v6344_v20 = vpop.eup %6343  ;;  %v1607_v16 = vsel %vm10170_vm15, %v1604_v32, %v1601_v49 }
 0x287   :  { %3680 = vst.msk [vmem:[%s11702_s12 + $0x80] sm:$0xff] %vm3663_vm7, %v5906_v37  ;;  %v1049_v14 = vand.u32 2147483647, %v10193_v18  ;;  %v5112_v48 = vadd.f32 %v9727_v0, %v5044_v36  ;;  %v5845_v41 = vmul.f32 -1.442695, %v2185_v38  ;;  %v6346_v35 = vpop.eup %6345  ;;  %v10210_v19 = vadd.f32 %v1607_v16, %v983_v59  ;;  %v10217_v0 = vpop.xlane.xlu1 %4932 }
 0x288   :  { %v2832_v21 = vsub.f32 1.0, %v2831_v15  ;;  %v10212_v56 = vadd.f32 1.0, %v6344_v20  ;;  %v4979_v37 = vsel %vm3663_vm7, %v4817_v13, 0.0  ;;  %v1608_v43 = vadd.f32 1.0, %v6346_v35  ;;  %v6615_v20 = vld [vmem:[%s11692_s2 + $0xa0] sm:$0xff] }
 0x289   :  { %v1611_v10 = vmul.f32 -0.5, %v6346_v35  ;;  %v1614_v31 = vand.u32 2147483647, %v6346_v35  ;;  %4980 = vadd.xlane.f32.xlu2 %v4979_v37  ;;  %v1113_v26 = vsub.f32 0.0, %v1049_v14  ;;  %vm2835_vm3 = vweird.f32 %v10144_v39  ;;  %5799 = vmatmul.msk.f32.gmra.mxu2 %vm511_vm0, %v10210_v19  ;;  %v717_v14 = vpop.f32.mrf.mxu0 }
 0x28a   :  { %v2833_v32 = vmul.f32 %v6342_v47, %v2832_v21  ;;  %vm2836_vm4 = vweird.f32 %v6342_v47  ;;  %6347 = vrcp.f32 %v10212_v56  ;;  %vm10221_vm5 = vcmp.eq.f32.partialorder %v2839_v6, 8.507059e+37  ;;  %v12079_v21 = vld [vmem:[#allocation66_spill] sm:$0xff] }
 0x28b   :  { %v2842_v36 = vor.u32 1.1754944e-38, %v2841_v46  ;;  %6349 = vlog2.f32 %v1608_v43  ;;  %v2854_v49 = vand.u32 2147483647, %v10212_v56  ;;  %v1612_v15 = vadd.f32 1.0, %v1611_v10  ;;  %vm2837_vm6 = vmor %vm2835_vm3, %vm2836_vm4 }
 0x28c   :  { %v2834_v38 = vadd.f32 %v6342_v47, %v2833_v32  ;;  %v1216_v13 = vmul.f32 1.442695, %v1113_v26  ;;  %v5176_v16 = vadd.f32 %v6615_v20, %v5112_v48  ;;  %vm10231_vm9 = vcmp.lt.f32.partialorder %v1614_v31, 0.0004427343 }
 0x28d   :  { %v2856_v46 = vand.u32 2147483648, %v10212_v56  ;;  %6351 = vpow2.f32 %v5845_v41  ;;  %v4429_v37 = vsel %vm4301_vm1, %v12073_v8, %v12079_v21  ;;  %v4543_v31 = vmul.f32 %v9963_v25, %v10074_v45  ;;  %v12080_v8 = vld [vmem:[#allocation68_spill] sm:$0xff]  ;;  %v4637_v45 = vpop.xlane.xlu0 %4636 }
 0x28e   :  { %v2838_v43 = vsel %vm2837_vm6, %v6342_v47, %v2834_v38  ;;  %6353 = vpow2.f32 %v1216_v13  ;;  %v5243_v48 = vmax.f32 %v8588_v62, %v5176_v16  ;;  %v4493_v10 = vmul.f32 1.4142135, %v4429_v37  ;;  %v2187_v16 = vpop.f32.mrf.mxu2 }
 0x28f   :  { %v2843_v39 = vsel %vm10221_vm5, %v2842_v36, %v2838_v43  ;;  %v4430_v41 = vsel %vm4302_vm2, %v8298_v44, %v8326_v34  ;;  %v718_v26 = vadd.f32 %v9770_v17, %v717_v14  ;;  %vm4300_vm10 = vcmp.ge.f32.partialorder %v12080_v8, 0.0 }
 0x290   :  { %v10250_v32 = vpop.eup %6347  ;;  %vm4305_vm11 = vcmp.ge.f32.partialorder %v8356_v52, 0.0  ;;  %v3552_v47 = vmul.f32 1.002, %v2843_v39  ;;  %v5308_v59 = vmin.f32 %v8611_v29, %v5243_v48  ;;  %v4821_v36 = vmul.f32 %v10048_v57, %v4493_v10  ;;  %v10268_v48 = vpop.f32.mrf.mxu1 }
 0x291   :  { %v4494_v38 = vmul.f32 1.4142135, %v4430_v41  ;;  %v6350_v13 = vpop.eup %6349  ;;  %v1613_v20 = vmul.f32 %v6346_v35, %v1612_v15  ;;  %v2846_v44 = vmul.f32 %v10250_v32, %v10212_v56  ;;  %v4677_v34 = vsel %vm511_vm0, %v4543_v31, 0.0 }
 0x292   :  { %v10259_v17 = vadd.f32 %v886_v55, %v718_v26  ;;  %v5907_v14 = vadd.f32 -0.001, %v3552_v47  ;;  %v1610_v21 = vmul.f32 0.6931472, %v6350_v13  ;;  %5373 = vst.msk [vmem:[%s11703_s13 + $0xa0] sm:$0xff] %vm5352_vm8, %v5308_v59  ;;  %v4991_v37 = vsel %vm3663_vm7, %v4821_v36, 0.0  ;;  %4678 = vadd.xlane.f32.xlu2 %v4677_v34  ;;  %v10283_v47 = vpop.xlane.xlu1 %4738 }
 0x293   :  { %v4822_v35 = vmul.f32 %v10048_v57, %v4494_v38  ;;  %v6352_v15 = vpop.eup %6351  ;;  %v2847_v43 = vsub.f32 1.0, %v2846_v44  ;;  %vm2851_vm12 = vweird.f32 %v10250_v32  ;;  %4992 = vadd.xlane.f32.xlu0 %v4991_v37  ;;  %v5045_v10 = vadd.f32 %v9626_v58, %v4637_v45  ;;  %12081 = vst [vmem:[#allocation37_spill] sm:$0xff] %v10283_v47  ;;  %v10288_v58 = vld [vmem:[%s11696_s6] ss:$0 sm:$0xff] }
 0x294   :  { %v1050_v55 = vand.u32 2147483647, %v10259_v17  ;;  %v10272_v39 = vpop.eup %6353  ;;  %3681 = vst.msk [vmem:[%s11702_s12 + $0x88] sm:$0xff] %vm3663_vm7, %v5907_v14  ;;  %v1616_v31 = vsel %vm10231_vm9, %v1613_v20, %v1610_v21  ;;  %v10280_v41 = vadd.f32 1.0, %v6352_v15  ;;  %v2188_v59 = vadd.f32 %v10288_v58, %v2187_v16  ;;  %v10316_v14 = vld [vmem:[#allocation2] ss:$0 sm:$0xff] }
 0x295   :  { %v4994_v26 = vsel %vm3663_vm7, %v4822_v35, 0.0  ;;  %v12082_v36 = vmax.f32 %v10123_v61, 0.0  ;;  %v2848_v6 = vmul.f32 %v10250_v32, %v2847_v43  ;;  %v1617_v45 = vadd.f32 1.0, %v10272_v39  ;;  %v10305_v61 = vpop.xlane.xlu2 %4926  ;;  %v12083_v35 = vld [vmem:[#allocation21_spill] sm:$0xff] }
 0x296   :  { %v1620_v13 = vmul.f32 -0.5, %v10272_v39  ;;  %4995 = vadd.xlane.f32.xlu1 %v4994_v26  ;;  %v10300_v20 = vadd.f32 %v10154_v23, %v9874_v24  ;;  %vm2850_vm13 = vweird.f32 %v10212_v56  ;;  %v985_v44 = vmax.f32 %v10193_v18, 0.0 }
 0x297   :  { %v10293_v38 = vadd.f32 %v1616_v31, %v12082_v36  ;;  %6355 = vrcp.f32 %v10280_v41  ;;  %v2849_v34 = vadd.f32 %v10250_v32, %v2848_v6  ;;  %vm2855_vm14 = vcmp.eq.f32.partialorder %v2854_v49, 8.507059e+37  ;;  %vm2852_vm15 = vmor %vm2850_vm13, %vm2851_vm12  ;;  %v6618_v31 = vld [vmem:[%s11692_s2 + $0xa8] sm:$0xff] }
 0x298   :  { %v2857_v16 = vor.u32 1.1754944e-38, %v2856_v46  ;;  %6357 = vlog2.f32 %v1617_v45  ;;  %v1623_v24 = vand.u32 2147483647, %v10272_v39  ;;  %v2869_v23 = vand.u32 2147483647, %v10280_v41  ;;  %v719_v45 = vpop.f32.mrf.mxu0 }
 0x299   :  { %5800 = vmatmul.msk.f32.gmra.mxu2 %vm511_vm0, %v10293_v38  ;;  %v1114_v18 = vsub.f32 0.0, %v1050_v55  ;;  %v5113_v21 = vadd.f32 %v10316_v14, %v5045_v10  ;;  %v2853_v56 = vsel %vm2852_vm15, %v10250_v32, %v2849_v34  ;;  %v1621_v49 = vadd.f32 1.0, %v1620_v13  ;;  %v12084_v10 = vld [vmem:[#allocation13_spill] sm:$0xff] }
 0x29a   :  { %v2871_v46 = vand.u32 2147483648, %v10280_v41  ;;  %v5846_v37 = vmul.f32 -1.442695, %v2188_v59  ;;  %vm4304_vm1 = vcmp.ge.f32.partialorder %v12083_v35, 0.0  ;;  %v2858_v15 = vsel %vm2855_vm14, %v2857_v16, %v2853_v56  ;;  %v12085_v59 = vld [vmem:[#allocation31_spill] sm:$0xff] }
 0x29b   :  { %v1218_v43 = vmul.f32 1.442695, %v1114_v18  ;;  %v5177_v26 = vadd.f32 %v6618_v31, %v5113_v21  ;;  %v4544_v55 = vmul.f32 %v9963_v25, %v10140_v28  ;;  %v3553_v36 = vmul.f32 1.002, %v2858_v15  ;;  %v12086_v21 = vld [vmem:[#allocation16_spill] sm:$0xff]  ;;  %v10340_v15 = vpop.f32.mrf.mxu1 }
 0x29c   :  { %6359 = vpow2.f32 %v5846_v37  ;;  %v4428_v32 = vsel %vm4300_vm10, %v12080_v8, %v12084_v10  ;;  %v4433_v6 = vsel %vm4305_vm11, %v8356_v52, %v12085_v59  ;;  %vm4303_vm2 = vcmp.ge.f32.partialorder %v12086_v21, 0.0  ;;  %v4640_v10 = vpop.xlane.xlu1 %4639  ;;  %v2190_v59 = vpop.f32.mrf.mxu2 }
 0x29d   :  { %v6356_v13 = vpop.eup %6355  ;;  %6361 = vpow2.f32 %v1218_v43  ;;  %v5244_v34 = vmax.f32 %v8588_v62, %v5177_v26  ;;  %v4680_v16 = vsel %vm511_vm0, %v4544_v55, 0.0  ;;  %v4492_v28 = vmul.f32 1.4142135, %v4428_v32  ;;  %v10347_v55 = vld [vmem:[%s11694_s4] ss:$0 sm:$0xff] }
 0x29e   :  { %v6358_v18 = vpop.eup %6357  ;;  %v5908_v56 = vadd.f32 -0.001, %v3553_v36  ;;  %v1622_v37 = vmul.f32 %v10272_v39, %v1621_v49  ;;  %v2861_v8 = vmul.f32 %v6356_v13, %v10280_v41  ;;  %4681 = vadd.xlane.f32.xlu0 %v4680_v16  ;;  %v4497_v52 = vmul.f32 1.4142135, %v4433_v6  ;;  %v10364_v16 = vpop.xlane.xlu2 %4741 }
 0x29f   :  { %v1619_v31 = vmul.f32 0.6931472, %v6358_v18  ;;  %v5309_v43 = vmin.f32 %v8611_v29, %v5244_v34  ;;  %v4820_v26 = vmul.f32 %v10048_v57, %v4492_v28  ;;  %v720_v36 = vadd.f32 %v10347_v55, %v719_v45  ;;  %12087 = vst [vmem:[#allocation44_spill] sm:$0xff] %v10364_v16 }
 0x2a0   :  { %3682 = vst.msk [vmem:[%s11702_s12 + $0x90] sm:$0xff] %vm3663_vm7, %v5908_v56  ;;  %vm1624_vm3 = vcmp.lt.f32.partialorder %v1623_v24, 0.0004427343  ;;  %v2862_v39 = vsub.f32 1.0, %v2861_v8  ;;  %v4825_v49 = vmul.f32 %v10048_v57, %v4497_v52  ;;  %v5046_v32 = vadd.f32 %v9688_v53, %v4640_v10  ;;  %v722_v1 = vpop.f32.mrf.mxu0 }
 0x2a1   :  { %v1625_v6 = vsel %vm1624_vm3, %v1622_v37, %v1619_v31  ;;  %5374 = vst.msk [vmem:[%s11703_s13 + $0xa8] sm:$0xff] %vm5352_vm8, %v5309_v43  ;;  %v4988_v45 = vsel %vm3663_vm7, %v4820_v26, 0.0  ;;  %v10362_v34 = vadd.f32 %v10268_v48, %v720_v36  ;;  %v2191_v24 = vadd.f32 %v10288_v58, %v2190_v59  ;;  %v10370_v37 = vpop.xlane.xlu0 %4938  ;;  %v12088_v43 = vld [vmem:[#allocation27_spill] sm:$0xff] }
 0x2a2   :  { %v6360_v28 = vpop.eup %6359  ;;  %v10367_v18 = vadd.f32 %v1625_v6, %v985_v44  ;;  %v2863_v53 = vmul.f32 %v6356_v13, %v2862_v39  ;;  %vm2866_vm4 = vweird.f32 %v6356_v13  ;;  %4989 = vadd.xlane.f32.xlu2 %v4988_v45  ;;  %v5003_v56 = vsel %vm3663_vm7, %v4825_v49, 0.0  ;;  %v12089_v6 = vld [vmem:[#allocation67_spill] sm:$0xff] }
 0x2a3   :  { %v6362_v8 = vpop.eup %6361  ;;  %vm2865_vm5 = vweird.f32 %v10280_v41  ;;  %v10373_v52 = vadd.f32 1.0, %v6360_v28  ;;  %5004 = vadd.xlane.f32.xlu1 %v5003_v56  ;;  %v1051_v48 = vand.u32 2147483647, %v10362_v34  ;;  %v5114_v31 = vadd.f32 %v10316_v14, %v5046_v32  ;;  %v10395_v47 = vpop.f32.mrf.mxu1  ;;  %v6620_v41 = vld [vmem:[%s11692_s2 + $0xb0] sm:$0xff] }
 0x2a4   :  { %vm4307_vm6 = vcmp.ge.f32.partialorder %v12088_v43, 0.0  ;;  %v2864_v44 = vadd.f32 %v6356_v13, %v2863_v53  ;;  %v1626_v26 = vadd.f32 1.0, %v6362_v8  ;;  %v1629_v36 = vmul.f32 -0.5, %v6362_v8  ;;  %5801 = vmatmul.msk.f32.gmra.mxu2 %vm511_vm0, %v10367_v18  ;;  %vm2867_vm9 = vmor %vm2865_vm5, %vm2866_vm4 }
 0x2a5   :  { %v5847_v10 = vmul.f32 -1.442695, %v2191_v24  ;;  %v10381_v39 = vmul.f32 0.2, %v10158_v11  ;;  %v2872_v49 = vor.u32 1.1754944e-38, %v2871_v46  ;;  %v986_v59 = vmax.f32 %v10259_v17, 0.0 }
 0x2a6   :  { %6363 = vrcp.f32 %v10373_v52  ;;  %v2868_v32 = vsel %vm2867_vm9, %v6356_v13, %v2864_v44  ;;  %vm2870_vm10 = vcmp.eq.f32.partialorder %v2869_v23, 8.507059e+37  ;;  %v4432_v45 = vsel %vm4304_vm1, %v12083_v35, %v12089_v6 }
 0x2a7   :  { %6365 = vlog2.f32 %v1626_v26  ;;  %v2873_v24 = vsel %vm2870_vm10, %v2872_v49, %v2868_v32  ;;  %v1630_v28 = vadd.f32 1.0, %v1629_v36  ;;  %v1632_v53 = vand.u32 2147483647, %v6362_v8  ;;  %v12090_v26 = vld [vmem:[#allocation28_spill] sm:$0xff] }
 0x2a8   :  { %v1115_v56 = vsub.f32 0.0, %v1051_v48  ;;  %v3554_v46 = vmul.f32 1.002, %v2873_v24  ;;  %v5178_v23 = vadd.f32 %v6620_v41, %v5114_v31  ;;  %6367 = vpow2.f32 %v5847_v10 }
 0x2a9   :  { %v4496_v44 = vmul.f32 1.4142135, %v4432_v45  ;;  %v4431_v35 = vsel %vm4303_vm2, %v12086_v21, %v12090_v26  ;;  %v4545_v48 = vmul.f32 %v9963_v25, %v10210_v19  ;;  %v723_v6 = vadd.f32 %v10347_v55, %v722_v1  ;;  %v4643_v45 = vpop.xlane.xlu2 %4642 }
 0x2aa   :  { %v1220_v13 = vmul.f32 1.442695, %v1115_v56  ;;  %v5909_v36 = vadd.f32 -0.001, %v3554_v46  ;;  %v5245_v49 = vmax.f32 %v8588_v62, %v5178_v23  ;;  %v4495_v32 = vmul.f32 1.4142135, %v4431_v35  ;;  %v2193_v46 = vpop.f32.mrf.mxu2 }
 0x2ab   :  { %v1631_v17 = vmul.f32 %v6362_v8, %v1630_v28  ;;  %v4824_v31 = vmul.f32 %v10048_v57, %v4496_v44  ;;  %v4683_v10 = vsel %vm511_vm0, %v4545_v48, 0.0  ;;  %vm4308_vm11 = vcmp.ge.f32.partialorder %v10300_v20, 0.0  ;;  %v10419_v28 = vpop.xlane.xlu0 %4744 }
 0x2ac   :  { %v6364_v24 = vpop.eup %6363  ;;  %6369 = vpow2.f32 %v1220_v13  ;;  %3683 = vst.msk [vmem:[%s11702_s12 + $0x98] sm:$0xff] %vm3663_vm7, %v5909_v36  ;;  %v2886_v1 = vand.u32 2147483648, %v10373_v52  ;;  %v5310_v21 = vmin.f32 %v8611_v29, %v5245_v49  ;;  %v4823_v8 = vmul.f32 %v10048_v57, %v4495_v32  ;;  %4684 = vadd.xlane.f32.xlu1 %v4683_v10 }
 0x2ad   :  { %v6366_v56 = vpop.eup %6365  ;;  %v2876_v19 = vmul.f32 %v6364_v24, %v10373_v52  ;;  %v5000_v23 = vsel %vm3663_vm7, %v4824_v31, 0.0  ;;  %v10423_v13 = vadd.f32 %v10340_v15, %v723_v6  ;;  %v5047_v44 = vadd.f32 %v9725_v42, %v4643_v45  ;;  %v12091_v42 = vld [vmem:[#allocation70_spill] sm:$0xff]  ;;  %v10442_v45 = vpop.xlane.xlu1 %4941 }
 0x2ae   :  { %v1628_v41 = vmul.f32 0.6931472, %v6366_v56  ;;  %v6368_v26 = vpop.eup %6367  ;;  %vm1633_vm12 = vcmp.lt.f32.partialorder %v1632_v53, 0.0004427343  ;;  %5375 = vst.msk [vmem:[%s11703_s13 + $0xb0] sm:$0xff] %vm5352_vm8, %v5310_v21  ;;  %5001 = vadd.xlane.f32.xlu0 %v5000_v23  ;;  %v4997_v48 = vsel %vm3663_vm7, %v4823_v8, 0.0  ;;  %v2194_v36 = vadd.f32 %v10288_v58, %v2193_v46  ;;  %v10448_v8 = vpop.f32.mrf.mxu1 }
 0x2af   :  { %v2877_v35 = vsub.f32 1.0, %v2876_v19  ;;  %v10432_v32 = vadd.f32 1.0, %v6368_v26  ;;  %4998 = vadd.xlane.f32.xlu2 %v4997_v48  ;;  %v1052_v15 = vand.u32 2147483647, %v10423_v13  ;;  %v4435_v53 = vsel %vm4307_vm6, %v12088_v43, %v12091_v42  ;;  %v6621_v26 = vld [vmem:[%s11692_s2 + $0xb8] sm:$0xff]  ;;  %v724_v42 = vpop.f32.mrf.mxu0 }
 0x2b0   :  { %v1634_v49 = vsel %vm1633_vm12, %v1631_v17, %v1628_v41  ;;  %vm2881_vm13 = vweird.f32 %v6364_v24  ;;  %v5115_v10 = vadd.f32 %v10316_v14, %v5047_v44  ;;  %vm4306_vm14 = vcmp.ge.f32.partialorder %v10158_v11, 0.0 }
 0x2b1   :  { %v10439_v6 = vadd.f32 %v1634_v49, %v986_v59  ;;  %v2878_v31 = vmul.f32 %v6364_v24, %v2877_v35  ;;  %v4372_v17 = vmul.f32 0.2, %v10300_v20  ;;  %vm2880_vm15 = vweird.f32 %v10373_v52 }
 0x2b2   :  { %v6370_v56 = vpop.eup %6369  ;;  %6371 = vrcp.f32 %v10432_v32  ;;  %v5848_v19 = vmul.f32 -1.442695, %v2194_v36  ;;  %v4499_v46 = vmul.f32 1.4142135, %v4435_v53  ;;  %vm2882_vm1 = vmor %vm2880_vm15, %vm2881_vm13  ;;  %v2887_v41 = vor.u32 1.1754944e-38, %v2886_v1 }
 0x2b3   :  { %v2879_v21 = vadd.f32 %v6364_v24, %v2878_v31  ;;  %v1635_v43 = vadd.f32 1.0, %v6370_v56  ;;  %v1638_v59 = vmul.f32 -0.5, %v6370_v56  ;;  %5802 = vmatmul.msk.f32.gmra.mxu2 %vm511_vm0, %v10439_v6  ;;  %v987_v23 = vmax.f32 %v10362_v34, 0.0 }
 0x2b4   :  { %v1116_v44 = vsub.f32 0.0, %v1052_v15  ;;  %v5179_v35 = vadd.f32 %v6621_v26, %v5115_v10  ;;  %v12092_v36 = vand.u32 2147483647, %v10373_v52  ;;  %v1641_v49 = vand.u32 2147483647, %v6370_v56  ;;  %v4646_v10 = vpop.xlane.xlu0 %4645 }
 0x2b5   :  { %v2883_v48 = vsel %vm2882_vm1, %v6364_v24, %v2879_v21  ;;  %6373 = vlog2.f32 %v1635_v43  ;;  %v1639_v34 = vadd.f32 1.0, %v1638_v59  ;;  %vm2895_vm3 = vweird.f32 %v10432_v32 }
 0x2b6   :  { %vm2885_vm2 = vcmp.eq.f32.partialorder %v12092_v36, 8.507059e+37  ;;  %v1222_v31 = vmul.f32 1.442695, %v1116_v44  ;;  %v5246_v16 = vmax.f32 %v8588_v62, %v5179_v35  ;;  %6375 = vpow2.f32 %v5848_v19 }
 0x2b7   :  { %v2888_v53 = vsel %vm2885_vm2, %v2887_v41, %v2883_v48  ;;  %v4827_v15 = vmul.f32 %v10048_v57, %v4499_v46  ;;  %v4546_v24 = vmul.f32 %v9963_v25, %v10293_v38  ;;  %v4436_v43 = vsel %vm4308_vm11, %v10300_v20, %v4372_v17  ;;  %v2196_v17 = vpop.f32.mrf.mxu2 }
 0x2b8   :  { %v3555_v1 = vmul.f32 1.002, %v2888_v53  ;;  %v6372_v52 = vpop.eup %6371  ;;  %6377 = vpow2.f32 %v1222_v31  ;;  %v5311_v21 = vmin.f32 %v8611_v29, %v5246_v16  ;;  %v725_v19 = vadd.f32 %v10347_v55, %v724_v42 }
 0x2b9   :  { %v2891_v59 = vmul.f32 %v6372_v52, %v10432_v32  ;;  %v2899_v44 = vand.u32 2147483647, %v10432_v32  ;;  %v5009_v46 = vsel %vm3663_vm7, %v4827_v15, 0.0  ;;  %v4686_v25 = vsel %vm511_vm0, %v4546_v24, 0.0  ;;  %v10494_v15 = vpop.xlane.xlu2 %4935 }
 0x2ba   :  { %v5910_v41 = vadd.f32 -0.001, %v3555_v1  ;;  %5376 = vst.msk [vmem:[%s11703_s13 + $0xb8] sm:$0xff] %vm5352_vm8, %v5311_v21  ;;  %5010 = vadd.xlane.f32.xlu0 %v5009_v46  ;;  %v4500_v38 = vmul.f32 1.4142135, %v4436_v43  ;;  %v10478_v20 = vadd.f32 %v10395_v47, %v725_v19  ;;  %v5048_v16 = vadd.f32 %v9800_v3, %v4646_v10  ;;  %4687 = vadd.xlane.f32.xlu2 %v4686_v25  ;;  %v10490_v47 = vpop.xlane.xlu1 %4747 }
 0x2bb   :  { %v6374_v26 = vpop.eup %6373  ;;  %v1640_v35 = vmul.f32 %v6370_v56, %v1639_v34  ;;  %vm10485_vm4 = vcmp.lt.f32.partialorder %v1641_v49, 0.0004427343  ;;  %v2892_v36 = vsub.f32 1.0, %v2891_v59  ;;  %v2901_v42 = vand.u32 2147483648, %v10432_v32  ;;  %12095 = vst [vmem:[#allocation46_spill] sm:$0xff] %v10490_v47  ;;  %v10498_v34 = vpop.f32.mrf.mxu1  ;;  %v6622_v32 = vld [vmem:[%s11692_s2 + $0xc0] sm:$0xff] }
 0x2bc   :  { %3684 = vst.msk [vmem:[%s11702_s12 + $0xa0] sm:$0xff] %vm3663_vm7, %v5910_v41  ;;  %v6376_v53 = vpop.eup %6375  ;;  %v1637_v3 = vmul.f32 0.6931472, %v6374_v26  ;;  %vm2896_vm5 = vweird.f32 %v6372_v52  ;;  %v4828_v31 = vmul.f32 %v10048_v57, %v4500_v38  ;;  %v1053_v1 = vand.u32 2147483647, %v10478_v20 }
 0x2bd   :  { %v2893_v56 = vmul.f32 %v6372_v52, %v2892_v36  ;;  %v10496_v49 = vadd.f32 1.0, %v6376_v53  ;;  %v2197_v24 = vadd.f32 %v10288_v58, %v2196_v17  ;;  %v4434_v10 = vsel %vm4306_vm14, %v10158_v11, %v10381_v39  ;;  %vm2897_vm6 = vmor %vm2895_vm3, %vm2896_vm5 }
 0x2be   :  { %v6378_v21 = vpop.eup %6377  ;;  %v1643_v43 = vsel %vm10485_vm4, %v1640_v35, %v1637_v3  ;;  %v5012_v19 = vsel %vm3663_vm7, %v4828_v31, 0.0  ;;  %v1117_v41 = vsub.f32 0.0, %v1053_v1  ;;  %v5116_v59 = vadd.f32 %v10316_v14, %v5048_v16  ;;  %v727_v3 = vpop.f32.mrf.mxu0 }
 0x2bf   :  { %v10509_v46 = vadd.f32 %v1643_v43, %v987_v23  ;;  %v2894_v25 = vadd.f32 %v6372_v52, %v2893_v56  ;;  %v1644_v38 = vadd.f32 1.0, %v6378_v21  ;;  %v1647_v26 = vmul.f32 -0.5, %v6378_v21  ;;  %5013 = vadd.xlane.f32.xlu1 %v5012_v19 }
 0x2c0   :  { %v2902_v11 = vor.u32 1.1754944e-38, %v2901_v42  ;;  %6379 = vrcp.f32 %v10496_v49  ;;  %v4498_v39 = vmul.f32 1.4142135, %v4434_v10  ;;  %vm2900_vm9 = vcmp.eq.f32.partialorder %v2899_v44, 8.507059e+37 }
 0x2c1   :  { %v2898_v17 = vsel %vm2897_vm6, %v6372_v52, %v2894_v25  ;;  %6381 = vlog2.f32 %v1644_v38  ;;  %v5849_v35 = vmul.f32 -1.442695, %v2197_v24  ;;  %5803 = vmatmul.msk.f32.gmra.mxu2 %vm511_vm0, %v10509_v46  ;;  %v1224_v16 = vmul.f32 1.442695, %v1117_v41  ;;  %v10523_v52 = vld [vmem:[%s11699_s9] ss:$0 sm:$0xff]  ;;  %v2199_v38 = vpop.f32.mrf.mxu2 }
 0x2c2   :  { %v2903_v23 = vsel %vm2900_vm9, %v2902_v11, %v2898_v17  ;;  %v1648_v36 = vadd.f32 1.0, %v1647_v26  ;;  %v1650_v53 = vand.u32 2147483647, %v6378_v21  ;;  %v5180_v42 = vadd.f32 %v6622_v32, %v5116_v59  ;;  %v4649_v10 = vpop.xlane.xlu1 %4648 }
 0x2c3   :  { %v3556_v48 = vmul.f32 1.002, %v2903_v23  ;;  %6383 = vpow2.f32 %v1224_v16  ;;  %v4547_v44 = vmul.f32 %v10523_v52, %v10367_v18  ;;  %v4826_v31 = vmul.f32 %v10048_v57, %v4498_v39  ;;  %v10537_v18 = vpop.xlane.xlu2 %4750  ;;  %v10551_v16 = vpop.xlane.xlu0 %4947 }
 0x2c4   :  { %v728_v1 = vadd.f32 %v10347_v55, %v727_v3  ;;  %v5247_v24 = vmax.f32 %v8588_v62, %v5180_v42  ;;  %6385 = vpow2.f32 %v5849_v35  ;;  %v4548_v43 = vmul.f32 %v10523_v52, %v10439_v6 }
 0x2c5   :  { %v5911_v56 = vadd.f32 -0.001, %v3556_v48  ;;  %v4689_v41 = vsel %vm511_vm0, %v4547_v44, 0.0  ;;  %v5006_v59 = vsel %vm3663_vm7, %v4826_v31, 0.0  ;;  %v5049_v57 = vadd.f32 %v9877_v51, %v4649_v10  ;;  %v6624_v31 = vld [vmem:[%s11692_s2 + $0xc8] sm:$0xff] }
 0x2c6   :  { %v6380_v19 = vpop.eup %6379  ;;  %v10535_v25 = vadd.f32 %v10448_v8, %v728_v1  ;;  %v988_v6 = vmax.f32 %v10423_v13, 0.0  ;;  %v5312_v39 = vmin.f32 %v8611_v29, %v5247_v24  ;;  %4690 = vadd.xlane.f32.xlu0 %v4689_v41  ;;  %5007 = vadd.xlane.f32.xlu2 %v5006_v59  ;;  %v10547_v8 = vpop.f32.mrf.mxu1  ;;  %v4692_v17 = vsel %vm511_vm0, %v4548_v43, 0.0 }
 0x2c7   :  { %v6382_v26 = vpop.eup %6381  ;;  %3685 = vst.msk [vmem:[%s11702_s12 + $0xa8] sm:$0xff] %vm3663_vm7, %v5911_v56  ;;  %v2906_v11 = vmul.f32 %v6380_v19, %v10496_v49  ;;  %v1649_v35 = vmul.f32 %v6378_v21, %v1648_v36  ;;  %v5117_v48 = vadd.f32 %v10316_v14, %v5049_v57  ;;  %4693 = vadd.xlane.f32.xlu1 %v4692_v17  ;;  %vm1651_vm10 = vcmp.lt.f32.partialorder %v1650_v53, 0.0004427343 }
 0x2c8   :  { %v1646_v51 = vmul.f32 0.6931472, %v6382_v26  ;;  %v1054_v23 = vand.u32 2147483647, %v10535_v25  ;;  %v2914_v32 = vand.u32 2147483647, %v10496_v49  ;;  %v2200_v42 = vadd.f32 %v10288_v58, %v2199_v38 }
 0x2c9   :  { %v2907_v13 = vsub.f32 1.0, %v2906_v11  ;;  %5377 = vst.msk [vmem:[%s11703_s13 + $0xc0] sm:$0xff] %vm5352_vm8, %v5312_v39  ;;  %v6384_v3 = vpop.eup %6383  ;;  %v2916_v36 = vand.u32 2147483648, %v10496_v49  ;;  %v5181_v53 = vadd.f32 %v6624_v31, %v5117_v48  ;;  %vm2911_vm11 = vweird.f32 %v6380_v19  ;;  %v729_v11 = vpop.f32.mrf.mxu0 }
 0x2ca   :  { %v1652_v21 = vsel %vm1651_vm10, %v1649_v35, %v1646_v51  ;;  %v1118_v44 = vsub.f32 0.0, %v1054_v23  ;;  %v6386_v1 = vpop.eup %6385  ;;  %v1653_v10 = vadd.f32 1.0, %v6384_v3  ;;  %v1656_v43 = vmul.f32 -0.5, %v6384_v3 }
 0x2cb   :  { %v10564_v56 = vadd.f32 %v1652_v21, %v988_v6  ;;  %v2908_v24 = vmul.f32 %v6380_v19, %v2907_v13  ;;  %v10566_v41 = vadd.f32 1.0, %v6386_v1  ;;  %v5248_v57 = vmax.f32 %v8588_v62, %v5181_v53 }
 0x2cc   :  { %v1226_v59 = vmul.f32 1.442695, %v1118_v44  ;;  %vm2910_vm12 = vweird.f32 %v10496_v49  ;;  %6387 = vlog2.f32 %v1653_v10  ;;  %v5850_v26 = vmul.f32 -1.442695, %v2200_v42  ;;  %v4652_v49 = vpop.xlane.xlu2 %4651  ;;  %v12096_v44 = vld [vmem:[#allocation6_spill] sm:$0xff] }
 0x2cd   :  { %v2909_v38 = vadd.f32 %v6380_v19, %v2908_v24  ;;  %5804 = vmatmul.msk.f32.gmra.mxu2 %vm511_vm0, %v10564_v56  ;;  %vm2912_vm13 = vmor %vm2910_vm12, %vm2911_vm11  ;;  %v2917_v6 = vor.u32 1.1754944e-38, %v2916_v36  ;;  %6389 = vrcp.f32 %v10566_v41  ;;  %vm2915_vm14 = vcmp.eq.f32.partialorder %v2914_v32, 8.507059e+37  ;;  %v2202_v36 = vpop.f32.mrf.mxu2  ;;  %v10584_v32 = vpop.xlane.xlu0 %4753  ;;  %v12097_v24 = vld [vmem:[#allocation29_spill] sm:$0xff] }
 0x2ce   :  { %v1659_v17 = vand.u32 2147483647, %v6384_v3  ;;  %6391 = vpow2.f32 %v1226_v59  ;;  %v1657_v35 = vadd.f32 1.0, %v1656_v43  ;;  %v5313_v23 = vmin.f32 %v8611_v29, %v5248_v57  ;;  %v10575_v42 = vpop.f32.mrf.mxu1 }
 0x2cf   :  { %v2913_v39 = vsel %vm2912_vm13, %v6380_v19, %v2909_v38  ;;  %6393 = vpow2.f32 %v5850_v26  ;;  %v730_v13 = vadd.f32 %v10347_v55, %v729_v11  ;;  %v5050_v21 = vadd.f32 %v9784_v5, %v4652_v49  ;;  %v10592_v5 = vld [vmem:[%s11697_s7] ss:$0 sm:$0xff] }
 0x2d0   :  { %v2918_v51 = vsel %vm2915_vm14, %v2917_v6, %v2913_v39  ;;  %v738_v19 = vadd.f32 %v10347_v55, %v12096_v44  ;;  %5378 = vst.msk [vmem:[%s11703_s13 + $0xc8] sm:$0xff] %vm5352_vm8, %v5313_v23  ;;  %v4549_v31 = vmul.f32 %v10523_v52, %v10509_v46  ;;  %v2203_v53 = vadd.f32 %v10288_v58, %v2202_v36 }
 0x2d1   :  { %v3557_v48 = vmul.f32 1.002, %v2918_v51  ;;  %v10596_v10 = vmul.f32 %v10592_v5, %v12097_v24  ;;  %vm10598_vm15 = vcmp.lt.f32.partialorder %v1659_v17, 0.0004427343  ;;  %v10603_v57 = vadd.f32 %v10498_v34, %v730_v13 }
 0x2d2   :  { %v6388_v1 = vpop.eup %6387  ;;  %v1658_v26 = vmul.f32 %v6384_v3, %v1657_v35  ;;  %v5118_v6 = vadd.f32 %v10316_v14, %v5050_v21  ;;  %v4695_v11 = vsel %vm511_vm0, %v4549_v31, 0.0  ;;  %v989_v17 = vmax.f32 %v10478_v20, 0.0  ;;  %v12100_v31 = vld [vmem:[#allocation32_spill] sm:$0xff] }
 0x2d3   :  { %v5912_v43 = vadd.f32 -0.001, %v3557_v48  ;;  %v6390_v46 = vpop.eup %6389  ;;  %v1655_v38 = vmul.f32 0.6931472, %v6388_v1  ;;  %v2929_v34 = vand.u32 2147483647, %v10566_v41  ;;  %4696 = vadd.xlane.f32.xlu2 %v4695_v11  ;;  %v10623_v1 = vmul.f32 %v10592_v5, %v12100_v31 }
 0x2d4   :  { %v6392_v39 = vpop.eup %6391  ;;  %v2921_v51 = vmul.f32 %v6390_v46, %v10566_v41  ;;  %v1055_v23 = vand.u32 2147483647, %v10603_v57  ;;  %v5851_v13 = vmul.f32 -1.442695, %v2203_v53  ;;  %v2931_v24 = vand.u32 2147483648, %v10566_v41  ;;  %v732_v53 = vpop.f32.mrf.mxu0 }
 0x2d5   :  { %3686 = vst.msk [vmem:[%s11702_s12 + $0xb0] sm:$0xff] %vm3663_vm7, %v5912_v43  ;;  %v6394_v3 = vpop.eup %6393  ;;  %v1661_v35 = vsel %vm10598_vm15, %v1658_v26, %v1655_v38  ;;  %v1662_v49 = vadd.f32 1.0, %v6392_v39  ;;  %v1665_v48 = vmul.f32 -0.5, %v6392_v39  ;;  %v6626_v43 = vld [vmem:[%s11692_s2 + $0xd0] sm:$0xff]  ;;  %vm2925_vm1 = vweird.f32 %v10566_v41 }
 0x2d6   :  { %v10617_v21 = vadd.f32 %v1661_v35, %v989_v17  ;;  %v2922_v36 = vsub.f32 1.0, %v2921_v51  ;;  %v10619_v44 = vadd.f32 1.0, %v6394_v3  ;;  %v1119_v20 = vsub.f32 0.0, %v1055_v23  ;;  %v906_v3 = vpop.f32.mrf.mxu1 }
 0x2d7   :  { %6395 = vlog2.f32 %v1662_v49  ;;  %v5182_v59 = vadd.f32 %v6626_v43, %v5118_v6  ;;  %vm2926_vm2 = vweird.f32 %v6390_v46  ;;  %vm10633_vm3 = vcmp.eq.f32.partialorder %v2929_v34, 8.507059e+37  ;;  %v4655_v34 = vpop.xlane.xlu0 %4654 }
 0x2d8   :  { %v2923_v38 = vmul.f32 %v6390_v46, %v2922_v36  ;;  %6397 = vrcp.f32 %v10619_v44  ;;  %5805 = vmatmul.msk.f32.gmra.mxu2 %vm511_vm0, %v10617_v21  ;;  %v1668_v11 = vand.u32 2147483647, %v6392_v39  ;;  %v1228_v17 = vmul.f32 1.442695, %v1119_v20  ;;  %vm2927_vm4 = vmor %vm2925_vm1, %vm2926_vm2 }
 0x2d9   :  { %v5249_v51 = vmax.f32 %v8588_v62, %v5182_v59  ;;  %v1666_v6 = vadd.f32 1.0, %v1665_v48  ;;  %6399 = vpow2.f32 %v5851_v13  ;;  %v733_v41 = vadd.f32 %v10347_v55, %v732_v53 }
 0x2da   :  { %v2924_v23 = vadd.f32 %v6390_v46, %v2923_v38  ;;  %v2932_v35 = vor.u32 1.1754944e-38, %v2931_v24  ;;  %6401 = vpow2.f32 %v1228_v17  ;;  %v10640_v36 = vadd.f32 %v906_v3, %v738_v19 }
 0x2db   :  { %v5314_v49 = vmin.f32 %v8611_v29, %v5249_v51  ;;  %v10643_v43 = vadd.f32 %v10547_v8, %v733_v41  ;;  %v5051_v20 = vadd.f32 %v9849_v22, %v4655_v34  ;;  %v4550_v48 = vmul.f32 %v10523_v52, %v10564_v56  ;;  %v10659_v8 = vpop.xlane.xlu1 %4950 }
 0x2dc   :  { %v2928_v31 = vsel %vm2927_vm4, %v6390_v46, %v2924_v23  ;;  %v990_v24 = vmax.f32 %v10535_v25, 0.0  ;;  %vm10651_vm5 = vcmp.lt.f32.partialorder %v1668_v11, 0.0004427343  ;;  %v1058_v22 = vand.u32 2147483647, %v10640_v36  ;;  %v2205_v23 = vpop.f32.mrf.mxu2 }
 0x2dd   :  { %v6396_v13 = vpop.eup %6395  ;;  %v2933_v59 = vsel %vm10633_vm3, %v2932_v35, %v2928_v31  ;;  %5379 = vst.msk [vmem:[%s11703_s13 + $0xd0] sm:$0xff] %vm5352_vm8, %v5314_v49  ;;  %v1667_v53 = vmul.f32 %v6392_v39, %v1666_v6  ;;  %v5119_v26 = vadd.f32 %v10316_v14, %v5051_v20  ;;  %v2944_v11 = vand.u32 2147483647, %v10619_v44  ;;  %v6627_v49 = vld [vmem:[%s11692_s2 + $0xd8] sm:$0xff] }
 0x2de   :  { %v6398_v56 = vpop.eup %6397  ;;  %v3558_v19 = vmul.f32 1.002, %v2933_v59  ;;  %v1664_v46 = vmul.f32 0.6931472, %v6396_v13  ;;  %v1056_v17 = vand.u32 2147483647, %v10643_v43  ;;  %vm2940_vm9 = vweird.f32 %v10619_v44 }
 0x2df   :  { %v2936_v25 = vmul.f32 %v6398_v56, %v10619_v44  ;;  %v1122_v51 = vsub.f32 0.0, %v1058_v22  ;;  %v6400_v41 = vpop.eup %6399  ;;  %v5183_v39 = vadd.f32 %v6627_v49, %v5119_v26  ;;  %v4698_v6 = vsel %vm511_vm0, %v4550_v48, 0.0 }
 0x2e0   :  { %v5913_v3 = vadd.f32 -0.001, %v3558_v19  ;;  %v1670_v35 = vsel %vm10651_vm5, %v1667_v53, %v1664_v46  ;;  %v6402_v34 = vpop.eup %6401  ;;  %v10674_v13 = vadd.f32 1.0, %v6400_v41  ;;  %v1120_v59 = vsub.f32 0.0, %v1056_v17  ;;  %4699 = vadd.xlane.f32.xlu0 %v4698_v6  ;;  %v6628_v53 = vld [vmem:[%s11698_s8] ss:$0 sm:$0xff]  ;;  %v10695_v6 = vpop.xlane.xlu2 %4944 }
 0x2e1   :  { %v10672_v31 = vadd.f32 %v1670_v35, %v990_v24  ;;  %v2937_v20 = vsub.f32 1.0, %v2936_v25  ;;  %v2946_v38 = vand.u32 2147483648, %v10619_v44  ;;  %v1671_v22 = vadd.f32 1.0, %v6402_v34  ;;  %v12105_v25 = vld [vmem:[#allocation34_spill] sm:$0xff] }
 0x2e2   :  { %3687 = vst.msk [vmem:[%s11702_s12 + $0xb8] sm:$0xff] %vm3663_vm7, %v5913_v3  ;;  %v5250_v19 = vmax.f32 %v8588_v62, %v5183_v39  ;;  %v2206_v48 = vadd.f32 %v10288_v58, %v2205_v23  ;;  %vm2941_vm6 = vweird.f32 %v6398_v56  ;;  %v1674_v24 = vmul.f32 -0.5, %v6402_v34 }
 0x2e3   :  { %v2938_v46 = vmul.f32 %v6398_v56, %v2937_v20  ;;  %6403 = vrcp.f32 %v10674_v13  ;;  %5806 = vmatmul.msk.f32.gmra.mxu2 %vm511_vm0, %v10672_v31  ;;  %v4246_v26 = vadd.f32 %v6628_v53, %v10596_v10  ;;  %v4179_v17 = vmul.f32 %v10592_v5, %v12105_v25  ;;  %vm2942_vm10 = vmor %vm2940_vm9, %vm2941_vm6  ;;  %v10697_v5 = vpop.xlane.xlu1 %4756 }
 0x2e4   :  { %6405 = vlog2.f32 %v1671_v22  ;;  %v1230_v23 = vmul.f32 1.442695, %v1120_v59  ;;  %v1234_v3 = vmul.f32 1.442695, %v1122_v51  ;;  %v4245_v35 = vadd.f32 %v6628_v53, %v10623_v1  ;;  %12106 = vst [vmem:[#allocation35_spill] sm:$0xff] %v10697_v5  ;;  %v734_v22 = vpop.f32.mrf.mxu0  ;;  %v12107_v59 = vld [vmem:[#allocation11_spill] sm:$0xff] }
 0x2e5   :  { %v2939_v41 = vadd.f32 %v6398_v56, %v2938_v46  ;;  %v2947_v49 = vor.u32 1.1754944e-38, %v2946_v38  ;;  %v5315_v39 = vmin.f32 %v8611_v29, %v5250_v19  ;;  %v5852_v20 = vmul.f32 -1.442695, %v2206_v48 }
 0x2e6   :  { %vm2945_vm11 = vcmp.eq.f32.partialorder %v2944_v11, 8.507059e+37  ;;  %v1675_v10 = vadd.f32 1.0, %v1674_v24  ;;  %6407 = vpow2.f32 %v1230_v23  ;;  %v1677_v44 = vand.u32 2147483647, %v6402_v34 }
 0x2e7   :  { %v2943_v47 = vsel %vm2942_vm10, %v6398_v56, %v2939_v41  ;;  %6409 = vpow2.f32 %v1234_v3  ;;  %5380 = vst.msk [vmem:[%s11703_s13 + $0xd8] sm:$0xff] %vm5352_vm8, %v5315_v39  ;;  %v735_v1 = vadd.f32 %v10347_v55, %v734_v22  ;;  %v740_v56 = vadd.f32 %v10347_v55, %v12107_v59 }
 0x2e8   :  { %v2948_v46 = vsel %vm2945_vm11, %v2947_v49, %v2943_v47  ;;  %v4374_v11 = vmul.f32 0.2, %v4246_v26  ;;  %6411 = vpow2.f32 %v5852_v20  ;;  %vm4310_vm12 = vcmp.ge.f32.partialorder %v4246_v26, 0.0 }
 0x2e9   :  { %v6404_v51 = vpop.eup %6403  ;;  %v3559_v38 = vmul.f32 1.002, %v2948_v46  ;;  %v4373_v48 = vmul.f32 0.2, %v4245_v35  ;;  %v10706_v47 = vadd.f32 %v6628_v53, %v4179_v17  ;;  %v1676_v23 = vmul.f32 %v6402_v34, %v1675_v10  ;;  %v908_v34 = vpop.f32.mrf.mxu1 }
 0x2ea   :  { %v6406_v19 = vpop.eup %6405  ;;  %v2951_v24 = vmul.f32 %v6404_v51, %v10674_v13  ;;  %v10710_v3 = vadd.f32 %v10575_v42, %v735_v1  ;;  %vm4309_vm13 = vcmp.ge.f32.partialorder %v4245_v35, 0.0  ;;  %v991_v49 = vmax.f32 %v10603_v57, 0.0 }
 0x2eb   :  { %v5914_v25 = vadd.f32 -0.001, %v3559_v38  ;;  %v1673_v41 = vmul.f32 0.6931472, %v6406_v19  ;;  %vm1678_vm14 = vcmp.lt.f32.partialorder %v1677_v44, 0.0004427343  ;;  %v4438_v42 = vsel %vm4310_vm12, %v4246_v26, %v4374_v11  ;;  %v10731_v11 = vpop.xlane.xlu0 %4956 }
 0x2ec   :  { %v2952_v55 = vsub.f32 1.0, %v2951_v24  ;;  %v6408_v39 = vpop.eup %6407  ;;  %v2959_v17 = vand.u32 2147483647, %v10674_v13  ;;  %v2961_v20 = vand.u32 2147483648, %v10674_v13  ;;  %vm2956_vm15 = vweird.f32 %v6404_v51  ;;  %12108 = vst [vmem:[#allocation38_spill] sm:$0xff] %v10731_v11 }
 0x2ed   :  { %3688 = vst.msk [vmem:[%s11702_s12 + $0xc0] sm:$0xff] %vm3663_vm7, %v5914_v25  ;;  %v1679_v53 = vsel %vm1678_vm14, %v1676_v23, %v1673_v41  ;;  %v10720_v10 = vpop.eup %6409  ;;  %v1680_v46 = vadd.f32 1.0, %v6408_v39  ;;  %vm2955_vm1 = vweird.f32 %v10674_v13  ;;  %v1683_v1 = vmul.f32 -0.5, %v6408_v39  ;;  %v10733_v25 = vpop.xlane.xlu2 %4759 }
 0x2ee   :  { %v10722_v22 = vadd.f32 %v1679_v53, %v991_v49  ;;  %v2953_v57 = vmul.f32 %v6404_v51, %v2952_v55  ;;  %v6412_v44 = vpop.eup %6411  ;;  %v1057_v59 = vand.u32 2147483647, %v10710_v3  ;;  %v4437_v38 = vsel %vm4309_vm13, %v4245_v35, %v4373_v48  ;;  %12109 = vst [vmem:[#allocation51_spill] sm:$0xff] %v10733_v25  ;;  %vm2957_vm2 = vmor %vm2955_vm1, %vm2956_vm15  ;;  %v4658_v48 = vpop.xlane.xlu1 %4657 }
 0x2ef   :  { %6413 = vlog2.f32 %v1680_v46  ;;  %v10727_v24 = vadd.f32 1.0, %v6412_v44  ;;  %v10729_v26 = vadd.f32 %v908_v34, %v740_v56  ;;  %v10738_v13 = vmul.f32 0.2, %v10706_v47  ;;  %v2208_v23 = vpop.f32.mrf.mxu2 }
 0x2f0   :  { %v2954_v19 = vadd.f32 %v6404_v51, %v2953_v57  ;;  %5807 = vmatmul.msk.f32.gmra.mxu2 %vm511_vm0, %v10722_v22  ;;  %v2962_v41 = vor.u32 1.1754944e-38, %v2961_v20  ;;  %v1698_v35 = vadd.f32 1.0, %v10720_v10  ;;  %vm2960_vm3 = vcmp.eq.f32.partialorder %v2959_v17, 8.507059e+37 }
 0x2f1   :  { %6415 = vrcp.f32 %v10727_v24  ;;  %v10743_v56 = vmul.f32 1.4142135, %v4438_v42  ;;  %v1684_v53 = vadd.f32 1.0, %v1683_v1  ;;  %v1686_v34 = vand.u32 2147483647, %v6408_v39 }
 0x2f2   :  { %v2958_v49 = vsel %vm2957_vm2, %v6404_v51, %v2954_v19  ;;  %v10745_v57 = vmul.f32 1.4142135, %v4437_v38  ;;  %v1701_v44 = vmul.f32 -0.5, %v10720_v10  ;;  %v1121_v5 = vsub.f32 0.0, %v1057_v59 }
 0x2f3   :  { %v2963_v55 = vsel %vm2960_vm3, %v2962_v41, %v2958_v49  ;;  %v1059_v20 = vand.u32 2147483647, %v10729_v26  ;;  %6417 = vlog2.f32 %v1698_v35  ;;  %v1704_v25 = vand.u32 2147483647, %v10720_v10 }
 0x2f4   :  { %v3560_v46 = vmul.f32 1.002, %v2963_v55  ;;  %v5052_v51 = vadd.f32 %v10069_v54, %v4658_v48  ;;  %v4551_v17 = vmul.f32 %v10523_v52, %v10617_v21  ;;  %v1232_v1 = vmul.f32 1.442695, %v1121_v5 }
 0x2f5   :  { %v6414_v42 = vpop.eup %6413  ;;  %v1123_v41 = vsub.f32 0.0, %v1059_v20  ;;  %v2209_v38 = vadd.f32 %v10288_v58, %v2208_v23  ;;  %v1685_v55 = vmul.f32 %v6408_v39, %v1684_v53  ;;  %v992_v54 = vmax.f32 %v10643_v43, 0.0  ;;  %v6629_v39 = vld [vmem:[%s11692_s2 + $0xe0] sm:$0xff]  ;;  %v10771_v53 = vpop.xlane.xlu0 %4762 }
 0x2f6   :  { %v5915_v19 = vadd.f32 -0.001, %v3560_v46  ;;  %v1682_v49 = vmul.f32 0.6931472, %v6414_v42  ;;  %v5120_v59 = vadd.f32 %v10316_v14, %v5052_v51  ;;  %v4701_v11 = vsel %vm511_vm0, %v4551_v17, 0.0  ;;  %v10777_v17 = vpop.xlane.xlu1 %4959 }
 0x2f7   :  { %v10756_v35 = vpop.eup %6415  ;;  %vm1687_vm4 = vcmp.lt.f32.partialorder %v1686_v34, 0.0004427343  ;;  %6419 = vpow2.f32 %v1232_v1  ;;  %v1236_v21 = vmul.f32 1.442695, %v1123_v41  ;;  %4702 = vadd.xlane.f32.xlu1 %v4701_v11  ;;  %v1702_v5 = vadd.f32 1.0, %v1701_v44  ;;  %v4661_v34 = vpop.xlane.xlu2 %4660 }
 0x2f8   :  { %3689 = vst.msk [vmem:[%s11702_s12 + $0xc8] sm:$0xff] %vm3663_vm7, %v5915_v19  ;;  %v1688_v58 = vsel %vm1687_vm4, %v1685_v55, %v1682_v49  ;;  %v2966_v14 = vmul.f32 %v10756_v35, %v10727_v24  ;;  %v5184_v48 = vadd.f32 %v6629_v39, %v5120_v59  ;;  %vm2970_vm5 = vweird.f32 %v10727_v24  ;;  %v2211_v42 = vpop.f32.mrf.mxu2  ;;  %v10785_v41 = vld [vmem:[%s11696_s6] ss:$0 sm:$0xff] }
 0x2f9   :  { %v10768_v23 = vadd.f32 %v1688_v58, %v992_v54  ;;  %6421 = vpow2.f32 %v1236_v21  ;;  %v5853_v43 = vmul.f32 -1.442695, %v2209_v38  ;;  %v6418_v11 = vpop.eup %6417  ;;  %vm4311_vm6 = vcmp.ge.f32.partialorder %v10706_v47, 0.0  ;;  %v10793_v55 = vld [vmem:[#allocation2] ss:$0 sm:$0xff] }
 0x2fa   :  { %v2967_v46 = vsub.f32 1.0, %v2966_v14  ;;  %v2976_v44 = vand.u32 2147483648, %v10727_v24  ;;  %v5251_v20 = vmax.f32 %v8588_v62, %v5184_v48  ;;  %v5053_v51 = vadd.f32 %v9923_v4, %v4661_v34 }
 0x2fb   :  { %v2974_v19 = vand.u32 2147483647, %v10727_v24  ;;  %6423 = vpow2.f32 %v5853_v43  ;;  %v4552_v1 = vmul.f32 %v10523_v52, %v10672_v31  ;;  %v2212_v38 = vadd.f32 %v10785_v41, %v2211_v42  ;;  %5808 = vmatmul.msk.f32.gmra.mxu2 %vm511_vm0, %v10768_v23 }
 0x2fc   :  { %v2968_v4 = vmul.f32 %v10756_v35, %v2967_v46  ;;  %vm2971_vm9 = vweird.f32 %v10756_v35  ;;  %v5316_v49 = vmin.f32 %v8611_v29, %v5251_v20  ;;  %v5121_v31 = vadd.f32 %v10793_v55, %v5053_v51 }
 0x2fd   :  { %v6420_v59 = vpop.eup %6419  ;;  %v1700_v54 = vmul.f32 0.6931472, %v6418_v11  ;;  %v4704_v21 = vsel %vm511_vm0, %v4552_v1, 0.0  ;;  %v5854_v58 = vmul.f32 -1.442695, %v2212_v38  ;;  %v4553_v14 = vmul.f32 %v10523_v52, %v10722_v22  ;;  %vm2972_vm10 = vmor %vm2970_vm5, %vm2971_vm9 }
 0x2fe   :  { %v1703_v39 = vmul.f32 %v10720_v10, %v1702_v5  ;;  %v2969_v48 = vadd.f32 %v10756_v35, %v2968_v4  ;;  %v2977_v43 = vor.u32 1.1754944e-38, %v2976_v44  ;;  %v1689_v34 = vadd.f32 1.0, %v6420_v59  ;;  %5381 = vst.msk [vmem:[%s11703_s13 + $0xe0] sm:$0xff] %vm5352_vm8, %v5316_v49  ;;  %4705 = vadd.xlane.f32.xlu2 %v4704_v21  ;;  %v6632_v5 = vld [vmem:[%s11692_s2 + $0xe8] sm:$0xff]  ;;  %v4664_v4 = vpop.xlane.xlu0 %4663  ;;  %v10830_v10 = vld [vmem:[%s11700_s10] ss:$0 sm:$0xff]  ;;  %v10840_v21 = vpop.xlane.xlu1 %4968 }
 0x2ff   :  { %v10805_v46 = vpop.eup %6421  ;;  %v1692_v22 = vmul.f32 -0.5, %v6420_v59  ;;  %v5185_v11 = vadd.f32 %v6632_v5, %v5121_v31  ;;  %6425 = vpow2.f32 %v5854_v58  ;;  %v4707_v44 = vsel %vm511_vm0, %v4553_v14, 0.0  ;;  %v10825_v49 = vpop.xlane.xlu2 %4953 }
 0x300   :  { %vm10817_vm11 = vcmp.lt.f32.partialorder %v1704_v25, 0.0004427343  ;;  %v2973_v51 = vsel %vm2972_vm10, %v10756_v35, %v2969_v48  ;;  %vm2975_vm12 = vcmp.eq.f32.partialorder %v2974_v19, 8.507059e+37  ;;  %6427 = vlog2.f32 %v1689_v34  ;;  %4708 = vadd.xlane.f32.xlu0 %v4707_v44  ;;  %v2214_v58 = vpop.f32.mrf.mxu2 }
 0x301   :  { %v6424_v24 = vpop.eup %6423  ;;  %v1706_v42 = vsel %vm10817_vm11, %v1703_v39, %v1700_v54  ;;  %v2978_v1 = vsel %vm2975_vm12, %v2977_v43, %v2973_v51  ;;  %v1707_v38 = vadd.f32 1.0, %v10805_v46  ;;  %v10834_v25 = vmul.f32 %v10830_v10, %v10743_v56 }
 0x302   :  { %v3561_v35 = vmul.f32 1.002, %v2978_v1  ;;  %v1710_v19 = vmul.f32 -0.5, %v10805_v46  ;;  %v10837_v31 = vadd.f32 1.0, %v6424_v24  ;;  %v5252_v54 = vmax.f32 %v8588_v62, %v5185_v11 }
 0x303   :  { %v994_v14 = vmax.f32 %v10640_v36, 0.0  ;;  %v1693_v39 = vadd.f32 1.0, %v1692_v22  ;;  %6429 = vlog2.f32 %v1707_v38  ;;  %v5054_v48 = vadd.f32 %v9994_v60, %v4664_v4 }
 0x304   :  { %v5916_v43 = vadd.f32 -0.001, %v3561_v35  ;;  %v1695_v34 = vand.u32 2147483647, %v6420_v59  ;;  %6431 = vrcp.f32 %v10837_v31  ;;  %v10847_v56 = vmul.f32 %v10830_v10, %v10745_v57 }
 0x305   :  { %v6426_v5 = vpop.eup %6425  ;;  %v10849_v44 = vadd.f32 %v1706_v42, %v994_v14  ;;  %v5317_v11 = vmin.f32 %v8611_v29, %v5252_v54  ;;  %v5122_v20 = vadd.f32 %v10793_v55, %v5054_v48  ;;  %v10857_v60 = vsel %vm4311_vm6, %v10706_v47, %v10738_v13  ;;  %v6634_v47 = vld [vmem:[%s11692_s2 + $0xf0] sm:$0xff] }
 0x306   :  { %v6428_v36 = vpop.eup %6427  ;;  %3690 = vst.msk [vmem:[%s11702_s12 + $0xd0] sm:$0xff] %vm3663_vm7, %v5916_v43  ;;  %v993_v57 = vmax.f32 %v10710_v3, 0.0  ;;  %v1711_v22 = vadd.f32 1.0, %v1710_v19  ;;  %v10864_v51 = vadd.f32 1.0, %v6426_v5  ;;  %v2215_v24 = vadd.f32 %v10785_v41, %v2214_v58  ;;  %v10879_v58 = vpop.xlane.xlu0 %4965 }
 0x307   :  { %v1691_v42 = vmul.f32 0.6931472, %v6428_v36  ;;  %v1694_v1 = vmul.f32 %v6420_v59, %v1693_v39  ;;  %v1713_v38 = vand.u32 2147483647, %v10805_v46  ;;  %5382 = vst.msk [vmem:[%s11703_s13 + $0xe8] sm:$0xff] %vm5352_vm8, %v5317_v11  ;;  %v5186_v13 = vadd.f32 %v6634_v47, %v5122_v20  ;;  %v10881_v14 = vpop.xlane.xlu2 %4962  ;;  %v4667_v11 = vpop.xlane.xlu1 %4666 }
 0x308   :  { %vm1696_vm13 = vcmp.lt.f32.partialorder %v1695_v34, 0.0004427343  ;;  %v995_v3 = vmax.f32 %v10729_v26, 0.0  ;;  %v2989_v4 = vand.u32 2147483647, %v10837_v31  ;;  %6433 = vrcp.f32 %v10864_v51  ;;  %v2217_v20 = vpop.f32.mrf.mxu2 }
 0x309   :  { %v6430_v59 = vpop.eup %6429  ;;  %v1697_v35 = vsel %vm1696_vm13, %v1694_v1, %v1691_v42  ;;  %v5253_v19 = vmax.f32 %v8588_v62, %v5186_v13  ;;  %v5855_v54 = vmul.f32 -1.442695, %v2215_v24  ;;  %v4556_v39 = vmul.f32 %v10523_v52, %v10849_v44 }
 0x30a   :  { %v6432_v48 = vpop.eup %6431  ;;  %v1889_v43 = vadd.f32 %v1697_v35, %v993_v57  ;;  %v1709_v34 = vmul.f32 0.6931472, %v6430_v59  ;;  %v1712_v26 = vmul.f32 %v10805_v46, %v1711_v22  ;;  %v2991_v5 = vand.u32 2147483648, %v10837_v31 }
 0x30b   :  { %vm1714_vm14 = vcmp.lt.f32.partialorder %v1713_v38, 0.0004427343  ;;  %v2981_v36 = vmul.f32 %v6432_v48, %v10837_v31  ;;  %v5318_v24 = vmin.f32 %v8611_v29, %v5253_v19  ;;  %6435 = vpow2.f32 %v5855_v54 }
 0x30c   :  { %v1715_v42 = vsel %vm1714_vm14, %v1712_v26, %v1709_v34  ;;  %v5055_v1 = vadd.f32 %v10305_v61, %v4667_v11  ;;  %v4716_v47 = vsel %vm511_vm0, %v4556_v39, 0.0  ;;  %v4554_v57 = vmul.f32 %v10523_v52, %v10768_v23  ;;  %5809 = vmatmul.msk.f32.gmra.mxu2 %vm511_vm0, %v1889_v43  ;;  %v6635_v34 = vld [vmem:[%s11692_s2 + $0xf8] sm:$0xff] }
 0x30d   :  { %v1891_v46 = vadd.f32 %v1715_v42, %v995_v3  ;;  %v2982_v22 = vsub.f32 1.0, %v2981_v36  ;;  %vm2985_vm15 = vweird.f32 %v10837_v31  ;;  %5383 = vst.msk [vmem:[%s11703_s13 + $0xf0] sm:$0xff] %vm5352_vm8, %v5318_v24  ;;  %4717 = vadd.xlane.f32.xlu0 %v4716_v47  ;;  %v2218_v38 = vadd.f32 %v10785_v41, %v2217_v20 }
 0x30e   :  { %v6434_v61 = vpop.eup %6433  ;;  %vm10900_vm1 = vcmp.eq.f32.partialorder %v2989_v4, 8.507059e+37  ;;  %v2992_v23 = vor.u32 1.1754944e-38, %v2991_v5  ;;  %v5123_v59 = vadd.f32 %v10793_v55, %v5055_v1  ;;  %v4710_v3 = vsel %vm511_vm0, %v4554_v57, 0.0  ;;  %v10914_v24 = vpop.xlane.xlu0 %4974 }
 0x30f   :  { %v2983_v35 = vmul.f32 %v6432_v48, %v2982_v22  ;;  %vm2986_vm2 = vweird.f32 %v6432_v48  ;;  %v2996_v19 = vmul.f32 %v6434_v61, %v10864_v51  ;;  %4711 = vadd.xlane.f32.xlu1 %v4710_v3  ;;  %v5856_v54 = vmul.f32 -1.442695, %v2218_v38  ;;  %5811 = vmatmul.msk.f32.vlgmr.msra.gmra.mxu3 %vm511_vm0, %v1891_v46  ;;  %v4670_v42 = vpop.xlane.xlu2 %4669 }
 0x310   :  { %v3004_v39 = vand.u32 2147483647, %v10864_v51  ;;  %v3006_v4 = vand.u32 2147483648, %v10864_v51  ;;  %v5187_v26 = vadd.f32 %v6635_v34, %v5123_v59  ;;  %v4555_v5 = vmul.f32 %v10523_v52, %v1889_v43  ;;  %vm2987_vm3 = vmor %vm2985_vm15, %vm2986_vm2  ;;  %v10924_v43 = vpop.xlane.xlu1 %4977  ;;  %v2220_v59 = vpop.f32.mrf.mxu2 }
 0x311   :  { %v6436_v11 = vpop.eup %6435  ;;  %v2984_v20 = vadd.f32 %v6432_v48, %v2983_v35  ;;  %v2997_v36 = vsub.f32 1.0, %v2996_v19  ;;  %6437 = vpow2.f32 %v5856_v54  ;;  %v4557_v1 = vmul.f32 %v10523_v52, %v1891_v46 }
 0x312   :  { %v10920_v47 = vadd.f32 1.0, %v6436_v11  ;;  %v5254_v57 = vmax.f32 %v8588_v62, %v5187_v26  ;;  %v5056_v22 = vadd.f32 %v10142_v63, %v4670_v42  ;;  %v4713_v38 = vsel %vm511_vm0, %v4555_v5, 0.0 }
 0x313   :  { %v2988_v3 = vsel %vm2987_vm3, %v6432_v48, %v2984_v20  ;;  %v2998_v35 = vmul.f32 %v6434_v61, %v2997_v36  ;;  %vm3001_vm4 = vweird.f32 %v6434_v61  ;;  %4714 = vadd.xlane.f32.xlu2 %v4713_v38  ;;  %v2221_v52 = vadd.f32 %v10785_v41, %v2220_v59 }
 0x314   :  { %v2993_v31 = vsel %vm10900_vm1, %v2992_v23, %v2988_v3  ;;  %6439 = vrcp.f32 %v10920_v47  ;;  %v5018_v46 = vsel %vm3663_vm7, %v10834_v25, 0.0  ;;  %5810 = vmatmul.msk.f32.gmra.mxu2 %vm511_vm0, %v10849_v44  ;;  %v4503_v63 = vmul.f32 1.4142135, %v10857_v60  ;;  %v12114_v44 = vld [vmem:[#allocation36_spill] sm:$0xff] }
 0x315   :  { %v3562_v19 = vmul.f32 1.002, %v2993_v31  ;;  %v2999_v48 = vadd.f32 %v6434_v61, %v2998_v35  ;;  %vm3000_vm5 = vweird.f32 %v10864_v51  ;;  %v5319_v54 = vmin.f32 %v8611_v29, %v5254_v57  ;;  %5019 = vadd.xlane.f32.xlu0 %v5018_v46 }
 0x316   :  { %vm3002_vm6 = vmor %vm3000_vm5, %vm3001_vm4  ;;  %v3007_v13 = vor.u32 1.1754944e-38, %v3006_v4  ;;  %v5124_v23 = vadd.f32 %v10793_v55, %v5056_v22  ;;  %v4719_v34 = vsel %vm511_vm0, %v4557_v1, 0.0  ;;  %v5857_v26 = vmul.f32 -1.442695, %v2221_v52  ;;  %v6636_v4 = vld [vmem:[%s11692_s2 + $0x100] sm:$0xff] }
 0x317   :  { %v6438_v25 = vpop.eup %6437  ;;  %v5917_v5 = vadd.f32 -0.001, %v3562_v19  ;;  %v3003_v11 = vsel %vm3002_vm6, %v6434_v61, %v2999_v48  ;;  %vm3005_vm9 = vcmp.eq.f32.partialorder %v3004_v39, 8.507059e+37  ;;  %5384 = vst.msk [vmem:[%s11703_s13 + $0xf8] sm:$0xff] %vm5352_vm8, %v5319_v54  ;;  %4720 = vadd.xlane.f32.xlu1 %v4719_v34  ;;  %5812 = vmatmul.msk.f32.gmra.mxu3 %vm511_vm0, %v12114_v44  ;;  %v4673_v39 = vpop.xlane.xlu0 %4672  ;;  %v4831_v42 = vmul.f32 %v10830_v10, %v4503_v63 }
 0x318   :  { %v3008_v60 = vsel %vm3005_vm9, %v3007_v13, %v3003_v11  ;;  %v10946_v51 = vadd.f32 1.0, %v6438_v25  ;;  %v5188_v20 = vadd.f32 %v6636_v4, %v5124_v23  ;;  %6441 = vpow2.f32 %v5857_v26  ;;  %v10955_v36 = vpop.xlane.xlu2 %4971  ;;  %v4987_v57 = vpop.xlane.xlu1 %4986  ;;  %v6637_v25 = vld [vmem:[%s11692_s2 + $0x108] sm:$0xff]  ;;  %v6638_v11 = vld [vmem:[%s11692_s2 + $0x198] sm:$0xff] }
 0x319   :  { %3691 = vst.msk [vmem:[%s11702_s12 + $0xd8] sm:$0xff] %vm3663_vm7, %v5917_v5  ;;  %v3563_v61 = vmul.f32 1.002, %v3008_v60  ;;  %v5015_v22 = vsel %vm3663_vm7, %v10847_v56, 0.0  ;;  %v2223_v38 = vpop.f32.mrf.mxu2  ;;  %v5057_v52 = vadd.f32 %v10217_v0, %v4673_v39  ;;  %v5075_v31 = vadd.f32 %v4987_v57, %v9972_v2 }
 0x31a   :  { %v6440_v1 = vpop.eup %6439  ;;  %6443 = vrcp.f32 %v10946_v51  ;;  %v5255_v35 = vmax.f32 %v8588_v62, %v5188_v20  ;;  %v5021_v56 = vsel %vm3663_vm7, %v4831_v42, 0.0  ;;  %v2224_v63 = vadd.f32 %v10785_v41, %v2223_v38 }
 0x31b   :  { %v5918_v59 = vadd.f32 -0.001, %v3563_v61  ;;  %v3011_v3 = vmul.f32 %v6440_v1, %v10920_v47  ;;  %5016 = vadd.xlane.f32.xlu2 %v5015_v22  ;;  %v3019_v48 = vand.u32 2147483647, %v10920_v47  ;;  %v3021_v54 = vand.u32 2147483648, %v10920_v47 }
 0x31c   :  { %v5320_v46 = vmin.f32 %v8611_v29, %v5255_v35  ;;  %v5125_v0 = vadd.f32 %v10793_v55, %v5057_v52  ;;  %v5143_v2 = vadd.f32 %v10793_v55, %v5075_v31  ;;  %vm3016_vm10 = vweird.f32 %v6440_v1 }
 0x31d   :  { %3692 = vst.msk [vmem:[%s11702_s12 + $0xe0] sm:$0xff] %vm3663_vm7, %v5918_v59  ;;  %v3012_v10 = vsub.f32 1.0, %v3011_v3  ;;  %v5858_v34 = vmul.f32 -1.442695, %v2224_v63  ;;  %vm3015_vm11 = vweird.f32 %v10920_v47  ;;  %vm3020_vm13 = vcmp.eq.f32.partialorder %v3019_v48, 8.507059e+37 }
 0x31e   :  { %v6442_v19 = vpop.eup %6441  ;;  %5385 = vst.msk [vmem:[%s11703_s13 + $0x100] sm:$0xff] %vm5352_vm8, %v5320_v46  ;;  %v5189_v5 = vadd.f32 %v6637_v25, %v5125_v0  ;;  %v5207_v44 = vadd.f32 %v6638_v11, %v5143_v2  ;;  %vm3017_vm12 = vmor %vm3015_vm11, %vm3016_vm10  ;;  %v3022_v61 = vor.u32 1.1754944e-38, %v3021_v54  ;;  %v3034_v39 = vand.u32 2147483647, %v10946_v51 }
 0x31f   :  { %v3013_v13 = vmul.f32 %v6440_v1, %v3012_v10  ;;  %v10980_v23 = vadd.f32 1.0, %v6442_v19  ;;  %5022 = vadd.xlane.f32.xlu1 %v5021_v56  ;;  %5813 = vmatmul.msk.f32.gmra.mxu3 %vm511_vm0, %v8709_v30  ;;  %v4984_v20 = vpop.xlane.xlu0 %4983  ;;  %v3036_v35 = vand.u32 2147483648, %v10946_v51  ;;  %vm3030_vm15 = vweird.f32 %v10946_v51 }
 0x320   :  { %v6444_v26 = vpop.eup %6443  ;;  %v10993_v30 = vpop.xlane.xlu2 %4980  ;;  %v5256_v42 = vmax.f32 %v8588_v62, %v5189_v5  ;;  %v5274_v47 = vmax.f32 %v8588_v62, %v5207_v44  ;;  %v5074_v56 = vadd.f32 %v4984_v20, %v9917_v50  ;;  %vm3035_vm2 = vcmp.eq.f32.partialorder %v3034_v39, 8.507059e+37 }
 0x321   :  { %v3014_v60 = vadd.f32 %v6440_v1, %v3013_v13  ;;  %v3026_v4 = vmul.f32 %v6444_v26, %v10946_v51  ;;  %6445 = vrcp.f32 %v10980_v23  ;;  %v4676_v57 = vpop.xlane.xlu1 %4675  ;;  %v2226_v22 = vpop.f32.mrf.mxu2  ;;  %vm3031_vm14 = vweird.f32 %v6444_v26 }
 0x322   :  { %6447 = vpow2.f32 %v5858_v34  ;;  %v5321_v52 = vmin.f32 %v8611_v29, %v5256_v42  ;;  %v5339_v46 = vmin.f32 %v8611_v29, %v5274_v47  ;;  %v2227_v63 = vadd.f32 %v10785_v41, %v2226_v22  ;;  %vm3032_vm1 = vmor %vm3030_vm15, %vm3031_vm14 }
 0x323   :  { %v3018_v38 = vsel %vm3017_vm12, %v6440_v1, %v3014_v60  ;;  %v3027_v59 = vsub.f32 1.0, %v3026_v4  ;;  %v5058_v1 = vadd.f32 %v10494_v15, %v4676_v57  ;;  %v5142_v50 = vadd.f32 %v10793_v55, %v5074_v56 }
 0x324   :  { %v3023_v3 = vsel %vm3020_vm13, %v3022_v61, %v3018_v38  ;;  %5386 = vst.msk [vmem:[%s11703_s13 + $0x108] sm:$0xff] %vm5352_vm8, %v5321_v52  ;;  %v3037_v15 = vor.u32 1.1754944e-38, %v3036_v35  ;;  %v5859_v13 = vmul.f32 -1.442695, %v2227_v63  ;;  %v3051_v25 = vand.u32 2147483648, %v10980_v23  ;;  %v6640_v61 = vld [vmem:[%s11692_s2 + $0x110] sm:$0xff] }
 0x325   :  { %v3564_v31 = vmul.f32 1.002, %v3023_v3  ;;  %v3028_v10 = vmul.f32 %v6444_v26, %v3027_v59  ;;  %5404 = vst.msk [vmem:[%s11703_s13 + $0x198] sm:$0xff] %vm5352_vm8, %v5339_v46  ;;  %v5126_v2 = vadd.f32 %v10793_v55, %v5058_v1  ;;  %v3049_v47 = vand.u32 2147483647, %v10980_v23 }
 0x326   :  { %6449 = vpow2.f32 %v5859_v13  ;;  %vm3045_vm4 = vweird.f32 %v10980_v23 }
 0x327   :  { %v6446_v19 = vpop.eup %6445  ;;  %v5919_v48 = vadd.f32 -0.001, %v3564_v31  ;;  %v3029_v54 = vadd.f32 %v6444_v26, %v3028_v10  ;;  %5814 = vmatmul.msk.f32.gmra.mxu3 %vm511_vm0, %v8822_v9  ;;  %v6639_v9 = vld [vmem:[%s11692_s2 + $0x190] sm:$0xff]  ;;  %v4993_v11 = vpop.xlane.xlu0 %4992  ;;  %v5190_v42 = vadd.f32 %v6640_v61, %v5126_v2  ;;  %vm3050_vm6 = vcmp.eq.f32.partialorder %v3049_v47, 8.507059e+37 }
 0x328   :  { %v3041_v0 = vmul.f32 %v6446_v19, %v10980_v23  ;;  %v6448_v34 = vpop.eup %6447  ;;  %v5206_v5 = vadd.f32 %v6639_v9, %v5142_v50  ;;  %v4679_v44 = vpop.xlane.xlu2 %4678  ;;  %v5077_v38 = vadd.f32 %v4993_v11, %v10118_v27  ;;  %vm3046_vm3 = vweird.f32 %v6446_v19  ;;  %v6643_v11 = vld [vmem:[%s11692_s2 + $0x1b0] sm:$0xff] }
 0x329   :  { %3693 = vst.msk [vmem:[%s11702_s12 + $0xe8] sm:$0xff] %vm3663_vm7, %v5919_v48  ;;  %v3033_v51 = vsel %vm3032_vm1, %v6444_v26, %v3029_v54  ;;  %v11028_v20 = vadd.f32 1.0, %v6448_v34  ;;  %v4996_v26 = vpop.xlane.xlu1 %4995  ;;  %v2229_v39 = vpop.f32.mrf.mxu2  ;;  %v5257_v52 = vmax.f32 %v8588_v62, %v5190_v42  ;;  %v5059_v46 = vadd.f32 %v10370_v37, %v4679_v44  ;;  %vm3047_vm5 = vmor %vm3045_vm4, %vm3046_vm3  ;;  %v6641_v37 = vld [vmem:[%s11692_s2 + $0x1a8] sm:$0xff]  ;;  %v6642_v34 = vld [vmem:[%s11692_s2 + $0x118] sm:$0xff] }
 0x32a   :  { %v3038_v60 = vsel %vm3035_vm2, %v3037_v15, %v3033_v51  ;;  %v3042_v4 = vsub.f32 1.0, %v3041_v0  ;;  %v5273_v22 = vmax.f32 %v8588_v62, %v5206_v5  ;;  %v5145_v10 = vadd.f32 %v10793_v55, %v5077_v38 }
 0x32b   :  { %v3565_v57 = vmul.f32 1.002, %v3038_v60  ;;  %6451 = vrcp.f32 %v11028_v20  ;;  %v3052_v27 = vor.u32 1.1754944e-38, %v3051_v25  ;;  %v5322_v56 = vmin.f32 %v8611_v29, %v5257_v52 }
 0x32c   :  { %v3043_v59 = vmul.f32 %v6446_v19, %v3042_v4  ;;  %v5338_v35 = vmin.f32 %v8611_v29, %v5273_v22  ;;  %v5078_v1 = vadd.f32 %v4996_v26, %v10204_v12  ;;  %v2230_v63 = vadd.f32 %v10785_v41, %v2229_v39  ;;  %v6450_v12 = vpop.eup %6449 }
 0x32d   :  { %v5920_v3 = vadd.f32 -0.001, %v3565_v57  ;;  %v5209_v48 = vadd.f32 %v6641_v37, %v5145_v10  ;;  %v5127_v54 = vadd.f32 %v10793_v55, %v5059_v46  ;;  %5387 = vst.msk [vmem:[%s11703_s13 + $0x110] sm:$0xff] %vm5352_vm8, %v5322_v56  ;;  %v11064_v2 = vadd.f32 1.0, %v6450_v12 }
 0x32e   :  { %v3044_v31 = vadd.f32 %v6446_v19, %v3043_v59  ;;  %5403 = vst.msk [vmem:[%s11703_s13 + $0x190] sm:$0xff] %vm5352_vm8, %v5338_v35  ;;  %v3066_v26 = vand.u32 2147483648, %v11028_v20  ;;  %v3064_v22 = vand.u32 2147483647, %v11028_v20  ;;  %vm3060_vm10 = vweird.f32 %v11028_v20 }
 0x32f   :  { %3694 = vst.msk [vmem:[%s11702_s12 + $0xf0] sm:$0xff] %vm3663_vm7, %v5920_v3  ;;  %5815 = vmatmul.msk.f32.gmra.mxu3 %vm511_vm0, %v8920_v7  ;;  %v5146_v7 = vadd.f32 %v10793_v55, %v5078_v1  ;;  %v5276_v13 = vmax.f32 %v8588_v62, %v5209_v48  ;;  %v5191_v51 = vadd.f32 %v6642_v34, %v5127_v54  ;;  %v4682_v25 = vpop.xlane.xlu0 %4681  ;;  %vm3075_vm13 = vweird.f32 %v11064_v2 }
 0x330   :  { %v3048_v23 = vsel %vm3047_vm5, %v6446_v19, %v3044_v31  ;;  %v5860_v19 = vmul.f32 -1.442695, %v2230_v63  ;;  %v4990_v9 = vpop.xlane.xlu2 %4989  ;;  %v5060_v59 = vadd.f32 %v10442_v45, %v4682_v25  ;;  %v3067_v56 = vor.u32 1.1754944e-38, %v3066_v26  ;;  %v12115_v26 = vld [vmem:[#allocation14_spill] sm:$0xff] }
 0x331   :  { %v3053_v50 = vsel %vm3050_vm6, %v3052_v27, %v3048_v23  ;;  %v6452_v15 = vpop.eup %6451  ;;  %v5210_v44 = vadd.f32 %v6643_v11, %v5146_v7  ;;  %v5005_v60 = vpop.xlane.xlu1 %5004  ;;  %v5341_v39 = vmin.f32 %v8611_v29, %v5276_v13  ;;  %v5258_v57 = vmax.f32 %v8588_v62, %v5191_v51  ;;  %v6645_v23 = vld [vmem:[%s11692_s2 + $0x1a0] sm:$0xff] }
 0x332   :  { %v3566_v0 = vmul.f32 1.002, %v3053_v50  ;;  %v3056_v5 = vmul.f32 %v6452_v15, %v11028_v20  ;;  %6453 = vpow2.f32 %v5860_v19  ;;  %v2232_v4 = vpop.f32.mrf.mxu2  ;;  %v5076_v47 = vadd.f32 %v4990_v9, %v10055_v40  ;;  %v6644_v20 = vld [vmem:[%s11692_s2 + $0x120] sm:$0xff]  ;;  %v6646_v50 = vld [vmem:[%s11692_s2 + $0x1c8] sm:$0xff] }
 0x333   :  { %6455 = vrcp.f32 %v11064_v2  ;;  %v5277_v38 = vmax.f32 %v8588_v62, %v5210_v44  ;;  %vm3061_vm9 = vweird.f32 %v6452_v15  ;;  %5406 = vst.msk [vmem:[%s11703_s13 + $0x1a8] sm:$0xff] %vm5352_vm8, %v5341_v39  ;;  %v5323_v35 = vmin.f32 %v8611_v29, %v5258_v57 }
 0x334   :  { %v5921_v61 = vadd.f32 -0.001, %v3566_v0  ;;  %v3057_v42 = vsub.f32 1.0, %v3056_v5  ;;  %v5081_v52 = vadd.f32 %v5005_v60, %v10419_v28  ;;  %v5128_v45 = vadd.f32 %v10793_v55, %v5060_v59  ;;  %vm3062_vm11 = vmor %vm3060_vm10, %vm3061_vm9  ;;  %v12117_v59 = vld [vmem:[#allocation37_spill] sm:$0xff] }
 0x335   :  { %v5342_v31 = vmin.f32 %v8611_v29, %v5277_v38  ;;  %v5144_v40 = vadd.f32 %v10793_v55, %v5076_v47  ;;  %v2233_v10 = vadd.f32 %v10785_v41, %v2232_v4  ;;  %5388 = vst.msk [vmem:[%s11703_s13 + $0x118] sm:$0xff] %vm5352_vm8, %v5323_v35  ;;  %vm3065_vm12 = vcmp.eq.f32.partialorder %v3064_v22, 8.507059e+37  ;;  %v12116_v22 = vld [vmem:[#allocation44_spill] sm:$0xff] }
 0x336   :  { %3695 = vst.msk [vmem:[%s11702_s12 + $0xf8] sm:$0xff] %vm3663_vm7, %v5921_v61  ;;  %v3058_v3 = vmul.f32 %v6452_v15, %v3057_v42  ;;  %v5192_v63 = vadd.f32 %v6644_v20, %v5128_v45  ;;  %v3079_v25 = vand.u32 2147483647, %v11064_v2  ;;  %v3081_v11 = vand.u32 2147483648, %v11064_v2 }
 0x337   :  { %5816 = vmatmul.msk.f32.gmra.mxu3 %vm511_vm0, %v9003_v33  ;;  %v5149_v33 = vadd.f32 %v10793_v55, %v5081_v52  ;;  %5407 = vst.msk [vmem:[%s11703_s13 + $0x1b0] sm:$0xff] %vm5352_vm8, %v5342_v31  ;;  %v5208_v37 = vadd.f32 %v6645_v23, %v5144_v40  ;;  %v5861_v48 = vmul.f32 -1.442695, %v2233_v10  ;;  %v5002_v0 = vpop.xlane.xlu0 %5001 }
 0x338   :  { %v6454_v46 = vpop.eup %6453  ;;  %v3059_v27 = vadd.f32 %v6452_v15, %v3058_v3  ;;  %v4999_v13 = vpop.xlane.xlu2 %4998  ;;  %v5080_v38 = vadd.f32 %v5002_v0, %v12116_v22  ;;  %vm11139_vm15 = vcmp.eq.f32.partialorder %v3079_v25, 8.507059e+37  ;;  %v3082_v40 = vor.u32 1.1754944e-38, %v3081_v11 }
 0x339   :  { %v6456_v28 = vpop.eup %6455  ;;  %v11109_v1 = vadd.f32 1.0, %v6454_v46  ;;  %v5213_v7 = vadd.f32 %v6646_v50, %v5149_v33  ;;  %v4685_v9 = vpop.xlane.xlu1 %4684  ;;  %v5275_v44 = vmax.f32 %v8588_v62, %v5208_v37  ;;  %v5079_v47 = vadd.f32 %v4999_v13, %v12117_v59  ;;  %v6648_v37 = vld [vmem:[%s11692_s2 + $0x1b8] sm:$0xff]  ;;  %v6649_v13 = vld [vmem:[%s11692_s2 + $0x128] sm:$0xff] }
 0x33a   :  { %v3063_v54 = vsel %vm3062_vm11, %v6452_v15, %v3059_v27  ;;  %v3071_v12 = vmul.f32 %v6456_v28, %v11064_v2  ;;  %v5259_v15 = vmax.f32 %v8588_v62, %v5192_v63  ;;  %v2235_v5 = vpop.f32.mrf.mxu2  ;;  %vm3076_vm14 = vweird.f32 %v6456_v28  ;;  %v6650_v59 = vld [vmem:[%s11692_s2 + $0x1d8] sm:$0xff] }
 0x33b   :  { %v3068_v19 = vsel %vm3065_vm12, %v3067_v56, %v3063_v54  ;;  %6457 = vrcp.f32 %v11109_v1  ;;  %v5280_v60 = vmax.f32 %v8588_v62, %v5213_v7  ;;  %v5340_v39 = vmin.f32 %v8611_v29, %v5275_v44  ;;  %vm3077_vm1 = vmor %vm3075_vm13, %vm3076_vm14 }
 0x33c   :  { %v3567_v34 = vmul.f32 1.002, %v3068_v19  ;;  %v3072_v51 = vsub.f32 1.0, %v3071_v12  ;;  %6459 = vpow2.f32 %v5861_v48  ;;  %v5324_v42 = vmin.f32 %v8611_v29, %v5259_v15 }
 0x33d   :  { %v5345_v57 = vmin.f32 %v8611_v29, %v5280_v60  ;;  %v5061_v52 = vadd.f32 %v10695_v6, %v4685_v9  ;;  %v2236_v31 = vadd.f32 %v10785_v41, %v2235_v5  ;;  %v3094_v10 = vand.u32 2147483647, %v11109_v1  ;;  %5405 = vst.msk [vmem:[%s11703_s13 + $0x1a0] sm:$0xff] %vm5352_vm8, %v5340_v39  ;;  %v12120_v60 = vld [vmem:[#allocation18_spill] sm:$0xff] }
 0x33e   :  { %v5922_v4 = vadd.f32 -0.001, %v3567_v34  ;;  %v3073_v61 = vmul.f32 %v6456_v28, %v3072_v51  ;;  %5389 = vst.msk [vmem:[%s11703_s13 + $0x120] sm:$0xff] %vm5352_vm8, %v5324_v42  ;;  %v5148_v46 = vadd.f32 %v10793_v55, %v5080_v38  ;;  %v5147_v27 = vadd.f32 %v10793_v55, %v5079_v47 }
 0x33f   :  { %5817 = vmatmul.msk.f32.gmra.mxu3 %vm511_vm0, %v12115_v26  ;;  %v3096_v33 = vand.u32 2147483648, %v11109_v1  ;;  %v5129_v2 = vadd.f32 %v10793_v55, %v5061_v52  ;;  %5410 = vst.msk [vmem:[%s11703_s13 + $0x1c8] sm:$0xff] %vm5352_vm8, %v5345_v57  ;;  %v5862_v54 = vmul.f32 -1.442695, %v2236_v31  ;;  %v5011_v12 = vpop.xlane.xlu0 %5010  ;;  %vm3090_vm3 = vweird.f32 %v11109_v1 }
 0x340   :  { %3696 = vst.msk [vmem:[%s11702_s12 + $0x100] sm:$0xff] %vm3663_vm7, %v5922_v4  ;;  %v3074_v3 = vadd.f32 %v6456_v28, %v3073_v61  ;;  %v5211_v48 = vadd.f32 %v6648_v37, %v5147_v27  ;;  %v4688_v50 = vpop.xlane.xlu2 %4687  ;;  %v5083_v9 = vadd.f32 %v5011_v12, %v10537_v18  ;;  %vm3095_vm5 = vcmp.eq.f32.partialorder %v3094_v10, 8.507059e+37  ;;  %v6651_v27 = vld [vmem:[%s11692_s2 + $0x130] sm:$0xff] }
 0x341   :  { %v6458_v45 = vpop.eup %6457  ;;  %v5193_v34 = vadd.f32 %v6649_v13, %v5129_v2  ;;  %6461 = vpow2.f32 %v5862_v54  ;;  %v5014_v44 = vpop.xlane.xlu1 %5013  ;;  %v5062_v39 = vadd.f32 %v10551_v16, %v4688_v50  ;;  %v3097_v57 = vor.u32 1.1754944e-38, %v3096_v33  ;;  %v6652_v2 = vld [vmem:[%s11692_s2 + $0x1e0] sm:$0xff]  ;;  %v12121_v37 = vld [vmem:[#allocation20_spill] sm:$0xff] }
 0x342   :  { %v3078_v56 = vsel %vm3077_vm1, %v6456_v28, %v3074_v3  ;;  %v3086_v6 = vmul.f32 %v6458_v45, %v11109_v1  ;;  %v6460_v20 = vpop.eup %6459  ;;  %v6647_v28 = vld [vmem:[%s11692_s2 + $0x1c0] sm:$0xff]  ;;  %v2238_v51 = vpop.f32.mrf.mxu2  ;;  %v5278_v15 = vmax.f32 %v8588_v62, %v5211_v48  ;;  %vm3091_vm2 = vweird.f32 %v6458_v45 }
 0x343   :  { %v3083_v63 = vsel %vm11139_vm15, %v3082_v40, %v3078_v56  ;;  %v5212_v23 = vadd.f32 %v6647_v28, %v5148_v46  ;;  %v11173_v0 = vadd.f32 1.0, %v6460_v20  ;;  %v5260_v42 = vmax.f32 %v8588_v62, %v5193_v34  ;;  %vm3092_vm4 = vmor %vm3090_vm3, %vm3091_vm2  ;;  %v12122_v34 = vld [vmem:[#allocation46_spill] sm:$0xff] }
 0x344   :  { %v3568_v7 = vmul.f32 1.002, %v3083_v63  ;;  %v3087_v19 = vsub.f32 1.0, %v3086_v6  ;;  %v5343_v61 = vmin.f32 %v8611_v29, %v5278_v15  ;;  %v5151_v26 = vadd.f32 %v10793_v55, %v5083_v9 }
 0x345   :  { %v5279_v25 = vmax.f32 %v8588_v62, %v5212_v23  ;;  %6463 = vrcp.f32 %v11173_v0  ;;  %v5084_v1 = vadd.f32 %v5014_v44, %v10584_v32  ;;  %v2239_v22 = vadd.f32 %v10785_v41, %v2238_v51 }
 0x346   :  { %v5923_v5 = vadd.f32 -0.001, %v3568_v7  ;;  %v3088_v11 = vmul.f32 %v6458_v45, %v3087_v19  ;;  %5408 = vst.msk [vmem:[%s11703_s13 + $0x1b8] sm:$0xff] %vm5352_vm8, %v5343_v61  ;;  %v5325_v16 = vmin.f32 %v8611_v29, %v5260_v42  ;;  %v5215_v47 = vadd.f32 %v6650_v59, %v5151_v26 }
 0x347   :  { %5818 = vmatmul.msk.f32.gmra.mxu3 %vm511_vm0, %v12120_v60  ;;  %v5344_v4 = vmin.f32 %v8611_v29, %v5279_v25  ;;  %v5130_v3 = vadd.f32 %v10793_v55, %v5062_v39  ;;  %v6462_v35 = vpop.eup %6461  ;;  %v5152_v32 = vadd.f32 %v10793_v55, %v5084_v1  ;;  %v5863_v31 = vmul.f32 -1.442695, %v2239_v22  ;;  %v4691_v63 = vpop.xlane.xlu0 %4690 }
 0x348   :  { %3697 = vst.msk [vmem:[%s11702_s12 + $0x108] sm:$0xff] %vm3663_vm7, %v5923_v5  ;;  %v3089_v18 = vadd.f32 %v6458_v45, %v3088_v11  ;;  %v11214_v10 = vadd.f32 1.0, %v6462_v35  ;;  %v5282_v46 = vmax.f32 %v8588_v62, %v5215_v47  ;;  %v5008_v28 = vpop.xlane.xlu2 %5007  ;;  %v3111_v54 = vand.u32 2147483648, %v11173_v0 }
 0x349   :  { %5409 = vst.msk [vmem:[%s11703_s13 + $0x1c0] sm:$0xff] %vm5352_vm8, %v5344_v4  ;;  %v5194_v56 = vadd.f32 %v6651_v27, %v5130_v3  ;;  %v5216_v20 = vadd.f32 %v6652_v2, %v5152_v32  ;;  %6465 = vpow2.f32 %v5863_v31  ;;  %v3109_v7 = vand.u32 2147483647, %v11173_v0  ;;  %v12123_v3 = vld [vmem:[#allocation25_spill] sm:$0xff] }
 0x34a   :  { %v3093_v38 = vsel %vm3092_vm4, %v6458_v45, %v3089_v18  ;;  %5390 = vst.msk [vmem:[%s11703_s13 + $0x128] sm:$0xff] %vm5352_vm8, %v5325_v16  ;;  %v2241_v6 = vpop.f32.mrf.mxu2  ;;  %6467 = vrcp.f32 %v11214_v10  ;;  %v5347_v12 = vmin.f32 %v8611_v29, %v5282_v46  ;;  %v5063_v13 = vadd.f32 %v10659_v8, %v4691_v63  ;;  %v4694_v18 = vpop.xlane.xlu1 %4693  ;;  %v6655_v2 = vld [vmem:[%s11692_s2 + $0x140] sm:$0xff] }
 0x34b   :  { %v3098_v52 = vsel %vm3095_vm5, %v3097_v57, %v3093_v38  ;;  %v6464_v45 = vpop.eup %6463  ;;  %v5261_v50 = vmax.f32 %v8588_v62, %v5194_v56  ;;  %v5283_v19 = vmax.f32 %v8588_v62, %v5216_v20  ;;  %v5082_v51 = vadd.f32 %v5008_v28, %v12122_v34  ;;  %v6654_v57 = vld [vmem:[%s11692_s2 + $0x1d0] sm:$0xff] }
 0x34c   :  { %v3569_v40 = vmul.f32 1.002, %v3098_v52  ;;  %v3101_v33 = vmul.f32 %v6464_v45, %v11173_v0  ;;  %vm3106_vm6 = vweird.f32 %v6464_v45  ;;  %5412 = vst.msk [vmem:[%s11703_s13 + $0x1d8] sm:$0xff] %vm5352_vm8, %v5347_v12  ;;  %v2242_v9 = vadd.f32 %v10785_v41, %v2241_v6 }
 0x34d   :  { %v5326_v15 = vmin.f32 %v8611_v29, %v5261_v50  ;;  %v5348_v5 = vmin.f32 %v8611_v29, %v5283_v19  ;;  %v5131_v11 = vadd.f32 %v10793_v55, %v5063_v13  ;;  %v5150_v44 = vadd.f32 %v10793_v55, %v5082_v51 }
 0x34e   :  { %v5924_v23 = vadd.f32 -0.001, %v3569_v40  ;;  %v3102_v48 = vsub.f32 1.0, %v3101_v33  ;;  %vm3105_vm9 = vweird.f32 %v11173_v0  ;;  %v3112_v4 = vor.u32 1.1754944e-38, %v3111_v54  ;;  %v6653_v0 = vld [vmem:[%s11692_s2 + $0x138] sm:$0xff] }
 0x34f   :  { %5819 = vmatmul.msk.f32.gmra.mxu3 %vm511_vm0, %v12121_v37  ;;  %v6466_v8 = vpop.eup %6465  ;;  %5391 = vst.msk [vmem:[%s11703_s13 + $0x130] sm:$0xff] %vm5352_vm8, %v5326_v15  ;;  %v5864_v61 = vmul.f32 -1.442695, %v2242_v9  ;;  %vm3107_vm10 = vmor %vm3105_vm9, %vm3106_vm6  ;;  %v5195_v39 = vadd.f32 %v6653_v0, %v5131_v11  ;;  %v5214_v1 = vadd.f32 %v6654_v57, %v5150_v44  ;;  %v5064_v22 = vadd.f32 %v10825_v49, %v4694_v18  ;;  %v12124_v37 = vld [vmem:[#allocation38_spill] sm:$0xff] }
 0x350   :  { %3698 = vst.msk [vmem:[%s11702_s12 + $0x110] sm:$0xff] %vm3663_vm7, %v5924_v23  ;;  %v3103_v25 = vmul.f32 %v6464_v45, %v3102_v48  ;;  %v6468_v42 = vpop.eup %6467  ;;  %v11257_v26 = vadd.f32 1.0, %v6466_v8  ;;  %vm3110_vm11 = vcmp.eq.f32.partialorder %v3109_v7, 8.507059e+37  ;;  %v3124_v32 = vand.u32 2147483647, %v11214_v10  ;;  %v4697_v28 = vpop.xlane.xlu2 %4696  ;;  %v6656_v44 = vld [vmem:[%s11692_s2 + $0x148] sm:$0xff] }
 0x351   :  { %5413 = vst.msk [vmem:[%s11703_s13 + $0x1e0] sm:$0xff] %vm5352_vm8, %v5348_v5  ;;  %v3116_v59 = vmul.f32 %v6468_v42, %v11214_v10  ;;  %6469 = vpow2.f32 %v5864_v61  ;;  %v5262_v31 = vmax.f32 %v8588_v62, %v5195_v39  ;;  %v3126_v49 = vand.u32 2147483648, %v11214_v10 }
 0x352   :  { %v3104_v60 = vadd.f32 %v6464_v45, %v3103_v25  ;;  %v2244_v38 = vpop.f32.mrf.mxu2  ;;  %6471 = vrcp.f32 %v11257_v26  ;;  %v5132_v40 = vadd.f32 %v10793_v55, %v5064_v22  ;;  %vm3121_vm12 = vweird.f32 %v6468_v42  ;;  %v12125_v25 = vld [vmem:[#allocation23_spill] sm:$0xff] }
 0x353   :  { %v3117_v52 = vsub.f32 1.0, %v3116_v59  ;;  %v2245_v46 = vadd.f32 %v10785_v41, %v2244_v38  ;;  %v5327_v6 = vmin.f32 %v8611_v29, %v5262_v31  ;;  %vm3120_vm13 = vweird.f32 %v11214_v10  ;;  %v4700_v57 = vpop.xlane.xlu0 %4699 }
 0x354   :  { %v3108_v16 = vsel %vm3107_vm10, %v6464_v45, %v3104_v60  ;;  %v5281_v45 = vmax.f32 %v8588_v62, %v5214_v1  ;;  %v5196_v20 = vadd.f32 %v6655_v2, %v5132_v40  ;;  %v5065_v48 = vadd.f32 %v12124_v37, %v4697_v28  ;;  %vm3122_vm14 = vmor %vm3120_vm13, %vm3121_vm12 }
 0x355   :  { %v3113_v47 = vsel %vm3110_vm11, %v3112_v4, %v3108_v16  ;;  %v3118_v56 = vmul.f32 %v6468_v42, %v3117_v52  ;;  %v5865_v63 = vmul.f32 -1.442695, %v2245_v46  ;;  %v3127_v12 = vor.u32 1.1754944e-38, %v3126_v49  ;;  %5392 = vst.msk [vmem:[%s11703_s13 + $0x138] sm:$0xff] %vm5352_vm8, %v5327_v6  ;;  %v11337_v49 = vld [vmem:[#allocation2] ss:$0 sm:$0xff] }
 0x356   :  { %v3570_v35 = vmul.f32 1.002, %v3113_v47  ;;  %v5346_v33 = vmin.f32 %v8611_v29, %v5281_v45  ;;  %v5263_v7 = vmax.f32 %v8588_v62, %v5196_v20  ;;  %vm3125_vm15 = vcmp.eq.f32.partialorder %v3124_v32, 8.507059e+37 }
 0x357   :  { %5820 = vmatmul.msk.f32.gmra.mxu3 %vm511_vm0, %v12123_v3  ;;  %v6470_v23 = vpop.eup %6469  ;;  %v3119_v41 = vadd.f32 %v6468_v42, %v3118_v56  ;;  %6473 = vpow2.f32 %v5865_v63  ;;  %v5133_v34 = vadd.f32 %v10793_v55, %v5065_v48  ;;  %v3141_v11 = vand.u32 2147483648, %v11257_v26  ;;  %v11311_v55 = vld [vmem:[%s11696_s6] ss:$0 sm:$0xff] }
 0x358   :  { %v5925_v27 = vadd.f32 -0.001, %v3570_v35  ;;  %v6472_v54 = vpop.eup %6471  ;;  %v11291_v50 = vadd.f32 1.0, %v6470_v23  ;;  %5411 = vst.msk [vmem:[%s11703_s13 + $0x1d0] sm:$0xff] %vm5352_vm8, %v5346_v33  ;;  %v5328_v5 = vmin.f32 %v8611_v29, %v5263_v7  ;;  %v3139_v18 = vand.u32 2147483647, %v11257_v26 }
 0x359   :  { %v3123_v13 = vsel %vm3122_vm14, %v6468_v42, %v3119_v41  ;;  %v3131_v10 = vmul.f32 %v6472_v54, %v11257_v26  ;;  %v5197_v8 = vadd.f32 %v6656_v44, %v5133_v34  ;;  %vm3136_vm1 = vweird.f32 %v6472_v54  ;;  %v6659_v33 = vld [vmem:[%s11692_s2 + $0x150] sm:$0xff] }
 0x35a   :  { %3699 = vst.msk [vmem:[%s11702_s12 + $0x118] sm:$0xff] %vm3663_vm7, %v5925_v27  ;;  %v2247_v19 = vpop.f32.mrf.mxu2  ;;  %v3128_v51 = vsel %vm3125_vm15, %v3127_v12, %v3123_v13  ;;  %6475 = vrcp.f32 %v11291_v50  ;;  %vm3135_vm2 = vweird.f32 %v11257_v26  ;;  %v5066_v38 = vadd.f32 %v10777_v17, %v4700_v57  ;;  %v12126_v17 = vld [vmem:[#allocation30_spill] sm:$0xff] }
 0x35b   :  { %v3571_v15 = vmul.f32 1.002, %v3128_v51  ;;  %v3132_v9 = vsub.f32 1.0, %v3131_v10  ;;  %v2248_v60 = vadd.f32 %v11311_v55, %v2247_v19  ;;  %5393 = vst.msk [vmem:[%s11703_s13 + $0x140] sm:$0xff] %vm5352_vm8, %v5328_v5  ;;  %v5264_v0 = vmax.f32 %v8588_v62, %v5197_v8  ;;  %vm3137_vm3 = vmor %vm3135_vm2, %vm3136_vm1  ;;  %v12127_v51 = vld [vmem:[#allocation43_spill] sm:$0xff] }
 0x35c   :  { %v3142_v59 = vor.u32 1.1754944e-38, %v3141_v11  ;;  %vm3140_vm4 = vcmp.eq.f32.partialorder %v3139_v18, 8.507059e+37  ;;  %v5134_v45 = vadd.f32 %v11337_v49, %v5066_v38  ;;  %v3154_v46 = vand.u32 2147483647, %v11291_v50 }
 0x35d   :  { %v5926_v4 = vadd.f32 -0.001, %v3571_v15  ;;  %v3133_v61 = vmul.f32 %v6472_v54, %v3132_v9  ;;  %v6474_v42 = vpop.eup %6473  ;;  %v5866_v39 = vmul.f32 -1.442695, %v2248_v60  ;;  %v5329_v47 = vmin.f32 %v8611_v29, %v5264_v0  ;;  %v6660_v9 = vld [vmem:[%s11692_s2 + $0x158] sm:$0xff] }
 0x35e   :  { %v11325_v22 = vadd.f32 1.0, %v6474_v42  ;;  %v3156_v27 = vand.u32 2147483648, %v11291_v50  ;;  %v5198_v2 = vadd.f32 %v6659_v33, %v5134_v45  ;;  %vm3150_vm6 = vweird.f32 %v11291_v50 }
 0x35f   :  { %5821 = vmatmul.msk.f32.gmra.mxu3 %vm511_vm0, %v12125_v25  ;;  %3700 = vst.msk [vmem:[%s11702_s12 + $0x120] sm:$0xff] %vm3663_vm7, %v5926_v4  ;;  %v3134_v1 = vadd.f32 %v6472_v54, %v3133_v61  ;;  %6477 = vpow2.f32 %v5866_v39  ;;  %vm3155_vm10 = vcmp.eq.f32.partialorder %v3154_v46, 8.507059e+37  ;;  %v6661_v46 = vld [vmem:[%s11692_s2 + $0x160] sm:$0xff] }
 0x360   :  { %v6476_v16 = vpop.eup %6475  ;;  %6479 = vrcp.f32 %v11325_v22  ;;  %5394 = vst.msk [vmem:[%s11703_s13 + $0x148] sm:$0xff] %vm5352_vm8, %v5329_v47  ;;  %v3157_v12 = vor.u32 1.1754944e-38, %v3156_v27  ;;  %v3171_v15 = vand.u32 2147483648, %v11325_v22  ;;  %v3169_v8 = vand.u32 2147483647, %v11325_v22 }
 0x361   :  { %v3138_v35 = vsel %vm3137_vm3, %v6472_v54, %v3134_v1  ;;  %v3146_v52 = vmul.f32 %v6476_v16, %v11291_v50  ;;  %vm3151_vm5 = vweird.f32 %v6476_v16  ;;  %v5265_v54 = vmax.f32 %v8588_v62, %v5198_v2 }
 0x362   :  { %v2250_v3 = vpop.f32.mrf.mxu2  ;;  %v3143_v32 = vsel %vm3140_vm4, %v3142_v59, %v3138_v35  ;;  %vm3152_vm9 = vmor %vm3150_vm6, %vm3151_vm5  ;;  %vm3165_vm12 = vweird.f32 %v11325_v22  ;;  %v3172_v38 = vor.u32 1.1754944e-38, %v3171_v15  ;;  %vm3170_vm14 = vcmp.eq.f32.partialorder %v3169_v8, 8.507059e+37 }
 0x363   :  { %v3572_v26 = vmul.f32 1.002, %v3143_v32  ;;  %v3147_v31 = vsub.f32 1.0, %v3146_v52  ;;  %v2251_v40 = vadd.f32 %v11311_v55, %v2250_v3  ;;  %v5330_v34 = vmin.f32 %v8611_v29, %v5265_v54 }
 0x365   :  { %v5927_v56 = vadd.f32 -0.001, %v3572_v26  ;;  %v3148_v6 = vmul.f32 %v6476_v16, %v3147_v31  ;;  %v5867_v20 = vmul.f32 -1.442695, %v2251_v40  ;;  %v6478_v28 = vpop.eup %6477  ;;  %5395 = vst.msk [vmem:[%s11703_s13 + $0x150] sm:$0xff] %vm5352_vm8, %v5330_v34 }
 0x366   :  { %v6480_v41 = vpop.eup %6479  ;;  %v11352_v48 = vadd.f32 1.0, %v6478_v28 }
 0x367   :  { %5822 = vmatmul.msk.f32.gmra.mxu3 %vm511_vm0, %v12126_v17  ;;  %3701 = vst.msk [vmem:[%s11702_s12 + $0x128] sm:$0xff] %vm3663_vm7, %v5927_v56  ;;  %v3149_v37 = vadd.f32 %v6476_v16, %v3148_v6  ;;  %6481 = vpow2.f32 %v5867_v20  ;;  %v3161_v7 = vmul.f32 %v6480_v41, %v11325_v22  ;;  %vm3166_vm11 = vweird.f32 %v6480_v41  ;;  %v12128_v17 = vld [vmem:[#allocation33_spill] sm:$0xff] }
 0x368   :  { %6483 = vrcp.f32 %v11352_v48  ;;  %vm3167_vm13 = vmor %vm3165_vm12, %vm3166_vm11  ;;  %v3184_v26 = vand.u32 2147483647, %v11352_v48  ;;  %v3186_v31 = vand.u32 2147483648, %v11352_v48  ;;  %vm3180_vm1 = vweird.f32 %v11352_v48 }
 0x369   :  { %v3153_v19 = vsel %vm3152_vm9, %v6476_v16, %v3149_v37  ;;  %v3162_v10 = vsub.f32 1.0, %v3161_v7 }
 0x36a   :  { %v4703_v63 = vpop.xlane.xlu1 %4702  ;;  %v3158_v13 = vsel %vm3155_vm10, %v3157_v12, %v3153_v19  ;;  %vm3185_vm3 = vcmp.eq.f32.partialorder %v3184_v26, 8.507059e+37 }
 0x36b   :  { %v5067_v23 = vadd.f32 %v10881_v14, %v4703_v63  ;;  %v2253_v14 = vpop.f32.mrf.mxu2  ;;  %v3573_v25 = vmul.f32 1.002, %v3158_v13  ;;  %v3163_v44 = vmul.f32 %v6480_v41, %v3162_v10  ;;  %v6662_v13 = vld [vmem:[%s11692_s2 + $0x168] sm:$0xff] }
 0x36c   :  { %v2254_v11 = vadd.f32 %v11311_v55, %v2253_v14 }
 0x36d   :  { %v5135_v50 = vadd.f32 %v11337_v49, %v5067_v23  ;;  %v6482_v60 = vpop.eup %6481  ;;  %v5928_v4 = vadd.f32 -0.001, %v3573_v25  ;;  %v3164_v0 = vadd.f32 %v6480_v41, %v3163_v44 }
 0x36e   :  { %v5868_v18 = vmul.f32 -1.442695, %v2254_v11  ;;  %v11374_v39 = vadd.f32 1.0, %v6482_v60  ;;  %v6484_v1 = vpop.eup %6483 }
 0x36f   :  { %5823 = vmatmul.msk.f32.gmra.mxu3 %vm511_vm0, %v12127_v51  ;;  %v5199_v5 = vadd.f32 %v6660_v9, %v5135_v50  ;;  %3702 = vst.msk [vmem:[%s11702_s12 + $0x130] sm:$0xff] %vm3663_vm7, %v5928_v4  ;;  %v3168_v59 = vsel %vm3167_vm13, %v6480_v41, %v3164_v0  ;;  %v3176_v47 = vmul.f32 %v6484_v1, %v11352_v48  ;;  %vm3181_vm15 = vweird.f32 %v6484_v1  ;;  %v12129_v51 = vld [vmem:[#allocation40_spill] sm:$0xff] }
 0x370   :  { %6485 = vpow2.f32 %v5868_v18  ;;  %v3173_v3 = vsel %vm3170_vm14, %v3172_v38, %v3168_v59  ;;  %vm3182_vm2 = vmor %vm3180_vm1, %vm3181_vm15  ;;  %v3187_v41 = vor.u32 1.1754944e-38, %v3186_v31  ;;  %v3201_v19 = vand.u32 2147483648, %v11374_v39  ;;  %v6664_v31 = vld [vmem:[%s11692_s2 + $0x170] sm:$0xff] }
 0x371   :  { %v5266_v61 = vmax.f32 %v8588_v62, %v5199_v5  ;;  %v4706_v42 = vpop.xlane.xlu2 %4705  ;;  %6487 = vrcp.f32 %v11374_v39  ;;  %v3177_v35 = vsub.f32 1.0, %v3176_v47  ;;  %v3199_v15 = vand.u32 2147483647, %v11374_v39 }
 0x372   :  { %v5068_v57 = vadd.f32 %v10879_v58, %v4706_v42  ;;  %v3574_v58 = vmul.f32 1.002, %v3173_v3  ;;  %vm3195_vm5 = vweird.f32 %v11374_v39  ;;  %v3202_v0 = vor.u32 1.1754944e-38, %v3201_v19 }
 0x373   :  { %v5331_v16 = vmin.f32 %v8611_v29, %v5266_v61  ;;  %v2256_v22 = vpop.f32.mrf.mxu2  ;;  %v3178_v40 = vmul.f32 %v6484_v1, %v3177_v35  ;;  %v4709_v6 = vpop.xlane.xlu0 %4708  ;;  %vm3200_vm6 = vcmp.eq.f32.partialorder %v3199_v15, 8.507059e+37 }
 0x374   :  { %v5136_v52 = vadd.f32 %v11337_v49, %v5068_v57  ;;  %v2257_v32 = vadd.f32 %v11311_v55, %v2256_v22  ;;  %v5929_v45 = vadd.f32 -0.001, %v3574_v58  ;;  %v5069_v2 = vadd.f32 %v10840_v21, %v4709_v6 }
 0x375   :  { %5396 = vst.msk [vmem:[%s11703_s13 + $0x158] sm:$0xff] %vm5352_vm8, %v5331_v16  ;;  %v3179_v63 = vadd.f32 %v6484_v1, %v3178_v40 }
 0x376   :  { %v5200_v27 = vadd.f32 %v6661_v46, %v5136_v52  ;;  %v5869_v56 = vmul.f32 -1.442695, %v2257_v32  ;;  %v6486_v33 = vpop.eup %6485  ;;  %3703 = vst.msk [vmem:[%s11702_s12 + $0x138] sm:$0xff] %vm3663_vm7, %v5929_v45  ;;  %v5137_v48 = vadd.f32 %v11337_v49, %v5069_v2 }
 0x377   :  { %5824 = vmatmul.msk.f32.gmra.mxu3 %vm511_vm0, %v12128_v17  ;;  %v6488_v20 = vpop.eup %6487  ;;  %v11403_v28 = vadd.f32 1.0, %v6486_v33  ;;  %v3183_v21 = vsel %vm3182_vm2, %v6484_v1, %v3179_v63  ;;  %v6663_v17 = vld [vmem:[%s11692_s2 + $0x180] sm:$0xff] }
 0x378   :  { %v5267_v23 = vmax.f32 %v8588_v62, %v5200_v27  ;;  %6489 = vpow2.f32 %v5869_v56  ;;  %v3191_v37 = vmul.f32 %v6488_v20, %v11374_v39  ;;  %v3188_v12 = vsel %vm3185_vm3, %v3187_v41, %v3183_v21  ;;  %v12130_v41 = vld [vmem:[#allocation51_spill] sm:$0xff] }
 0x379   :  { %6491 = vrcp.f32 %v11403_v28  ;;  %v3575_v14 = vmul.f32 1.002, %v3188_v12  ;;  %v5201_v10 = vadd.f32 %v6662_v13, %v5137_v48  ;;  %vm3196_vm4 = vweird.f32 %v6488_v20 }
 0x37a   :  { %v3192_v7 = vsub.f32 1.0, %v3191_v37  ;;  %v5332_v50 = vmin.f32 %v8611_v29, %v5267_v23  ;;  %v3216_v58 = vand.u32 2147483648, %v11403_v28  ;;  %vm3210_vm10 = vweird.f32 %v11403_v28 }
 0x37b   :  { %v2259_v54 = vpop.f32.mrf.mxu2  ;;  %v5930_v5 = vadd.f32 -0.001, %v3575_v14  ;;  %v5268_v11 = vmax.f32 %v8588_v62, %v5201_v10 }
 0x37c   :  { %v2260_v34 = vadd.f32 %v11311_v55, %v2259_v54  ;;  %v3193_v25 = vmul.f32 %v6488_v20, %v3192_v7  ;;  %5397 = vst.msk [vmem:[%s11703_s13 + $0x160] sm:$0xff] %vm5352_vm8, %v5332_v50  ;;  %v3217_v23 = vor.u32 1.1754944e-38, %v3216_v58 }
 0x37d   :  { %3704 = vst.msk [vmem:[%s11702_s12 + $0x140] sm:$0xff] %vm3663_vm7, %v5930_v5  ;;  %v5333_v57 = vmin.f32 %v8611_v29, %v5268_v11  ;;  %v6665_v5 = vld [vmem:[%s11692_s2 + $0x1f0] sm:$0xff] }
 0x37e   :  { %v6490_v9 = vpop.eup %6489  ;;  %v5870_v44 = vmul.f32 -1.442695, %v2260_v34  ;;  %v3194_v60 = vadd.f32 %v6488_v20, %v3193_v25 }
 0x37f   :  { %5825 = vmatmul.msk.f32.gmra.mxu3 %vm511_vm0, %v12129_v51  ;;  %v11425_v4 = vadd.f32 1.0, %v6490_v9  ;;  %v6492_v42 = vpop.eup %6491  ;;  %vm3197_vm0 = vmor %vm3195_vm5, %vm3196_vm4  ;;  %5398 = vst.msk [vmem:[%s11703_s13 + $0x168] sm:$0xff] %vm5352_vm8, %v5333_v57 }
 0x380   :  { %v4718_v8 = vpop.xlane.xlu0 %4717  ;;  %6493 = vpow2.f32 %v5870_v44  ;;  %v3198_v39 = vsel %vm3197_vm0, %v6488_v20, %v3194_v60  ;;  %v3206_v38 = vmul.f32 %v6492_v42, %v11403_v28  ;;  %vm3211_vm9 = vweird.f32 %v6492_v42 }
 0x381   :  { %v5072_v61 = vadd.f32 %v10924_v43, %v4718_v8  ;;  %6495 = vrcp.f32 %v11425_v4  ;;  %v3203_v43 = vsel %vm3200_vm6, %v3202_v0, %v3198_v39  ;;  %vm3212_vm11 = vmor %vm3210_vm10, %vm3211_vm9  ;;  %v3231_v7 = vand.u32 2147483648, %v11425_v4  ;;  %v6666_v39 = vld [vmem:[%s11692_s2 + $0x178] sm:$0xff] }
 0x382   :  { %v4712_v18 = vpop.xlane.xlu1 %4711  ;;  %v3576_v59 = vmul.f32 1.002, %v3203_v43  ;;  %v3207_v47 = vsub.f32 1.0, %v3206_v38  ;;  %v3229_v13 = vand.u32 2147483647, %v11425_v4  ;;  %vm3225_vm14 = vweird.f32 %v11425_v4 }
 0x383   :  { %v5070_v1 = vadd.f32 %v10955_v36, %v4712_v18  ;;  %v2262_v16 = vpop.f32.mrf.mxu2  ;;  %v5140_v22 = vadd.f32 %v11337_v49, %v5072_v61  ;;  %v3214_v36 = vand.u32 2147483647, %v11403_v28 }
 0x384   :  { %v2263_v35 = vadd.f32 %v11311_v55, %v2262_v16  ;;  %v5931_v52 = vadd.f32 -0.001, %v3576_v59  ;;  %v3208_v32 = vmul.f32 %v6492_v42, %v3207_v47  ;;  %vm3230_vm1 = vcmp.eq.f32.partialorder %v3229_v13, 8.507059e+37 }
 0x385   :  { %v5138_v3 = vadd.f32 %v11337_v49, %v5070_v1  ;;  %v5204_v26 = vadd.f32 %v6663_v17, %v5140_v22  ;;  %vm3215_vm12 = vcmp.eq.f32.partialorder %v3214_v36, 8.507059e+37 }
 0x386   :  { %v6494_v40 = vpop.eup %6493  ;;  %v5871_v46 = vmul.f32 -1.442695, %v2263_v35  ;;  %3705 = vst.msk [vmem:[%s11702_s12 + $0x148] sm:$0xff] %vm3663_vm7, %v5931_v52  ;;  %v3209_v6 = vadd.f32 %v6492_v42, %v3208_v32  ;;  %v4715_v63 = vpop.xlane.xlu2 %4714  ;;  %v6667_v32 = vld [vmem:[%s11692_s2 + $0x188] sm:$0xff] }
 0x387   :  { %v5202_v45 = vadd.f32 %v6664_v31, %v5138_v3  ;;  %v6496_v56 = vpop.eup %6495  ;;  %v11457_v33 = vadd.f32 1.0, %v6494_v40  ;;  %v5271_v2 = vmax.f32 %v8588_v62, %v5204_v26  ;;  %v5071_v25 = vadd.f32 %v10914_v24, %v4715_v63 }
 0x388   :  { %v5020_v27 = vpop.xlane.xlu0 %5019  ;;  %v3221_v28 = vmul.f32 %v6496_v56, %v11425_v4  ;;  %6497 = vpow2.f32 %v5871_v46  ;;  %v3213_v21 = vsel %vm3212_vm11, %v6492_v42, %v3209_v6  ;;  %vm3226_vm13 = vweird.f32 %v6496_v56 }
 0x389   :  { %v5269_v20 = vmax.f32 %v8588_v62, %v5202_v45  ;;  %v5086_v37 = vadd.f32 %v5020_v27, %v12130_v41  ;;  %6499 = vrcp.f32 %v11457_v33  ;;  %v3218_v54 = vsel %vm3215_vm12, %v3217_v23, %v3213_v21  ;;  %vm3227_vm15 = vmor %vm3225_vm14, %vm3226_vm13  ;;  %v12131_v45 = vld [vmem:[#allocation35_spill] sm:$0xff] }
 0x38a   :  { %v4721_v48 = vpop.xlane.xlu1 %4720  ;;  %v3222_v12 = vsub.f32 1.0, %v3221_v28  ;;  %v5336_v50 = vmin.f32 %v8611_v29, %v5271_v2  ;;  %v3577_v19 = vmul.f32 1.002, %v3218_v54  ;;  %v3232_v24 = vor.u32 1.1754944e-38, %v3231_v7  ;;  %v6668_v21 = vld [vmem:[%s11692_s2 + $0x1e8] sm:$0xff] }
 0x38b   :  { %v2265_v14 = vpop.f32.mrf.mxu2  ;;  %v5334_v10 = vmin.f32 %v8611_v29, %v5269_v20  ;;  %v5154_v34 = vadd.f32 %v11337_v49, %v5086_v37  ;;  %v5073_v15 = vadd.f32 %v10993_v30, %v4721_v48  ;;  %v5139_v30 = vadd.f32 %v11337_v49, %v5071_v25 }
 0x38c   :  { %v3223_v51 = vmul.f32 %v6496_v56, %v3222_v12  ;;  %5401 = vst.msk [vmem:[%s11703_s13 + $0x180] sm:$0xff] %vm5352_vm8, %v5336_v50  ;;  %v5932_v9 = vadd.f32 -0.001, %v3577_v19  ;;  %v2266_v44 = vadd.f32 %v11311_v55, %v2265_v14  ;;  %v3244_v22 = vand.u32 2147483647, %v11457_v33 }
 0x38d   :  { %5399 = vst.msk [vmem:[%s11703_s13 + $0x170] sm:$0xff] %vm5352_vm8, %v5334_v10  ;;  %v5218_v11 = vadd.f32 %v6665_v5, %v5154_v34  ;;  %v5141_v0 = vadd.f32 %v11337_v49, %v5073_v15  ;;  %v5203_v38 = vadd.f32 %v6666_v39, %v5139_v30  ;;  %v3246_v35 = vand.u32 2147483648, %v11457_v33 }
 0x38e   :  { %v6498_v8 = vpop.eup %6497  ;;  %v3224_v60 = vadd.f32 %v6496_v56, %v3223_v51  ;;  %3706 = vst.msk [vmem:[%s11702_s12 + $0x150] sm:$0xff] %vm3663_vm7, %v5932_v9  ;;  %v5872_v57 = vmul.f32 -1.442695, %v2266_v44  ;;  %v5017_v16 = vpop.xlane.xlu2 %5016  ;;  %vm3240_vm3 = vweird.f32 %v11457_v33  ;;  %vm3245_vm5 = vcmp.eq.f32.partialorder %v3244_v22, 8.507059e+37 }
 0x38f   :  { %v6500_v61 = vpop.eup %6499  ;;  %v11491_v18 = vadd.f32 1.0, %v6498_v8  ;;  %v5285_v42 = vmax.f32 %v8588_v62, %v5218_v11  ;;  %v5270_v52 = vmax.f32 %v8588_v62, %v5203_v38  ;;  %v5205_v17 = vadd.f32 %v6667_v32, %v5141_v0 }
 0x390   :  { %v3228_v1 = vsel %vm3227_vm15, %v6496_v56, %v3224_v60  ;;  %v3236_v4 = vmul.f32 %v6500_v61, %v11457_v33  ;;  %vm3241_vm2 = vweird.f32 %v6500_v61  ;;  %v5085_v40 = vadd.f32 %v5017_v16, %v12131_v45 }
 0x391   :  { %v3233_v43 = vsel %vm3230_vm1, %v3232_v24, %v3228_v1  ;;  %6501 = vrcp.f32 %v11491_v18  ;;  %v5350_v3 = vmin.f32 %v8611_v29, %v5285_v42  ;;  %v5335_v46 = vmin.f32 %v8611_v29, %v5270_v52  ;;  %vm3242_vm4 = vmor %vm3240_vm3, %vm3241_vm2 }
 0x392   :  { %v3578_v59 = vmul.f32 1.002, %v3233_v43  ;;  %v3237_v47 = vsub.f32 1.0, %v3236_v4  ;;  %v5023_v36 = vpop.xlane.xlu1 %5022  ;;  %v2274_v58 = vpop.f32.mrf.mxu3  ;;  %6503 = vpow2.f32 %v5872_v57  ;;  %v5272_v27 = vmax.f32 %v8588_v62, %v5205_v17 }
 0x393   :  { %5415 = vst.msk [vmem:[%s11703_s13 + $0x1f0] sm:$0xff] %vm5352_vm8, %v5350_v3  ;;  %v5087_v56 = vadd.f32 %v5023_v36, %v10771_v53  ;;  %v2275_v6 = vadd.f32 %v11311_v55, %v2274_v58  ;;  %v5153_v20 = vadd.f32 %v11337_v49, %v5085_v40  ;;  %v3247_v23 = vor.u32 1.1754944e-38, %v3246_v35  ;;  %v2268_v37 = vpop.f32.mrf.mxu2 }
 0x394   :  { %v5933_v26 = vadd.f32 -0.001, %v3578_v59  ;;  %v3238_v31 = vmul.f32 %v6500_v61, %v3237_v47  ;;  %5400 = vst.msk [vmem:[%s11703_s13 + $0x178] sm:$0xff] %vm5352_vm8, %v5335_v46  ;;  %v5337_v53 = vmin.f32 %v8611_v29, %v5272_v27  ;;  %v2269_v14 = vadd.f32 %v11311_v55, %v2268_v37 }
 0x395   :  { %v5155_v28 = vadd.f32 %v11337_v49, %v5087_v56  ;;  %v5875_v41 = vmul.f32 -1.442695, %v2275_v6  ;;  %v5217_v54 = vadd.f32 %v6668_v21, %v5153_v20  ;;  %v6669_v49 = vld [vmem:[%s11692_s2 + $0x1f8] sm:$0xff]  ;;  %v3259_v51 = vand.u32 2147483647, %v11491_v18 }
 0x396   :  { %3707 = vst.msk [vmem:[%s11702_s12 + $0x158] sm:$0xff] %vm3663_vm7, %v5933_v26  ;;  %v3239_v2 = vadd.f32 %v6500_v61, %v3238_v31  ;;  %v3261_v25 = vand.u32 2147483648, %v11491_v18  ;;  %v5873_v9 = vmul.f32 -1.442695, %v2269_v14  ;;  %vm3255_vm6 = vweird.f32 %v11491_v18 }
 0x397   :  { %v6502_v63 = vpop.eup %6501  ;;  %5402 = vst.msk [vmem:[%s11703_s13 + $0x188] sm:$0xff] %vm5352_vm8, %v5337_v53  ;;  %v5219_v50 = vadd.f32 %v6669_v49, %v5155_v28  ;;  %6505 = vpow2.f32 %v5875_v41  ;;  %v5284_v34 = vmax.f32 %v8588_v62, %v5217_v54  ;;  %vm3260_vm10 = vcmp.eq.f32.partialorder %v3259_v51, 8.507059e+37 }
 0x398   :  { %v3243_v48 = vsel %vm3242_vm4, %v6500_v61, %v3239_v2  ;;  %v3251_v33 = vmul.f32 %v6502_v63, %v11491_v18  ;;  %v6504_v12 = vpop.eup %6503  ;;  %vm3256_vm0 = vweird.f32 %v6502_v63  ;;  %v3262_v61 = vor.u32 1.1754944e-38, %v3261_v25 }
 0x399   :  { %v3248_v7 = vsel %vm3245_vm5, %v3247_v23, %v3243_v48  ;;  %v2557_v10 = vadd.f32 1.0, %v6504_v12  ;;  %v5286_v15 = vmax.f32 %v8588_v62, %v5219_v50  ;;  %v5349_v8 = vmin.f32 %v8611_v29, %v5284_v34  ;;  %vm3257_vm9 = vmor %vm3255_vm6, %vm3256_vm0 }
 0x39a   :  { %v3579_v19 = vmul.f32 1.002, %v3248_v7  ;;  %v3252_v13 = vsub.f32 1.0, %v3251_v33  ;;  %v2277_v44 = vpop.f32.mrf.mxu3 }
 0x39b   :  { %6507 = vrcp.f32 %v2557_v10  ;;  %v5351_v60 = vmin.f32 %v8611_v29, %v5286_v15  ;;  %v2278_v62 = vadd.f32 %v11311_v55, %v2277_v44  ;;  %5414 = vst.msk [vmem:[%s11703_s13 + $0x1e8] sm:$0xff] %vm5352_vm8, %v5349_v8  ;;  %v2271_v57 = vpop.f32.mrf.mxu2  ;;  %v3276_v22 = vand.u32 2147483648, %v2557_v10 }
 0x39c   :  { %v5934_v5 = vadd.f32 -0.001, %v3579_v19  ;;  %v3253_v11 = vmul.f32 %v6502_v63, %v3252_v13  ;;  %6509 = vpow2.f32 %v5873_v9  ;;  %v2272_v16 = vadd.f32 %v11311_v55, %v2271_v57 }
 0x39d   :  { %v6506_v30 = vpop.eup %6505  ;;  %5416 = vst.msk [vmem:[%s11703_s13 + $0x1f8] sm:$0xff] %vm5352_vm8, %v5351_v60  ;;  %v5876_v18 = vmul.f32 -1.442695, %v2278_v62  ;;  %v3274_v35 = vand.u32 2147483647, %v2557_v10  ;;  %vm3270_vm11 = vweird.f32 %v2557_v10  ;;  %v3277_v45 = vor.u32 1.1754944e-38, %v3276_v22 }
 0x39e   :  { %3708 = vst.msk [vmem:[%s11702_s12 + $0x160] sm:$0xff] %vm3663_vm7, %v5934_v5  ;;  %v3254_v24 = vadd.f32 %v6502_v63, %v3253_v11  ;;  %v2560_v42 = vadd.f32 1.0, %v6506_v30  ;;  %v5874_v3 = vmul.f32 -1.442695, %v2272_v16 }
 0x39f   :  { %vm3275_vm13 = vcmp.eq.f32.partialorder %v3274_v35, 8.507059e+37 }
 0x3a0   :  { %v3258_v29 = vsel %vm3257_vm9, %v6502_v63, %v3254_v24  ;;  %6511 = vrcp.f32 %v2560_v42  ;;  %v3319_v2 = vand.u32 2147483647, %v2560_v42  ;;  %v3321_v20 = vand.u32 2147483648, %v2560_v42 }
 0x3a1   :  { %v3263_v0 = vsel %vm3260_vm10, %v3262_v61, %v3258_v29  ;;  %v6508_v1 = vpop.eup %6507  ;;  %6513 = vpow2.f32 %v5876_v18  ;;  %vm3315_vm15 = vweird.f32 %v2560_v42 }
 0x3a2   :  { %v3580_v4 = vmul.f32 1.002, %v3263_v0  ;;  %v3266_v39 = vmul.f32 %v6508_v1, %v2557_v10  ;;  %v6510_v38 = vpop.eup %6509  ;;  %v2280_v36 = vpop.f32.mrf.mxu3  ;;  %vm3271_vm8 = vweird.f32 %v6508_v1  ;;  %vm3320_vm2 = vcmp.eq.f32.partialorder %v3319_v2, 8.507059e+37 }
 0x3a3   :  { %v11561_v47 = vadd.f32 1.0, %v6510_v38  ;;  %v2281_v32 = vadd.f32 %v11311_v55, %v2280_v36  ;;  %vm3272_vm12 = vmor %vm3270_vm11, %vm3271_vm8  ;;  %v3322_v54 = vor.u32 1.1754944e-38, %v3321_v20 }
 0x3a4   :  { %v5935_v43 = vadd.f32 -0.001, %v3580_v4  ;;  %v3267_v59 = vsub.f32 1.0, %v3266_v39 }
 0x3a5   :  { %6515 = vrcp.f32 %v11561_v47  ;;  %v5877_v46 = vmul.f32 -1.442695, %v2281_v32  ;;  %v3289_v50 = vand.u32 2147483647, %v11561_v47  ;;  %v3291_v14 = vand.u32 2147483648, %v11561_v47 }
 0x3a6   :  { %3709 = vst.msk [vmem:[%s11702_s12 + $0x168] sm:$0xff] %vm3663_vm7, %v5935_v43  ;;  %v3268_v58 = vmul.f32 %v6508_v1, %v3267_v59  ;;  %v6512_v52 = vpop.eup %6511  ;;  %6517 = vpow2.f32 %v5874_v3  ;;  %vm3285_vm4 = vweird.f32 %v11561_v47 }
 0x3a7   :  { %v6514_v17 = vpop.eup %6513  ;;  %v3311_v31 = vmul.f32 %v6512_v52, %v2560_v42  ;;  %vm3316_vm14 = vweird.f32 %v6512_v52  ;;  %vm3290_vm0 = vcmp.eq.f32.partialorder %v3289_v50, 8.507059e+37  ;;  %v3292_v44 = vor.u32 1.1754944e-38, %v3291_v14 }
 0x3a8   :  { %v3269_v26 = vadd.f32 %v6508_v1, %v3268_v58  ;;  %v11569_v40 = vadd.f32 1.0, %v6514_v17  ;;  %vm3317_vm1 = vmor %vm3315_vm15, %vm3316_vm14 }
 0x3a9   :  { %v3312_v56 = vsub.f32 1.0, %v3311_v31 }
 0x3aa   :  { %v3273_v27 = vsel %vm3272_vm12, %v6508_v1, %v3269_v26  ;;  %6519 = vrcp.f32 %v11569_v40  ;;  %v2283_v37 = vpop.f32.mrf.mxu3  ;;  %v3334_v24 = vand.u32 2147483647, %v11569_v40  ;;  %v3336_v62 = vand.u32 2147483648, %v11569_v40 }
 0x3ab   :  { %v3278_v6 = vsel %vm3275_vm13, %v3277_v45, %v3273_v27  ;;  %v6516_v63 = vpop.eup %6515  ;;  %v3313_v53 = vmul.f32 %v6512_v52, %v3312_v56  ;;  %6521 = vpow2.f32 %v5877_v46  ;;  %v2284_v7 = vadd.f32 %v11311_v55, %v2283_v37 }
 0x3ac   :  { %v3581_v23 = vmul.f32 1.002, %v3278_v6  ;;  %v6518_v28 = vpop.eup %6517  ;;  %v3281_v41 = vmul.f32 %v6516_v63, %v11561_v47  ;;  %vm3286_vm3 = vweird.f32 %v6516_v63  ;;  %vm3330_vm9 = vweird.f32 %v11569_v40 }
 0x3ad   :  { %v3314_v33 = vadd.f32 %v6512_v52, %v3313_v53  ;;  %v11573_v21 = vadd.f32 1.0, %v6518_v28  ;;  %v5878_v34 = vmul.f32 -1.442695, %v2284_v7  ;;  %vm3287_vm5 = vmor %vm3285_vm4, %vm3286_vm3  ;;  %vm3335_vm8 = vcmp.eq.f32.partialorder %v3334_v24, 8.507059e+37 }
 0x3ae   :  { %v5936_v48 = vadd.f32 -0.001, %v3581_v23  ;;  %v3282_v12 = vsub.f32 1.0, %v3281_v41  ;;  %v3337_v43 = vor.u32 1.1754944e-38, %v3336_v62 }
 0x3af   :  { %v3318_v49 = vsel %vm3317_vm1, %v6512_v52, %v3314_v33  ;;  %6523 = vrcp.f32 %v11573_v21  ;;  %v3306_v47 = vand.u32 2147483648, %v11573_v21  ;;  %v3304_v35 = vand.u32 2147483647, %v11573_v21 }
 0x3b0   :  { %3710 = vst.msk [vmem:[%s11702_s12 + $0x170] sm:$0xff] %vm3663_vm7, %v5936_v48  ;;  %v6520_v19 = vpop.eup %6519  ;;  %v3323_v13 = vsel %vm3320_vm2, %v3322_v54, %v3318_v49  ;;  %v3283_v10 = vmul.f32 %v6516_v63, %v3282_v12  ;;  %6525 = vpow2.f32 %v5878_v34  ;;  %vm3300_vm12 = vweird.f32 %v11573_v21 }
 0x3b1   :  { %v6522_v51 = vpop.eup %6521  ;;  %v3584_v25 = vmul.f32 1.002, %v3323_v13  ;;  %v3326_v15 = vmul.f32 %v6520_v19, %v11569_v40  ;;  %vm3331_vm6 = vweird.f32 %v6520_v19  ;;  %v3307_v45 = vor.u32 1.1754944e-38, %v3306_v47 }
 0x3b2   :  { %v3284_v9 = vadd.f32 %v6516_v63, %v3283_v10  ;;  %v11585_v5 = vadd.f32 1.0, %v6522_v51  ;;  %v2286_v30 = vpop.f32.mrf.mxu3  ;;  %vm3332_vm10 = vmor %vm3330_vm9, %vm3331_vm6  ;;  %vm3305_vm14 = vcmp.eq.f32.partialorder %v3304_v35, 8.507059e+37 }
 0x3b3   :  { %v5939_v11 = vadd.f32 -0.001, %v3584_v25  ;;  %v3327_v8 = vsub.f32 1.0, %v3326_v15  ;;  %v2287_v18 = vadd.f32 %v11311_v55, %v2286_v30 }
 0x3b4   :  { %v3288_v60 = vsel %vm3287_vm5, %v6516_v63, %v3284_v9  ;;  %6527 = vrcp.f32 %v11585_v5  ;;  %v3349_v56 = vand.u32 2147483647, %v11585_v5  ;;  %v3351_v6 = vand.u32 2147483648, %v11585_v5 }
 0x3b5   :  { %v6524_v61 = vpop.eup %6523  ;;  %3713 = vst.msk [vmem:[%s11702_s12 + $0x188] sm:$0xff] %vm3663_vm7, %v5939_v11  ;;  %v3293_v29 = vsel %vm3290_vm0, %v3292_v44, %v3288_v60  ;;  %v3328_v42 = vmul.f32 %v6520_v19, %v3327_v8  ;;  %v5879_v4 = vmul.f32 -1.442695, %v2287_v18  ;;  %vm3345_vm1 = vweird.f32 %v11585_v5 }
 0x3b6   :  { %v3582_v0 = vmul.f32 1.002, %v3293_v29  ;;  %v3296_v57 = vmul.f32 %v6524_v61, %v11573_v21  ;;  %v6526_v39 = vpop.eup %6525  ;;  %vm3301_vm11 = vweird.f32 %v6524_v61  ;;  %v3352_v33 = vor.u32 1.1754944e-38, %v3351_v6 }
 0x3b7   :  { %v3329_v1 = vadd.f32 %v6520_v19, %v3328_v42  ;;  %v11598_v22 = vadd.f32 1.0, %v6526_v39  ;;  %6529 = vpow2.f32 %v5879_v4  ;;  %vm3302_vm13 = vmor %vm3300_vm12, %vm3301_vm11  ;;  %vm3350_vm3 = vcmp.eq.f32.partialorder %v3349_v56, 8.507059e+37 }
 0x3b8   :  { %v5937_v38 = vadd.f32 -0.001, %v3582_v0  ;;  %v3297_v16 = vsub.f32 1.0, %v3296_v57 }
 0x3b9   :  { %v3333_v59 = vsel %vm3332_vm10, %v6520_v19, %v3329_v1  ;;  %6531 = vrcp.f32 %v11598_v22  ;;  %v3366_v14 = vand.u32 2147483648, %v11598_v22  ;;  %v3364_v10 = vand.u32 2147483647, %v11598_v22 }
 0x3ba   :  { %v6528_v3 = vpop.eup %6527  ;;  %3711 = vst.msk [vmem:[%s11702_s12 + $0x178] sm:$0xff] %vm3663_vm7, %v5937_v38  ;;  %v3338_v36 = vsel %vm3335_vm8, %v3337_v43, %v3333_v59  ;;  %v3298_v58 = vmul.f32 %v6524_v61, %v3297_v16  ;;  %v2289_v26 = vpop.f32.mrf.mxu3  ;;  %vm3360_vm5 = vweird.f32 %v11598_v22 }
 0x3bb   :  { %v3585_v52 = vmul.f32 1.002, %v3338_v36  ;;  %v3341_v32 = vmul.f32 %v6528_v3, %v11585_v5  ;;  %v2290_v46 = vadd.f32 %v11311_v55, %v2289_v26  ;;  %vm3346_vm15 = vweird.f32 %v6528_v3 }
 0x3bc   :  { %v3299_v17 = vadd.f32 %v6524_v61, %v3298_v58  ;;  %vm3347_vm2 = vmor %vm3345_vm1, %vm3346_vm15  ;;  %v3367_v11 = vor.u32 1.1754944e-38, %v3366_v14  ;;  %vm3365_vm6 = vcmp.eq.f32.partialorder %v3364_v10, 8.507059e+37 }
 0x3bd   :  { %v5940_v31 = vadd.f32 -0.001, %v3585_v52  ;;  %v3342_v40 = vsub.f32 1.0, %v3341_v32  ;;  %v6530_v2 = vpop.eup %6529  ;;  %v5880_v23 = vmul.f32 -1.442695, %v2290_v46 }
 0x3be   :  { %v3303_v27 = vsel %vm3302_vm13, %v6524_v61, %v3299_v17  ;;  %v2564_v28 = vadd.f32 1.0, %v6530_v2 }
 0x3bf   :  { %3714 = vst.msk [vmem:[%s11702_s12 + $0x190] sm:$0xff] %vm3663_vm7, %v5940_v31  ;;  %v3308_v20 = vsel %vm3305_vm14, %v3307_v45, %v3303_v27  ;;  %v3343_v63 = vmul.f32 %v6528_v3, %v3342_v40  ;;  %v6532_v41 = vpop.eup %6531  ;;  %6533 = vpow2.f32 %v5880_v23 }
 0x3c0   :  { %v3583_v53 = vmul.f32 1.002, %v3308_v20  ;;  %v3356_v21 = vmul.f32 %v6532_v41, %v11598_v22  ;;  %6535 = vrcp.f32 %v2564_v28  ;;  %vm3361_vm4 = vweird.f32 %v6532_v41 }
 0x3c1   :  { %v3344_v37 = vadd.f32 %v6528_v3, %v3343_v63  ;;  %vm3362_vm0 = vmor %vm3360_vm5, %vm3361_vm4  ;;  %v3381_v30 = vand.u32 2147483648, %v2564_v28  ;;  %v3379_v42 = vand.u32 2147483647, %v2564_v28  ;;  %vm3375_vm10 = vweird.f32 %v2564_v28 }
 0x3c2   :  { %v5938_v48 = vadd.f32 -0.001, %v3583_v53  ;;  %v3357_v7 = vsub.f32 1.0, %v3356_v21  ;;  %v2292_v49 = vpop.f32.mrf.mxu3 }
 0x3c3   :  { %v3348_v54 = vsel %vm3347_vm2, %v6528_v3, %v3344_v37  ;;  %v2293_v19 = vadd.f32 %v11311_v55, %v2292_v49  ;;  %v3382_v38 = vor.u32 1.1754944e-38, %v3381_v30  ;;  %vm3380_vm11 = vcmp.eq.f32.partialorder %v3379_v42, 8.507059e+37  ;;  %v11642_v37 = vld [vmem:[%s11696_s6] ss:$0 sm:$0xff] }
 0x3c4   :  { %3712 = vst.msk [vmem:[%s11702_s12 + $0x180] sm:$0xff] %vm3663_vm7, %v5938_v48  ;;  %v3353_v12 = vsel %vm3350_vm3, %v3352_v33, %v3348_v54  ;;  %v3358_v13 = vmul.f32 %v6532_v41, %v3357_v7 }
 0x3c5   :  { %v3586_v50 = vmul.f32 1.002, %v3353_v12  ;;  %v6534_v34 = vpop.eup %6533  ;;  %v5881_v25 = vmul.f32 -1.442695, %v2293_v19 }
 0x3c6   :  { %v6536_v15 = vpop.eup %6535  ;;  %v3359_v9 = vadd.f32 %v6532_v41, %v3358_v13  ;;  %v2565_v5 = vadd.f32 1.0, %v6534_v34 }
 0x3c7   :  { %v5941_v51 = vadd.f32 -0.001, %v3586_v50  ;;  %v3371_v44 = vmul.f32 %v6536_v15, %v2564_v28  ;;  %6537 = vpow2.f32 %v5881_v25  ;;  %vm3376_vm9 = vweird.f32 %v6536_v15 }
 0x3c8   :  { %v3363_v8 = vsel %vm3362_vm0, %v6532_v41, %v3359_v9  ;;  %6539 = vrcp.f32 %v2565_v5  ;;  %vm3377_vm8 = vmor %vm3375_vm10, %vm3376_vm9  ;;  %v3394_v36 = vand.u32 2147483647, %v2565_v5  ;;  %v3396_v58 = vand.u32 2147483648, %v2565_v5 }
 0x3c9   :  { %3715 = vst.msk [vmem:[%s11702_s12 + $0x198] sm:$0xff] %vm3663_vm7, %v5941_v51  ;;  %v3368_v60 = vsel %vm3365_vm6, %v3367_v11, %v3363_v8  ;;  %v3372_v24 = vsub.f32 1.0, %v3371_v44  ;;  %vm3390_vm13 = vweird.f32 %v2565_v5 }
 0x3ca   :  { %v3587_v62 = vmul.f32 1.002, %v3368_v60  ;;  %v2295_v61 = vpop.f32.mrf.mxu3  ;;  %v3397_v46 = vor.u32 1.1754944e-38, %v3396_v58  ;;  %vm3395_vm15 = vcmp.eq.f32.partialorder %v3394_v36, 8.507059e+37 }
 0x3cb   :  { %v3373_v29 = vmul.f32 %v6536_v15, %v3372_v24  ;;  %v2296_v18 = vadd.f32 %v11311_v55, %v2295_v61 }
 0x3cc   :  { %v5942_v0 = vadd.f32 -0.001, %v3587_v62 }
 0x3cd   :  { %v6538_v57 = vpop.eup %6537  ;;  %v3374_v1 = vadd.f32 %v6536_v15, %v3373_v29  ;;  %v5882_v4 = vmul.f32 -1.442695, %v2296_v18 }
 0x3ce   :  { %v6540_v39 = vpop.eup %6539  ;;  %3716 = vst.msk [vmem:[%s11702_s12 + $0x1a0] sm:$0xff] %vm3663_vm7, %v5942_v0  ;;  %v2566_v43 = vadd.f32 1.0, %v6538_v57 }
 0x3cf   :  { %v3378_v16 = vsel %vm3377_vm8, %v6536_v15, %v3374_v1  ;;  %v3386_v59 = vmul.f32 %v6540_v39, %v2565_v5  ;;  %6541 = vpow2.f32 %v5882_v4  ;;  %vm3391_vm12 = vweird.f32 %v6540_v39 }
 0x3d0   :  { %v3383_v47 = vsel %vm3380_vm11, %v3382_v38, %v3378_v16  ;;  %6543 = vrcp.f32 %v2566_v43  ;;  %vm3392_vm14 = vmor %vm3390_vm13, %vm3391_vm12  ;;  %v3409_v63 = vand.u32 2147483647, %v2566_v43  ;;  %v3411_v23 = vand.u32 2147483648, %v2566_v43 }
 0x3d1   :  { %v3588_v22 = vmul.f32 1.002, %v3383_v47  ;;  %v3387_v3 = vsub.f32 1.0, %v3386_v59  ;;  %vm3405_vm2 = vweird.f32 %v2566_v43 }
 0x3d2   :  { %v2298_v35 = vpop.f32.mrf.mxu3  ;;  %v3412_v7 = vor.u32 1.1754944e-38, %v3411_v23  ;;  %vm3410_vm4 = vcmp.eq.f32.partialorder %v3409_v63, 8.507059e+37 }
 0x3d3   :  { %v5943_v52 = vadd.f32 -0.001, %v3588_v22  ;;  %v3388_v32 = vmul.f32 %v6540_v39, %v3387_v3  ;;  %v2299_v17 = vadd.f32 %v11311_v55, %v2298_v35 }
 0x3d5   :  { %v6542_v26 = vpop.eup %6541  ;;  %3717 = vst.msk [vmem:[%s11702_s12 + $0x1a8] sm:$0xff] %vm3663_vm7, %v5943_v52  ;;  %v3389_v31 = vadd.f32 %v6540_v39, %v3388_v32  ;;  %v5883_v45 = vmul.f32 -1.442695, %v2299_v17 }
 0x3d6   :  { %v6544_v40 = vpop.eup %6543  ;;  %v2567_v27 = vadd.f32 1.0, %v6542_v26 }
 0x3d7   :  { %v3393_v56 = vsel %vm3392_vm14, %v6540_v39, %v3389_v31  ;;  %v3401_v6 = vmul.f32 %v6544_v40, %v2566_v43  ;;  %6545 = vpow2.f32 %v5883_v45  ;;  %vm3406_vm1 = vweird.f32 %v6544_v40 }
 0x3d8   :  { %v3398_v2 = vsel %vm3395_vm15, %v3397_v46, %v3393_v56  ;;  %6547 = vrcp.f32 %v2567_v27  ;;  %vm3407_vm3 = vmor %vm3405_vm2, %vm3406_vm1  ;;  %v3424_v34 = vand.u32 2147483647, %v2567_v27  ;;  %v3426_v51 = vand.u32 2147483648, %v2567_v27 }
 0x3d9   :  { %v3589_v55 = vmul.f32 1.002, %v3398_v2  ;;  %v3402_v20 = vsub.f32 1.0, %v3401_v6  ;;  %vm3420_vm0 = vweird.f32 %v2567_v27 }
 0x3da   :  { %v2301_v53 = vpop.f32.mrf.mxu3  ;;  %v3427_v24 = vor.u32 1.1754944e-38, %v3426_v51  ;;  %vm3425_vm9 = vcmp.eq.f32.partialorder %v3424_v34, 8.507059e+37 }
 0x3db   :  { %v5944_v28 = vadd.f32 -0.001, %v3589_v55  ;;  %v3403_v41 = vmul.f32 %v6544_v40, %v3402_v20  ;;  %v2302_v48 = vadd.f32 %v11642_v37, %v2301_v53 }
 0x3dd   :  { %v6546_v33 = vpop.eup %6545  ;;  %3718 = vst.msk [vmem:[%s11702_s12 + $0x1b0] sm:$0xff] %vm3663_vm7, %v5944_v28  ;;  %v3404_v21 = vadd.f32 %v6544_v40, %v3403_v41  ;;  %v5884_v54 = vmul.f32 -1.442695, %v2302_v48 }
 0x3de   :  { %v6548_v12 = vpop.eup %6547  ;;  %v2568_v49 = vadd.f32 1.0, %v6546_v33 }
 0x3df   :  { %v3408_v50 = vsel %vm3407_vm3, %v6544_v40, %v3404_v21  ;;  %v3416_v14 = vmul.f32 %v6548_v12, %v2567_v27  ;;  %6549 = vpow2.f32 %v5884_v54  ;;  %vm3421_vm5 = vweird.f32 %v6548_v12 }
 0x3e0   :  { %v3413_v19 = vsel %vm3410_vm4, %v3412_v7, %v3408_v50  ;;  %6551 = vrcp.f32 %v2568_v49  ;;  %vm3422_vm6 = vmor %vm3420_vm0, %vm3421_vm5  ;;  %v3439_v0 = vand.u32 2147483647, %v2568_v49  ;;  %v3441_v57 = vand.u32 2147483648, %v2568_v49 }
 0x3e1   :  { %v3590_v13 = vmul.f32 1.002, %v3413_v19  ;;  %v3417_v10 = vsub.f32 1.0, %v3416_v14  ;;  %vm3435_vm8 = vweird.f32 %v2568_v49 }
 0x3e2   :  { %v2304_v25 = vpop.f32.mrf.mxu3  ;;  %v3442_v22 = vor.u32 1.1754944e-38, %v3441_v57  ;;  %vm3440_vm12 = vcmp.eq.f32.partialorder %v3439_v0, 8.507059e+37 }
 0x3e3   :  { %v5945_v15 = vadd.f32 -0.001, %v3590_v13  ;;  %v3418_v9 = vmul.f32 %v6548_v12, %v3417_v10  ;;  %v2305_v5 = vadd.f32 %v11642_v37, %v2304_v25 }
 0x3e5   :  { %v6550_v11 = vpop.eup %6549  ;;  %3719 = vst.msk [vmem:[%s11702_s12 + $0x1b8] sm:$0xff] %vm3663_vm7, %v5945_v15  ;;  %v3419_v44 = vadd.f32 %v6548_v12, %v3418_v9  ;;  %v5885_v8 = vmul.f32 -1.442695, %v2305_v5 }
 0x3e6   :  { %v6552_v60 = vpop.eup %6551  ;;  %v2569_v62 = vadd.f32 1.0, %v6550_v11 }
 0x3e7   :  { %v3423_v30 = vsel %vm3422_vm6, %v6548_v12, %v3419_v44  ;;  %v3431_v61 = vmul.f32 %v6552_v60, %v2568_v49  ;;  %6553 = vpow2.f32 %v5885_v8  ;;  %vm3436_vm10 = vweird.f32 %v6552_v60 }
 0x3e8   :  { %v3428_v29 = vsel %vm3425_vm9, %v3427_v24, %v3423_v30  ;;  %6555 = vrcp.f32 %v2569_v62  ;;  %vm3437_vm11 = vmor %vm3435_vm8, %vm3436_vm10  ;;  %v3454_v17 = vand.u32 2147483647, %v2569_v62  ;;  %v3456_v26 = vand.u32 2147483648, %v2569_v62 }
 0x3e9   :  { %v3591_v42 = vmul.f32 1.002, %v3428_v29  ;;  %v3432_v18 = vsub.f32 1.0, %v3431_v61  ;;  %vm3450_vm14 = vweird.f32 %v2569_v62 }
 0x3ea   :  { %v2307_v1 = vpop.f32.mrf.mxu3  ;;  %v3457_v55 = vor.u32 1.1754944e-38, %v3456_v26  ;;  %vm3455_vm1 = vcmp.eq.f32.partialorder %v3454_v17, 8.507059e+37 }
 0x3eb   :  { %v5946_v4 = vadd.f32 -0.001, %v3591_v42  ;;  %v3433_v39 = vmul.f32 %v6552_v60, %v3432_v18  ;;  %v2308_v38 = vadd.f32 %v11642_v37, %v2307_v1 }
 0x3ed   :  { %v6554_v43 = vpop.eup %6553  ;;  %3720 = vst.msk [vmem:[%s11702_s12 + $0x1c0] sm:$0xff] %vm3663_vm7, %v5946_v4  ;;  %v3434_v16 = vadd.f32 %v6552_v60, %v3433_v39  ;;  %v5886_v59 = vmul.f32 -1.442695, %v2308_v38 }
 0x3ee   :  { %v6556_v47 = vpop.eup %6555  ;;  %v2570_v3 = vadd.f32 1.0, %v6554_v43 }
 0x3ef   :  { %v3438_v36 = vsel %vm3437_vm11, %v6552_v60, %v3434_v16  ;;  %v3446_v58 = vmul.f32 %v6556_v47, %v2569_v62  ;;  %6557 = vpow2.f32 %v5886_v59  ;;  %vm3451_vm13 = vweird.f32 %v6556_v47 }
 0x3f0   :  { %v3443_v35 = vsel %vm3440_vm12, %v3442_v22, %v3438_v36  ;;  %6559 = vrcp.f32 %v2570_v3  ;;  %vm3452_vm15 = vmor %vm3450_vm14, %vm3451_vm13  ;;  %v3469_v48 = vand.u32 2147483647, %v2570_v3  ;;  %v3471_v33 = vand.u32 2147483648, %v2570_v3 }
 0x3f1   :  { %v3592_v52 = vmul.f32 1.002, %v3443_v35  ;;  %v3447_v32 = vsub.f32 1.0, %v3446_v58  ;;  %vm3465_vm3 = vweird.f32 %v2570_v3 }
 0x3f2   :  { %v2310_v31 = vpop.f32.mrf.mxu3  ;;  %v3472_v13 = vor.u32 1.1754944e-38, %v3471_v33  ;;  %vm3470_vm5 = vcmp.eq.f32.partialorder %v3469_v48, 8.507059e+37 }
 0x3f3   :  { %v5947_v45 = vadd.f32 -0.001, %v3592_v52  ;;  %v3448_v40 = vmul.f32 %v6556_v47, %v3447_v32  ;;  %v2311_v46 = vadd.f32 %v11642_v37, %v2310_v31 }
 0x3f5   :  { %v6558_v27 = vpop.eup %6557  ;;  %3721 = vst.msk [vmem:[%s11702_s12 + $0x1c8] sm:$0xff] %vm3663_vm7, %v5947_v45  ;;  %v3449_v56 = vadd.f32 %v6556_v47, %v3448_v40  ;;  %v5887_v6 = vmul.f32 -1.442695, %v2311_v46 }
 0x3f6   :  { %v6560_v2 = vpop.eup %6559  ;;  %v2571_v20 = vadd.f32 1.0, %v6558_v27 }
 0x3f7   :  { %v3453_v63 = vsel %vm3452_vm15, %v6556_v47, %v3449_v56  ;;  %v3461_v23 = vmul.f32 %v6560_v2, %v2570_v3  ;;  %6561 = vpow2.f32 %v5887_v6  ;;  %vm3466_vm2 = vweird.f32 %v6560_v2 }
 0x3f8   :  { %v3458_v53 = vsel %vm3455_vm1, %v3457_v55, %v3453_v63  ;;  %6563 = vrcp.f32 %v2571_v20  ;;  %vm3467_vm4 = vmor %vm3465_vm3, %vm3466_vm2  ;;  %v3484_v5 = vand.u32 2147483647, %v2571_v20  ;;  %v3486_v11 = vand.u32 2147483648, %v2571_v20 }
 0x3f9   :  { %v3593_v28 = vmul.f32 1.002, %v3458_v53  ;;  %v3462_v41 = vsub.f32 1.0, %v3461_v23  ;;  %vm3480_vm6 = vweird.f32 %v2571_v20 }
 0x3fa   :  { %v2313_v21 = vpop.f32.mrf.mxu3  ;;  %v3487_v42 = vor.u32 1.1754944e-38, %v3486_v11  ;;  %vm3485_vm10 = vcmp.eq.f32.partialorder %v3484_v5, 8.507059e+37 }
 0x3fb   :  { %v5948_v54 = vadd.f32 -0.001, %v3593_v28  ;;  %v3463_v12 = vmul.f32 %v6560_v2, %v3462_v41  ;;  %v2314_v7 = vadd.f32 %v11642_v37, %v2313_v21 }
 0x3fd   :  { %v6562_v49 = vpop.eup %6561  ;;  %3722 = vst.msk [vmem:[%s11702_s12 + $0x1d0] sm:$0xff] %vm3663_vm7, %v5948_v54  ;;  %v3464_v50 = vadd.f32 %v6560_v2, %v3463_v12  ;;  %v5888_v14 = vmul.f32 -1.442695, %v2314_v7 }
 0x3fe   :  { %v6564_v19 = vpop.eup %6563  ;;  %v2572_v10 = vadd.f32 1.0, %v6562_v49 }
 0x3ff   :  { %v3468_v34 = vsel %vm3467_vm4, %v6560_v2, %v3464_v50  ;;  %v3476_v51 = vmul.f32 %v6564_v19, %v2571_v20  ;;  %6565 = vpow2.f32 %v5888_v14  ;;  %vm3481_vm0 = vweird.f32 %v6564_v19 }
 0x400   :  { %v3473_v25 = vsel %vm3470_vm5, %v3472_v13, %v3468_v34  ;;  %6567 = vrcp.f32 %v2572_v10  ;;  %vm3482_vm9 = vmor %vm3480_vm6, %vm3481_vm0  ;;  %v3501_v39 = vand.u32 2147483648, %v2572_v10  ;;  %v3499_v16 = vand.u32 2147483647, %v2572_v10 }
 0x401   :  { %v3594_v15 = vmul.f32 1.002, %v3473_v25  ;;  %v3477_v9 = vsub.f32 1.0, %v3476_v51  ;;  %vm3495_vm11 = vweird.f32 %v2572_v10 }
 0x402   :  { %v2316_v44 = vpop.f32.mrf.mxu3  ;;  %v3502_v3 = vor.u32 1.1754944e-38, %v3501_v39  ;;  %vm3500_vm13 = vcmp.eq.f32.partialorder %v3499_v16, 8.507059e+37 }
 0x403   :  { %v5949_v8 = vadd.f32 -0.001, %v3594_v15  ;;  %v3478_v60 = vmul.f32 %v6564_v19, %v3477_v9  ;;  %v2317_v24 = vadd.f32 %v11642_v37, %v2316_v44 }
 0x405   :  { %v6566_v62 = vpop.eup %6565  ;;  %3723 = vst.msk [vmem:[%s11702_s12 + $0x1d8] sm:$0xff] %vm3663_vm7, %v5949_v8  ;;  %v3479_v30 = vadd.f32 %v6564_v19, %v3478_v60  ;;  %v5889_v61 = vmul.f32 -1.442695, %v2317_v24 }
 0x406   :  { %v6568_v29 = vpop.eup %6567  ;;  %v2573_v18 = vadd.f32 1.0, %v6566_v62 }
 0x407   :  { %v3483_v0 = vsel %vm3482_vm9, %v6564_v19, %v3479_v30  ;;  %v3491_v57 = vmul.f32 %v6568_v29, %v2572_v10  ;;  %6569 = vpow2.f32 %v5889_v61  ;;  %vm3496_vm8 = vweird.f32 %v6568_v29 }
 0x408   :  { %v3488_v1 = vsel %vm3485_vm10, %v3487_v42, %v3483_v0  ;;  %6571 = vrcp.f32 %v2573_v18  ;;  %vm3497_vm12 = vmor %vm3495_vm11, %vm3496_vm8  ;;  %v3516_v26 = vand.u32 2147483648, %v2573_v18  ;;  %v3514_v40 = vand.u32 2147483647, %v2573_v18 }
 0x409   :  { %v3595_v37 = vmul.f32 1.002, %v3488_v1  ;;  %v3492_v4 = vsub.f32 1.0, %v3491_v57  ;;  %vm3510_vm15 = vweird.f32 %v2573_v18 }
 0x40a   :  { %v3517_v56 = vor.u32 1.1754944e-38, %v3516_v26  ;;  %vm3515_vm2 = vcmp.eq.f32.partialorder %v3514_v40, 8.507059e+37 }
 0x40b   :  { %v5950_v38 = vadd.f32 -0.001, %v3595_v37  ;;  %v3493_v43 = vmul.f32 %v6568_v29, %v3492_v4 }
 0x40d   :  { %v6570_v59 = vpop.eup %6569  ;;  %3724 = vst.msk [vmem:[%s11702_s12 + $0x1e0] sm:$0xff] %vm3663_vm7, %v5950_v38  ;;  %v3494_v47 = vadd.f32 %v6568_v29, %v3493_v43 }
 0x40e   :  { %v6572_v22 = vpop.eup %6571  ;;  %v2574_v36 = vadd.f32 1.0, %v6570_v59 }
 0x40f   :  { %v3498_v58 = vsel %vm3497_vm12, %v6568_v29, %v3494_v47  ;;  %v3506_v35 = vmul.f32 %v6572_v22, %v2573_v18  ;;  %vm3511_vm14 = vweird.f32 %v6572_v22 }
 0x410   :  { %v3503_v52 = vsel %vm3500_vm13, %v3502_v3, %v3498_v58  ;;  %6573 = vrcp.f32 %v2574_v36  ;;  %vm3512_vm1 = vmor %vm3510_vm15, %vm3511_vm14  ;;  %v3531_v23 = vand.u32 2147483648, %v2574_v36  ;;  %v3529_v41 = vand.u32 2147483647, %v2574_v36 }
 0x411   :  { %v3596_v32 = vmul.f32 1.002, %v3503_v52  ;;  %v3507_v17 = vsub.f32 1.0, %v3506_v35  ;;  %vm3525_vm4 = vweird.f32 %v2574_v36 }
 0x412   :  { %v3532_v33 = vor.u32 1.1754944e-38, %v3531_v23  ;;  %vm3530_vm0 = vcmp.eq.f32.partialorder %v3529_v41, 8.507059e+37 }
 0x413   :  { %v5951_v31 = vadd.f32 -0.001, %v3596_v32  ;;  %v3508_v45 = vmul.f32 %v6572_v22, %v3507_v17 }
 0x415   :  { %3725 = vst.msk [vmem:[%s11702_s12 + $0x1e8] sm:$0xff] %vm3663_vm7, %v5951_v31  ;;  %v3509_v46 = vadd.f32 %v6572_v22, %v3508_v45 }
 0x416   :  { %v6574_v27 = vpop.eup %6573 }
 0x417   :  { %v3513_v6 = vsel %vm3512_vm1, %v6572_v22, %v3509_v46  ;;  %v3521_v2 = vmul.f32 %v6574_v27, %v2574_v36  ;;  %vm3526_vm3 = vweird.f32 %v6574_v27 }
 0x418   :  { %v3518_v55 = vsel %vm3515_vm2, %v3517_v56, %v3513_v6  ;;  %vm3527_vm5 = vmor %vm3525_vm4, %vm3526_vm3 }
 0x419   :  { %v3597_v20 = vmul.f32 1.002, %v3518_v55  ;;  %v3522_v63 = vsub.f32 1.0, %v3521_v2 }
 0x41b   :  { %v5952_v53 = vadd.f32 -0.001, %v3597_v20  ;;  %v3523_v28 = vmul.f32 %v6574_v27, %v3522_v63 }
 0x41d   :  { %3726 = vst.msk [vmem:[%s11702_s12 + $0x1f0] sm:$0xff] %vm3663_vm7, %v5952_v53  ;;  %v3524_v48 = vadd.f32 %v6574_v27, %v3523_v28 }
 0x41f   :  { %v3528_v21 = vsel %vm3527_vm5, %v6574_v27, %v3524_v48 }
 0x420   :  { %v3533_v54 = vsel %vm3530_vm0, %v3532_v33, %v3528_v21 }
 0x421   :  { %v3598_v12 = vmul.f32 1.002, %v3533_v54 }
 0x423   :  { %v5953_v7 = vadd.f32 -0.001, %v3598_v12 }
 0x425   :  { %3727 = vst.msk [vmem:[%s11702_s12 + $0x1f8] sm:$0xff] %vm3663_vm7, %v5953_v7 }
 0x426   :  { %5425 = vsyncpa [#allocation4], 1 }

</bundles_post_ra>
